<compile_context>
chip_gen: v7x
topology: tpu7x:2x2x1
jax: 0.10.0
libtpu: 0.0.40
codegen_flags: <defaults>
</compile_context>

<pallas_src>
import functools

import numpy as np
import jax
import jax.numpy as jnp
from jax.experimental import pallas as pl
from jax.experimental.pallas import tpu as pltpu


# ----------------------------------------------------------------------------
# Fused classifier-head kernel
#   grid = (B,)  -- one batch element per grid step
#   per level lvl in 0..3:
#     m   = w_lvl (1,C) @ f_lvl (C,P) + b_lvl       (1x1 conv, lane-dense map)
#     lg  = mean_P(m)                                (GAP logit)
#     r   = m (1,P) @ kron(Ah,Aw)^T (P, H*W)         (bilinear upsample, lane-dense)
#   mecam = 0.25 * (r1 + r2 + r3 + r4)  from locals (no output-ref re-read)
# ----------------------------------------------------------------------------
def _head_kernel(f1, f2, f3, f4,
                 w1, w2, w3, w4,
                 a1, a2, a3, a4,
                 bias_ref,
                 lg1, lg2, lg3, lg4,
                 r1, r2, r3, r4,
                 mecam_ref):
    fs = (f1, f2, f3, f4)
    ws = (w1, w2, w3, w4)
    As = (a1, a2, a3, a4)
    lg_refs = (lg1, lg2, lg3, lg4)
    r_refs = (r1, r2, r3, r4)

    acc = None
    for lvl in range(4):                                   # 4 levels, static unroll
        f = fs[lvl][0]                                     # (C, P)
        m = jnp.dot(ws[lvl][...], f,
                    preferred_element_type=jnp.float32)    # (1, P)  1x1 conv
        m = m + bias_ref[lvl]                              # scalar bias from SMEM
        lg_refs[lvl][0] = jnp.mean(m, axis=1, keepdims=True)   # (1, 1) GAP logit
        r = jnp.dot(m, As[lvl][...],
                    preferred_element_type=jnp.float32)    # (1, H*W) upsampled CAM
        r_refs[lvl][0] = r
        acc = r if acc is None else acc + r
    mecam_ref[0] = acc * 0.25


def classifier_head(feats, ic_w, ic_b, interp_mats, H, W):
    B = feats[0].shape[0]
    HW = H * W

    in_arrays, in_specs = [], []
    for f in feats:                                        # (B, C, Hf, Wf) NCHW
        _, C, Hf, Wf = f.shape
        P = Hf * Wf
        in_arrays.append(f.reshape(B, C, P))               # free trailing-dim merge
        in_specs.append(pl.BlockSpec((1, C, P), lambda b: (b, 0, 0)))
    for w in ic_w:                                         # (1, C) weight-on-left
        in_arrays.append(w)
        in_specs.append(pl.BlockSpec(w.shape, lambda b: (0, 0)))
    for A in interp_mats:                                  # (P, H*W) kron interp
        in_arrays.append(A)
        in_specs.append(pl.BlockSpec(A.shape, lambda b: (0, 0)))
    in_arrays.append(ic_b)                                 # (4,) biases -> SMEM
    in_specs.append(pl.BlockSpec(memory_space=pltpu.MemorySpace.SMEM))

    out_shape = ([jax.ShapeDtypeStruct((B, 1, 1), jnp.float32)] * 4
                 + [jax.ShapeDtypeStruct((B, 1, HW), jnp.float32)] * 5)
    out_specs = ([pl.BlockSpec((1, 1, 1), lambda b: (b, 0, 0))] * 4
                 + [pl.BlockSpec((1, 1, HW), lambda b: (b, 0, 0))] * 5)

    outs = pl.pallas_call(
        _head_kernel,
        grid=(B,),
        in_specs=in_specs,
        out_specs=out_specs,
        out_shape=out_shape,
        compiler_params=pltpu.CompilerParams(
            dimension_semantics=("parallel",)),            # 2nd TC on v7x
    )(*in_arrays)

    logits_collect = [lg.reshape(B, 1) for lg in outs[:4]]
    map_collect = [r.reshape(B, 1, H, W) for r in outs[4:8]]
    MECAM_map = outs[8].reshape(B, 1, H, W)
    return logits_collect, map_collect, MECAM_map


# ----------------------------------------------------------------------------
# Bilinear-interp matrices (PyTorch align_corners=False), hoisted & cached.
# ----------------------------------------------------------------------------
def _interp_matrix_np(out_size, in_size):
    scale = in_size / out_size
    A = np.zeros((out_size, in_size), np.float32)
    for i in range(out_size):
        src = max((i + 0.5) * scale - 0.5, 0.0)
        i0 = min(int(np.floor(src)), in_size - 1)
        i1 = min(i0 + 1, in_size - 1)
        lam = src - i0
        A[i, i0] += 1.0 - lam
        A[i, i1] += lam
    return A


@functools.lru_cache(maxsize=None)
def _head_interp_mats(H, W, feat_hw):
    mats = []
    for hf, wf in feat_hw:
        Ah = _interp_matrix_np(H, hf)                    # (H, hf)
        Aw = _interp_matrix_np(W, wf)                    # (W, wf)
        mats.append(jnp.asarray(np.kron(Ah, Aw).T))      # (hf*wf, H*W)
    return tuple(mats)


# ----------------------------------------------------------------------------
# Stand-in backbone (ResNet50 definition not provided in source) -- plain JAX.
# ----------------------------------------------------------------------------
def _conv2d(x, w, stride):
    return jax.lax.conv_general_dilated(
        x, w, window_strides=(stride, stride), padding='SAME',
        dimension_numbers=('NCHW', 'OIHW', 'NCHW'))


def _instance_norm(x, eps=1e-5):
    mean = jnp.mean(x, axis=(2, 3), keepdims=True)
    var = jnp.var(x, axis=(2, 3), keepdims=True)
    return (x - mean) / jnp.sqrt(var + eps)


def backbone_forward(x, p):
    h = jax.nn.relu(_instance_norm(_conv2d(x, p['stem'], 2)))    # /2,   64
    l1 = jax.nn.relu(_instance_norm(_conv2d(h, p['c1'], 2)))     # /4,  256
    l2 = jax.nn.relu(_instance_norm(_conv2d(l1, p['c2'], 2)))    # /8,  512
    l3 = jax.nn.relu(_instance_norm(_conv2d(l2, p['c3'], 2)))    # /16, 1024
    l4 = jax.nn.relu(_instance_norm(_conv2d(l3, p['c4'], 2)))    # /32, 2048
    return l1, l2, l3, l4


def init_params(key):
    ks = jax.random.split(key, 9)

    def he(k, shape):
        fan_in = shape[1] * shape[2] * shape[3]
        return (jax.random.normal(k, shape, jnp.float32)
                * jnp.sqrt(2.0 / fan_in))

    backbone = {
        'stem': he(ks[0], (64, 3, 3, 3)),
        'c1':   he(ks[1], (256, 64, 3, 3)),
        'c2':   he(ks[2], (512, 256, 1, 1)),
        'c3':   he(ks[3], (1024, 512, 1, 1)),
        'c4':   he(ks[4], (2048, 1024, 1, 1)),
    }
    ic_w = []
    for lvl, cin in enumerate((256, 512, 1024, 2048)):
        ic_w.append(jax.random.normal(ks[5 + lvl], (1, cin), jnp.float32) * 0.02)
    ic_b = jnp.asarray([0.01, 0.02, 0.03, 0.04], jnp.float32)
    return {'backbone': backbone, 'ic_w': ic_w, 'ic_b': ic_b}


# ----------------------------------------------------------------------------
# Forward pass (mirrors Res50_Classifier.forward)
# ----------------------------------------------------------------------------
def res50_classifier_forward(x, params):
    B, _, H, W = x.shape
    l1, l2, l3, l4 = backbone_forward(x, params['backbone'])
    # input_gray is computed in the PyTorch forward but never used in the outputs
    _input_gray = jnp.mean(x, axis=1, keepdims=True)

    feats = (l1, l2, l3, l4)
    feat_hw = tuple((int(f.shape[2]), int(f.shape[3])) for f in feats)
    interp_mats = _head_interp_mats(H, W, feat_hw)

    return classifier_head(feats, params['ic_w'], params['ic_b'],
                           interp_mats, H, W)


# ----------------------------------------------------------------------------
if __name__ == "__main__":
    key = jax.random.PRNGKey(0)
    kx, kp = jax.random.split(key)
    x = jax.random.normal(kx, (2, 3, 64, 64), jnp.float32)
    params = init_params(kp)

    logits_collect, map_collect, MECAM_map = res50_classifier_forward(x, params)

    jax.block_until_ready(MECAM_map)
    for t in logits_collect + map_collect:
        jax.block_until_ready(t)

    assert MECAM_map.shape == (2, 1, 64, 64)
    assert all(l.shape == (2, 1) for l in logits_collect)
    assert all(m.shape == (2, 1, 64, 64) for m in map_collect)
    print("KERNEL_OK")
</pallas_src>

<mosaic_0001>
module attributes {stable_mosaic.version = 11 : i64} {
  func.func @_head_kernel(%arg0: i32, %arg1: memref<1x256x256xf32, #tpu.memory_space<vmem>>, %arg2: memref<1x512x64xf32, #tpu.memory_space<vmem>>, %arg3: memref<1x1024x16xf32, #tpu.memory_space<vmem>>, %arg4: memref<1x2048x4xf32, #tpu.memory_space<vmem>>, %arg5: memref<1x256xf32, #tpu.memory_space<vmem>>, %arg6: memref<1x512xf32, #tpu.memory_space<vmem>>, %arg7: memref<1x1024xf32, #tpu.memory_space<vmem>>, %arg8: memref<1x2048xf32, #tpu.memory_space<vmem>>, %arg9: memref<256x4096xf32, #tpu.memory_space<vmem>>, %arg10: memref<64x4096xf32, #tpu.memory_space<vmem>>, %arg11: memref<16x4096xf32, #tpu.memory_space<vmem>>, %arg12: memref<4x4096xf32, #tpu.memory_space<vmem>>, %arg13: memref<4xf32, #tpu.memory_space<smem>>, %arg14: memref<1x1x1xf32, #tpu.memory_space<vmem>>, %arg15: memref<1x1x1xf32, #tpu.memory_space<vmem>>, %arg16: memref<1x1x1xf32, #tpu.memory_space<vmem>>, %arg17: memref<1x1x1xf32, #tpu.memory_space<vmem>>, %arg18: memref<1x1x4096xf32, #tpu.memory_space<vmem>>, %arg19: memref<1x1x4096xf32, #tpu.memory_space<vmem>>, %arg20: memref<1x1x4096xf32, #tpu.memory_space<vmem>>, %arg21: memref<1x1x4096xf32, #tpu.memory_space<vmem>>, %arg22: memref<1x1x4096xf32, #tpu.memory_space<vmem>>) attributes {dimension_semantics = [#tpu.dimension_semantics<parallel>], iteration_bounds = array<i64: 2>, scalar_prefetch = 0 : i64, scratch_operands = 0 : i64, tpu.core_type = #tpu.core_type<tc>, window_params = [{transform_indices = @transform_0, window_bounds = array<i64: 1, 256, 256>}, {transform_indices = @transform_1, window_bounds = array<i64: 1, 512, 64>}, {transform_indices = @transform_2, window_bounds = array<i64: 1, 1024, 16>}, {transform_indices = @transform_3, window_bounds = array<i64: 1, 2048, 4>}, {pipeline_mode = #tpu.pipeline_mode<synchronous>, transform_indices = @transform_4, window_bounds = array<i64: 1, 256>}, {pipeline_mode = #tpu.pipeline_mode<synchronous>, transform_indices = @transform_5, window_bounds = array<i64: 1, 512>}, {pipeline_mode = #tpu.pipeline_mode<synchronous>, transform_indices = @transform_6, window_bounds = array<i64: 1, 1024>}, {pipeline_mode = #tpu.pipeline_mode<synchronous>, transform_indices = @transform_7, window_bounds = array<i64: 1, 2048>}, {pipeline_mode = #tpu.pipeline_mode<synchronous>, transform_indices = @transform_8, window_bounds = array<i64: 256, 4096>}, {pipeline_mode = #tpu.pipeline_mode<synchronous>, transform_indices = @transform_9, window_bounds = array<i64: 64, 4096>}, {pipeline_mode = #tpu.pipeline_mode<synchronous>, transform_indices = @transform_10, window_bounds = array<i64: 16, 4096>}, {pipeline_mode = #tpu.pipeline_mode<synchronous>, transform_indices = @transform_11, window_bounds = array<i64: 4, 4096>}, {transform_indices = @transform_12, window_bounds = array<i64: 4>}, {transform_indices = @transform_13, window_bounds = array<i64: 1, 1, 1>}, {transform_indices = @transform_14, window_bounds = array<i64: 1, 1, 1>}, {transform_indices = @transform_15, window_bounds = array<i64: 1, 1, 1>}, {transform_indices = @transform_16, window_bounds = array<i64: 1, 1, 1>}, {transform_indices = @transform_17, window_bounds = array<i64: 1, 1, 4096>}, {transform_indices = @transform_18, window_bounds = array<i64: 1, 1, 4096>}, {transform_indices = @transform_19, window_bounds = array<i64: 1, 1, 4096>}, {transform_indices = @transform_20, window_bounds = array<i64: 1, 1, 4096>}, {transform_indices = @transform_21, window_bounds = array<i64: 1, 1, 4096>}]} {
    %c0 = arith.constant 0 : index
    %c0_0 = arith.constant 0 : index
    %c0_1 = arith.constant 0 : index
    %0 = vector.load %arg1[%c0, %c0_0, %c0_1] : memref<1x256x256xf32, #tpu.memory_space<vmem>>, vector<1x256x256xf32>
    %1 = vector.shape_cast %0 : vector<1x256x256xf32> to vector<256x256xf32>
    %c0_2 = arith.constant 0 : index
    %c0_3 = arith.constant 0 : index
    %2 = vector.load %arg5[%c0_2, %c0_3] : memref<1x256xf32, #tpu.memory_space<vmem>>, vector<1x256xf32>
    %cst = arith.constant dense<0.000000e+00> : vector<1x256xf32>
    %3 = tpu.matmul %2, %1, %cst {dimension_numbers = #tpu.dot_dimension_numbers<[1], [0], [0], [1], [0, 0, 1, 1], [], []>} : vector<1x256xf32>, vector<256x256xf32>, vector<1x256xf32> -> vector<1x256xf32>
    %c0_4 = arith.constant 0 : index
    %4 = memref.load %arg13[%c0_4] : memref<4xf32, #tpu.memory_space<smem>>
    %5 = vector.broadcast %4 : f32 to vector<1x256xf32>
    %6 = arith.addf %3, %5 : vector<1x256xf32>
    %cst_5 = arith.constant dense<0.000000e+00> : vector<1xf32>
    %7 = vector.multi_reduction <add>, %6, %cst_5 [1] : vector<1x256xf32> to vector<1xf32>
    %8 = vector.shape_cast %7 : vector<1xf32> to vector<1x1xf32>
    %cst_6 = arith.constant 2.560000e+02 : f32
    %9 = vector.broadcast %cst_6 : f32 to vector<1x1xf32>
    %10 = arith.divf %8, %9 : vector<1x1xf32>
    %c0_7 = arith.constant 0 : index
    %c0_8 = arith.constant 0 : index
    %c0_9 = arith.constant 0 : index
    %11 = vector.load %arg14[%c0_7, %c0_8, %c0_9] : memref<1x1x1xf32, #tpu.memory_space<vmem>>, vector<1x1x1xf32>
    %12 = vector.shape_cast %11 : vector<1x1x1xf32> to vector<1x1xf32>
    %13 = vector.shape_cast %10 : vector<1x1xf32> to vector<1x1x1xf32>
    tpu.vector_store %arg14[%c0_7, %c0_8, %c0_9], %13 {strides = array<i32>} : memref<1x1x1xf32, #tpu.memory_space<vmem>>, vector<1x1x1xf32>,
    %c0_10 = arith.constant 0 : index
    %c0_11 = arith.constant 0 : index
    %14 = vector.load %arg9[%c0_10, %c0_11] : memref<256x4096xf32, #tpu.memory_space<vmem>>, vector<256x4096xf32>
    %cst_12 = arith.constant dense<0.000000e+00> : vector<1x4096xf32>
    %15 = tpu.matmul %6, %14, %cst_12 {dimension_numbers = #tpu.dot_dimension_numbers<[1], [0], [0], [1], [0, 0, 1, 1], [], []>} : vector<1x256xf32>, vector<256x4096xf32>, vector<1x4096xf32> -> vector<1x4096xf32>
    %c0_13 = arith.constant 0 : index
    %c0_14 = arith.constant 0 : index
    %c0_15 = arith.constant 0 : index
    %16 = vector.load %arg18[%c0_13, %c0_14, %c0_15] : memref<1x1x4096xf32, #tpu.memory_space<vmem>>, vector<1x1x4096xf32>
    %17 = vector.shape_cast %16 : vector<1x1x4096xf32> to vector<1x4096xf32>
    %18 = vector.shape_cast %15 : vector<1x4096xf32> to vector<1x1x4096xf32>
    tpu.vector_store %arg18[%c0_13, %c0_14, %c0_15], %18 {strides = array<i32>} : memref<1x1x4096xf32, #tpu.memory_space<vmem>>, vector<1x1x4096xf32>,
    %c0_16 = arith.constant 0 : index
    %c0_17 = arith.constant 0 : index
    %c0_18 = arith.constant 0 : index
    %19 = vector.load %arg2[%c0_16, %c0_17, %c0_18] : memref<1x512x64xf32, #tpu.memory_space<vmem>>, vector<1x512x64xf32>
    %20 = vector.shape_cast %19 : vector<1x512x64xf32> to vector<512x64xf32>
    %c0_19 = arith.constant 0 : index
    %c0_20 = arith.constant 0 : index
    %21 = vector.load %arg6[%c0_19, %c0_20] : memref<1x512xf32, #tpu.memory_space<vmem>>, vector<1x512xf32>
    %cst_21 = arith.constant dense<0.000000e+00> : vector<1x64xf32>
    %22 = tpu.matmul %21, %20, %cst_21 {dimension_numbers = #tpu.dot_dimension_numbers<[1], [0], [0], [1], [0, 0, 1, 1], [], []>} : vector<1x512xf32>, vector<512x64xf32>, vector<1x64xf32> -> vector<1x64xf32>
    %c1 = arith.constant 1 : index
    %23 = memref.load %arg13[%c1] : memref<4xf32, #tpu.memory_space<smem>>
    %24 = vector.broadcast %23 : f32 to vector<1x64xf32>
    %25 = arith.addf %22, %24 : vector<1x64xf32>
    %cst_22 = arith.constant dense<0.000000e+00> : vector<1xf32>
    %26 = vector.multi_reduction <add>, %25, %cst_22 [1] : vector<1x64xf32> to vector<1xf32>
    %27 = vector.shape_cast %26 : vector<1xf32> to vector<1x1xf32>
    %cst_23 = arith.constant 6.400000e+01 : f32
    %28 = vector.broadcast %cst_23 : f32 to vector<1x1xf32>
    %29 = arith.divf %27, %28 : vector<1x1xf32>
    %c0_24 = arith.constant 0 : index
    %c0_25 = arith.constant 0 : index
    %c0_26 = arith.constant 0 : index
    %30 = vector.load %arg15[%c0_24, %c0_25, %c0_26] : memref<1x1x1xf32, #tpu.memory_space<vmem>>, vector<1x1x1xf32>
    %31 = vector.shape_cast %30 : vector<1x1x1xf32> to vector<1x1xf32>
    %32 = vector.shape_cast %29 : vector<1x1xf32> to vector<1x1x1xf32>
    tpu.vector_store %arg15[%c0_24, %c0_25, %c0_26], %32 {strides = array<i32>} : memref<1x1x1xf32, #tpu.memory_space<vmem>>, vector<1x1x1xf32>,
    %c0_27 = arith.constant 0 : index
    %c0_28 = arith.constant 0 : index
    %33 = vector.load %arg10[%c0_27, %c0_28] : memref<64x4096xf32, #tpu.memory_space<vmem>>, vector<64x4096xf32>
    %cst_29 = arith.constant dense<0.000000e+00> : vector<1x4096xf32>
    %34 = tpu.matmul %25, %33, %cst_29 {dimension_numbers = #tpu.dot_dimension_numbers<[1], [0], [0], [1], [0, 0, 1, 1], [], []>} : vector<1x64xf32>, vector<64x4096xf32>, vector<1x4096xf32> -> vector<1x4096xf32>
    %c0_30 = arith.constant 0 : index
    %c0_31 = arith.constant 0 : index
    %c0_32 = arith.constant 0 : index
    %35 = vector.load %arg19[%c0_30, %c0_31, %c0_32] : memref<1x1x4096xf32, #tpu.memory_space<vmem>>, vector<1x1x4096xf32>
    %36 = vector.shape_cast %35 : vector<1x1x4096xf32> to vector<1x4096xf32>
    %37 = vector.shape_cast %34 : vector<1x4096xf32> to vector<1x1x4096xf32>
    tpu.vector_store %arg19[%c0_30, %c0_31, %c0_32], %37 {strides = array<i32>} : memref<1x1x4096xf32, #tpu.memory_space<vmem>>, vector<1x1x4096xf32>,
    %38 = arith.addf %15, %34 : vector<1x4096xf32>
    %c0_33 = arith.constant 0 : index
    %c0_34 = arith.constant 0 : index
    %c0_35 = arith.constant 0 : index
    %39 = vector.load %arg3[%c0_33, %c0_34, %c0_35] : memref<1x1024x16xf32, #tpu.memory_space<vmem>>, vector<1x1024x16xf32>
    %40 = vector.shape_cast %39 : vector<1x1024x16xf32> to vector<1024x16xf32>
    %c0_36 = arith.constant 0 : index
    %c0_37 = arith.constant 0 : index
    %41 = vector.load %arg7[%c0_36, %c0_37] : memref<1x1024xf32, #tpu.memory_space<vmem>>, vector<1x1024xf32>
    %cst_38 = arith.constant dense<0.000000e+00> : vector<1x16xf32>
    %42 = tpu.matmul %41, %40, %cst_38 {dimension_numbers = #tpu.dot_dimension_numbers<[1], [0], [0], [1], [0, 0, 1, 1], [], []>} : vector<1x1024xf32>, vector<1024x16xf32>, vector<1x16xf32> -> vector<1x16xf32>
    %c2 = arith.constant 2 : index
    %43 = memref.load %arg13[%c2] : memref<4xf32, #tpu.memory_space<smem>>
    %44 = vector.broadcast %43 : f32 to vector<1x16xf32>
    %45 = arith.addf %42, %44 : vector<1x16xf32>
    %cst_39 = arith.constant dense<0.000000e+00> : vector<1xf32>
    %46 = vector.multi_reduction <add>, %45, %cst_39 [1] : vector<1x16xf32> to vector<1xf32>
    %47 = vector.shape_cast %46 : vector<1xf32> to vector<1x1xf32>
    %cst_40 = arith.constant 1.600000e+01 : f32
    %48 = vector.broadcast %cst_40 : f32 to vector<1x1xf32>
    %49 = arith.divf %47, %48 : vector<1x1xf32>
    %c0_41 = arith.constant 0 : index
    %c0_42 = arith.constant 0 : index
    %c0_43 = arith.constant 0 : index
    %50 = vector.load %arg16[%c0_41, %c0_42, %c0_43] : memref<1x1x1xf32, #tpu.memory_space<vmem>>, vector<1x1x1xf32>
    %51 = vector.shape_cast %50 : vector<1x1x1xf32> to vector<1x1xf32>
    %52 = vector.shape_cast %49 : vector<1x1xf32> to vector<1x1x1xf32>
    tpu.vector_store %arg16[%c0_41, %c0_42, %c0_43], %52 {strides = array<i32>} : memref<1x1x1xf32, #tpu.memory_space<vmem>>, vector<1x1x1xf32>,
    %c0_44 = arith.constant 0 : index
    %c0_45 = arith.constant 0 : index
    %53 = vector.load %arg11[%c0_44, %c0_45] : memref<16x4096xf32, #tpu.memory_space<vmem>>, vector<16x4096xf32>
    %cst_46 = arith.constant dense<0.000000e+00> : vector<1x4096xf32>
    %54 = tpu.matmul %45, %53, %cst_46 {dimension_numbers = #tpu.dot_dimension_numbers<[1], [0], [0], [1], [0, 0, 1, 1], [], []>} : vector<1x16xf32>, vector<16x4096xf32>, vector<1x4096xf32> -> vector<1x4096xf32>
    %c0_47 = arith.constant 0 : index
    %c0_48 = arith.constant 0 : index
    %c0_49 = arith.constant 0 : index
    %55 = vector.load %arg20[%c0_47, %c0_48, %c0_49] : memref<1x1x4096xf32, #tpu.memory_space<vmem>>, vector<1x1x4096xf32>
    %56 = vector.shape_cast %55 : vector<1x1x4096xf32> to vector<1x4096xf32>
    %57 = vector.shape_cast %54 : vector<1x4096xf32> to vector<1x1x4096xf32>
    tpu.vector_store %arg20[%c0_47, %c0_48, %c0_49], %57 {strides = array<i32>} : memref<1x1x4096xf32, #tpu.memory_space<vmem>>, vector<1x1x4096xf32>,
    %58 = arith.addf %38, %54 : vector<1x4096xf32>
    %c0_50 = arith.constant 0 : index
    %c0_51 = arith.constant 0 : index
    %c0_52 = arith.constant 0 : index
    %59 = vector.load %arg4[%c0_50, %c0_51, %c0_52] : memref<1x2048x4xf32, #tpu.memory_space<vmem>>, vector<1x2048x4xf32>
    %60 = vector.shape_cast %59 : vector<1x2048x4xf32> to vector<2048x4xf32>
    %c0_53 = arith.constant 0 : index
    %c0_54 = arith.constant 0 : index
    %61 = vector.load %arg8[%c0_53, %c0_54] : memref<1x2048xf32, #tpu.memory_space<vmem>>, vector<1x2048xf32>
    %cst_55 = arith.constant dense<0.000000e+00> : vector<1x4xf32>
    %62 = tpu.matmul %61, %60, %cst_55 {dimension_numbers = #tpu.dot_dimension_numbers<[1], [0], [0], [1], [0, 0, 1, 1], [], []>} : vector<1x2048xf32>, vector<2048x4xf32>, vector<1x4xf32> -> vector<1x4xf32>
    %c3 = arith.constant 3 : index
    %63 = memref.load %arg13[%c3] : memref<4xf32, #tpu.memory_space<smem>>
    %64 = vector.broadcast %63 : f32 to vector<1x4xf32>
    %65 = arith.addf %62, %64 : vector<1x4xf32>
    %cst_56 = arith.constant dense<0.000000e+00> : vector<1xf32>
    %66 = vector.multi_reduction <add>, %65, %cst_56 [1] : vector<1x4xf32> to vector<1xf32>
    %67 = vector.shape_cast %66 : vector<1xf32> to vector<1x1xf32>
    %cst_57 = arith.constant 4.000000e+00 : f32
    %68 = vector.broadcast %cst_57 : f32 to vector<1x1xf32>
    %69 = arith.divf %67, %68 : vector<1x1xf32>
    %c0_58 = arith.constant 0 : index
    %c0_59 = arith.constant 0 : index
    %c0_60 = arith.constant 0 : index
    %70 = vector.load %arg17[%c0_58, %c0_59, %c0_60] : memref<1x1x1xf32, #tpu.memory_space<vmem>>, vector<1x1x1xf32>
    %71 = vector.shape_cast %70 : vector<1x1x1xf32> to vector<1x1xf32>
    %72 = vector.shape_cast %69 : vector<1x1xf32> to vector<1x1x1xf32>
    tpu.vector_store %arg17[%c0_58, %c0_59, %c0_60], %72 {strides = array<i32>} : memref<1x1x1xf32, #tpu.memory_space<vmem>>, vector<1x1x1xf32>,
    %c0_61 = arith.constant 0 : index
    %c0_62 = arith.constant 0 : index
    %73 = vector.load %arg12[%c0_61, %c0_62] : memref<4x4096xf32, #tpu.memory_space<vmem>>, vector<4x4096xf32>
    %cst_63 = arith.constant dense<0.000000e+00> : vector<1x4096xf32>
    %74 = tpu.matmul %65, %73, %cst_63 {dimension_numbers = #tpu.dot_dimension_numbers<[1], [0], [0], [1], [0, 0, 1, 1], [], []>} : vector<1x4xf32>, vector<4x4096xf32>, vector<1x4096xf32> -> vector<1x4096xf32>
    %c0_64 = arith.constant 0 : index
    %c0_65 = arith.constant 0 : index
    %c0_66 = arith.constant 0 : index
    %75 = vector.load %arg21[%c0_64, %c0_65, %c0_66] : memref<1x1x4096xf32, #tpu.memory_space<vmem>>, vector<1x1x4096xf32>
    %76 = vector.shape_cast %75 : vector<1x1x4096xf32> to vector<1x4096xf32>
    %77 = vector.shape_cast %74 : vector<1x4096xf32> to vector<1x1x4096xf32>
    tpu.vector_store %arg21[%c0_64, %c0_65, %c0_66], %77 {strides = array<i32>} : memref<1x1x4096xf32, #tpu.memory_space<vmem>>, vector<1x1x4096xf32>,
    %78 = arith.addf %58, %74 : vector<1x4096xf32>
    %cst_67 = arith.constant 2.500000e-01 : f32
    %79 = vector.broadcast %cst_67 : f32 to vector<1x4096xf32>
    %80 = arith.mulf %78, %79 : vector<1x4096xf32>
    %c0_68 = arith.constant 0 : index
    %c0_69 = arith.constant 0 : index
    %c0_70 = arith.constant 0 : index
    %81 = vector.load %arg22[%c0_68, %c0_69, %c0_70] : memref<1x1x4096xf32, #tpu.memory_space<vmem>>, vector<1x1x4096xf32>
    %82 = vector.shape_cast %81 : vector<1x1x4096xf32> to vector<1x4096xf32>
    %83 = vector.shape_cast %80 : vector<1x4096xf32> to vector<1x1x4096xf32>
    tpu.vector_store %arg22[%c0_68, %c0_69, %c0_70], %83 {strides = array<i32>} : memref<1x1x4096xf32, #tpu.memory_space<vmem>>, vector<1x1x4096xf32>,
    return
  }
  func.func @transform_0(%arg0: i32) -> (i32, i32, i32) {
    %c0_i32 = arith.constant 0 : i32
    %c0_i32_0 = arith.constant 0 : i32
    %c0_i32_1 = arith.constant 0 : i32
    return %arg0, %c0_i32, %c0_i32_0 : i32, i32, i32
  }
  func.func @transform_1(%arg0: i32) -> (i32, i32, i32) {
    %c0_i32 = arith.constant 0 : i32
    %c0_i32_0 = arith.constant 0 : i32
    %c0_i32_1 = arith.constant 0 : i32
    return %arg0, %c0_i32, %c0_i32_0 : i32, i32, i32
  }
  func.func @transform_2(%arg0: i32) -> (i32, i32, i32) {
    %c0_i32 = arith.constant 0 : i32
    %c0_i32_0 = arith.constant 0 : i32
    %c0_i32_1 = arith.constant 0 : i32
    return %arg0, %c0_i32, %c0_i32_0 : i32, i32, i32
  }
  func.func @transform_3(%arg0: i32) -> (i32, i32, i32) {
    %c0_i32 = arith.constant 0 : i32
    %c0_i32_0 = arith.constant 0 : i32
    %c0_i32_1 = arith.constant 0 : i32
    return %arg0, %c0_i32, %c0_i32_0 : i32, i32, i32
  }
  func.func @transform_4(%arg0: i32) -> (i32, i32) {
    %c0_i32 = arith.constant 0 : i32
    %c0_i32_0 = arith.constant 0 : i32
    %c0_i32_1 = arith.constant 0 : i32
    return %c0_i32, %c0_i32_0 : i32, i32
  }
  func.func @transform_5(%arg0: i32) -> (i32, i32) {
    %c0_i32 = arith.constant 0 : i32
    %c0_i32_0 = arith.constant 0 : i32
    %c0_i32_1 = arith.constant 0 : i32
    return %c0_i32, %c0_i32_0 : i32, i32
  }
  func.func @transform_6(%arg0: i32) -> (i32, i32) {
    %c0_i32 = arith.constant 0 : i32
    %c0_i32_0 = arith.constant 0 : i32
    %c0_i32_1 = arith.constant 0 : i32
    return %c0_i32, %c0_i32_0 : i32, i32
  }
  func.func @transform_7(%arg0: i32) -> (i32, i32) {
    %c0_i32 = arith.constant 0 : i32
    %c0_i32_0 = arith.constant 0 : i32
    %c0_i32_1 = arith.constant 0 : i32
    return %c0_i32, %c0_i32_0 : i32, i32
  }
  func.func @transform_8(%arg0: i32) -> (i32, i32) {
    %c0_i32 = arith.constant 0 : i32
    %c0_i32_0 = arith.constant 0 : i32
    %c0_i32_1 = arith.constant 0 : i32
    return %c0_i32, %c0_i32_0 : i32, i32
  }
  func.func @transform_9(%arg0: i32) -> (i32, i32) {
    %c0_i32 = arith.constant 0 : i32
    %c0_i32_0 = arith.constant 0 : i32
    %c0_i32_1 = arith.constant 0 : i32
    return %c0_i32, %c0_i32_0 : i32, i32
  }
  func.func @transform_10(%arg0: i32) -> (i32, i32) {
    %c0_i32 = arith.constant 0 : i32
    %c0_i32_0 = arith.constant 0 : i32
    %c0_i32_1 = arith.constant 0 : i32
    return %c0_i32, %c0_i32_0 : i32, i32
  }
  func.func @transform_11(%arg0: i32) -> (i32, i32) {
    %c0_i32 = arith.constant 0 : i32
    %c0_i32_0 = arith.constant 0 : i32
    %c0_i32_1 = arith.constant 0 : i32
    return %c0_i32, %c0_i32_0 : i32, i32
  }
  func.func @transform_12(%arg0: i32) -> i32 {
    %c0_i32 = arith.constant 0 : i32
    %c0_i32_0 = arith.constant 0 : i32
    return %c0_i32 : i32
  }
  func.func @transform_13(%arg0: i32) -> (i32, i32, i32) {
    %c0_i32 = arith.constant 0 : i32
    %c0_i32_0 = arith.constant 0 : i32
    %c0_i32_1 = arith.constant 0 : i32
    return %arg0, %c0_i32, %c0_i32_0 : i32, i32, i32
  }
  func.func @transform_14(%arg0: i32) -> (i32, i32, i32) {
    %c0_i32 = arith.constant 0 : i32
    %c0_i32_0 = arith.constant 0 : i32
    %c0_i32_1 = arith.constant 0 : i32
    return %arg0, %c0_i32, %c0_i32_0 : i32, i32, i32
  }
  func.func @transform_15(%arg0: i32) -> (i32, i32, i32) {
    %c0_i32 = arith.constant 0 : i32
    %c0_i32_0 = arith.constant 0 : i32
    %c0_i32_1 = arith.constant 0 : i32
    return %arg0, %c0_i32, %c0_i32_0 : i32, i32, i32
  }
  func.func @transform_16(%arg0: i32) -> (i32, i32, i32) {
    %c0_i32 = arith.constant 0 : i32
    %c0_i32_0 = arith.constant 0 : i32
    %c0_i32_1 = arith.constant 0 : i32
    return %arg0, %c0_i32, %c0_i32_0 : i32, i32, i32
  }
  func.func @transform_17(%arg0: i32) -> (i32, i32, i32) {
    %c0_i32 = arith.constant 0 : i32
    %c0_i32_0 = arith.constant 0 : i32
    %c0_i32_1 = arith.constant 0 : i32
    return %arg0, %c0_i32, %c0_i32_0 : i32, i32, i32
  }
  func.func @transform_18(%arg0: i32) -> (i32, i32, i32) {
    %c0_i32 = arith.constant 0 : i32
    %c0_i32_0 = arith.constant 0 : i32
    %c0_i32_1 = arith.constant 0 : i32
    return %arg0, %c0_i32, %c0_i32_0 : i32, i32, i32
  }
  func.func @transform_19(%arg0: i32) -> (i32, i32, i32) {
    %c0_i32 = arith.constant 0 : i32
    %c0_i32_0 = arith.constant 0 : i32
    %c0_i32_1 = arith.constant 0 : i32
    return %arg0, %c0_i32, %c0_i32_0 : i32, i32, i32
  }
  func.func @transform_20(%arg0: i32) -> (i32, i32, i32) {
    %c0_i32 = arith.constant 0 : i32
    %c0_i32_0 = arith.constant 0 : i32
    %c0_i32_1 = arith.constant 0 : i32
    return %arg0, %c0_i32, %c0_i32_0 : i32, i32, i32
  }
  func.func @transform_21(%arg0: i32) -> (i32, i32, i32) {
    %c0_i32 = arith.constant 0 : i32
    %c0_i32_0 = arith.constant 0 : i32
    %c0_i32_1 = arith.constant 0 : i32
    return %arg0, %c0_i32, %c0_i32_0 : i32, i32, i32
  }
}

</mosaic_0001>

<bundles_post_ra>
// kernel: tpu_custom_call.1
= control target key start
LH: loop header
LB: loop body
LE: loop exit
PB: predicated region body
PF: predicated region fallthrough
CT: control target
= control target key end

     0   :  { %s16301_s0 = inlined_call_operand.vmem [shape: f32[2,256,256], index: 0, kind: input, shape index: {}]   ;;  %s16302_s1 = inlined_call_operand.vmem [shape: f32[2,512,64], index: 1, kind: input, shape index: {}]   ;;  %s16303_s2 = inlined_call_operand.vmem [shape: f32[2,1024,16], index: 2, kind: input, shape index: {}]   ;;  %s16304_s3 = inlined_call_operand.vmem [shape: f32[2,2048,4], index: 3, kind: input, shape index: {}]   ;;  %s16305_s4 = inlined_call_operand.hbm [shape: f32[1,256], index: 4, kind: input, shape index: {}]   ;;  %s16306_s5 = inlined_call_operand.hbm [shape: f32[1,512], index: 5, kind: input, shape index: {}]   ;;  %s16307_s6 = inlined_call_operand.hbm [shape: f32[1,1024], index: 6, kind: input, shape index: {}]   ;;  %s16308_s7 = inlined_call_operand.hbm [shape: f32[1,2048], index: 7, kind: input, shape index: {}]   ;;  %s16309_s8 = inlined_call_operand.hbm [shape: f32[256,4096], index: 8, kind: input, shape index: {}]   ;;  %s16310_s9 = inlined_call_operand.vmem [shape: f32[64,4096], index: 9, kind: input, shape index: {}]   ;;  %s16311_s10 = inlined_call_operand.vmem [shape: f32[16,4096], index: 10, kind: input, shape index: {}]   ;;  %s16312_s11 = inlined_call_operand.vmem [shape: f32[4,4096], index: 11, kind: input, shape index: {}]   ;;  %s16313_s12 = inlined_call_operand.hbm [shape: f32[4], index: 12, kind: input, shape index: {}]   ;;  %s16314_s13 = inlined_call_operand.vmem [shape: f32[2,1,1], index: 13, kind: output, shape index: {0}]   ;;  %s16315_s14 = inlined_call_operand.vmem [shape: f32[2,1,1], index: 14, kind: output, shape index: {1}]   ;;  %s16316_s15 = inlined_call_operand.vmem [shape: f32[2,1,1], index: 15, kind: output, shape index: {2}]   ;;  %s16317_s16 = inlined_call_operand.vmem [shape: f32[2,1,1], index: 16, kind: output, shape index: {3}]   ;;  %s16318_s17 = inlined_call_operand.hbm [shape: f32[2,1,4096], index: 17, kind: output, shape index: {4}]   ;;  %s16319_s18 = inlined_call_operand.hbm [shape: f32[2,1,4096], index: 18, kind: output, shape index: {5}]   ;;  %s16320_s19 = inlined_call_operand.hbm [shape: f32[2,1,4096], index: 19, kind: output, shape index: {6}]   ;;  %s16321_s20 = inlined_call_operand.hbm [shape: f32[2,1,4096], index: 20, kind: output, shape index: {7}]   ;;  %s16322_s21 = inlined_call_operand.hbm [shape: f32[2,1,4096], index: 21, kind: output, shape index: {8}]  }
   0x1   :  { %16349 = sst [smem:[#allocation39_spill]] %s16301_s0 }
   0x2   :  { %16350 = sst [smem:[#allocation40_spill]] %s16302_s1 }
   0x3   :  { %16351 = sst [smem:[#allocation41_spill]] %s16303_s2 }
   0x4   :  { %16352 = sst [smem:[#allocation42_spill]] %s16304_s3 }
   0x5   :  { %16353 = sst [smem:[#allocation43_spill]] %s16305_s4 }
   0x6   :  { %16354 = sst [smem:[#allocation44_spill]] %s16306_s5 }
   0x7   :  { %16355 = sst [smem:[#allocation45_spill]] %s16307_s6 }
   0x8   :  { %16356 = sst [smem:[#allocation46_spill]] %s16308_s7 }
   0x9   :  { %16357 = sst [smem:[#allocation47_spill]] %s16309_s8 }
   0xa   :  { %16358 = sst [smem:[#allocation48_spill]] %s16310_s9 }
   0xb   :  { %16359 = sst [smem:[#allocation49_spill]] %s16311_s10 }
   0xc   :  { %16360 = sst [smem:[#allocation50_spill]] %s16312_s11 }
   0xd   :  { %16361 = sst [smem:[#allocation51_spill]] %s16318_s17 }
   0xe   :  { %16362 = sst [smem:[#allocation52_spill]] %s16320_s19 }
   0xf   :  { %16363 = sst [smem:[#allocation53_spill]] %s16321_s20 }
  0x10   :  { %16364 = sst [smem:[#allocation54_spill]] %s16322_s21 }
  0x11   :  { %27 = vsyncpa [#allocation3], 0 }
  0x12   :  { %28 = vsyncpa [#allocation7], 0 }
  0x13   :  { %29 = vsyncpa [#allocation10], 0 }
  0x14   :  { %30 = vsyncpa [#allocation5], 0 }
  0x15   :  { %31 = vsyncpa [#allocation4], 0 }
  0x16   :  { %33 = vsyncpa [#allocation4 + $0x1], 0 }
  0x17   :  { %34 = vsyncpa [#allocation15], 0 }
  0x18   :  { %36 = vsyncpa [#allocation15 + $0x1], 0 }
  0x19   :  { %37 = vsyncpa [#allocation18], 0 }
  0x1a   :  { %39 = vsyncpa [#allocation18 + $0x1], 0  ;;  %s13514_s2 = smov 0   ;;  %s13516_s25 = smov 0  }
  0x1b   :  { %s13518_s26 = smov 0   ;;  %s13520_s27 = smov 0  }
  0x1c LB: > { %16365 = sst [smem:[#allocation27_spill]] %s13375_s2  ;;  %s13535_s3 = sadd.s32 4294967295, %s13387_s27   ;;  %s13387_s27 = sphi %s13520_s27, %s16423_s27   ;;  %s13383_s26 = sphi %s13518_s26, %s16425_s26   ;;  %s13379_s25 = sphi %s13516_s25, %s16427_s25   ;;  %s13375_s2 = sphi %s13514_s2, %s16426_s2  }
  0x1d   : > { %16366 = sst [smem:[#allocation28_spill]] %s13383_s26  ;;  %s16325_s28 = sadd.s32 4294967294, %s13387_s27  }
  0x1e   : > { %16367 = sst [smem:[#allocation29_spill]] %s13387_s27  ;;  %s13539_s29 = sadd.s32 1, %s13387_s27  }
  0x1f   : > { %16368 = sst [smem:[#allocation30_spill]] %s13539_s29  ;;  %s449_s0 = sadd.s32 1, %s13383_s26 }
  0x20   : > { %s446_s4 = ssub.s32 %s13387_s27, %s13539_s29  ;;  %p459_p0 = scmp.ne.s32.totalorder %s13383_s26, %s13379_s25 }
  0x21   : > { %p447_p1 = scmp.eq.s32.totalorder %s446_s4, 0  ;;  %p460_p2 = scmp.eq.s32.totalorder %s13535_s3, 1 }
  0x22   : > { %p465_p3 = scmp.ne.s32.totalorder %s13379_s25, %s13375_s2  ;;  %p466_p4 = scmp.eq.s32.totalorder %s16325_s28, 1 }
  0x23   : > { %s13552_s30 = scalar_select %p447_p1, %s13383_s26, %s449_s0  }
  0x24   : > { %p13554_p5 = por %p460_p2, %p459_p0  ;;  %p13558_p6 = por %p466_p4, %p465_p3 }
  0x25   : > { %16369 = sst [smem:[#allocation31_spill]] %s13552_s30  ;;  %p10413_p7 = scmp.ge.s32.totalorder %s13387_s27, 1 }
  0x26   : > { %s16370_s5 = scalar_select %p13554_p5, 1, 0 }
  0x27   : > { %s16371_s22 = scalar_select %p13558_p6, 1, 0 }
  0x28   : > { %p577_p8 = scmp.lt.s32.totalorder %s13387_s27, 3  ;;  %p16335_p9 = scmp.eq.s32.totalorder %s13535_s3, 0 }
  0x29   : > { %16372 = sst [smem:[#allocation32_spill]] %s16371_s22  ;;  %s13389_s1 = smov [#allocation6]  }
  0x2a   : > { %p13565_p10 = pnand %p10413_p7, %p577_p8  ;;  %s601_s24 = sshll.u32 %s13389_s1, 4  ;;  %s602_s24 = int_to_ptr.vmem [resolvable:$true] %s601_s24 }
  0x2b   : > { %s13390_s0 = smov [#allocation9]   ;;  %s13391_s30 = smov [#allocation2]  }
  0x2c   : > { %s16373_s23 = scalar_select %p13565_p10, 1, 0 }
  0x2d   : > { %p12930_p11 = pneg %p13565_p10  ;;  %s623_s4 = sshll.u32 %s13390_s0, 4  ;;  %s13577_s4 = int_to_ptr.vmem [resolvable:$true] %s623_s4 }
  0x2e   : > { %s590_s26 = sshll.u32 %s13391_s30, 4  ;;  %s16375_s1 = sld [smem:[#allocation44_spill]]  ;;  %s13579_s26 = int_to_ptr.vmem [resolvable:$true] %s590_s26 }
  0x2f   : > { %p13573_p12 = pnand %p16335_p9, %p12930_p11 }
  0x31   : > { %p13589_p0 = pneg %p13573_p12 }
  0x34   : > { %s13036_s2 = scalar_lea.hbm %s16375_s1, 64 }
  0x35   : > { %p13037_p13 = scmp.ne.s32.totalorder %s16375_s1, %s13036_s2  ;;  %p13043_p3 = scmp.lt.u32.totalorder %s13036_s2, %s16375_s1 }
  0x37   : > { %p13039_p1 = pnand %p13589_p0, %p13037_p13 }
  0x39   : > { %p13040_p2 = pneg %p13039_p1 }
  0x3b   : > { %p13045_p4 = pnand %p13043_p3, %p13040_p2 }
  0x3d   : > { %13048 = shalt.err (!%p13045_p4)
}
  0x3e   : > { %s13049_s29 = scalar_lea.vmem %s602_s24, 64  ;;  %p13057_p9 = scmp.lt.s32.totalorder %s602_s24, %s602_s24 }
  0x3f   : > { %p13050_p7 = scmp.ne.s32.totalorder %s602_s24, %s13049_s29  ;;  %p13058_p6 = scmp.lt.s32.totalorder %s13049_s29, %s13049_s29 }
  0x41   : > { %p13052_p8 = pnand %p13050_p7, %p13589_p0  ;;  %p13059_p5 = por %p13058_p6, %p13057_p9 }
  0x43   : > { %p13053_p11 = pneg %p13052_p8 }
  0x45   : > { %p13060_p10 = pnand %p13059_p5, %p13053_p11 }
  0x47   : > { %13063 = shalt.err (!%p13060_p10)
}
  0x48   : > { %12936 = dma.hbm_to_vmem [thread:$0]  (!%p13573_p12), %s16375_s1, 64, %s602_s24, [#allocation7]  }
  0x49   : > { %s16377_s7 = sld [smem:[#allocation46_spill]] }
  0x4f   : > { %s13064_s22 = scalar_lea.hbm %s16377_s7, 256 }
  0x50   : > { %p13065_p13 = scmp.ne.s32.totalorder %s16377_s7, %s13064_s22  ;;  %p13071_p5 = scmp.lt.u32.totalorder %s13064_s22, %s16377_s7 }
  0x52   : > { %p13067_p1 = pnand %p13065_p13, %p13589_p0 }
  0x54   : > { %p13068_p6 = pneg %p13067_p1 }
  0x56   : > { %p13073_p9 = pnand %p13071_p5, %p13068_p6 }
  0x58   : > { %13076 = shalt.err (!%p13073_p9)
}
  0x59   : > { %s13077_s24 = scalar_lea.vmem %s13577_s4, 256  ;;  %p13085_p4 = scmp.lt.s32.totalorder %s13577_s4, %s13577_s4 }
  0x5a   : > { %p13078_p10 = scmp.ne.s32.totalorder %s13577_s4, %s13077_s24  ;;  %p13086_p7 = scmp.lt.s32.totalorder %s13077_s24, %s13077_s24 }
  0x5c   : > { %p13080_p2 = pnand %p13078_p10, %p13589_p0  ;;  %p13087_p8 = por %p13086_p7, %p13085_p4 }
  0x5e   : > { %p13081_p3 = pneg %p13080_p2 }
  0x60   : > { %p13088_p11 = pnand %p13087_p8, %p13081_p3 }
  0x62   : > { %13091 = shalt.err (!%p13088_p11)
}
  0x63   : > { %12942 = dma.hbm_to_vmem [thread:$0]  (!%p13573_p12), %s16377_s7, 256, %s13577_s4, [#allocation10]  }
  0x64   : > { %s16378_s20 = sld [smem:[#allocation43_spill]] }
  0x6a   : > { %s13092_s2 = scalar_lea.hbm %s16378_s20, 32 }
  0x6b   : > { %p13093_p13 = scmp.ne.s32.totalorder %s16378_s20, %s13092_s2  ;;  %p13099_p5 = scmp.lt.u32.totalorder %s13092_s2, %s16378_s20 }
  0x6d   : > { %p13095_p1 = pnand %p13093_p13, %p13589_p0 }
  0x6f   : > { %p13096_p6 = pneg %p13095_p1 }
  0x71   : > { %p13101_p9 = pnand %p13099_p5, %p13096_p6 }
  0x73   : > { %13104 = shalt.err (!%p13101_p9)
}
  0x74   : > { %s13105_s4 = scalar_lea.vmem %s13579_s26, 32  ;;  %p13113_p4 = scmp.lt.s32.totalorder %s13579_s26, %s13579_s26 }
  0x75   : > { %p13106_p10 = scmp.ne.s32.totalorder %s13579_s26, %s13105_s4  ;;  %p13114_p7 = scmp.lt.s32.totalorder %s13105_s4, %s13105_s4 }
  0x77   : > { %p13108_p2 = pnand %p13106_p10, %p13589_p0  ;;  %p13115_p8 = por %p13114_p7, %p13113_p4 }
  0x79   : > { %p13109_p3 = pneg %p13108_p2 }
  0x7b   : > { %p13116_p11 = pnand %p13115_p8, %p13109_p3 }
  0x7d   : > { %13119 = shalt.err (!%p13116_p11)
}
  0x7e   : > { %12933 = dma.hbm_to_vmem [thread:$0]  (!%p13573_p12), %s16378_s20, 32, %s13579_s26, [#allocation3]  }
  0x7f   : > { %s13392_s21 = smov [#allocation8]   ;;  %s13393_s2 = smov [#allocation11]  }
  0x80   : > { %s612_s27 = sshll.u32 %s13392_s21, 4  ;;  %s633_s22 = sshll.u32 %s13393_s2, 4  ;;  %s613_s27 = int_to_ptr.vmem [resolvable:$true] %s612_s27  ;;  %s634_s22 = int_to_ptr.vmem [resolvable:$true] %s633_s22 }
  0x81   : > { %s16379_s6 = sld [smem:[#allocation45_spill]] }
  0x87   : > { %s13120_s24 = scalar_lea.hbm %s16379_s6, 128 }
  0x88   : > { %p13121_p13 = scmp.ne.s32.totalorder %s16379_s6, %s13120_s24  ;;  %p13127_p5 = scmp.lt.u32.totalorder %s13120_s24, %s16379_s6 }
  0x8a   : > { %p13123_p1 = pnand %p13121_p13, %p13589_p0 }
  0x8c   : > { %p13124_p6 = pneg %p13123_p1 }
  0x8e   : > { %p13129_p9 = pnand %p13127_p5, %p13124_p6 }
  0x90   : > { %13132 = shalt.err (!%p13129_p9)
}
  0x91   : > { %s13133_s26 = scalar_lea.vmem %s613_s27, 128  ;;  %p13141_p4 = scmp.lt.s32.totalorder %s613_s27, %s613_s27 }
  0x92   : > { %p13134_p10 = scmp.ne.s32.totalorder %s613_s27, %s13133_s26  ;;  %p13142_p7 = scmp.lt.s32.totalorder %s13133_s26, %s13133_s26 }
  0x94   : > { %p13136_p2 = pnand %p13134_p10, %p13589_p0  ;;  %p13143_p8 = por %p13142_p7, %p13141_p4 }
  0x96   : > { %p13137_p3 = pneg %p13136_p2 }
  0x98   : > { %p13144_p11 = pnand %p13143_p8, %p13137_p3 }
  0x9a   : > { %13147 = shalt.err (!%p13144_p11)
}
  0x9b   : > { %12939 = dma.hbm_to_vmem [thread:$0]  (!%p13573_p12), %s16379_s6, 128, %s613_s27, [#allocation7]  }
  0x9c   : > { %s16380_s8 = sld [smem:[#allocation47_spill]] }
  0xa2   : > { %s13148_s2 = scalar_lea.hbm %s16380_s8, 131072 }
  0xa3   : > { %p13149_p13 = scmp.ne.s32.totalorder %s16380_s8, %s13148_s2  ;;  %p13155_p5 = scmp.lt.u32.totalorder %s13148_s2, %s16380_s8 }
  0xa5   : > { %p13151_p1 = pnand %p13149_p13, %p13589_p0 }
  0xa7   : > { %p13152_p6 = pneg %p13151_p1 }
  0xa9   : > { %p13157_p9 = pnand %p13155_p5, %p13152_p6 }
  0xab   : > { %13160 = shalt.err (!%p13157_p9)
}
  0xac   : > { %s13161_s17 = scalar_lea.vmem %s634_s22, 131072  ;;  %p13169_p4 = scmp.lt.s32.totalorder %s634_s22, %s634_s22 }
  0xad   : > { %p13162_p10 = scmp.ne.s32.totalorder %s634_s22, %s13161_s17  ;;  %p13170_p7 = scmp.lt.s32.totalorder %s13161_s17, %s13161_s17 }
  0xaf   : > { %p13164_p2 = pnand %p13162_p10, %p13589_p0  ;;  %p13171_p8 = por %p13170_p7, %p13169_p4 }
  0xb1   : > { %p13165_p3 = pneg %p13164_p2 }
  0xb3   : > { %p13172_p11 = pnand %p13171_p8, %p13165_p3 }
  0xb5   : > { %13175 = shalt.err (!%p13172_p11)
}
  0xb6   : > { %s13394_s27 = smov 4096   ;;  %s13395_s26 = smov 256  }
  0xb7   : > { %12945 = dma.hbm_to_vmem [thread:$0]  (!%p13573_p12), %s16380_s8, 131072, %s634_s22, [#allocation10], %s13394_s27, %s13394_s27, %s13395_s26  }
  0xb8   : > { %s13176_s2 = scalar_lea.hbm %s16313_s12, 16 }
  0xb9   : > { %p13177_p13 = scmp.ne.s32.totalorder %s16313_s12, %s13176_s2  ;;  %p13183_p5 = scmp.lt.u32.totalorder %s13176_s2, %s16313_s12 }
  0xbb   : > { %p13179_p1 = pnand %p13177_p13, %p13589_p0 }
  0xbd   : > { %p13180_p6 = pneg %p13179_p1 }
  0xbf   : > { %p13185_p9 = pnand %p13183_p5, %p13180_p6 }
  0xc1   : > { %13188 = shalt.err (!%p13185_p9)
}
  0xc2   : > { %s13396_s17 = smov [#allocation12]   ;;  %p16381_p10 = scmp.ne.s32.totalorder %s16373_s23, 0 }
  0xc3   : > { %12948 = dma.hbm_to_smem (!%p13573_p12), %s16313_s12, 16, %s13396_s17, [#allocation5]  }
  0xc4   : > { %699 = sbr.rel (%p16381_p10) target bundleno = 2304 (0x900), region = 72 }
  0xcb   : > { %p16382_p2 = scmp.eq.s32.totalorder %s13535_s3, 0 }
  0xcd   : > { %13346 = dma.done.wait (%p16382_p2), [#allocation3], 32   ;;  %p16383_p0 = pmov %p16382_p2 }
  0xcf   : > { %13348 = vsyncadd (%p16383_p0), [#allocation3], 4294967264  ;;  %p16384_p3 = pmov %p16383_p0 }
  0xd0   : > { %p16385_p4 = pmov %p16383_p0 }
  0xd1   : > { %13350 = dma.done.wait (%p16384_p3), [#allocation7], 192  }
  0xd2   : > { %13352 = vsyncadd (%p16385_p4), [#allocation7], 4294967104  ;;  %p16386_p7 = pmov %p16383_p0 }
  0xd3   : > { %p16387_p12 = pmov %p16383_p0 }
  0xd4   : > { %13354 = dma.done.wait (%p16386_p7), [#allocation10], 131328  }
  0xd5   : > { %13356 = vsyncadd (%p16387_p12), [#allocation10], 4294835968  ;;  %p16388_p8 = pmov %p16383_p0 }
  0xd6   : > { %p16389_p11 = pmov %p16383_p0 }
  0xd7   : > { %13358 = dma.done.wait (%p16388_p8), [#allocation5], 16  }
  0xd8   : > { %13360 = vsyncadd (%p16389_p11), [#allocation5], 4294967280 }
  0xd9   : > { %725 = sfence }
  0xda   : > { %p827_p13 = scmp.lt.s32.totalorder %s13535_s3, 1  ;;  %v927_v0 = vlaneseq  ;;  %v1019_v1 = vld [vmem:[#allocation11 + $0x8] sm:$0xff]  ;;  %v1018_v5 = vld [vmem:[#allocation11] sm:$0xff]  ;;  %s16390_s1 = sld [smem:[#allocation39_spill]]  ;;  %vm1008_vm0 = vcmask 1040384   ;;  %vm1016_vm1 = vcmask 0  }
  0xdb   : > { %v1051_v2 = vld [vmem:[#allocation11 + $0x108] sm:$0xff]  ;;  %v1050_v6 = vld [vmem:[#allocation11 + $0x100] sm:$0xff]  ;;  %s924_s7 = sld [smem:[#allocation12]]  ;;  %s16341_s29 = sand.u32 1, %s13379_s25   ;;  %vm3905_vm2 = vcmask 523264   ;;  %vm3642_vm3 = vcmask 516096  }
  0xdc   : > { %s13723_s28 = scalar_select %p827_p13, %s13535_s3, 1  ;;  %v13725_v3 = vshrl.u32 %v927_v0, 7  ;;  %v11104_v4 = vpack.c.bf16 %v1051_v2, %v1019_v1  ;;  %v13727_v7 = vld [vmem:[#allocation2] sm:$0x3]  ;;  %v11106_v8 = vpack.c.bf16 %v1050_v6, %v1018_v5  ;;  %v1083_v9 = vld [vmem:[#allocation11 + $0x208] sm:$0xff]  ;;  %vm5836_vm4 = vcmask 130048  }
  0xdd   : > { %v1115_v10 = vld [vmem:[#allocation11 + $0x308] sm:$0xff]  ;;  %v1082_v13 = vld [vmem:[#allocation11 + $0x200] sm:$0xff]  ;;  %s13886_s24 = sshll.u32 %s16341_s29, 5  ;;  %s16391_s27 = sld [smem:[#allocation40_spill]]  ;;  %vm5765_vm5 = vcmask 122880   ;;  %vm8205_vm6 = vcmask 1043456  }
  0xde   : > { %s10541_s23 = sshll.u32 %s13723_s28, 9  ;;  %v13731_v11 = vsub.s32 1, %v13725_v3  ;;  %11105 = vmatprep.subr.bf16.mxu1 %v11104_v4  ;;  %v11108_v12 = vpack.c.bf16 %v1115_v10, %v1083_v9  ;;  %v1114_v14 = vld [vmem:[#allocation11 + $0x300] sm:$0xff]  ;;  %v1147_v58 = vld [vmem:[#allocation11 + $0x408] sm:$0xff]  ;;  %s849_s30 = scalar_lea.vmem %s16314_s13, %s13723_s28  ;;  %vm8201_vm7 = vcmask 31744   ;;  %vm8146_vm8 = vcmask 24576  }
  0xdf   : > { %11107 = vmatpush1.bf16.msra.mxu1 %v11106_v8  ;;  %v11110_v19 = vpack.c.bf16 %v1114_v14, %v1082_v13  ;;  %v1179_v61 = vld [vmem:[#allocation11 + $0x508] sm:$0xff]  ;;  %v1146_v63 = vld [vmem:[#allocation11 + $0x400] sm:$0xff]  ;;  %s13894_s4 = scalar_lea.vmem [#allocation13], %s13886_s24  ;;  %s16393_s9 = sld [smem:[#allocation48_spill]] }
  0xe0   : > { %s13738_s19 = scalar_lea.vmem %s16390_s1, %s10541_s23  ;;  %v934_v18 = vrot.slane %v13727_v7, %v13731_v11  ;;  %11109 = vmatprep.subr.bf16.mxu1 %v11108_v12  ;;  %v11112_v62 = vpack.c.bf16 %v1179_v61, %v1147_v58  ;;  %v1178_v0 = vld [vmem:[#allocation11 + $0x500] sm:$0xff]  ;;  %v1211_v4 = vld [vmem:[#allocation11 + $0x608] sm:$0xff]  ;;  %s10543_s22 = sshll.u32 %s13723_s28, 10 }
  0xe1   : > { %v860_v15 = vld [vmem:[%s13738_s19 + $0x8] sm:$0xff]  ;;  %v862_v16 = vld [vmem:[%s13738_s19 + $0x18] sm:$0xff]  ;;  %v859_v17 = vld [vmem:[%s13738_s19] sm:$0xff]  ;;  %v11114_v2 = vpack.c.bf16 %v1178_v0, %v1146_v63  ;;  %s852_s1 = scalar_lea.vmem %s16315_s14, %s13723_s28  ;;  %s16397_s10 = sld [smem:[#allocation49_spill]] }
  0xe2   : > { %v11040_v20 = vpack.c.bf16 %v862_v16, %v860_v15  ;;  %v861_v21 = vld [vmem:[%s13738_s19 + $0x10] sm:$0xff]  ;;  %v864_v22 = vld [vmem:[%s13738_s19 + $0x28] sm:$0xff]  ;;  %v866_v23 = vld [vmem:[%s13738_s19 + $0x38] sm:$0xff]  ;;  %1001 = vmatprep.mubr.f32.mxu0 %v934_v18  ;;  %s10458_s26 = sld [smem:[#allocation12 + $0x2]]  ;;  %s16402_s6 = sld [smem:[#allocation42_spill]] }
  0xe3   : > { %v11042_v24 = vpack.c.bf16 %v861_v21, %v859_v17  ;;  %v11044_v25 = vpack.c.bf16 %v866_v23, %v864_v22  ;;  %v863_v26 = vld [vmem:[%s13738_s19 + $0x20] sm:$0xff]  ;;  %v865_v27 = vld [vmem:[%s13738_s19 + $0x30] sm:$0xff]  ;;  %v868_v28 = vld [vmem:[%s13738_s19 + $0x48] sm:$0xff]  ;;  %11111 = vmatpush1.bf16.msra.mxu1 %v11110_v19  ;;  %s13950_s0 = scalar_lea.vmem %s16391_s27, %s10541_s23  ;;  %s10441_s23 = sld [smem:[#allocation12 + $0x1]] }
  0xe4   : > { %11041 = vmatprep.subr.bf16.mxu0 %v11040_v20  ;;  %v870_v29 = vld [vmem:[%s13738_s19 + $0x58] sm:$0xff]  ;;  %v11046_v30 = vpack.c.bf16 %v865_v27, %v863_v26  ;;  %v867_v32 = vld [vmem:[%s13738_s19 + $0x40] sm:$0xff]  ;;  %v869_v33 = vld [vmem:[%s13738_s19 + $0x50] sm:$0xff]  ;;  %11113 = vmatprep.subr.bf16.mxu1 %v11112_v62  ;;  %s855_s17 = scalar_lea.vmem %s16316_s15, %s13723_s28  ;;  %s16409_s11 = sld [smem:[#allocation50_spill]] }
  0xe5   : > { %11043 = vmatpush1.bf16.msra.mxu0 %v11042_v24  ;;  %v11048_v31 = vpack.c.bf16 %v870_v29, %v868_v28  ;;  %v872_v34 = vld [vmem:[%s13738_s19 + $0x68] sm:$0xff]  ;;  %v874_v35 = vld [vmem:[%s13738_s19 + $0x78] sm:$0xff]  ;;  %v11050_v36 = vpack.c.bf16 %v869_v33, %v867_v32  ;;  %v871_v38 = vld [vmem:[%s13738_s19 + $0x60] sm:$0xff]  ;;  %s16348_s2 = sand.u32 1, %s13535_s3   ;;  %p16410_p6 = scmp.ne.s32.totalorder %s16370_s5, 0 }
  0xe6   : > { %11045 = vmatprep.subr.bf16.mxu0 %v11044_v25  ;;  %v11052_v37 = vpack.c.bf16 %v874_v35, %v872_v34  ;;  %v873_v39 = vld [vmem:[%s13738_s19 + $0x70] sm:$0xff]  ;;  %v876_v40 = vld [vmem:[%s13738_s19 + $0x88] sm:$0xff]  ;;  %v878_v41 = vld [vmem:[%s13738_s19 + $0x98] sm:$0xff] }
  0xe7   : > { %v11054_v42 = vpack.c.bf16 %v873_v39, %v871_v38  ;;  %v11056_v43 = vpack.c.bf16 %v878_v41, %v876_v40  ;;  %v875_v44 = vld [vmem:[%s13738_s19 + $0x80] sm:$0xff]  ;;  %v877_v45 = vld [vmem:[%s13738_s19 + $0x90] sm:$0xff]  ;;  %v880_v46 = vld [vmem:[%s13738_s19 + $0xa8] sm:$0xff]  ;;  %11115 = vmatpush1.bf16.msra.mxu1 %v11114_v2 }
  0xe8   : > { %v882_v47 = vld [vmem:[%s13738_s19 + $0xb8] sm:$0xff]  ;;  %v11058_v48 = vpack.c.bf16 %v877_v45, %v875_v44  ;;  %v879_v50 = vld [vmem:[%s13738_s19 + $0xa0] sm:$0xff]  ;;  %v881_v51 = vld [vmem:[%s13738_s19 + $0xb0] sm:$0xff] }
  0xe9   : > { %11047 = vmatpush1.bf16.msra.mxu0 %v11046_v30  ;;  %v11060_v49 = vpack.c.bf16 %v882_v47, %v880_v46  ;;  %v884_v52 = vld [vmem:[%s13738_s19 + $0xc8] sm:$0xff]  ;;  %v886_v53 = vld [vmem:[%s13738_s19 + $0xd8] sm:$0xff]  ;;  %v11062_v54 = vpack.c.bf16 %v881_v51, %v879_v50  ;;  %v883_v56 = vld [vmem:[%s13738_s19 + $0xc0] sm:$0xff] }
  0xea   : > { %11049 = vmatprep.subr.bf16.mxu0 %v11048_v31  ;;  %v11064_v55 = vpack.c.bf16 %v886_v53, %v884_v52  ;;  %v885_v57 = vld [vmem:[%s13738_s19 + $0xd0] sm:$0xff]  ;;  %v888_v59 = vld [vmem:[%s13738_s19 + $0xe8] sm:$0xff]  ;;  %v890_v60 = vld [vmem:[%s13738_s19 + $0xf8] sm:$0xff] }
  0xeb   : > { %v11066_v1 = vpack.c.bf16 %v885_v57, %v883_v56  ;;  %v1243_v5 = vld [vmem:[#allocation11 + $0x708] sm:$0xff]  ;;  %v11068_v6 = vpack.c.bf16 %v890_v60, %v888_v59  ;;  %v889_v9 = vld [vmem:[%s13738_s19 + $0xf0] sm:$0xff]  ;;  %v1210_v12 = vld [vmem:[#allocation11 + $0x600] sm:$0xff] }
  0xec   : > { %v887_v8 = vld [vmem:[%s13738_s19 + $0xe0] sm:$0xff]  ;;  %v11116_v10 = vpack.c.bf16 %v1243_v5, %v1211_v4  ;;  %v892_v13 = vld [vmem:[%s13738_s19 + $0x108] sm:$0xff]  ;;  %v894_v14 = vld [vmem:[%s13738_s19 + $0x118] sm:$0xff] }
  0xed   : > { %11051 = vmatpush1.bf16.msra.mxu0 %v11050_v36  ;;  %v1242_v15 = vld [vmem:[#allocation11 + $0x700] sm:$0xff]  ;;  %v1275_v17 = vld [vmem:[#allocation11 + $0x808] sm:$0xff]  ;;  %v11070_v19 = vpack.c.bf16 %v889_v9, %v887_v8  ;;  %v11072_v23 = vpack.c.bf16 %v894_v14, %v892_v13  ;;  %v893_v25 = vld [vmem:[%s13738_s19 + $0x110] sm:$0xff] }
  0xee   : > { %11053 = vmatprep.subr.bf16.mxu0 %v11052_v37  ;;  %11117 = vmatprep.subr.bf16.mxu1 %v11116_v10  ;;  %v11118_v16 = vpack.c.bf16 %v1242_v15, %v1210_v12  ;;  %v1307_v18 = vld [vmem:[#allocation11 + $0x908] sm:$0xff]  ;;  %v1274_v21 = vld [vmem:[#allocation11 + $0x800] sm:$0xff]  ;;  %v897_v39 = vld [vmem:[%s13738_s19 + $0x130] sm:$0xff] }
  0xef   : > { %v11120_v20 = vpack.c.bf16 %v1307_v18, %v1275_v17  ;;  %v1306_v22 = vld [vmem:[#allocation11 + $0x900] sm:$0xff]  ;;  %v1339_v26 = vld [vmem:[#allocation11 + $0xa08] sm:$0xff]  ;;  %v901_v51 = vld [vmem:[%s13738_s19 + $0x150] sm:$0xff] }
  0xf0   : > { %v891_v24 = vld [vmem:[%s13738_s19 + $0x100] sm:$0xff]  ;;  %v896_v27 = vld [vmem:[%s13738_s19 + $0x128] sm:$0xff]  ;;  %v898_v28 = vld [vmem:[%s13738_s19 + $0x138] sm:$0xff]  ;;  %11119 = vmatpush1.bf16.msra.mxu1 %v11118_v16  ;;  %v11122_v29 = vpack.c.bf16 %v1306_v22, %v1274_v21 }
  0xf1   : > { %11055 = vmatpush1.bf16.msra.mxu0 %v11054_v42  ;;  %v1371_v30 = vld [vmem:[#allocation11 + $0xb08] sm:$0xff]  ;;  %11121 = vmatprep.subr.bf16.mxu1 %v11120_v20  ;;  %v1338_v32 = vld [vmem:[#allocation11 + $0xa00] sm:$0xff]  ;;  %v11074_v34 = vpack.c.bf16 %v893_v25, %v891_v24  ;;  %v11076_v37 = vpack.c.bf16 %v898_v28, %v896_v27  ;;  %v905_v63 = vld [vmem:[%s13738_s19 + $0x170] sm:$0xff] }
  0xf2   : > { %11057 = vmatprep.subr.bf16.mxu0 %v11056_v43  ;;  %v11124_v31 = vpack.c.bf16 %v1371_v30, %v1339_v26  ;;  %v1370_v33 = vld [vmem:[#allocation11 + $0xb00] sm:$0xff]  ;;  %v1403_v35 = vld [vmem:[#allocation11 + $0xc08] sm:$0xff]  ;;  %v909_v14 = vld [vmem:[%s13738_s19 + $0x190] sm:$0xff] }
  0xf3   : > { %v1435_v36 = vld [vmem:[#allocation11 + $0xd08] sm:$0xff]  ;;  %v902_v41 = vld [vmem:[%s13738_s19 + $0x158] sm:$0xff]  ;;  %v11126_v42 = vpack.c.bf16 %v1370_v33, %v1338_v32  ;;  %v913_v26 = vld [vmem:[%s13738_s19 + $0x1b0] sm:$0xff] }
  0xf4   : > { %v895_v38 = vld [vmem:[%s13738_s19 + $0x120] sm:$0xff]  ;;  %v900_v40 = vld [vmem:[%s13738_s19 + $0x148] sm:$0xff]  ;;  %11123 = vmatpush1.bf16.msra.mxu1 %v11122_v29  ;;  %v11128_v43 = vpack.c.bf16 %v1435_v36, %v1403_v35  ;;  %v906_v53 = vld [vmem:[%s13738_s19 + $0x178] sm:$0xff] }
  0xf5   : > { %11059 = vmatpush1.bf16.msra.mxu0 %v11058_v48  ;;  %11125 = vmatprep.subr.bf16.mxu1 %v11124_v31  ;;  %v1402_v44 = vld [vmem:[#allocation11 + $0xc00] sm:$0xff]  ;;  %v11078_v46 = vpack.c.bf16 %v897_v39, %v895_v38  ;;  %v1467_v47 = vld [vmem:[#allocation11 + $0xe08] sm:$0xff]  ;;  %v917_v38 = vld [vmem:[%s13738_s19 + $0x1d0] sm:$0xff] }
  0xf6   : > { %11061 = vmatprep.subr.bf16.mxu0 %v11060_v49  ;;  %v1434_v45 = vld [vmem:[#allocation11 + $0xd00] sm:$0xff]  ;;  %v1499_v48 = vld [vmem:[#allocation11 + $0xf08] sm:$0xff]  ;;  %v11080_v49 = vpack.c.bf16 %v902_v41, %v900_v40 }
  0xf7   : > { %v899_v50 = vld [vmem:[%s13738_s19 + $0x140] sm:$0xff]  ;;  %v904_v52 = vld [vmem:[%s13738_s19 + $0x168] sm:$0xff]  ;;  %v914_v16 = vld [vmem:[%s13738_s19 + $0x1b8] sm:$0xff] }
  0xf8   : > { %11127 = vmatpush1.bf16.msra.mxu1 %v11126_v42  ;;  %v1466_v56 = vld [vmem:[#allocation11 + $0xe00] sm:$0xff]  ;;  %v11082_v58 = vpack.c.bf16 %v901_v51, %v899_v50  ;;  %v1531_v59 = vld [vmem:[#allocation11 + $0x1008] sm:$0xff]  ;;  %v11084_v61 = vpack.c.bf16 %v906_v53, %v904_v52  ;;  %v921_v50 = vld [vmem:[%s13738_s19 + $0x1f0] sm:$0xff] }
  0xf9   : > { %11063 = vmatpush1.bf16.msra.mxu0 %v11062_v54  ;;  %v11130_v54 = vpack.c.bf16 %v1434_v45, %v1402_v44  ;;  %11129 = vmatprep.subr.bf16.mxu1 %v11128_v43  ;;  %v1498_v57 = vld [vmem:[#allocation11 + $0xf00] sm:$0xff]  ;;  %v1563_v60 = vld [vmem:[#allocation11 + $0x1108] sm:$0xff]  ;;  %v1021_v51 = vld [vmem:[#allocation11 + $0x18] sm:$0xff] }
  0xfa   : > { %11065 = vmatprep.subr.bf16.mxu0 %v11064_v55  ;;  %v11132_v55 = vpack.c.bf16 %v1499_v48, %v1467_v47  ;;  %v903_v62 = vld [vmem:[%s13738_s19 + $0x160] sm:$0xff]  ;;  %v908_v0 = vld [vmem:[%s13738_s19 + $0x188] sm:$0xff]  ;;  %v11134_v2 = vpack.c.bf16 %v1498_v57, %v1466_v56  ;;  %v11136_v4 = vpack.c.bf16 %v1563_v60, %v1531_v59  ;;  %v918_v28 = vld [vmem:[%s13738_s19 + $0x1d8] sm:$0xff] }
  0xfb   : > { %v1530_v5 = vld [vmem:[#allocation11 + $0x1000] sm:$0xff]  ;;  %v11086_v8 = vpack.c.bf16 %v905_v63, %v903_v62  ;;  %v1595_v9 = vld [vmem:[#allocation11 + $0x1208] sm:$0xff]  ;;  %v1053_v52 = vld [vmem:[#allocation11 + $0x118] sm:$0xff] }
  0xfc   : > { %11131 = vmatpush1.bf16.msra.mxu1 %v11130_v54  ;;  %v1627_v10 = vld [vmem:[#allocation11 + $0x1308] sm:$0xff]  ;;  %v1626_v20 = vld [vmem:[#allocation11 + $0x1300] sm:$0xff]  ;;  %v13807_v54 = vsub.s32 0, %v13725_v3  ;;  %v1020_v62 = vld [vmem:[#allocation11 + $0x10] sm:$0xff] }
  0xfd   : > { %11067 = vmatpush1.bf16.msra.mxu0 %v11066_v1  ;;  %v910_v1 = vld [vmem:[%s13738_s19 + $0x198] sm:$0xff]  ;;  %11133 = vmatprep.subr.bf16.mxu1 %v11132_v55  ;;  %v907_v13 = vld [vmem:[%s13738_s19 + $0x180] sm:$0xff]  ;;  %v912_v15 = vld [vmem:[%s13738_s19 + $0x1a8] sm:$0xff]  ;;  %v11140_v18 = vpack.c.bf16 %v1627_v10, %v1595_v9 }
  0xfe   : > { %11069 = vmatprep.subr.bf16.mxu0 %v11068_v6  ;;  %v1562_v6 = vld [vmem:[#allocation11 + $0x1100] sm:$0xff]  ;;  %v11088_v12 = vpack.c.bf16 %v910_v1, %v908_v0  ;;  %v11090_v21 = vpack.c.bf16 %v909_v14, %v907_v13  ;;  %v1659_v22 = vld [vmem:[#allocation11 + $0x1408] sm:$0xff]  ;;  %v11092_v24 = vpack.c.bf16 %v914_v16, %v912_v15  ;;  %v1052_v63 = vld [vmem:[#allocation11 + $0x110] sm:$0xff] }
  0xff   : > { %v11138_v17 = vpack.c.bf16 %v1562_v6, %v1530_v5  ;;  %v911_v25 = vld [vmem:[%s13738_s19 + $0x1a0] sm:$0xff]  ;;  %v916_v27 = vld [vmem:[%s13738_s19 + $0x1c8] sm:$0xff]  ;;  %v922_v40 = vld [vmem:[%s13738_s19 + $0x1f8] sm:$0xff]  ;;  %v11170_v9 = vpack.c.bf16 %v1052_v63, %v1020_v62 }
 0x100   : > { %11135 = vmatpush1.bf16.msra.mxu1 %v11134_v2  ;;  %v1658_v31 = vld [vmem:[#allocation11 + $0x1400] sm:$0xff]  ;;  %v11094_v33 = vpack.c.bf16 %v913_v26, %v911_v25  ;;  %v1755_v35 = vld [vmem:[#allocation11 + $0x1708] sm:$0xff]  ;;  %v11096_v36 = vpack.c.bf16 %v918_v28, %v916_v27  ;;  %v1085_v0 = vld [vmem:[#allocation11 + $0x218] sm:$0xff] }
 0x101   : > { %11071 = vmatpush1.bf16.msra.mxu0 %v11070_v19  ;;  %11137 = vmatprep.subr.bf16.mxu1 %v11136_v4  ;;  %v1594_v19 = vld [vmem:[#allocation11 + $0x1200] sm:$0xff]  ;;  %v920_v39 = vld [vmem:[%s13738_s19 + $0x1e8] sm:$0xff]  ;;  %v1117_v1 = vld [vmem:[#allocation11 + $0x318] sm:$0xff]  ;;  %v930_v4 = vrot.slane %v13727_v7, %v13807_v54 }
 0x102   : > { %11073 = vmatprep.subr.bf16.mxu0 %v11072_v23  ;;  %v1691_v23 = vld [vmem:[#allocation11 + $0x1508] sm:$0xff]  ;;  %v11142_v29 = vpack.c.bf16 %v1626_v20, %v1594_v19  ;;  %v1690_v32 = vld [vmem:[#allocation11 + $0x1500] sm:$0xff]  ;;  %v11100_v48 = vpack.c.bf16 %v922_v40, %v920_v39  ;;  %v11172_v13 = vpack.c.bf16 %v1117_v1, %v1085_v0  ;;  %v1084_v14 = vld [vmem:[#allocation11 + $0x210] sm:$0xff] }
 0x103   : > { %v11144_v30 = vpack.c.bf16 %v1691_v23, %v1659_v22  ;;  %v11146_v41 = vpack.c.bf16 %v1690_v32, %v1658_v31  ;;  %v1722_v43 = vld [vmem:[#allocation11 + $0x1600] sm:$0xff]  ;;  %v1819_v47 = vld [vmem:[#allocation11 + $0x1908] sm:$0xff]  ;;  %v1116_v15 = vld [vmem:[#allocation11 + $0x310] sm:$0xff] }
 0x104   : > { %11139 = vmatpush1.bf16.msra.mxu1 %v11138_v17  ;;  %v1754_v44 = vld [vmem:[#allocation11 + $0x1700] sm:$0xff]  ;;  %v1851_v59 = vld [vmem:[#allocation11 + $0x1a08] sm:$0xff]  ;;  %v1149_v16 = vld [vmem:[#allocation11 + $0x418] sm:$0xff] }
 0x105   : > { %11075 = vmatpush1.bf16.msra.mxu0 %v11074_v34  ;;  %11141 = vmatprep.subr.bf16.mxu1 %v11140_v18  ;;  %v1723_v34 = vld [vmem:[#allocation11 + $0x1608] sm:$0xff]  ;;  %v11150_v53 = vpack.c.bf16 %v1754_v44, %v1722_v43  ;;  %v1786_v56 = vld [vmem:[#allocation11 + $0x1800] sm:$0xff]  ;;  %v1181_v17 = vld [vmem:[#allocation11 + $0x518] sm:$0xff] }
 0x106   : > { %11077 = vmatprep.subr.bf16.mxu0 %v11076_v37  ;;  %v915_v37 = vld [vmem:[%s13738_s19 + $0x1c0] sm:$0xff]  ;;  %v11148_v42 = vpack.c.bf16 %v1755_v35, %v1723_v34  ;;  %v11176_v22 = vpack.c.bf16 %v1181_v17, %v1149_v16  ;;  %v1148_v23 = vld [vmem:[#allocation11 + $0x410] sm:$0xff]  ;;  %v1213_v25 = vld [vmem:[#allocation11 + $0x618] sm:$0xff] }
 0x107   : > { %v11098_v45 = vpack.c.bf16 %v917_v38, %v915_v37  ;;  %v1818_v57 = vld [vmem:[#allocation11 + $0x1900] sm:$0xff]  ;;  %v1883_v60 = vld [vmem:[#allocation11 + $0x1b08] sm:$0xff]  ;;  %v1245_v26 = vld [vmem:[#allocation11 + $0x718] sm:$0xff] }
 0x108   : > { %11143 = vmatpush1.bf16.msra.mxu1 %v11142_v29  ;;  %v11154_v2 = vpack.c.bf16 %v1818_v57, %v1786_v56  ;;  %v11156_v5 = vpack.c.bf16 %v1883_v60, %v1851_v59  ;;  %v1850_v6 = vld [vmem:[#allocation11 + $0x1a00] sm:$0xff]  ;;  %v1915_v10 = vld [vmem:[#allocation11 + $0x1c08] sm:$0xff]  ;;  %v11180_v29 = vpack.c.bf16 %v1245_v26, %v1213_v25  ;;  %v1244_v31 = vld [vmem:[#allocation11 + $0x710] sm:$0xff] }
 0x109   : > { %11079 = vmatpush1.bf16.msra.mxu0 %v11078_v46  ;;  %11145 = vmatprep.subr.bf16.mxu1 %v11144_v30  ;;  %v1787_v46 = vld [vmem:[#allocation11 + $0x1808] sm:$0xff]  ;;  %v1914_v7 = vld [vmem:[#allocation11 + $0x1c00] sm:$0xff]  ;;  %v1212_v30 = vld [vmem:[#allocation11 + $0x610] sm:$0xff] }
 0x10a   : > { %11081 = vmatprep.subr.bf16.mxu0 %v11080_v49  ;;  %v919_v49 = vld [vmem:[%s13738_s19 + $0x1e0] sm:$0xff]  ;;  %v11152_v55 = vpack.c.bf16 %v1819_v47, %v1787_v46  ;;  %v1277_v32 = vld [vmem:[#allocation11 + $0x818] sm:$0xff]  ;;  %v11182_v34 = vpack.c.bf16 %v1244_v31, %v1212_v30  ;;  %v1308_v37 = vld [vmem:[#allocation11 + $0x910] sm:$0xff]  ;;  %s13399_s19 = smov [#allocation14]  }
 0x10b   : > { %v1946_v20 = vld [vmem:[#allocation11 + $0x1d00] sm:$0xff]  ;;  %v1341_v38 = vld [vmem:[#allocation11 + $0xa18] sm:$0xff]  ;;  %v1372_v43 = vld [vmem:[#allocation11 + $0xb10] sm:$0xff]  ;;  %s13193_s29 = sshll.u32 %s13399_s19, 4  ;;  %s13194_s29 = int_to_ptr.vmem [resolvable:$false] %s13193_s29 }
 0x10c   : > { %11147 = vmatpush1.bf16.msra.mxu1 %v11146_v41  ;;  %v11162_v27 = vpack.c.bf16 %v1946_v20, %v1914_v7  ;;  %v1373_v39 = vld [vmem:[#allocation11 + $0xb18] sm:$0xff]  ;;  %v1500_v56 = vld [vmem:[#allocation11 + $0xf10] sm:$0xff] }
 0x10d   : > { %11083 = vmatpush1.bf16.msra.mxu0 %v11082_v58  ;;  %11149 = vmatprep.subr.bf16.mxu1 %v11148_v42  ;;  %v11102_v58 = vpack.c.bf16 %v921_v50, %v919_v49  ;;  %v11188_v41 = vpack.c.bf16 %v1373_v39, %v1341_v38  ;;  %v1340_v42 = vld [vmem:[#allocation11 + $0xa10] sm:$0xff]  ;;  %v1405_v44 = vld [vmem:[#allocation11 + $0xc18] sm:$0xff]  ;;  %v1979_v38 = vld [vmem:[#allocation11 + $0x1e08] sm:$0xff] }
 0x10e   : > { %11085 = vmatprep.subr.bf16.mxu0 %v11084_v61  ;;  %v11168_v61 = vpack.c.bf16 %v1053_v52, %v1021_v51  ;;  %v11190_v46 = vpack.c.bf16 %v1372_v43, %v1340_v42  ;;  %v1436_v49 = vld [vmem:[#allocation11 + $0xd10] sm:$0xff]  ;;  %v1469_v50 = vld [vmem:[#allocation11 + $0xe18] sm:$0xff]  ;;  %v2011_v39 = vld [vmem:[#allocation11 + $0x1f08] sm:$0xff] }
 0x10f   : > { %v1501_v51 = vld [vmem:[#allocation11 + $0xf18] sm:$0xff]  ;;  %v1564_v62 = vld [vmem:[#allocation11 + $0x1110] sm:$0xff]  ;;  %v1978_v43 = vld [vmem:[#allocation11 + $0x1e00] sm:$0xff] }
 0x110   : > { %11151 = vmatpush1.bf16.msra.mxu1 %v11150_v53  ;;  %v11196_v53 = vpack.c.bf16 %v1501_v51, %v1469_v50  ;;  %v1533_v57 = vld [vmem:[#allocation11 + $0x1018] sm:$0xff]  ;;  %v1884_v30 = vld [vmem:[#allocation11 + $0x1b10] sm:$0xff]  ;;  %v1023_v50 = vld [vmem:[#allocation11 + $0x28] sm:$0xff] }
 0x111   : > { %11087 = vmatpush1.bf16.msra.mxu0 %v11086_v8  ;;  %11153 = vmatprep.subr.bf16.mxu1 %v11152_v55  ;;  %v1882_v8 = vld [vmem:[#allocation11 + $0x1b00] sm:$0xff]  ;;  %v1468_v55 = vld [vmem:[#allocation11 + $0xe10] sm:$0xff]  ;;  %v1597_v63 = vld [vmem:[#allocation11 + $0x1218] sm:$0xff] }
 0x112   : > { %11089 = vmatprep.subr.bf16.mxu0 %v11088_v12  ;;  %v1947_v12 = vld [vmem:[#allocation11 + $0x1d08] sm:$0xff]  ;;  %v11158_v18 = vpack.c.bf16 %v1882_v8, %v1850_v6  ;;  %v11198_v59 = vpack.c.bf16 %v1500_v56, %v1468_v55  ;;  %v1629_v0 = vld [vmem:[#allocation11 + $0x1318] sm:$0xff] }
 0x113   : > { %v11160_v19 = vpack.c.bf16 %v1947_v12, %v1915_v10  ;;  %v1661_v6 = vld [vmem:[#allocation11 + $0x1418] sm:$0xff]  ;;  %v1660_v12 = vld [vmem:[#allocation11 + $0x1410] sm:$0xff]  ;;  %v1055_v51 = vld [vmem:[#allocation11 + $0x128] sm:$0xff] }
 0x114   : > { %11155 = vmatpush1.bf16.msra.mxu1 %v11154_v2  ;;  %v11204_v2 = vpack.c.bf16 %v1629_v0, %v1597_v63  ;;  %v1693_v8 = vld [vmem:[#allocation11 + $0x1518] sm:$0xff] }
 0x115   : > { %11091 = vmatpush1.bf16.msra.mxu0 %v11090_v21  ;;  %11157 = vmatprep.subr.bf16.mxu1 %v11156_v5  ;;  %v11174_v21 = vpack.c.bf16 %v1116_v15, %v1084_v14  ;;  %v1628_v5 = vld [vmem:[#allocation11 + $0x1310] sm:$0xff]  ;;  %v11208_v10 = vpack.c.bf16 %v1693_v8, %v1661_v6  ;;  %v1725_v14 = vld [vmem:[#allocation11 + $0x1618] sm:$0xff] }
 0x116   : > { %11093 = vmatprep.subr.bf16.mxu0 %v11092_v24  ;;  %v1180_v24 = vld [vmem:[#allocation11 + $0x510] sm:$0xff]  ;;  %v1757_v15 = vld [vmem:[#allocation11 + $0x1718] sm:$0xff] }
 0x117   : > { %v11178_v28 = vpack.c.bf16 %v1180_v24, %v1148_v23  ;;  %v11212_v17 = vpack.c.bf16 %v1757_v15, %v1725_v14  ;;  %v1789_v7 = vld [vmem:[#allocation11 + $0x1818] sm:$0xff]  ;;  %v1788_v23 = vld [vmem:[#allocation11 + $0x1810] sm:$0xff] }
 0x118   : > { %11159 = vmatpush1.bf16.msra.mxu1 %v11158_v18  ;;  %v1724_v18 = vld [vmem:[#allocation11 + $0x1610] sm:$0xff]  ;;  %v1821_v20 = vld [vmem:[#allocation11 + $0x1918] sm:$0xff] }
 0x119   : > { %11095 = vmatpush1.bf16.msra.mxu0 %v11094_v33  ;;  %11161 = vmatprep.subr.bf16.mxu1 %v11160_v19  ;;  %v1309_v33 = vld [vmem:[#allocation11 + $0x918] sm:$0xff]  ;;  %v1756_v19 = vld [vmem:[#allocation11 + $0x1710] sm:$0xff] }
 0x11a   : > { %11097 = vmatprep.subr.bf16.mxu0 %v11096_v36  ;;  %v11184_v35 = vpack.c.bf16 %v1309_v33, %v1277_v32  ;;  %v1276_v36 = vld [vmem:[#allocation11 + $0x810] sm:$0xff]  ;;  %v1853_v25 = vld [vmem:[#allocation11 + $0x1a18] sm:$0xff] }
 0x11b   : > { %v11186_v40 = vpack.c.bf16 %v1308_v37, %v1276_v36  ;;  %v1820_v24 = vld [vmem:[#allocation11 + $0x1910] sm:$0xff]  ;;  %v1885_v26 = vld [vmem:[#allocation11 + $0x1b18] sm:$0xff] }
 0x11c   : > { %11163 = vmatpush1.bf16.msra.mxu1 %v11162_v27  ;;  %v11218_v27 = vpack.c.bf16 %v1820_v24, %v1788_v23  ;;  %v1917_v31 = vld [vmem:[#allocation11 + $0x1c18] sm:$0xff]  ;;  %v1948_v36 = vld [vmem:[#allocation11 + $0x1d10] sm:$0xff] }
 0x11d   : > { %11099 = vmatpush1.bf16.msra.mxu0 %v11098_v45  ;;  %v1437_v45 = vld [vmem:[#allocation11 + $0xd18] sm:$0xff]  ;;  %v1088_v14 = vld [vmem:[#allocation11 + $0x230] sm:$0xff] }
 0x11e   : > { %11101 = vmatprep.subr.bf16.mxu0 %v11100_v48  ;;  %v11192_v47 = vpack.c.bf16 %v1437_v45, %v1405_v44  ;;  %v1404_v48 = vld [vmem:[#allocation11 + $0xc10] sm:$0xff]  ;;  %v1949_v32 = vld [vmem:[#allocation11 + $0x1d18] sm:$0xff]  ;;  %v2010_v44 = vld [vmem:[#allocation11 + $0x1f00] sm:$0xff] }
 0x11f   : > { %v11194_v52 = vpack.c.bf16 %v1436_v49, %v1404_v48  ;;  %v2013_v42 = vld [vmem:[#allocation11 + $0x1f18] sm:$0xff]  ;;  %v2012_v48 = vld [vmem:[#allocation11 + $0x1f10] sm:$0xff] }
 0x120   : > { %v1057_v55 = vld [vmem:[#allocation11 + $0x138] sm:$0xff]  ;;  %v1120_v15 = vld [vmem:[#allocation11 + $0x330] sm:$0xff] }
 0x121   : > { %11103 = vmatpush1.bf16.msra.mxu0 %v11102_v58  ;;  %v1565_v58 = vld [vmem:[#allocation11 + $0x1118] sm:$0xff]  ;;  %v11302_v24 = vpack.c.bf16 %v1120_v15, %v1088_v14  ;;  %v1406_v15 = vld [vmem:[#allocation11 + $0xc20] sm:$0xff] }
 0x122   : > { %11169 = vmatprep.subr.bf16.mxu0 %v11168_v61  ;;  %v11200_v60 = vpack.c.bf16 %v1565_v58, %v1533_v57  ;;  %v1532_v61 = vld [vmem:[#allocation11 + $0x1010] sm:$0xff]  ;;  %v925_v57 = vstv %s924_s7  ;;  %v1022_v58 = vld [vmem:[#allocation11 + $0x20] sm:$0xff]  ;;  %s10544_s7 = sshll.u32 %s13723_s28, 11 }
 0x123   : > { %v11202_v1 = vpack.c.bf16 %v1564_v62, %v1532_v61  ;;  %v1056_v61 = vld [vmem:[#allocation11 + $0x130] sm:$0xff]  ;;  %s15429_s21 = scalar_lea.vmem %s16402_s6, %s10544_s7  ;;  %s10475_s6 = sld [smem:[#allocation12 + $0x3]] }
 0x124   : > { %1002 = vmatmul.mubr.f32.vlgmr.msra.gmra.mrb[0].mxu0 %v930_v4  ;;  %v1596_v4 = vld [vmem:[#allocation11 + $0x1210] sm:$0xff] }
 0x125   : > { %11171 = vmatpush1.bf16.msra.mxu0 %v11170_v9  ;;  %v11206_v9 = vpack.c.bf16 %v1628_v5, %v1596_v4  ;;  %v1089_v4 = vld [vmem:[#allocation11 + $0x238] sm:$0xff] }
 0x126   : > { %11173 = vmatprep.subr.bf16.mxu0 %v11172_v13  ;;  %v1692_v13 = vld [vmem:[#allocation11 + $0x1510] sm:$0xff] }
 0x127   : > { %v11210_v16 = vpack.c.bf16 %v1692_v13, %v1660_v12  ;;  %v1118_v12 = vld [vmem:[#allocation11 + $0x320] sm:$0xff] }
 0x129   : > { %11175 = vmatpush1.bf16.msra.mxu0 %v11174_v21  ;;  %v11214_v21 = vpack.c.bf16 %v1756_v19, %v1724_v18  ;;  %v1183_v19 = vld [vmem:[#allocation11 + $0x528] sm:$0xff] }
 0x12a   : > { %11177 = vmatprep.subr.bf16.mxu0 %v11176_v22  ;;  %v11216_v22 = vpack.c.bf16 %v1821_v20, %v1789_v7  ;;  %v1153_v7 = vld [vmem:[#allocation11 + $0x438] sm:$0xff] }
 0x12b   : > { %v1185_v20 = vld [vmem:[#allocation11 + $0x538] sm:$0xff] }
 0x12d   : > { %11179 = vmatpush1.bf16.msra.mxu0 %v11178_v28  ;;  %v11220_v28 = vpack.c.bf16 %v1885_v26, %v1853_v25  ;;  %v1150_v25 = vld [vmem:[#allocation11 + $0x420] sm:$0xff] }
 0x12e   : > { %11181 = vmatprep.subr.bf16.mxu0 %v11180_v29  ;;  %v1852_v29 = vld [vmem:[#allocation11 + $0x1a10] sm:$0xff]  ;;  %v1182_v26 = vld [vmem:[#allocation11 + $0x520] sm:$0xff] }
 0x12f   : > { %v11222_v33 = vpack.c.bf16 %v1884_v30, %v1852_v29  ;;  %v1152_v29 = vld [vmem:[#allocation11 + $0x430] sm:$0xff] }
 0x130   : > { %v1184_v30 = vld [vmem:[#allocation11 + $0x530] sm:$0xff] }
 0x131   : > { %11183 = vmatpush1.bf16.msra.mxu0 %v11182_v34  ;;  %v11224_v34 = vpack.c.bf16 %v1949_v32, %v1917_v31  ;;  %v1215_v31 = vld [vmem:[#allocation11 + $0x628] sm:$0xff] }
 0x132   : > { %11185 = vmatprep.subr.bf16.mxu0 %v11184_v35  ;;  %v1916_v35 = vld [vmem:[#allocation11 + $0x1c10] sm:$0xff]  ;;  %v1247_v32 = vld [vmem:[#allocation11 + $0x728] sm:$0xff] }
 0x133   : > { %v11226_v37 = vpack.c.bf16 %v1948_v36, %v1916_v35  ;;  %v11242_v35 = vpack.c.bf16 %v1182_v26, %v1150_v25  ;;  %v11306_v36 = vpack.c.bf16 %v1184_v30, %v1152_v29  ;;  %v1470_v26 = vld [vmem:[#allocation11 + $0xe20] sm:$0xff]  ;;  %v1472_v30 = vld [vmem:[#allocation11 + $0xe30] sm:$0xff] }
 0x135   : > { %11187 = vmatpush1.bf16.msra.mxu0 %v11186_v40  ;;  %v1981_v40 = vld [vmem:[#allocation11 + $0x1e18] sm:$0xff] }
 0x136   : > { %11189 = vmatprep.subr.bf16.mxu0 %v11188_v41  ;;  %v11164_v41 = vpack.c.bf16 %v2011_v39, %v1979_v38  ;;  %v11228_v45 = vpack.c.bf16 %v2013_v42, %v1981_v40  ;;  %v1246_v38 = vld [vmem:[#allocation11 + $0x720] sm:$0xff]  ;;  %v11244_v39 = vpack.c.bf16 %v1247_v32, %v1215_v31  ;;  %v1248_v42 = vld [vmem:[#allocation11 + $0x730] sm:$0xff]  ;;  %v1535_v32 = vld [vmem:[#allocation11 + $0x1028] sm:$0xff] }
 0x137   : > { %v1504_v31 = vld [vmem:[#allocation11 + $0xf30] sm:$0xff] }
 0x138   : > { %11165 = vmatprep.subr.bf16.mxu1 %v11164_v41  ;;  %v1216_v41 = vld [vmem:[#allocation11 + $0x630] sm:$0xff] }
 0x139   : > { %11191 = vmatpush1.bf16.msra.mxu0 %v11190_v46  ;;  %v11166_v46 = vpack.c.bf16 %v2010_v44, %v1978_v43  ;;  %v1279_v43 = vld [vmem:[#allocation11 + $0x828] sm:$0xff] }
 0x13a   : > { %11193 = vmatprep.subr.bf16.mxu0 %v11192_v47  ;;  %v1980_v47 = vld [vmem:[#allocation11 + $0x1e10] sm:$0xff]  ;;  %v1311_v44 = vld [vmem:[#allocation11 + $0x928] sm:$0xff] }
 0x13b   : > { %v11230_v49 = vpack.c.bf16 %v2012_v48, %v1980_v47  ;;  %11167 = vmatpush1.bf16.msra.mxu1 %v11166_v46  ;;  %v1313_v46 = vld [vmem:[#allocation11 + $0x938] sm:$0xff]  ;;  %v11310_v48 = vpack.c.bf16 %v1248_v42, %v1216_v41  ;;  %v1536_v42 = vld [vmem:[#allocation11 + $0x1030] sm:$0xff] }
 0x13d   : > { %11195 = vmatpush1.bf16.msra.mxu0 %v11194_v52  ;;  %v1025_v52 = vld [vmem:[#allocation11 + $0x38] sm:$0xff] }
 0x13e   : > { %11197 = vmatprep.subr.bf16.mxu0 %v11196_v53  ;;  %v11232_v53 = vpack.c.bf16 %v1055_v51, %v1023_v50  ;;  %v11296_v56 = vpack.c.bf16 %v1057_v55, %v1025_v52  ;;  %v1310_v50 = vld [vmem:[#allocation11 + $0x920] sm:$0xff]  ;;  %v11248_v51 = vpack.c.bf16 %v1311_v44, %v1279_v43  ;;  %v1312_v55 = vld [vmem:[#allocation11 + $0x930] sm:$0xff]  ;;  %v1599_v44 = vld [vmem:[#allocation11 + $0x1228] sm:$0xff] }
 0x13f   : > { %v1568_v43 = vld [vmem:[#allocation11 + $0x1130] sm:$0xff] }
 0x140   : > { %11233 = vmatprep.subr.bf16.mxu1 %v11232_v53  ;;  %v1280_v53 = vld [vmem:[#allocation11 + $0x830] sm:$0xff] }
 0x141   : > { %11199 = vmatpush1.bf16.msra.mxu0 %v11198_v59  ;;  %v1054_v59 = vld [vmem:[#allocation11 + $0x120] sm:$0xff] }
 0x142   : > { %11201 = vmatprep.subr.bf16.mxu0 %v11200_v60  ;;  %v1024_v60 = vld [vmem:[#allocation11 + $0x30] sm:$0xff]  ;;  %v11234_v6 = vpack.c.bf16 %v1054_v59, %v1022_v58  ;;  %v1345_v58 = vld [vmem:[#allocation11 + $0xa38] sm:$0xff] }
 0x143   : > { %v11298_v8 = vpack.c.bf16 %v1056_v61, %v1024_v60  ;;  %v1377_v59 = vld [vmem:[#allocation11 + $0xb38] sm:$0xff]  ;;  %v11314_v61 = vpack.c.bf16 %v1312_v55, %v1280_v53  ;;  %v1600_v55 = vld [vmem:[#allocation11 + $0x1230] sm:$0xff] }
 0x145   : > { %11203 = vmatpush1.bf16.msra.mxu0 %v11202_v1  ;;  %v1087_v1 = vld [vmem:[#allocation11 + $0x228] sm:$0xff] }
 0x146   : > { %11205 = vmatprep.subr.bf16.mxu0 %v11204_v2  ;;  %v1119_v2 = vld [vmem:[#allocation11 + $0x328] sm:$0xff] }
 0x147   : > { %v11236_v18 = vpack.c.bf16 %v1119_v2, %v1087_v1  ;;  %v11316_v2 = vpack.c.bf16 %v1377_v59, %v1345_v58  ;;  %v1695_v58 = vld [vmem:[#allocation11 + $0x1528] sm:$0xff]  ;;  %v1665_v59 = vld [vmem:[#allocation11 + $0x1438] sm:$0xff] }
 0x149   : > { %11207 = vmatpush1.bf16.msra.mxu0 %v11206_v9  ;;  %v1121_v9 = vld [vmem:[#allocation11 + $0x338] sm:$0xff] }
 0x14a   : > { %11209 = vmatprep.subr.bf16.mxu0 %v11208_v10  ;;  %v1086_v10 = vld [vmem:[#allocation11 + $0x220] sm:$0xff] }
 0x14b   : > { %v11238_v23 = vpack.c.bf16 %v1118_v12, %v1086_v10  ;;  %v1409_v10 = vld [vmem:[#allocation11 + $0xc38] sm:$0xff] }
 0x14c   : > { %v1441_v12 = vld [vmem:[#allocation11 + $0xd38] sm:$0xff] }
 0x14d   : > { %11211 = vmatpush1.bf16.msra.mxu0 %v11210_v16  ;;  %v1151_v16 = vld [vmem:[#allocation11 + $0x428] sm:$0xff] }
 0x14e   : > { %11213 = vmatprep.subr.bf16.mxu0 %v11212_v17 }
 0x151   : > { %11215 = vmatpush1.bf16.msra.mxu0 %v11214_v21 }
 0x152   : > { %11217 = vmatprep.subr.bf16.mxu0 %v11216_v22  ;;  %v11300_v22 = vpack.c.bf16 %v1121_v9, %v1089_v4  ;;  %v1344_v4 = vld [vmem:[#allocation11 + $0xa30] sm:$0xff]  ;;  %v1439_v9 = vld [vmem:[#allocation11 + $0xd28] sm:$0xff] }
 0x155   : > { %11219 = vmatpush1.bf16.msra.mxu0 %v11218_v27  ;;  %v11240_v27 = vpack.c.bf16 %v1183_v19, %v1151_v16  ;;  %v1438_v16 = vld [vmem:[#allocation11 + $0xd20] sm:$0xff]  ;;  %v1408_v19 = vld [vmem:[#allocation11 + $0xc30] sm:$0xff] }
 0x156   : > { %11221 = vmatprep.subr.bf16.mxu0 %v11220_v28  ;;  %v11304_v28 = vpack.c.bf16 %v1185_v20, %v1153_v7  ;;  %v1440_v7 = vld [vmem:[#allocation11 + $0xd30] sm:$0xff]  ;;  %v1471_v20 = vld [vmem:[#allocation11 + $0xe28] sm:$0xff] }
 0x157   : > { %v11322_v25 = vpack.c.bf16 %v1440_v7, %v1408_v19  ;;  %v1728_v7 = vld [vmem:[#allocation11 + $0x1630] sm:$0xff] }
 0x159   : > { %11223 = vmatpush1.bf16.msra.mxu0 %v11222_v33  ;;  %v1217_v33 = vld [vmem:[#allocation11 + $0x638] sm:$0xff] }
 0x15a   : > { %11225 = vmatprep.subr.bf16.mxu0 %v11224_v34  ;;  %v1249_v34 = vld [vmem:[#allocation11 + $0x738] sm:$0xff] }
 0x15b   : > { %v11308_v40 = vpack.c.bf16 %v1249_v34, %v1217_v33  ;;  %v1567_v33 = vld [vmem:[#allocation11 + $0x1128] sm:$0xff]  ;;  %v1537_v34 = vld [vmem:[#allocation11 + $0x1038] sm:$0xff] }
 0x15d   : > { %11227 = vmatpush1.bf16.msra.mxu0 %v11226_v37  ;;  %v1214_v37 = vld [vmem:[#allocation11 + $0x620] sm:$0xff] }
 0x15e   : > { %11229 = vmatprep.subr.bf16.mxu0 %v11228_v45  ;;  %v1281_v45 = vld [vmem:[#allocation11 + $0x838] sm:$0xff]  ;;  %v11246_v47 = vpack.c.bf16 %v1246_v38, %v1214_v37  ;;  %v11326_v37 = vpack.c.bf16 %v1504_v31, %v1472_v30  ;;  %v1534_v38 = vld [vmem:[#allocation11 + $0x1020] sm:$0xff]  ;;  %v1792_v31 = vld [vmem:[#allocation11 + $0x1830] sm:$0xff] }
 0x15f   : > { %v11312_v52 = vpack.c.bf16 %v1313_v46, %v1281_v45  ;;  %v1631_v45 = vld [vmem:[#allocation11 + $0x1328] sm:$0xff]  ;;  %v1601_v46 = vld [vmem:[#allocation11 + $0x1238] sm:$0xff] }
 0x161   : > { %11231 = vmatpush1.bf16.msra.mxu0 %v11230_v49  ;;  %v1278_v49 = vld [vmem:[#allocation11 + $0x820] sm:$0xff] }
 0x162   : > { %11297 = vmatprep.subr.bf16.mxu0 %v11296_v56  ;;  %v1343_v56 = vld [vmem:[#allocation11 + $0xa28] sm:$0xff]  ;;  %v11250_v60 = vpack.c.bf16 %v1310_v50, %v1278_v49  ;;  %v11330_v49 = vpack.c.bf16 %v1568_v43, %v1536_v42  ;;  %v1598_v50 = vld [vmem:[#allocation11 + $0x1220] sm:$0xff]  ;;  %v1856_v43 = vld [vmem:[#allocation11 + $0x1a30] sm:$0xff] }
 0x1f7   : > { %v1003_v62 = vpop.f32.mrb[0].mxu0 }
 0x1f8   : > { %v13811_v63 = vadd.f32 %v1003_v62, %v925_v57  ;;  %v1005_v0 = vpop.f32.mrb[1].mxu0  ;;  %v1342_v62 = vld [vmem:[#allocation11 + $0xa20] sm:$0xff] }
 0x1f9   : > { %v13813_v5 = vadd.f32 %v1005_v0, %v925_v57  ;;  %v1375_v57 = vld [vmem:[#allocation11 + $0xb28] sm:$0xff]  ;;  %v1374_v0 = vld [vmem:[#allocation11 + $0xb20] sm:$0xff] }
 0x1fa   : > { %v1009_v13 = vsel %vm1008_vm0, %v13811_v63, 0.0  ;;  %v11252_v1 = vpack.c.bf16 %v1375_v57, %v1343_v56  ;;  %v1632_v56 = vld [vmem:[#allocation11 + $0x1330] sm:$0xff]  ;;  %v1663_v57 = vld [vmem:[#allocation11 + $0x1428] sm:$0xff] }
 0x1fb   : > { %2106 = vmatprep.mubr.f32.mxu1 %v13813_v5  ;;  %2177 = vmatprep.mubr.f32.mxu0 %v13813_v5  ;;  %v1010_v17 = vsel %vm1008_vm0, %v13813_v5, 0.0 }
 0x1fc   : > { %2107 = vmatmul.mubr.f32.vlgmr.msra.gmra.mrb[0].mxu1 %v13811_v63  ;;  %2178 = vmatmul.mubr.f32.vlgmr.msra.gmra.mrb[2].mxu0 %v13811_v63  ;;  %v1011_v21 = vadd.f32 %v1010_v17, %v1009_v13  ;;  %v11254_v13 = vpack.c.bf16 %v1374_v0, %v1342_v62  ;;  %v11334_v62 = vpack.c.bf16 %v1632_v56, %v1600_v55  ;;  %v1662_v0 = vld [vmem:[#allocation11 + $0x1420] sm:$0xff]  ;;  %v1920_v56 = vld [vmem:[#allocation11 + $0x1c30] sm:$0xff] }
 0x1fd   : > { %11235 = vmatpush1.bf16.msra.mxu1 %v11234_v6  ;;  %11299 = vmatpush1.bf16.msra.mxu0 %v11298_v8  ;;  %v1376_v6 = vld [vmem:[#allocation11 + $0xb30] sm:$0xff]  ;;  %v1407_v8 = vld [vmem:[#allocation11 + $0xc28] sm:$0xff] }
 0x1fe   : > { %2248 = vmatprep.mubr.f32.mxu1 %v13813_v5  ;;  %2319 = vmatprep.mubr.f32.mxu0 %v13813_v5  ;;  %v11318_v14 = vpack.c.bf16 %v1376_v6, %v1344_v4  ;;  %v11256_v17 = vpack.c.bf16 %v1439_v9, %v1407_v8  ;;  %v1664_v6 = vld [vmem:[#allocation11 + $0x1430] sm:$0xff]  ;;  %v1727_v9 = vld [vmem:[#allocation11 + $0x1628] sm:$0xff] }
 0x1ff   : > { %1012 = vadd.xlane.f32.xlu0 %v1011_v21  ;;  %11237 = vmatprep.subr.bf16.mxu1 %v11236_v18  ;;  %v11320_v18 = vpack.c.bf16 %v1441_v12, %v1409_v10  ;;  %v1503_v21 = vld [vmem:[#allocation11 + $0xf28] sm:$0xff]  ;;  %v1696_v8 = vld [vmem:[#allocation11 + $0x1530] sm:$0xff]  ;;  %v1729_v12 = vld [vmem:[#allocation11 + $0x1638] sm:$0xff] }
 0x200   : > { %11301 = vmatprep.subr.bf16.mxu0 %v11300_v22  ;;  %v1473_v22 = vld [vmem:[#allocation11 + $0xe38] sm:$0xff]  ;;  %v1759_v10 = vld [vmem:[#allocation11 + $0x1728] sm:$0xff] }
 0x201   : > { %11239 = vmatpush1.bf16.msra.mxu1 %v11238_v23  ;;  %11303 = vmatpush1.bf16.msra.mxu0 %v11302_v24  ;;  %v1505_v23 = vld [vmem:[#allocation11 + $0xf38] sm:$0xff]  ;;  %v11258_v24 = vpack.c.bf16 %v1438_v16, %v1406_v15  ;;  %v11338_v15 = vpack.c.bf16 %v1696_v8, %v1664_v6  ;;  %v1726_v16 = vld [vmem:[#allocation11 + $0x1620] sm:$0xff]  ;;  %v1984_v8 = vld [vmem:[#allocation11 + $0x1e30] sm:$0xff] }
 0x202   : > { %11241 = vmatprep.subr.bf16.mxu1 %v11240_v27  ;;  %11305 = vmatprep.subr.bf16.mxu0 %v11304_v28  ;;  %v1502_v27 = vld [vmem:[#allocation11 + $0xf20] sm:$0xff]  ;;  %v11260_v28 = vpack.c.bf16 %v1503_v21, %v1471_v20  ;;  %v11324_v29 = vpack.c.bf16 %v1505_v23, %v1473_v22  ;;  %v1760_v20 = vld [vmem:[#allocation11 + $0x1730] sm:$0xff]  ;;  %v1791_v21 = vld [vmem:[#allocation11 + $0x1828] sm:$0xff] }
 0x203   : > { %v1823_v22 = vld [vmem:[#allocation11 + $0x1928] sm:$0xff]  ;;  %v1793_v23 = vld [vmem:[#allocation11 + $0x1838] sm:$0xff] }
 0x205   : > { %11243 = vmatpush1.bf16.msra.mxu1 %v11242_v35  ;;  %11307 = vmatpush1.bf16.msra.mxu0 %v11306_v36  ;;  %v1569_v35 = vld [vmem:[#allocation11 + $0x1138] sm:$0xff]  ;;  %v11262_v36 = vpack.c.bf16 %v1502_v27, %v1470_v26  ;;  %v11342_v26 = vpack.c.bf16 %v1760_v20, %v1728_v7  ;;  %v1790_v27 = vld [vmem:[#allocation11 + $0x1820] sm:$0xff]  ;;  %v1028_v20 = vld [vmem:[#allocation11 + $0x50] sm:$0xff] }
 0x206   : > { %11245 = vmatprep.subr.bf16.mxu1 %v11244_v39  ;;  %11309 = vmatprep.subr.bf16.mxu0 %v11308_v40  ;;  %v1566_v39 = vld [vmem:[#allocation11 + $0x1120] sm:$0xff]  ;;  %v11264_v40 = vpack.c.bf16 %v1567_v33, %v1535_v32  ;;  %v11328_v41 = vpack.c.bf16 %v1569_v35, %v1537_v34  ;;  %v1824_v32 = vld [vmem:[#allocation11 + $0x1930] sm:$0xff]  ;;  %v1855_v33 = vld [vmem:[#allocation11 + $0x1a28] sm:$0xff] }
 0x207   : > { %v1887_v34 = vld [vmem:[#allocation11 + $0x1b28] sm:$0xff]  ;;  %v1857_v35 = vld [vmem:[#allocation11 + $0x1a38] sm:$0xff]  ;;  %v1058_v7 = vld [vmem:[#allocation11 + $0x140] sm:$0xff] }
 0x209   : > { %11247 = vmatpush1.bf16.msra.mxu1 %v11246_v47  ;;  %11311 = vmatpush1.bf16.msra.mxu0 %v11310_v48  ;;  %v1633_v47 = vld [vmem:[#allocation11 + $0x1338] sm:$0xff]  ;;  %v11266_v48 = vpack.c.bf16 %v1566_v39, %v1534_v38  ;;  %v11346_v38 = vpack.c.bf16 %v1824_v32, %v1792_v31  ;;  %v1854_v39 = vld [vmem:[#allocation11 + $0x1a20] sm:$0xff] }
 0x20a   : > { %11249 = vmatprep.subr.bf16.mxu1 %v11248_v51  ;;  %11313 = vmatprep.subr.bf16.mxu0 %v11312_v52  ;;  %v1630_v51 = vld [vmem:[#allocation11 + $0x1320] sm:$0xff]  ;;  %v11268_v52 = vpack.c.bf16 %v1631_v45, %v1599_v44  ;;  %v11332_v53 = vpack.c.bf16 %v1633_v47, %v1601_v46  ;;  %v1888_v44 = vld [vmem:[#allocation11 + $0x1b30] sm:$0xff]  ;;  %v1919_v45 = vld [vmem:[#allocation11 + $0x1c28] sm:$0xff] }
 0x20b   : > { %v1951_v46 = vld [vmem:[#allocation11 + $0x1d28] sm:$0xff]  ;;  %v1921_v47 = vld [vmem:[#allocation11 + $0x1c38] sm:$0xff] }
 0x20d   : > { %11251 = vmatpush1.bf16.msra.mxu1 %v11250_v60  ;;  %11315 = vmatpush1.bf16.msra.mxu0 %v11314_v61  ;;  %v1697_v60 = vld [vmem:[#allocation11 + $0x1538] sm:$0xff]  ;;  %v11270_v61 = vpack.c.bf16 %v1630_v51, %v1598_v50  ;;  %v11350_v50 = vpack.c.bf16 %v1888_v44, %v1856_v43  ;;  %v1918_v51 = vld [vmem:[#allocation11 + $0x1c20] sm:$0xff]  ;;  %v1156_v43 = vld [vmem:[#allocation11 + $0x450] sm:$0xff] }
 0x20e   : > { %11253 = vmatprep.subr.bf16.mxu1 %v11252_v1  ;;  %11317 = vmatprep.subr.bf16.mxu0 %v11316_v2  ;;  %v1694_v1 = vld [vmem:[#allocation11 + $0x1520] sm:$0xff]  ;;  %v11272_v2 = vpack.c.bf16 %v1695_v58, %v1663_v57  ;;  %v11336_v4 = vpack.c.bf16 %v1697_v60, %v1665_v59  ;;  %v1952_v57 = vld [vmem:[#allocation11 + $0x1d30] sm:$0xff]  ;;  %v1983_v58 = vld [vmem:[#allocation11 + $0x1e28] sm:$0xff] }
 0x20f   : > { %v2015_v59 = vld [vmem:[#allocation11 + $0x1f28] sm:$0xff]  ;;  %v1985_v60 = vld [vmem:[#allocation11 + $0x1e38] sm:$0xff] }
 0x211   : > { %11255 = vmatpush1.bf16.msra.mxu1 %v11254_v13  ;;  %11319 = vmatpush1.bf16.msra.mxu0 %v11318_v14  ;;  %v1761_v13 = vld [vmem:[#allocation11 + $0x1738] sm:$0xff]  ;;  %v11274_v14 = vpack.c.bf16 %v1694_v1, %v1662_v0  ;;  %v11354_v0 = vpack.c.bf16 %v1952_v57, %v1920_v56  ;;  %v1982_v1 = vld [vmem:[#allocation11 + $0x1e20] sm:$0xff]  ;;  %v1220_v56 = vld [vmem:[#allocation11 + $0x650] sm:$0xff] }
 0x212   : > { %11257 = vmatprep.subr.bf16.mxu1 %v11256_v17  ;;  %11321 = vmatprep.subr.bf16.mxu0 %v11320_v18  ;;  %v1758_v17 = vld [vmem:[#allocation11 + $0x1720] sm:$0xff]  ;;  %v11276_v18 = vpack.c.bf16 %v1759_v10, %v1727_v9  ;;  %v11340_v19 = vpack.c.bf16 %v1761_v13, %v1729_v12  ;;  %v2016_v9 = vld [vmem:[#allocation11 + $0x1f30] sm:$0xff]  ;;  %v1027_v10 = vld [vmem:[#allocation11 + $0x48] sm:$0xff] }
 0x213   : > { %v1059_v12 = vld [vmem:[#allocation11 + $0x148] sm:$0xff]  ;;  %v1029_v13 = vld [vmem:[#allocation11 + $0x58] sm:$0xff] }
 0x215   : > { %11259 = vmatpush1.bf16.msra.mxu1 %v11258_v24  ;;  %11323 = vmatpush1.bf16.msra.mxu0 %v11322_v25  ;;  %v1825_v24 = vld [vmem:[#allocation11 + $0x1938] sm:$0xff]  ;;  %v11278_v25 = vpack.c.bf16 %v1758_v17, %v1726_v16  ;;  %v11358_v16 = vpack.c.bf16 %v2016_v9, %v1984_v8  ;;  %v11360_v17 = vpack.c.bf16 %v1059_v12, %v1027_v10  ;;  %v1284_v8 = vld [vmem:[#allocation11 + $0x850] sm:$0xff]  ;;  %v1347_v12 = vld [vmem:[#allocation11 + $0xa48] sm:$0xff] }
 0x216   : > { %11261 = vmatprep.subr.bf16.mxu1 %v11260_v28  ;;  %11325 = vmatprep.subr.bf16.mxu0 %v11324_v29  ;;  %v1822_v28 = vld [vmem:[#allocation11 + $0x1920] sm:$0xff]  ;;  %v11280_v29 = vpack.c.bf16 %v1823_v22, %v1791_v21  ;;  %v11344_v30 = vpack.c.bf16 %v1825_v24, %v1793_v23  ;;  %v1060_v21 = vld [vmem:[#allocation11 + $0x150] sm:$0xff]  ;;  %v1091_v22 = vld [vmem:[#allocation11 + $0x248] sm:$0xff] }
 0x217   : > { %v1123_v23 = vld [vmem:[#allocation11 + $0x348] sm:$0xff]  ;;  %v1093_v24 = vld [vmem:[#allocation11 + $0x258] sm:$0xff]  ;;  %v1316_v10 = vld [vmem:[#allocation11 + $0x950] sm:$0xff] }
 0x218   : > { %v11364_v31 = vpack.c.bf16 %v1123_v23, %v1091_v22  ;;  %v1380_v22 = vld [vmem:[#allocation11 + $0xb50] sm:$0xff]  ;;  %v1411_v23 = vld [vmem:[#allocation11 + $0xc48] sm:$0xff] }
 0x219   : > { %11263 = vmatpush1.bf16.msra.mxu1 %v11262_v36  ;;  %11327 = vmatpush1.bf16.msra.mxu0 %v11326_v37  ;;  %v1889_v36 = vld [vmem:[#allocation11 + $0x1b38] sm:$0xff]  ;;  %v11282_v37 = vpack.c.bf16 %v1822_v28, %v1790_v27  ;;  %v11426_v27 = vpack.c.bf16 %v1060_v21, %v1028_v20  ;;  %v1090_v28 = vld [vmem:[#allocation11 + $0x240] sm:$0xff]  ;;  %v1348_v20 = vld [vmem:[#allocation11 + $0xa50] sm:$0xff] }
 0x21a   : > { %11265 = vmatprep.subr.bf16.mxu1 %v11264_v40  ;;  %11329 = vmatprep.subr.bf16.mxu0 %v11328_v41  ;;  %v1886_v40 = vld [vmem:[#allocation11 + $0x1b20] sm:$0xff]  ;;  %v11284_v41 = vpack.c.bf16 %v1887_v34, %v1855_v33  ;;  %v11348_v42 = vpack.c.bf16 %v1889_v36, %v1857_v35  ;;  %v1124_v33 = vld [vmem:[#allocation11 + $0x350] sm:$0xff]  ;;  %v1155_v34 = vld [vmem:[#allocation11 + $0x448] sm:$0xff] }
 0x21b   : > { %v1187_v35 = vld [vmem:[#allocation11 + $0x548] sm:$0xff]  ;;  %v1157_v36 = vld [vmem:[#allocation11 + $0x458] sm:$0xff] }
 0x21d   : > { %11267 = vmatpush1.bf16.msra.mxu1 %v11266_v48  ;;  %11331 = vmatpush1.bf16.msra.mxu0 %v11330_v49  ;;  %v1953_v48 = vld [vmem:[#allocation11 + $0x1d38] sm:$0xff]  ;;  %v11286_v49 = vpack.c.bf16 %v1886_v40, %v1854_v39  ;;  %v11368_v40 = vpack.c.bf16 %v1187_v35, %v1155_v34  ;;  %v1444_v34 = vld [vmem:[#allocation11 + $0xd50] sm:$0xff]  ;;  %v1475_v35 = vld [vmem:[#allocation11 + $0xe48] sm:$0xff] }
 0x21e   : > { %11269 = vmatprep.subr.bf16.mxu1 %v11268_v52  ;;  %11333 = vmatprep.subr.bf16.mxu0 %v11332_v53  ;;  %v1950_v52 = vld [vmem:[#allocation11 + $0x1d20] sm:$0xff]  ;;  %v11288_v53 = vpack.c.bf16 %v1951_v46, %v1919_v45  ;;  %v11352_v55 = vpack.c.bf16 %v1953_v48, %v1921_v47  ;;  %v1188_v45 = vld [vmem:[#allocation11 + $0x550] sm:$0xff]  ;;  %v1219_v46 = vld [vmem:[#allocation11 + $0x648] sm:$0xff] }
 0x21f   : > { %v1251_v47 = vld [vmem:[#allocation11 + $0x748] sm:$0xff]  ;;  %v1221_v48 = vld [vmem:[#allocation11 + $0x658] sm:$0xff] }
 0x221   : > { %11271 = vmatpush1.bf16.msra.mxu1 %v11270_v61  ;;  %11335 = vmatpush1.bf16.msra.mxu0 %v11334_v62  ;;  %v2017_v61 = vld [vmem:[#allocation11 + $0x1f38] sm:$0xff]  ;;  %v11290_v62 = vpack.c.bf16 %v1950_v52, %v1918_v51  ;;  %v11434_v51 = vpack.c.bf16 %v1188_v45, %v1156_v43  ;;  %v11372_v52 = vpack.c.bf16 %v1251_v47, %v1219_v46  ;;  %v1506_v43 = vld [vmem:[#allocation11 + $0xf40] sm:$0xff]  ;;  %v1508_v46 = vld [vmem:[#allocation11 + $0xf50] sm:$0xff] }
 0x222   : > { %11273 = vmatprep.subr.bf16.mxu1 %v11272_v2  ;;  %11337 = vmatprep.subr.bf16.mxu0 %v11336_v4  ;;  %v2014_v2 = vld [vmem:[#allocation11 + $0x1f20] sm:$0xff]  ;;  %v11292_v4 = vpack.c.bf16 %v2015_v59, %v1983_v58  ;;  %v11356_v6 = vpack.c.bf16 %v2017_v61, %v1985_v60  ;;  %v1252_v58 = vld [vmem:[#allocation11 + $0x750] sm:$0xff]  ;;  %v1283_v59 = vld [vmem:[#allocation11 + $0x848] sm:$0xff] }
 0x223   : > { %v1315_v60 = vld [vmem:[#allocation11 + $0x948] sm:$0xff]  ;;  %v1285_v61 = vld [vmem:[#allocation11 + $0x858] sm:$0xff] }
 0x224   : > { %v1539_v47 = vld [vmem:[#allocation11 + $0x1048] sm:$0xff] }
 0x225   : > { %11275 = vmatpush1.bf16.msra.mxu1 %v11274_v14  ;;  %11339 = vmatpush1.bf16.msra.mxu0 %v11338_v15  ;;  %v1061_v14 = vld [vmem:[#allocation11 + $0x158] sm:$0xff]  ;;  %v11294_v15 = vpack.c.bf16 %v2014_v2, %v1982_v1  ;;  %v11438_v1 = vpack.c.bf16 %v1252_v58, %v1220_v56  ;;  %v11376_v2 = vpack.c.bf16 %v1315_v60, %v1283_v59  ;;  %v1570_v56 = vld [vmem:[#allocation11 + $0x1140] sm:$0xff]  ;;  %v1572_v59 = vld [vmem:[#allocation11 + $0x1150] sm:$0xff] }
 0x226   : > { %11277 = vmatprep.subr.bf16.mxu1 %v11276_v18  ;;  %11341 = vmatprep.subr.bf16.mxu0 %v11340_v19  ;;  %v11424_v18 = vpack.c.bf16 %v1061_v14, %v1029_v13  ;;  %v1026_v19 = vld [vmem:[#allocation11 + $0x40] sm:$0xff]  ;;  %v1379_v13 = vld [vmem:[#allocation11 + $0xb48] sm:$0xff]  ;;  %v1349_v14 = vld [vmem:[#allocation11 + $0xa58] sm:$0xff] }
 0x227   : > { %v1603_v60 = vld [vmem:[#allocation11 + $0x1248] sm:$0xff] }
 0x229   : > { %11279 = vmatpush1.bf16.msra.mxu1 %v11278_v25  ;;  %11343 = vmatpush1.bf16.msra.mxu0 %v11342_v26  ;;  %v1125_v25 = vld [vmem:[#allocation11 + $0x358] sm:$0xff]  ;;  %v11362_v26 = vpack.c.bf16 %v1058_v7, %v1026_v19  ;;  %v1346_v19 = vld [vmem:[#allocation11 + $0xa40] sm:$0xff] }
 0x22a   : > { %11281 = vmatprep.subr.bf16.mxu1 %v11280_v29  ;;  %11345 = vmatprep.subr.bf16.mxu0 %v11344_v30  ;;  %v1122_v29 = vld [vmem:[#allocation11 + $0x340] sm:$0xff]  ;;  %v1092_v30 = vld [vmem:[#allocation11 + $0x250] sm:$0xff]  ;;  %v11428_v32 = vpack.c.bf16 %v1125_v25, %v1093_v24  ;;  %v1443_v24 = vld [vmem:[#allocation11 + $0xd48] sm:$0xff] }
 0x22b   : > { %v11430_v39 = vpack.c.bf16 %v1124_v33, %v1092_v30  ;;  %v1378_v7 = vld [vmem:[#allocation11 + $0xb40] sm:$0xff]  ;;  %v1413_v25 = vld [vmem:[#allocation11 + $0xc58] sm:$0xff] }
 0x22c   : > { %v1410_v30 = vld [vmem:[#allocation11 + $0xc40] sm:$0xff] }
 0x22d   : > { %11283 = vmatpush1.bf16.msra.mxu1 %v11282_v37  ;;  %11347 = vmatpush1.bf16.msra.mxu0 %v11346_v38  ;;  %v1189_v37 = vld [vmem:[#allocation11 + $0x558] sm:$0xff]  ;;  %v11366_v38 = vpack.c.bf16 %v1122_v29, %v1090_v28  ;;  %v11446_v28 = vpack.c.bf16 %v1380_v22, %v1348_v20  ;;  %v11384_v29 = vpack.c.bf16 %v1443_v24, %v1411_v23  ;;  %v1698_v20 = vld [vmem:[#allocation11 + $0x1540] sm:$0xff]  ;;  %v1700_v23 = vld [vmem:[#allocation11 + $0x1550] sm:$0xff] }
 0x22e   : > { %11285 = vmatprep.subr.bf16.mxu1 %v11284_v41  ;;  %11349 = vmatprep.subr.bf16.mxu0 %v11348_v42  ;;  %v1154_v41 = vld [vmem:[#allocation11 + $0x440] sm:$0xff]  ;;  %v11432_v44 = vpack.c.bf16 %v1189_v37, %v1157_v36  ;;  %v1507_v36 = vld [vmem:[#allocation11 + $0xf48] sm:$0xff]  ;;  %v1477_v37 = vld [vmem:[#allocation11 + $0xe58] sm:$0xff] }
 0x22f   : > { %v1186_v42 = vld [vmem:[#allocation11 + $0x540] sm:$0xff]  ;;  %v1731_v24 = vld [vmem:[#allocation11 + $0x1648] sm:$0xff] }
 0x231   : > { %11287 = vmatpush1.bf16.msra.mxu1 %v11286_v49  ;;  %11351 = vmatpush1.bf16.msra.mxu0 %v11350_v50  ;;  %v1253_v49 = vld [vmem:[#allocation11 + $0x758] sm:$0xff]  ;;  %v11370_v50 = vpack.c.bf16 %v1186_v42, %v1154_v41  ;;  %v11388_v41 = vpack.c.bf16 %v1507_v36, %v1475_v35  ;;  %v1474_v42 = vld [vmem:[#allocation11 + $0xe40] sm:$0xff]  ;;  %v1764_v35 = vld [vmem:[#allocation11 + $0x1750] sm:$0xff] }
 0x232   : > { %11289 = vmatprep.subr.bf16.mxu1 %v11288_v53  ;;  %11353 = vmatprep.subr.bf16.mxu0 %v11352_v55  ;;  %v1218_v53 = vld [vmem:[#allocation11 + $0x640] sm:$0xff]  ;;  %v11436_v57 = vpack.c.bf16 %v1253_v49, %v1221_v48  ;;  %v1571_v48 = vld [vmem:[#allocation11 + $0x1148] sm:$0xff]  ;;  %v1541_v49 = vld [vmem:[#allocation11 + $0x1058] sm:$0xff] }
 0x233   : > { %v1250_v55 = vld [vmem:[#allocation11 + $0x740] sm:$0xff]  ;;  %v1795_v36 = vld [vmem:[#allocation11 + $0x1848] sm:$0xff] }
 0x235   : > { %11291 = vmatpush1.bf16.msra.mxu1 %v11290_v62  ;;  %11355 = vmatpush1.bf16.msra.mxu0 %v11354_v0  ;;  %v1317_v62 = vld [vmem:[#allocation11 + $0x958] sm:$0xff]  ;;  %v11374_v0 = vpack.c.bf16 %v1250_v55, %v1218_v53  ;;  %v11392_v53 = vpack.c.bf16 %v1571_v48, %v1539_v47  ;;  %v1538_v55 = vld [vmem:[#allocation11 + $0x1040] sm:$0xff]  ;;  %v1828_v47 = vld [vmem:[#allocation11 + $0x1950] sm:$0xff] }
 0x236   : > { %11293 = vmatprep.subr.bf16.mxu1 %v11292_v4  ;;  %11357 = vmatprep.subr.bf16.mxu0 %v11356_v6  ;;  %v1282_v4 = vld [vmem:[#allocation11 + $0x840] sm:$0xff]  ;;  %v11440_v9 = vpack.c.bf16 %v1317_v62, %v1285_v61  ;;  %v1635_v61 = vld [vmem:[#allocation11 + $0x1348] sm:$0xff]  ;;  %v1605_v62 = vld [vmem:[#allocation11 + $0x1258] sm:$0xff] }
 0x237   : > { %v1314_v6 = vld [vmem:[#allocation11 + $0x940] sm:$0xff]  ;;  %v1859_v48 = vld [vmem:[#allocation11 + $0x1a48] sm:$0xff] }
 0x239   : > { %11295 = vmatpush1.bf16.msra.mxu1 %v11294_v15  ;;  %11359 = vmatpush1.bf16.msra.mxu0 %v11358_v16  ;;  %v1381_v15 = vld [vmem:[#allocation11 + $0xb58] sm:$0xff]  ;;  %v11378_v16 = vpack.c.bf16 %v1314_v6, %v1282_v4  ;;  %v11396_v4 = vpack.c.bf16 %v1635_v61, %v1603_v60  ;;  %v1602_v6 = vld [vmem:[#allocation11 + $0x1240] sm:$0xff]  ;;  %v1892_v60 = vld [vmem:[#allocation11 + $0x1b50] sm:$0xff] }
 0x23a   : > { %11361 = vmatprep.subr.bf16.mxu1 %v11360_v17  ;;  %11425 = vmatprep.subr.bf16.mxu0 %v11424_v18  ;;  %v11442_v17 = vpack.c.bf16 %v1316_v10, %v1284_v8  ;;  %v11380_v18 = vpack.c.bf16 %v1379_v13, %v1347_v12  ;;  %v11444_v21 = vpack.c.bf16 %v1381_v15, %v1349_v14  ;;  %v1634_v8 = vld [vmem:[#allocation11 + $0x1340] sm:$0xff]  ;;  %v1636_v12 = vld [vmem:[#allocation11 + $0x1350] sm:$0xff]  ;;  %v1667_v13 = vld [vmem:[#allocation11 + $0x1448] sm:$0xff] }
 0x23b   : > { %v1699_v14 = vld [vmem:[#allocation11 + $0x1548] sm:$0xff]  ;;  %v1669_v15 = vld [vmem:[#allocation11 + $0x1458] sm:$0xff] }
 0x23c   : > { %2249 = vmatmul.mubr.f32.vlgmr.msra.gmra.mrb[2].mxu1 %v13811_v63  ;;  %2320 = vmatmul.mubr.f32.vlgmr.msra.gmra.mrb[4].mxu0 %v13811_v63  ;;  %v1923_v61 = vld [vmem:[#allocation11 + $0x1c48] sm:$0xff] }
 0x23d   : > { %11363 = vmatpush1.bf16.msra.mxu1 %v11362_v26  ;;  %2390 = vmatprep.mubr.f32.mxu1 %v13813_v5  ;;  %v1445_v26 = vld [vmem:[#allocation11 + $0xd58] sm:$0xff] }
 0x23e   : > { %11427 = vmatpush1.bf16.msra.mxu0 %v11426_v27  ;;  %2461 = vmatprep.mubr.f32.mxu0 %v13813_v5  ;;  %v11382_v27 = vpack.c.bf16 %v1378_v7, %v1346_v19  ;;  %v11448_v33 = vpack.c.bf16 %v1445_v26, %v1413_v25  ;;  %v11400_v19 = vpack.c.bf16 %v1699_v14, %v1667_v13  ;;  %v1666_v7 = vld [vmem:[#allocation11 + $0x1440] sm:$0xff]  ;;  %v1763_v25 = vld [vmem:[#allocation11 + $0x1748] sm:$0xff]  ;;  %v1733_v26 = vld [vmem:[#allocation11 + $0x1658] sm:$0xff] }
 0x23f   : > { %11365 = vmatprep.subr.bf16.mxu1 %v11364_v31  ;;  %11429 = vmatprep.subr.bf16.mxu0 %v11428_v32  ;;  %v1442_v31 = vld [vmem:[#allocation11 + $0xd40] sm:$0xff]  ;;  %v1412_v32 = vld [vmem:[#allocation11 + $0xc50] sm:$0xff]  ;;  %v1987_v14 = vld [vmem:[#allocation11 + $0x1e48] sm:$0xff] }
 0x240   : > { %v1956_v13 = vld [vmem:[#allocation11 + $0x1d50] sm:$0xff] }
 0x241   : > { %11367 = vmatpush1.bf16.msra.mxu1 %v11366_v38  ;;  %v1509_v38 = vld [vmem:[#allocation11 + $0xf58] sm:$0xff] }
 0x242   : > { %11431 = vmatpush1.bf16.msra.mxu0 %v11430_v39  ;;  %11369 = vmatprep.subr.bf16.mxu1 %v11368_v40  ;;  %v11386_v39 = vpack.c.bf16 %v1442_v31, %v1410_v30  ;;  %v11450_v40 = vpack.c.bf16 %v1444_v34, %v1412_v32  ;;  %v11452_v45 = vpack.c.bf16 %v1509_v38, %v1477_v37  ;;  %v1730_v31 = vld [vmem:[#allocation11 + $0x1640] sm:$0xff]  ;;  %v1827_v37 = vld [vmem:[#allocation11 + $0x1948] sm:$0xff]  ;;  %v1797_v38 = vld [vmem:[#allocation11 + $0x1858] sm:$0xff] }
 0x243   : > { %11433 = vmatprep.subr.bf16.mxu0 %v11432_v44  ;;  %v1476_v44 = vld [vmem:[#allocation11 + $0xe50] sm:$0xff]  ;;  %v11404_v30 = vpack.c.bf16 %v1763_v25, %v1731_v24  ;;  %v1762_v32 = vld [vmem:[#allocation11 + $0x1740] sm:$0xff]  ;;  %v1031_v25 = vld [vmem:[#allocation11 + $0x68] sm:$0xff] }
 0x244   : > { %v2020_v24 = vld [vmem:[#allocation11 + $0x1f50] sm:$0xff] }
 0x245   : > { %11371 = vmatpush1.bf16.msra.mxu1 %v11370_v50  ;;  %v1573_v50 = vld [vmem:[#allocation11 + $0x1158] sm:$0xff] }
 0x246   : > { %11435 = vmatpush1.bf16.msra.mxu0 %v11434_v51  ;;  %11373 = vmatprep.subr.bf16.mxu1 %v11372_v52  ;;  %v11390_v51 = vpack.c.bf16 %v1506_v43, %v1474_v42  ;;  %v11454_v52 = vpack.c.bf16 %v1508_v46, %v1476_v44  ;;  %v11456_v58 = vpack.c.bf16 %v1573_v50, %v1541_v49  ;;  %v1794_v43 = vld [vmem:[#allocation11 + $0x1840] sm:$0xff]  ;;  %v1891_v49 = vld [vmem:[#allocation11 + $0x1b48] sm:$0xff]  ;;  %v1861_v50 = vld [vmem:[#allocation11 + $0x1a58] sm:$0xff] }
 0x247   : > { %11437 = vmatprep.subr.bf16.mxu0 %v11436_v57  ;;  %v1540_v57 = vld [vmem:[#allocation11 + $0x1050] sm:$0xff]  ;;  %v11408_v42 = vpack.c.bf16 %v1827_v37, %v1795_v36  ;;  %v1826_v44 = vld [vmem:[#allocation11 + $0x1940] sm:$0xff]  ;;  %v1095_v37 = vld [vmem:[#allocation11 + $0x268] sm:$0xff] }
 0x248   : > { %v1064_v36 = vld [vmem:[#allocation11 + $0x170] sm:$0xff] }
 0x249   : > { %11375 = vmatpush1.bf16.msra.mxu1 %v11374_v0  ;;  %v1637_v0 = vld [vmem:[#allocation11 + $0x1358] sm:$0xff] }
 0x24a   : > { %11439 = vmatpush1.bf16.msra.mxu0 %v11438_v1  ;;  %11377 = vmatprep.subr.bf16.mxu1 %v11376_v2  ;;  %v11394_v1 = vpack.c.bf16 %v1570_v56, %v1538_v55  ;;  %v11458_v2 = vpack.c.bf16 %v1572_v59, %v1540_v57  ;;  %v11460_v10 = vpack.c.bf16 %v1637_v0, %v1605_v62  ;;  %v1858_v56 = vld [vmem:[#allocation11 + $0x1a40] sm:$0xff]  ;;  %v1955_v62 = vld [vmem:[#allocation11 + $0x1d48] sm:$0xff]  ;;  %v1925_v0 = vld [vmem:[#allocation11 + $0x1c58] sm:$0xff] }
 0x24b   : > { %11441 = vmatprep.subr.bf16.mxu0 %v11440_v9  ;;  %v1604_v9 = vld [vmem:[#allocation11 + $0x1250] sm:$0xff]  ;;  %v11412_v55 = vpack.c.bf16 %v1891_v49, %v1859_v48  ;;  %v1890_v57 = vld [vmem:[#allocation11 + $0x1b40] sm:$0xff]  ;;  %v1159_v48 = vld [vmem:[#allocation11 + $0x468] sm:$0xff] }
 0x24c   : > { %v1191_v49 = vld [vmem:[#allocation11 + $0x568] sm:$0xff] }
 0x24d   : > { %11379 = vmatpush1.bf16.msra.mxu1 %v11378_v16  ;;  %v1701_v16 = vld [vmem:[#allocation11 + $0x1558] sm:$0xff] }
 0x24e   : > { %11443 = vmatpush1.bf16.msra.mxu0 %v11442_v17  ;;  %11381 = vmatprep.subr.bf16.mxu1 %v11380_v18  ;;  %v11398_v17 = vpack.c.bf16 %v1634_v8, %v1602_v6  ;;  %v11462_v18 = vpack.c.bf16 %v1636_v12, %v1604_v9  ;;  %v11464_v22 = vpack.c.bf16 %v1701_v16, %v1669_v15  ;;  %v1922_v8 = vld [vmem:[#allocation11 + $0x1c40] sm:$0xff]  ;;  %v2019_v15 = vld [vmem:[#allocation11 + $0x1f48] sm:$0xff]  ;;  %v1989_v16 = vld [vmem:[#allocation11 + $0x1e58] sm:$0xff] }
 0x24f   : > { %11445 = vmatprep.subr.bf16.mxu0 %v11444_v21  ;;  %v1668_v21 = vld [vmem:[#allocation11 + $0x1450] sm:$0xff]  ;;  %v11416_v6 = vpack.c.bf16 %v1955_v62, %v1923_v61  ;;  %v1954_v9 = vld [vmem:[#allocation11 + $0x1d40] sm:$0xff]  ;;  %v1223_v62 = vld [vmem:[#allocation11 + $0x668] sm:$0xff] }
 0x250   : > { %v1192_v61 = vld [vmem:[#allocation11 + $0x570] sm:$0xff] }
 0x251   : > { %11383 = vmatpush1.bf16.msra.mxu1 %v11382_v27  ;;  %v1765_v27 = vld [vmem:[#allocation11 + $0x1758] sm:$0xff] }
 0x252   : > { %11447 = vmatpush1.bf16.msra.mxu0 %v11446_v28  ;;  %11385 = vmatprep.subr.bf16.mxu1 %v11384_v29  ;;  %v11402_v28 = vpack.c.bf16 %v1698_v20, %v1666_v7  ;;  %v11466_v29 = vpack.c.bf16 %v1700_v23, %v1668_v21  ;;  %v11468_v34 = vpack.c.bf16 %v1765_v27, %v1733_v26  ;;  %v1986_v20 = vld [vmem:[#allocation11 + $0x1e40] sm:$0xff]  ;;  %v1063_v26 = vld [vmem:[#allocation11 + $0x168] sm:$0xff]  ;;  %v1033_v27 = vld [vmem:[#allocation11 + $0x78] sm:$0xff] }
 0x253   : > { %11449 = vmatprep.subr.bf16.mxu0 %v11448_v33  ;;  %v1732_v33 = vld [vmem:[#allocation11 + $0x1650] sm:$0xff]  ;;  %v11420_v7 = vpack.c.bf16 %v2019_v15, %v1987_v14  ;;  %v2018_v21 = vld [vmem:[#allocation11 + $0x1f40] sm:$0xff]  ;;  %v1287_v15 = vld [vmem:[#allocation11 + $0x868] sm:$0xff] }
 0x254   : > { %v1256_v14 = vld [vmem:[#allocation11 + $0x770] sm:$0xff] }
 0x255   : > { %11387 = vmatpush1.bf16.msra.mxu1 %v11386_v39  ;;  %v1829_v39 = vld [vmem:[#allocation11 + $0x1958] sm:$0xff] }
 0x256   : > { %11451 = vmatpush1.bf16.msra.mxu0 %v11450_v40  ;;  %11389 = vmatprep.subr.bf16.mxu1 %v11388_v41  ;;  %v11406_v40 = vpack.c.bf16 %v1762_v32, %v1730_v31  ;;  %v11470_v41 = vpack.c.bf16 %v1764_v35, %v1732_v33  ;;  %v11472_v46 = vpack.c.bf16 %v1829_v39, %v1797_v38  ;;  %v1030_v32 = vld [vmem:[#allocation11 + $0x60] sm:$0xff]  ;;  %v1032_v35 = vld [vmem:[#allocation11 + $0x70] sm:$0xff]  ;;  %v1127_v38 = vld [vmem:[#allocation11 + $0x368] sm:$0xff] }
 0x257   : > { %11453 = vmatprep.subr.bf16.mxu0 %v11452_v45  ;;  %v1796_v45 = vld [vmem:[#allocation11 + $0x1850] sm:$0xff]  ;;  %v11488_v31 = vpack.c.bf16 %v1063_v26, %v1031_v25  ;;  %v1062_v33 = vld [vmem:[#allocation11 + $0x160] sm:$0xff]  ;;  %v1351_v26 = vld [vmem:[#allocation11 + $0xa68] sm:$0xff] }
 0x258   : > { %v11490_v39 = vpack.c.bf16 %v1062_v33, %v1030_v32  ;;  %v1320_v25 = vld [vmem:[#allocation11 + $0x970] sm:$0xff]  ;;  %v1350_v33 = vld [vmem:[#allocation11 + $0xa60] sm:$0xff] }
 0x259   : > { %11391 = vmatpush1.bf16.msra.mxu1 %v11390_v51  ;;  %v1893_v51 = vld [vmem:[#allocation11 + $0x1b58] sm:$0xff] }
 0x25a   : > { %11455 = vmatpush1.bf16.msra.mxu0 %v11454_v52  ;;  %11393 = vmatprep.subr.bf16.mxu1 %v11392_v53  ;;  %v11410_v52 = vpack.c.bf16 %v1826_v44, %v1794_v43  ;;  %v11474_v53 = vpack.c.bf16 %v1828_v47, %v1796_v45  ;;  %v11476_v59 = vpack.c.bf16 %v1893_v51, %v1861_v50  ;;  %v1094_v43 = vld [vmem:[#allocation11 + $0x260] sm:$0xff]  ;;  %v1096_v45 = vld [vmem:[#allocation11 + $0x270] sm:$0xff]  ;;  %v1161_v51 = vld [vmem:[#allocation11 + $0x478] sm:$0xff] }
 0x25b   : > { %11457 = vmatprep.subr.bf16.mxu0 %v11456_v58  ;;  %v1860_v58 = vld [vmem:[#allocation11 + $0x1a50] sm:$0xff]  ;;  %v1126_v44 = vld [vmem:[#allocation11 + $0x360] sm:$0xff] }
 0x25c   : > { %v1128_v47 = vld [vmem:[#allocation11 + $0x370] sm:$0xff] }
 0x25d   : > { %11395 = vmatpush1.bf16.msra.mxu1 %v11394_v1  ;;  %v1957_v1 = vld [vmem:[#allocation11 + $0x1d58] sm:$0xff] }
 0x25e   : > { %11459 = vmatpush1.bf16.msra.mxu0 %v11458_v2  ;;  %11397 = vmatprep.subr.bf16.mxu1 %v11396_v4  ;;  %v11414_v2 = vpack.c.bf16 %v1890_v57, %v1858_v56  ;;  %v11478_v4 = vpack.c.bf16 %v1892_v60, %v1860_v58  ;;  %v11480_v12 = vpack.c.bf16 %v1957_v1, %v1925_v0  ;;  %v1158_v57 = vld [vmem:[#allocation11 + $0x460] sm:$0xff]  ;;  %v1255_v0 = vld [vmem:[#allocation11 + $0x768] sm:$0xff]  ;;  %v1225_v1 = vld [vmem:[#allocation11 + $0x678] sm:$0xff] }
 0x25f   : > { %11461 = vmatprep.subr.bf16.mxu0 %v11460_v10  ;;  %v1924_v10 = vld [vmem:[#allocation11 + $0x1c50] sm:$0xff]  ;;  %v11496_v56 = vpack.c.bf16 %v1191_v49, %v1159_v48  ;;  %v1190_v58 = vld [vmem:[#allocation11 + $0x560] sm:$0xff] }
 0x260   : > { %v1446_v48 = vld [vmem:[#allocation11 + $0xd60] sm:$0xff]  ;;  %v1416_v49 = vld [vmem:[#allocation11 + $0xc70] sm:$0xff] }
 0x261   : > { %11399 = vmatpush1.bf16.msra.mxu1 %v11398_v17  ;;  %v2021_v17 = vld [vmem:[#allocation11 + $0x1f58] sm:$0xff] }
 0x262   : > { %11463 = vmatpush1.bf16.msra.mxu0 %v11462_v18  ;;  %11401 = vmatprep.subr.bf16.mxu1 %v11400_v19  ;;  %v11418_v18 = vpack.c.bf16 %v1954_v9, %v1922_v8  ;;  %v11482_v19 = vpack.c.bf16 %v1956_v13, %v1924_v10  ;;  %v11484_v23 = vpack.c.bf16 %v2021_v17, %v1989_v16  ;;  %v1222_v9 = vld [vmem:[#allocation11 + $0x660] sm:$0xff]  ;;  %v1319_v16 = vld [vmem:[#allocation11 + $0x968] sm:$0xff]  ;;  %v1289_v17 = vld [vmem:[#allocation11 + $0x878] sm:$0xff] }
 0x263   : > { %11465 = vmatprep.subr.bf16.mxu0 %v11464_v22  ;;  %v1988_v22 = vld [vmem:[#allocation11 + $0x1e50] sm:$0xff]  ;;  %v11500_v8 = vpack.c.bf16 %v1255_v0, %v1223_v62  ;;  %v1254_v10 = vld [vmem:[#allocation11 + $0x760] sm:$0xff] }
 0x264   : > { %v1480_v62 = vld [vmem:[#allocation11 + $0xe70] sm:$0xff] }
 0x265   : > { %11403 = vmatpush1.bf16.msra.mxu1 %v11402_v28  ;;  %v1065_v28 = vld [vmem:[#allocation11 + $0x178] sm:$0xff] }
 0x266   : > { %11467 = vmatpush1.bf16.msra.mxu0 %v11466_v29  ;;  %11405 = vmatprep.subr.bf16.mxu1 %v11404_v30  ;;  %v11422_v29 = vpack.c.bf16 %v2018_v21, %v1986_v20  ;;  %v11486_v30 = vpack.c.bf16 %v2020_v24, %v1988_v22  ;;  %v11504_v20 = vpack.c.bf16 %v1319_v16, %v1287_v15  ;;  %v1286_v21 = vld [vmem:[#allocation11 + $0x860] sm:$0xff]  ;;  %v1544_v15 = vld [vmem:[#allocation11 + $0x1070] sm:$0xff] }
 0x267   : > { %11469 = vmatprep.subr.bf16.mxu0 %v11468_v34  ;;  %v11552_v34 = vpack.c.bf16 %v1065_v28, %v1033_v27  ;;  %v1318_v22 = vld [vmem:[#allocation11 + $0x960] sm:$0xff]  ;;  %v1383_v27 = vld [vmem:[#allocation11 + $0xb68] sm:$0xff]  ;;  %v1353_v28 = vld [vmem:[#allocation11 + $0xa78] sm:$0xff] }
 0x268   : > { %v11508_v32 = vpack.c.bf16 %v1383_v27, %v1351_v26  ;;  %v1608_v26 = vld [vmem:[#allocation11 + $0x1270] sm:$0xff] }
 0x269   : > { %11407 = vmatpush1.bf16.msra.mxu1 %v11406_v40  ;;  %v1097_v40 = vld [vmem:[#allocation11 + $0x278] sm:$0xff] }
 0x26a   : > { %11471 = vmatpush1.bf16.msra.mxu0 %v11470_v41  ;;  %11409 = vmatprep.subr.bf16.mxu1 %v11408_v42  ;;  %v1129_v41 = vld [vmem:[#allocation11 + $0x378] sm:$0xff]  ;;  %v11554_v42 = vpack.c.bf16 %v1064_v36, %v1032_v35  ;;  %v1352_v35 = vld [vmem:[#allocation11 + $0xa70] sm:$0xff] }
 0x26b   : > { %11473 = vmatprep.subr.bf16.mxu0 %v11472_v46  ;;  %v11492_v46 = vpack.c.bf16 %v1127_v38, %v1095_v37  ;;  %v11556_v50 = vpack.c.bf16 %v1129_v41, %v1097_v40  ;;  %v1384_v37 = vld [vmem:[#allocation11 + $0xb70] sm:$0xff]  ;;  %v1415_v38 = vld [vmem:[#allocation11 + $0xc68] sm:$0xff]  ;;  %v1417_v41 = vld [vmem:[#allocation11 + $0xc78] sm:$0xff] }
 0x26d   : > { %11411 = vmatpush1.bf16.msra.mxu1 %v11410_v52  ;;  %v1193_v52 = vld [vmem:[#allocation11 + $0x578] sm:$0xff] }
 0x26e   : > { %11475 = vmatpush1.bf16.msra.mxu0 %v11474_v53  ;;  %11413 = vmatprep.subr.bf16.mxu1 %v11412_v55  ;;  %v11494_v53 = vpack.c.bf16 %v1126_v44, %v1094_v43  ;;  %v11558_v55 = vpack.c.bf16 %v1128_v47, %v1096_v45  ;;  %v11560_v60 = vpack.c.bf16 %v1193_v52, %v1161_v51  ;;  %v1414_v47 = vld [vmem:[#allocation11 + $0xc60] sm:$0xff]  ;;  %v1448_v51 = vld [vmem:[#allocation11 + $0xd70] sm:$0xff]  ;;  %v1479_v52 = vld [vmem:[#allocation11 + $0xe68] sm:$0xff] }
 0x26f   : > { %11477 = vmatprep.subr.bf16.mxu0 %v11476_v59  ;;  %v1160_v59 = vld [vmem:[#allocation11 + $0x470] sm:$0xff]  ;;  %v11574_v45 = vpack.c.bf16 %v1384_v37, %v1352_v35  ;;  %v1702_v37 = vld [vmem:[#allocation11 + $0x1560] sm:$0xff] }
 0x271   : > { %11415 = vmatpush1.bf16.msra.mxu1 %v11414_v2  ;;  %v1257_v2 = vld [vmem:[#allocation11 + $0x778] sm:$0xff] }
 0x272   : > { %11479 = vmatpush1.bf16.msra.mxu0 %v11478_v4  ;;  %11417 = vmatprep.subr.bf16.mxu1 %v11416_v6  ;;  %v11498_v4 = vpack.c.bf16 %v1190_v58, %v1158_v57  ;;  %v11562_v6 = vpack.c.bf16 %v1192_v61, %v1160_v59  ;;  %v11564_v13 = vpack.c.bf16 %v1257_v2, %v1225_v1  ;;  %v1510_v61 = vld [vmem:[#allocation11 + $0xf60] sm:$0xff]  ;;  %v1512_v1 = vld [vmem:[#allocation11 + $0xf70] sm:$0xff]  ;;  %v1543_v2 = vld [vmem:[#allocation11 + $0x1068] sm:$0xff] }
 0x273   : > { %11481 = vmatprep.subr.bf16.mxu0 %v11480_v12  ;;  %v1224_v12 = vld [vmem:[#allocation11 + $0x670] sm:$0xff]  ;;  %v11514_v57 = vpack.c.bf16 %v1446_v48, %v1414_v47  ;;  %v11578_v58 = vpack.c.bf16 %v1448_v51, %v1416_v49  ;;  %v1734_v48 = vld [vmem:[#allocation11 + $0x1660] sm:$0xff] }
 0x274   : > { %v1766_v49 = vld [vmem:[#allocation11 + $0x1760] sm:$0xff] }
 0x275   : > { %11419 = vmatpush1.bf16.msra.mxu1 %v11418_v18  ;;  %v1321_v18 = vld [vmem:[#allocation11 + $0x978] sm:$0xff] }
 0x276   : > { %11483 = vmatpush1.bf16.msra.mxu0 %v11482_v19  ;;  %11421 = vmatprep.subr.bf16.mxu1 %v11420_v7  ;;  %v11502_v19 = vpack.c.bf16 %v1254_v10, %v1222_v9  ;;  %v11566_v7 = vpack.c.bf16 %v1256_v14, %v1224_v12  ;;  %v11568_v24 = vpack.c.bf16 %v1321_v18, %v1289_v17  ;;  %v1574_v14 = vld [vmem:[#allocation11 + $0x1160] sm:$0xff]  ;;  %v1576_v17 = vld [vmem:[#allocation11 + $0x1170] sm:$0xff]  ;;  %v1607_v18 = vld [vmem:[#allocation11 + $0x1268] sm:$0xff] }
 0x277   : > { %11485 = vmatprep.subr.bf16.mxu0 %v11484_v23  ;;  %v1288_v23 = vld [vmem:[#allocation11 + $0x870] sm:$0xff]  ;;  %v11582_v10 = vpack.c.bf16 %v1512_v1, %v1480_v62  ;;  %v1830_v62 = vld [vmem:[#allocation11 + $0x1960] sm:$0xff] }
 0x279   : > { %11423 = vmatpush1.bf16.msra.mxu1 %v11422_v29  ;;  %v1385_v29 = vld [vmem:[#allocation11 + $0xb78] sm:$0xff] }
 0x27a   : > { %11487 = vmatpush1.bf16.msra.mxu0 %v11486_v30  ;;  %11489 = vmatprep.subr.bf16.mxu1 %v11488_v31  ;;  %v11506_v30 = vpack.c.bf16 %v1318_v22, %v1286_v21  ;;  %v11570_v31 = vpack.c.bf16 %v1320_v25, %v1288_v23  ;;  %v11572_v36 = vpack.c.bf16 %v1385_v29, %v1353_v28  ;;  %v1638_v25 = vld [vmem:[#allocation11 + $0x1360] sm:$0xff]  ;;  %v1640_v28 = vld [vmem:[#allocation11 + $0x1370] sm:$0xff]  ;;  %v1671_v29 = vld [vmem:[#allocation11 + $0x1468] sm:$0xff] }
 0x27b   : > { %11553 = vmatprep.subr.bf16.mxu0 %v11552_v34  ;;  %v1382_v34 = vld [vmem:[#allocation11 + $0xb60] sm:$0xff]  ;;  %v11586_v22 = vpack.c.bf16 %v1576_v17, %v1544_v15 }
 0x27c   : > { %2391 = vmatmul.mubr.f32.vlgmr.msra.gmra.mrb[4].mxu1 %v13811_v63  ;;  %v11510_v44 = vpack.c.bf16 %v1382_v34, %v1350_v33  ;;  %v11590_v34 = vpack.c.bf16 %v1640_v28, %v1608_v26  ;;  %v1894_v15 = vld [vmem:[#allocation11 + $0x1b60] sm:$0xff] }
 0x27d   : > { %2462 = vmatmul.mubr.f32.vlgmr.msra.gmra.mrb[6].mxu0 %v13811_v63  ;;  %11491 = vmatpush1.bf16.msra.mxu1 %v11490_v39  ;;  %v1447_v39 = vld [vmem:[#allocation11 + $0xd68] sm:$0xff]  ;;  %v1958_v26 = vld [vmem:[#allocation11 + $0x1d60] sm:$0xff] }
 0x27e   : > { %2532 = vmatprep.mubr.f32.mxu1 %v13813_v5  ;;  %11555 = vmatpush1.bf16.msra.mxu0 %v11554_v42  ;;  %v1449_v42 = vld [vmem:[#allocation11 + $0xd78] sm:$0xff] }
 0x27f   : > { %2603 = vmatprep.mubr.f32.mxu0 %v13813_v5  ;;  %11493 = vmatprep.subr.bf16.mxu1 %v11492_v46  ;;  %v11512_v46 = vpack.c.bf16 %v1447_v39, %v1415_v38  ;;  %v1672_v38 = vld [vmem:[#allocation11 + $0x1470] sm:$0xff] }
 0x280   : > { %11557 = vmatprep.subr.bf16.mxu0 %v11556_v50  ;;  %v11576_v50 = vpack.c.bf16 %v1449_v42, %v1417_v41  ;;  %v1735_v41 = vld [vmem:[#allocation11 + $0x1668] sm:$0xff] }
 0x281   : > { %11495 = vmatpush1.bf16.msra.mxu1 %v11494_v53  ;;  %v1511_v53 = vld [vmem:[#allocation11 + $0xf68] sm:$0xff] }
 0x282   : > { %11559 = vmatpush1.bf16.msra.mxu0 %v11558_v55  ;;  %11497 = vmatprep.subr.bf16.mxu1 %v11496_v56  ;;  %v1481_v55 = vld [vmem:[#allocation11 + $0xe78] sm:$0xff]  ;;  %v11516_v59 = vpack.c.bf16 %v1511_v53, %v1479_v52  ;;  %v1767_v42 = vld [vmem:[#allocation11 + $0x1768] sm:$0xff]  ;;  %v1768_v52 = vld [vmem:[#allocation11 + $0x1770] sm:$0xff] }
 0x283   : > { %11561 = vmatprep.subr.bf16.mxu0 %v11560_v60  ;;  %v1513_v56 = vld [vmem:[#allocation11 + $0xf78] sm:$0xff]  ;;  %v1478_v60 = vld [vmem:[#allocation11 + $0xe60] sm:$0xff]  ;;  %v11532_v47 = vpack.c.bf16 %v1767_v42, %v1735_v41  ;;  %v1799_v53 = vld [vmem:[#allocation11 + $0x1868] sm:$0xff] }
 0x284   : > { %v11580_v0 = vpack.c.bf16 %v1513_v56, %v1481_v55  ;;  %v11518_v9 = vpack.c.bf16 %v1510_v61, %v1478_v60  ;;  %v1831_v55 = vld [vmem:[#allocation11 + $0x1968] sm:$0xff]  ;;  %v1801_v56 = vld [vmem:[#allocation11 + $0x1878] sm:$0xff]  ;;  %v1798_v61 = vld [vmem:[#allocation11 + $0x1860] sm:$0xff] }
 0x285   : > { %11499 = vmatpush1.bf16.msra.mxu1 %v11498_v4  ;;  %v1575_v4 = vld [vmem:[#allocation11 + $0x1168] sm:$0xff]  ;;  %v11536_v60 = vpack.c.bf16 %v1831_v55, %v1799_v53  ;;  %v2024_v41 = vld [vmem:[#allocation11 + $0x1f70] sm:$0xff] }
 0x286   : > { %11563 = vmatpush1.bf16.msra.mxu0 %v11562_v6  ;;  %11501 = vmatprep.subr.bf16.mxu1 %v11500_v8  ;;  %v1545_v6 = vld [vmem:[#allocation11 + $0x1078] sm:$0xff]  ;;  %v11520_v12 = vpack.c.bf16 %v1575_v4, %v1543_v2  ;;  %v1832_v2 = vld [vmem:[#allocation11 + $0x1970] sm:$0xff]  ;;  %v1863_v4 = vld [vmem:[#allocation11 + $0x1a68] sm:$0xff] }
 0x287   : > { %11565 = vmatprep.subr.bf16.mxu0 %v11564_v13  ;;  %v1577_v8 = vld [vmem:[#allocation11 + $0x1178] sm:$0xff]  ;;  %v1542_v13 = vld [vmem:[#allocation11 + $0x1060] sm:$0xff]  ;;  %v1035_v42 = vld [vmem:[#allocation11 + $0x88] sm:$0xff] }
 0x288   : > { %v11584_v16 = vpack.c.bf16 %v1577_v8, %v1545_v6  ;;  %v11522_v21 = vpack.c.bf16 %v1574_v14, %v1542_v13  ;;  %v1895_v6 = vld [vmem:[#allocation11 + $0x1b68] sm:$0xff]  ;;  %v1865_v8 = vld [vmem:[#allocation11 + $0x1a78] sm:$0xff]  ;;  %v1862_v14 = vld [vmem:[#allocation11 + $0x1a60] sm:$0xff] }
 0x289   : > { %11503 = vmatpush1.bf16.msra.mxu1 %v11502_v19  ;;  %v1639_v19 = vld [vmem:[#allocation11 + $0x1368] sm:$0xff]  ;;  %v11540_v13 = vpack.c.bf16 %v1895_v6, %v1863_v4  ;;  %v1068_v53 = vld [vmem:[#allocation11 + $0x190] sm:$0xff] }
 0x28a   : > { %11567 = vmatpush1.bf16.msra.mxu0 %v11566_v7  ;;  %11505 = vmatprep.subr.bf16.mxu1 %v11504_v20  ;;  %v1609_v7 = vld [vmem:[#allocation11 + $0x1278] sm:$0xff]  ;;  %v11524_v23 = vpack.c.bf16 %v1639_v19, %v1607_v18  ;;  %v1896_v18 = vld [vmem:[#allocation11 + $0x1b70] sm:$0xff]  ;;  %v1927_v19 = vld [vmem:[#allocation11 + $0x1c68] sm:$0xff] }
 0x28b   : > { %11569 = vmatprep.subr.bf16.mxu0 %v11568_v24  ;;  %v1641_v20 = vld [vmem:[#allocation11 + $0x1378] sm:$0xff]  ;;  %v1606_v24 = vld [vmem:[#allocation11 + $0x1260] sm:$0xff]  ;;  %v1099_v55 = vld [vmem:[#allocation11 + $0x288] sm:$0xff] }
 0x28c   : > { %v1013_v40 = vpop.xlane.xlu0 %1012  ;;  %v11588_v27 = vpack.c.bf16 %v1641_v20, %v1609_v7  ;;  %v11526_v33 = vpack.c.bf16 %v1638_v25, %v1606_v24  ;;  %v1959_v7 = vld [vmem:[#allocation11 + $0x1d68] sm:$0xff]  ;;  %v1929_v20 = vld [vmem:[#allocation11 + $0x1c78] sm:$0xff]  ;;  %v1926_v25 = vld [vmem:[#allocation11 + $0x1c60] sm:$0xff] }
 0x28d   : > { %v1015_v43 = vmul.f32 0.00390625, %v1013_v40  ;;  %11507 = vmatpush1.bf16.msra.mxu1 %v11506_v30  ;;  %v1703_v30 = vld [vmem:[#allocation11 + $0x1568] sm:$0xff]  ;;  %v1704_v40 = vld [vmem:[#allocation11 + $0x1570] sm:$0xff]  ;;  %v11544_v24 = vpack.c.bf16 %v1959_v7, %v1927_v19 }
 0x28e   : > { %11571 = vmatpush1.bf16.msra.mxu0 %v11570_v31  ;;  %11509 = vmatprep.subr.bf16.mxu1 %v11508_v32  ;;  %v1673_v31 = vld [vmem:[#allocation11 + $0x1478] sm:$0xff]  ;;  %v11528_v35 = vpack.c.bf16 %v1703_v30, %v1671_v29  ;;  %v1960_v29 = vld [vmem:[#allocation11 + $0x1d70] sm:$0xff]  ;;  %v1991_v30 = vld [vmem:[#allocation11 + $0x1e68] sm:$0xff] }
 0x28f   : > { %1017 = vst.msk [vmem:[%s849_s30] sm:$0x1] %vm1016_vm1, %v1015_v43  ;;  %11573 = vmatprep.subr.bf16.mxu0 %v11572_v36  ;;  %v1705_v32 = vld [vmem:[#allocation11 + $0x1578] sm:$0xff]  ;;  %v1670_v36 = vld [vmem:[#allocation11 + $0x1460] sm:$0xff]  ;;  %v1163_v4 = vld [vmem:[#allocation11 + $0x488] sm:$0xff]  ;;  %s16026_s30 = sshll.u32 %s13535_s3, 9 }
 0x290   : > { %v11592_v39 = vpack.c.bf16 %v1705_v32, %v1673_v31  ;;  %v1737_v43 = vld [vmem:[#allocation11 + $0x1678] sm:$0xff]  ;;  %v2023_v31 = vld [vmem:[#allocation11 + $0x1f68] sm:$0xff]  ;;  %v1196_v19 = vld [vmem:[#allocation11 + $0x590] sm:$0xff]  ;;  %s16032_s7 = scalar_lea.hbm %s16319_s18, %s16026_s30 }
 0x291   : > { %11511 = vmatpush1.bf16.msra.mxu1 %v11510_v44  ;;  %v1769_v44 = vld [vmem:[#allocation11 + $0x1778] sm:$0xff]  ;;  %v1195_v6 = vld [vmem:[#allocation11 + $0x588] sm:$0xff] }
 0x292   : > { %11575 = vmatpush1.bf16.msra.mxu0 %v11574_v45  ;;  %11513 = vmatprep.subr.bf16.mxu1 %v11512_v46  ;;  %v11530_v45 = vpack.c.bf16 %v1702_v37, %v1670_v36  ;;  %v11594_v46 = vpack.c.bf16 %v1704_v40, %v1672_v38  ;;  %v11596_v51 = vpack.c.bf16 %v1769_v44, %v1737_v43  ;;  %v1993_v32 = vld [vmem:[#allocation11 + $0x1e78] sm:$0xff]  ;;  %v1990_v37 = vld [vmem:[#allocation11 + $0x1e60] sm:$0xff]  ;;  %v1067_v43 = vld [vmem:[#allocation11 + $0x188] sm:$0xff] }
 0x293   : > { %11577 = vmatprep.subr.bf16.mxu0 %v11576_v50  ;;  %v1736_v50 = vld [vmem:[#allocation11 + $0x1670] sm:$0xff]  ;;  %v11548_v36 = vpack.c.bf16 %v2023_v31, %v1991_v30  ;;  %v2022_v38 = vld [vmem:[#allocation11 + $0x1f60] sm:$0xff]  ;;  %v1037_v44 = vld [vmem:[#allocation11 + $0x98] sm:$0xff] }
 0x294   : > { %v1227_v7 = vld [vmem:[#allocation11 + $0x688] sm:$0xff]  ;;  %v1260_v30 = vld [vmem:[#allocation11 + $0x790] sm:$0xff] }
 0x295   : > { %11515 = vmatpush1.bf16.msra.mxu1 %v11514_v57  ;;  %v1833_v57 = vld [vmem:[#allocation11 + $0x1978] sm:$0xff]  ;;  %v1291_v31 = vld [vmem:[#allocation11 + $0x888] sm:$0xff] }
 0x296   : > { %11579 = vmatpush1.bf16.msra.mxu0 %v11578_v58  ;;  %11517 = vmatprep.subr.bf16.mxu1 %v11516_v59  ;;  %v11534_v58 = vpack.c.bf16 %v1766_v49, %v1734_v48  ;;  %v11598_v59 = vpack.c.bf16 %v1768_v52, %v1736_v50  ;;  %v11600_v1 = vpack.c.bf16 %v1833_v57, %v1801_v56  ;;  %v1034_v49 = vld [vmem:[#allocation11 + $0x80] sm:$0xff]  ;;  %v1036_v52 = vld [vmem:[#allocation11 + $0x90] sm:$0xff]  ;;  %v1131_v56 = vld [vmem:[#allocation11 + $0x388] sm:$0xff] }
 0x297   : > { %11581 = vmatprep.subr.bf16.mxu0 %v11580_v0  ;;  %v1800_v0 = vld [vmem:[#allocation11 + $0x1870] sm:$0xff]  ;;  %v11616_v48 = vpack.c.bf16 %v1067_v43, %v1035_v42  ;;  %v1066_v50 = vld [vmem:[#allocation11 + $0x180] sm:$0xff] }
 0x298   : > { %v11618_v57 = vpack.c.bf16 %v1066_v50, %v1034_v49 }
 0x299   : > { %11519 = vmatpush1.bf16.msra.mxu1 %v11518_v9  ;;  %v1897_v9 = vld [vmem:[#allocation11 + $0x1b78] sm:$0xff] }
 0x29a   : > { %11583 = vmatpush1.bf16.msra.mxu0 %v11582_v10  ;;  %11521 = vmatprep.subr.bf16.mxu1 %v11520_v12  ;;  %v11538_v10 = vpack.c.bf16 %v1830_v62, %v1798_v61  ;;  %v11602_v12 = vpack.c.bf16 %v1832_v2, %v1800_v0  ;;  %v11604_v17 = vpack.c.bf16 %v1897_v9, %v1865_v8  ;;  %v1098_v61 = vld [vmem:[#allocation11 + $0x280] sm:$0xff]  ;;  %v1100_v0 = vld [vmem:[#allocation11 + $0x290] sm:$0xff]  ;;  %v1165_v9 = vld [vmem:[#allocation11 + $0x498] sm:$0xff] }
 0x29b   : > { %11585 = vmatprep.subr.bf16.mxu0 %v11584_v16  ;;  %v1864_v16 = vld [vmem:[#allocation11 + $0x1a70] sm:$0xff]  ;;  %v1130_v62 = vld [vmem:[#allocation11 + $0x380] sm:$0xff] }
 0x29c   : > { %v1132_v2 = vld [vmem:[#allocation11 + $0x390] sm:$0xff] }
 0x29d   : > { %11523 = vmatpush1.bf16.msra.mxu1 %v11522_v21  ;;  %v1961_v21 = vld [vmem:[#allocation11 + $0x1d78] sm:$0xff] }
 0x29e   : > { %11587 = vmatpush1.bf16.msra.mxu0 %v11586_v22  ;;  %11525 = vmatprep.subr.bf16.mxu1 %v11524_v23  ;;  %v11542_v22 = vpack.c.bf16 %v1894_v15, %v1862_v14  ;;  %v11606_v23 = vpack.c.bf16 %v1896_v18, %v1864_v16  ;;  %v11608_v28 = vpack.c.bf16 %v1961_v21, %v1929_v20  ;;  %v1162_v15 = vld [vmem:[#allocation11 + $0x480] sm:$0xff]  ;;  %v1259_v20 = vld [vmem:[#allocation11 + $0x788] sm:$0xff]  ;;  %v1229_v21 = vld [vmem:[#allocation11 + $0x698] sm:$0xff] }
 0x29f   : > { %11589 = vmatprep.subr.bf16.mxu0 %v11588_v27  ;;  %v1928_v27 = vld [vmem:[#allocation11 + $0x1c70] sm:$0xff]  ;;  %v11624_v14 = vpack.c.bf16 %v1195_v6, %v1163_v4  ;;  %v1194_v16 = vld [vmem:[#allocation11 + $0x580] sm:$0xff] }
 0x2a0   : > { %v1418_v4 = vld [vmem:[#allocation11 + $0xc80] sm:$0xff] }
 0x2a1   : > { %11527 = vmatpush1.bf16.msra.mxu1 %v11526_v33  ;;  %v2025_v33 = vld [vmem:[#allocation11 + $0x1f78] sm:$0xff]  ;;  %v1450_v6 = vld [vmem:[#allocation11 + $0xd80] sm:$0xff] }
 0x2a2   : > { %11591 = vmatpush1.bf16.msra.mxu0 %v11590_v34  ;;  %11529 = vmatprep.subr.bf16.mxu1 %v11528_v35  ;;  %v11546_v34 = vpack.c.bf16 %v1958_v26, %v1926_v25  ;;  %v11610_v35 = vpack.c.bf16 %v1960_v29, %v1928_v27  ;;  %v11612_v40 = vpack.c.bf16 %v2025_v33, %v1993_v32  ;;  %v1226_v26 = vld [vmem:[#allocation11 + $0x680] sm:$0xff]  ;;  %v1323_v32 = vld [vmem:[#allocation11 + $0x988] sm:$0xff]  ;;  %v1293_v33 = vld [vmem:[#allocation11 + $0x898] sm:$0xff] }
 0x2a3   : > { %11593 = vmatprep.subr.bf16.mxu0 %v11592_v39  ;;  %v1992_v39 = vld [vmem:[#allocation11 + $0x1e70] sm:$0xff]  ;;  %v11628_v25 = vpack.c.bf16 %v1259_v20, %v1227_v7  ;;  %v1258_v27 = vld [vmem:[#allocation11 + $0x780] sm:$0xff]  ;;  %v1517_v7 = vld [vmem:[#allocation11 + $0xf98] sm:$0xff] }
 0x2a5   : > { %11531 = vmatpush1.bf16.msra.mxu1 %v11530_v45  ;;  %v1069_v45 = vld [vmem:[#allocation11 + $0x198] sm:$0xff] }
 0x2a6   : > { %11595 = vmatpush1.bf16.msra.mxu0 %v11594_v46  ;;  %11533 = vmatprep.subr.bf16.mxu1 %v11532_v47  ;;  %v11550_v46 = vpack.c.bf16 %v2022_v38, %v1990_v37  ;;  %v11614_v47 = vpack.c.bf16 %v2024_v41, %v1992_v39  ;;  %v11632_v37 = vpack.c.bf16 %v1323_v32, %v1291_v31  ;;  %v1290_v38 = vld [vmem:[#allocation11 + $0x880] sm:$0xff]  ;;  %v13397_v41 = vmov 1966171168   ;;  %v1516_v31 = vld [vmem:[#allocation11 + $0xf90] sm:$0xff]  ;;  %v1547_v32 = vld [vmem:[#allocation11 + $0x1088] sm:$0xff] }
 0x2a7   : > { %11597 = vmatprep.subr.bf16.mxu0 %v11596_v51  ;;  %v11680_v51 = vpack.c.bf16 %v1069_v45, %v1037_v44  ;;  %v1322_v39 = vld [vmem:[#allocation11 + $0x980] sm:$0xff]  ;;  %v3215_v42 = vunpack.c.l.s4 %v13397_v41  ;;  %v1324_v44 = vld [vmem:[#allocation11 + $0x990] sm:$0xff]  ;;  %v1355_v45 = vld [vmem:[#allocation11 + $0xa88] sm:$0xff] }
 0x2a8   : > { %v11634_v49 = vpack.c.bf16 %v1322_v39, %v1290_v38  ;;  %v1578_v41 = vld [vmem:[#allocation11 + $0x1180] sm:$0xff] }
 0x2a9   : > { %11535 = vmatpush1.bf16.msra.mxu1 %v11534_v58  ;;  %v1101_v58 = vld [vmem:[#allocation11 + $0x298] sm:$0xff] }
 0x2aa   : > { %11599 = vmatpush1.bf16.msra.mxu0 %v11598_v59  ;;  %11537 = vmatprep.subr.bf16.mxu1 %v11536_v60  ;;  %v1133_v59 = vld [vmem:[#allocation11 + $0x398] sm:$0xff]  ;;  %v11682_v60 = vpack.c.bf16 %v1068_v53, %v1036_v52  ;;  %v1354_v52 = vld [vmem:[#allocation11 + $0xa80] sm:$0xff] }
 0x2ab   : > { %11601 = vmatprep.subr.bf16.mxu0 %v11600_v1  ;;  %v11620_v1 = vpack.c.bf16 %v1131_v56, %v1099_v55  ;;  %v11684_v8 = vpack.c.bf16 %v1133_v59, %v1101_v58  ;;  %v1386_v53 = vld [vmem:[#allocation11 + $0xb80] sm:$0xff]  ;;  %v1356_v55 = vld [vmem:[#allocation11 + $0xa90] sm:$0xff]  ;;  %v3216_v56 = vunpack.c.0.s8 %v3215_v42  ;;  %v1419_v59 = vld [vmem:[#allocation11 + $0xc88] sm:$0xff] }
 0x2ac   : > { %v1388_v58 = vld [vmem:[#allocation11 + $0xb90] sm:$0xff] }
 0x2ad   : > { %11539 = vmatpush1.bf16.msra.mxu1 %v11538_v10  ;;  %v1197_v10 = vld [vmem:[#allocation11 + $0x598] sm:$0xff]  ;;  %v1548_v42 = vld [vmem:[#allocation11 + $0x1090] sm:$0xff] }
 0x2ae   : > { %11603 = vmatpush1.bf16.msra.mxu0 %v11602_v12  ;;  %11541 = vmatprep.subr.bf16.mxu1 %v11540_v13  ;;  %v11622_v12 = vpack.c.bf16 %v1130_v62, %v1098_v61  ;;  %v11686_v13 = vpack.c.bf16 %v1132_v2, %v1100_v0  ;;  %v11688_v18 = vpack.c.bf16 %v1197_v10, %v1165_v9  ;;  %v1421_v61 = vld [vmem:[#allocation11 + $0xc98] sm:$0xff] }
 0x2af   : > { %11605 = vmatprep.subr.bf16.mxu0 %v11604_v17  ;;  %v1164_v17 = vld [vmem:[#allocation11 + $0x490] sm:$0xff]  ;;  %v1453_v62 = vld [vmem:[#allocation11 + $0xd98] sm:$0xff]  ;;  %v11638_v0 = vpack.c.bf16 %v1386_v53, %v1354_v52  ;;  %v13843_v9 = vsub.s32 %v3216_v56, %v13725_v3  ;;  %v1610_v52 = vld [vmem:[#allocation11 + $0x1280] sm:$0xff] }
 0x2b0   : > { %v1642_v53 = vld [vmem:[#allocation11 + $0x1380] sm:$0xff] }
 0x2b1   : > { %11543 = vmatpush1.bf16.msra.mxu1 %v11542_v22  ;;  %v1261_v22 = vld [vmem:[#allocation11 + $0x798] sm:$0xff] }
 0x2b2   : > { %11607 = vmatpush1.bf16.msra.mxu0 %v11606_v23  ;;  %11545 = vmatprep.subr.bf16.mxu1 %v11544_v24  ;;  %v11626_v23 = vpack.c.bf16 %v1194_v16, %v1162_v15  ;;  %v11690_v24 = vpack.c.bf16 %v1196_v19, %v1164_v17  ;;  %v11692_v29 = vpack.c.bf16 %v1261_v22, %v1229_v21  ;;  %v1483_v15 = vld [vmem:[#allocation11 + $0xe88] sm:$0xff]  ;;  %v1485_v19 = vld [vmem:[#allocation11 + $0xe98] sm:$0xff] }
 0x2b3   : > { %11609 = vmatprep.subr.bf16.mxu0 %v11608_v28  ;;  %v1228_v28 = vld [vmem:[#allocation11 + $0x690] sm:$0xff]  ;;  %v1515_v16 = vld [vmem:[#allocation11 + $0xf88] sm:$0xff]  ;;  %v11642_v22 = vpack.c.bf16 %v1450_v6, %v1418_v4  ;;  %v1706_v4 = vld [vmem:[#allocation11 + $0x1580] sm:$0xff] }
 0x2b4   : > { %v1676_v6 = vld [vmem:[#allocation11 + $0x1490] sm:$0xff] }
 0x2b5   : > { %11547 = vmatpush1.bf16.msra.mxu1 %v11546_v34  ;;  %v1325_v34 = vld [vmem:[#allocation11 + $0x998] sm:$0xff] }
 0x2b6   : > { %11611 = vmatpush1.bf16.msra.mxu0 %v11610_v35  ;;  %11549 = vmatprep.subr.bf16.mxu1 %v11548_v36  ;;  %v11630_v35 = vpack.c.bf16 %v1258_v27, %v1226_v26  ;;  %v11694_v36 = vpack.c.bf16 %v1260_v30, %v1228_v28  ;;  %v11696_v43 = vpack.c.bf16 %v1325_v34, %v1293_v33  ;;  %v1514_v26 = vld [vmem:[#allocation11 + $0xf80] sm:$0xff]  ;;  %v1484_v27 = vld [vmem:[#allocation11 + $0xe90] sm:$0xff]  ;;  %v1579_v33 = vld [vmem:[#allocation11 + $0x1188] sm:$0xff] }
 0x2b7   : > { %11613 = vmatprep.subr.bf16.mxu0 %v11612_v40  ;;  %v1292_v40 = vld [vmem:[#allocation11 + $0x890] sm:$0xff]  ;;  %v11708_v30 = vpack.c.bf16 %v1517_v7, %v1485_v19  ;;  %v1549_v34 = vld [vmem:[#allocation11 + $0x1098] sm:$0xff]  ;;  %v11710_v38 = vpack.c.bf16 %v1516_v31, %v1484_v27  ;;  %v11648_v39 = vpack.c.bf16 %v1579_v33, %v1547_v32  ;;  %v1803_v27 = vld [vmem:[#allocation11 + $0x1888] sm:$0xff] }
 0x2b8   : > { %v11698_v50 = vpack.c.bf16 %v1324_v44, %v1292_v40  ;;  %v1546_v40 = vld [vmem:[#allocation11 + $0x1080] sm:$0xff]  ;;  %v1580_v44 = vld [vmem:[#allocation11 + $0x1190] sm:$0xff]  ;;  %v1773_v19 = vld [vmem:[#allocation11 + $0x1798] sm:$0xff] }
 0x2b9   : > { %11551 = vmatpush1.bf16.msra.mxu1 %v11550_v46  ;;  %v1387_v46 = vld [vmem:[#allocation11 + $0xb88] sm:$0xff]  ;;  %v1805_v31 = vld [vmem:[#allocation11 + $0x1898] sm:$0xff] }
 0x2ba   : > { %11615 = vmatpush1.bf16.msra.mxu0 %v11614_v47  ;;  %11617 = vmatprep.subr.bf16.mxu1 %v11616_v48  ;;  %v1357_v47 = vld [vmem:[#allocation11 + $0xa98] sm:$0xff] }
 0x2bb   : > { %11681 = vmatprep.subr.bf16.mxu0 %v11680_v51  ;;  %v1389_v48 = vld [vmem:[#allocation11 + $0xb98] sm:$0xff]  ;;  %v11636_v51 = vpack.c.bf16 %v1387_v46, %v1355_v45  ;;  %v1611_v45 = vld [vmem:[#allocation11 + $0x1288] sm:$0xff] }
 0x2bc   : > { %2533 = vmatmul.mubr.f32.vlgmr.msra.gmra.mrb[6].mxu1 %v13811_v63  ;;  %v1643_v46 = vld [vmem:[#allocation11 + $0x1388] sm:$0xff]  ;;  %v1837_v32 = vld [vmem:[#allocation11 + $0x1998] sm:$0xff] }
 0x2bd   : > { %2604 = vmatmul.mubr.f32.vlgmr.msra.gmra.mrb[8].mxu0 %v13811_v63  ;;  %11619 = vmatpush1.bf16.msra.mxu1 %v11618_v57  ;;  %v11700_v57 = vpack.c.bf16 %v1389_v48, %v1357_v47  ;;  %v1613_v47 = vld [vmem:[#allocation11 + $0x1298] sm:$0xff] }
 0x2be   : > { %2674 = vmatprep.mubr.f32.mxu1 %v13813_v5  ;;  %11683 = vmatpush1.bf16.msra.mxu0 %v11682_v60  ;;  %v1451_v60 = vld [vmem:[#allocation11 + $0xd88] sm:$0xff]  ;;  %v1645_v48 = vld [vmem:[#allocation11 + $0x1398] sm:$0xff] }
 0x2bf   : > { %2745 = vmatprep.mubr.f32.mxu0 %v13813_v5  ;;  %11621 = vmatprep.subr.bf16.mxu1 %v11620_v1  ;;  %v11702_v1 = vpack.c.bf16 %v1388_v58, %v1356_v55  ;;  %v11640_v2 = vpack.c.bf16 %v1451_v60, %v1419_v59  ;;  %v1612_v55 = vld [vmem:[#allocation11 + $0x1290] sm:$0xff]  ;;  %v11716_v56 = vpack.c.bf16 %v1645_v48, %v1613_v47  ;;  %v1675_v58 = vld [vmem:[#allocation11 + $0x1488] sm:$0xff]  ;;  %v1677_v60 = vld [vmem:[#allocation11 + $0x1498] sm:$0xff] }
 0x2c0   : > { %11685 = vmatprep.subr.bf16.mxu0 %v11684_v8  ;;  %v1420_v8 = vld [vmem:[#allocation11 + $0xc90] sm:$0xff]  ;;  %v1707_v59 = vld [vmem:[#allocation11 + $0x1588] sm:$0xff] }
 0x2c1   : > { %11623 = vmatpush1.bf16.msra.mxu1 %v11622_v12 }
 0x2c2   : > { %11687 = vmatpush1.bf16.msra.mxu0 %v11686_v13  ;;  %11625 = vmatprep.subr.bf16.mxu1 %v11624_v14  ;;  %v11704_v13 = vpack.c.bf16 %v1453_v62, %v1421_v61  ;;  %v1452_v14 = vld [vmem:[#allocation11 + $0xd90] sm:$0xff]  ;;  %v1709_v61 = vld [vmem:[#allocation11 + $0x1598] sm:$0xff]  ;;  %v11654_v62 = vpack.c.bf16 %v1642_v53, %v1610_v52 }
 0x2c3   : > { %11689 = vmatprep.subr.bf16.mxu0 %v11688_v18  ;;  %v1900_v53 = vld [vmem:[#allocation11 + $0x1b90] sm:$0xff] }
 0x2c5   : > { %11627 = vmatpush1.bf16.msra.mxu1 %v11626_v23  ;;  %v11706_v23 = vpack.c.bf16 %v1452_v14, %v1420_v8  ;;  %v11720_v8 = vpack.c.bf16 %v1709_v61, %v1677_v60  ;;  %v1739_v14 = vld [vmem:[#allocation11 + $0x1688] sm:$0xff] }
 0x2c6   : > { %11691 = vmatpush1.bf16.msra.mxu0 %v11690_v24  ;;  %11629 = vmatprep.subr.bf16.mxu1 %v11628_v25  ;;  %v11644_v24 = vpack.c.bf16 %v1515_v16, %v1483_v15  ;;  %v1482_v25 = vld [vmem:[#allocation11 + $0xe80] sm:$0xff]  ;;  %v1771_v15 = vld [vmem:[#allocation11 + $0x1788] sm:$0xff]  ;;  %v1741_v16 = vld [vmem:[#allocation11 + $0x1698] sm:$0xff] }
 0x2c7   : > { %11693 = vmatprep.subr.bf16.mxu0 %v11692_v29 }
 0x2c9   : > { %11631 = vmatpush1.bf16.msra.mxu1 %v11630_v35  ;;  %v1581_v35 = vld [vmem:[#allocation11 + $0x1198] sm:$0xff] }
 0x2ca   : > { %11695 = vmatpush1.bf16.msra.mxu0 %v11694_v36  ;;  %11633 = vmatprep.subr.bf16.mxu1 %v11632_v37  ;;  %v11646_v37 = vpack.c.bf16 %v1514_v26, %v1482_v25  ;;  %v11724_v25 = vpack.c.bf16 %v1773_v19, %v1741_v16  ;;  %v1772_v26 = vld [vmem:[#allocation11 + $0x1790] sm:$0xff] }
 0x2cb   : > { %11697 = vmatprep.subr.bf16.mxu0 %v11696_v43  ;;  %v11712_v43 = vpack.c.bf16 %v1581_v35, %v1549_v34 }
 0x2cd   : > { %11635 = vmatpush1.bf16.msra.mxu1 %v11634_v49  ;;  %v11650_v49 = vpack.c.bf16 %v1578_v41, %v1546_v40  ;;  %v11728_v40 = vpack.c.bf16 %v1837_v32, %v1805_v31  ;;  %v1836_v41 = vld [vmem:[#allocation11 + $0x1990] sm:$0xff] }
 0x2ce   : > { %11699 = vmatpush1.bf16.msra.mxu0 %v11698_v50  ;;  %11637 = vmatprep.subr.bf16.mxu1 %v11636_v51  ;;  %v11714_v50 = vpack.c.bf16 %v1580_v44, %v1548_v42  ;;  %v11652_v51 = vpack.c.bf16 %v1643_v46, %v1611_v45  ;;  %v1867_v42 = vld [vmem:[#allocation11 + $0x1a88] sm:$0xff]  ;;  %v1869_v44 = vld [vmem:[#allocation11 + $0x1a98] sm:$0xff] }
 0x2cf   : > { %v13845_v10 = vpop.f32.mrb[0].mxu1  ;;  %v13847_v12 = vpop.f32.mrb[2].mxu0  ;;  %11701 = vmatprep.subr.bf16.mxu0 %v11700_v57  ;;  %v1644_v57 = vld [vmem:[#allocation11 + $0x1390] sm:$0xff]  ;;  %v1901_v45 = vld [vmem:[#allocation11 + $0x1b98] sm:$0xff] }
 0x2d0   : > { %v13849_v17 = vpop.f32.mrb[1].mxu1  ;;  %v13851_v18 = vpop.f32.mrb[3].mxu0  ;;  %v11732_v52 = vpack.c.bf16 %v1901_v45, %v1869_v44  ;;  %v1102_v45 = vld [vmem:[#allocation11 + $0x2a0] sm:$0xff] }
 0x2d1   : > { %v3210_v20 = vcombine.low %v13845_v10, %v13849_v17  ;;  %v3211_v21 = vcombine.low %v13847_v12, %v13851_v18  ;;  %11639 = vmatpush1.bf16.msra.mxu1 %v11638_v0  ;;  %v11718_v0 = vpack.c.bf16 %v1644_v57, %v1612_v55  ;;  %v1931_v55 = vld [vmem:[#allocation11 + $0x1c88] sm:$0xff]  ;;  %v1933_v57 = vld [vmem:[#allocation11 + $0x1c98] sm:$0xff] }
 0x2d2   : > { %11703 = vmatpush1.bf16.msra.mxu0 %v11702_v1  ;;  %11641 = vmatprep.subr.bf16.mxu1 %v11640_v2  ;;  %v11656_v1 = vpack.c.bf16 %v1707_v59, %v1675_v58  ;;  %v1674_v2 = vld [vmem:[#allocation11 + $0x1480] sm:$0xff]  ;;  %v1965_v58 = vld [vmem:[#allocation11 + $0x1d98] sm:$0xff] }
 0x2d3   : > { %v13858_v28 = vrot.slane %v3210_v20, %v13843_v9  ;;  %v13861_v29 = vrot.slane %v3211_v21, %v13843_v9  ;;  %11705 = vmatprep.subr.bf16.mxu0 %v11704_v13  ;;  %v1708_v13 = vld [vmem:[#allocation11 + $0x1590] sm:$0xff]  ;;  %v11658_v7 = vpack.c.bf16 %v1706_v4, %v1674_v2  ;;  %v11660_v21 = vpack.c.bf16 %v1771_v15, %v1739_v14  ;;  %v2029_v14 = vld [vmem:[#allocation11 + $0x1f98] sm:$0xff] }
 0x2d4   : > { %v11722_v20 = vpack.c.bf16 %v1708_v13, %v1676_v6  ;;  %v11736_v2 = vpack.c.bf16 %v1965_v58, %v1933_v57  ;;  %v1964_v4 = vld [vmem:[#allocation11 + $0x1d90] sm:$0xff]  ;;  %v1995_v6 = vld [vmem:[#allocation11 + $0x1e88] sm:$0xff]  ;;  %v1997_v13 = vld [vmem:[#allocation11 + $0x1e98] sm:$0xff] }
 0x2d5   : > { %v3242_v36 = vcombine.low %v13858_v28, %v13861_v29  ;;  %11643 = vmatpush1.bf16.msra.mxu1 %v11642_v22  ;;  %v1738_v22 = vld [vmem:[#allocation11 + $0x1680] sm:$0xff]  ;;  %v1616_v29 = vld [vmem:[#allocation11 + $0x12b0] sm:$0xff] }
 0x2d6   : > { %11707 = vmatpush1.bf16.msra.mxu0 %v11706_v23  ;;  %11645 = vmatprep.subr.bf16.mxu1 %v11644_v24  ;;  %v1770_v23 = vld [vmem:[#allocation11 + $0x1780] sm:$0xff]  ;;  %v1740_v24 = vld [vmem:[#allocation11 + $0x1690] sm:$0xff] }
 0x2d7   : > { %11709 = vmatprep.subr.bf16.mxu0 %v11708_v30  ;;  %v1835_v30 = vld [vmem:[#allocation11 + $0x1988] sm:$0xff]  ;;  %v11662_v33 = vpack.c.bf16 %v1770_v23, %v1738_v22  ;;  %v11726_v34 = vpack.c.bf16 %v1772_v26, %v1740_v24  ;;  %v11740_v22 = vpack.c.bf16 %v2029_v14, %v1997_v13  ;;  %v2028_v23 = vld [vmem:[#allocation11 + $0x1f90] sm:$0xff]  ;;  %v1041_v26 = vld [vmem:[#allocation11 + $0xb8] sm:$0xff] }
 0x2d8   : > { %v11664_v35 = vpack.c.bf16 %v1835_v30, %v1803_v27  ;;  %v1039_v24 = vld [vmem:[#allocation11 + $0xa8] sm:$0xff]  ;;  %v1073_v27 = vld [vmem:[#allocation11 + $0x1b8] sm:$0xff]  ;;  %v1646_v28 = vld [vmem:[#allocation11 + $0x13a0] sm:$0xff] }
 0x2d9   : > { %11647 = vmatpush1.bf16.msra.mxu1 %v11646_v37  ;;  %v1802_v37 = vld [vmem:[#allocation11 + $0x1880] sm:$0xff] }
 0x2da   : > { %11711 = vmatpush1.bf16.msra.mxu0 %v11710_v38  ;;  %11649 = vmatprep.subr.bf16.mxu1 %v11648_v39  ;;  %v1834_v38 = vld [vmem:[#allocation11 + $0x1980] sm:$0xff]  ;;  %v1804_v39 = vld [vmem:[#allocation11 + $0x1890] sm:$0xff] }
 0x2db   : > { %11713 = vmatprep.subr.bf16.mxu0 %v11712_v43  ;;  %v1899_v43 = vld [vmem:[#allocation11 + $0x1b88] sm:$0xff]  ;;  %v11666_v46 = vpack.c.bf16 %v1834_v38, %v1802_v37  ;;  %v11730_v47 = vpack.c.bf16 %v1836_v41, %v1804_v39  ;;  %v1040_v37 = vld [vmem:[#allocation11 + $0xb0] sm:$0xff] }
 0x2dc   : > { %v11668_v48 = vpack.c.bf16 %v1899_v43, %v1867_v42  ;;  %v1072_v38 = vld [vmem:[#allocation11 + $0x1b0] sm:$0xff]  ;;  %v1103_v39 = vld [vmem:[#allocation11 + $0x2a8] sm:$0xff]  ;;  %v1105_v42 = vld [vmem:[#allocation11 + $0x2b8] sm:$0xff] }
 0x2dd   : > { %11651 = vmatpush1.bf16.msra.mxu1 %v11650_v49  ;;  %v1866_v49 = vld [vmem:[#allocation11 + $0x1a80] sm:$0xff]  ;;  %v1137_v43 = vld [vmem:[#allocation11 + $0x3b8] sm:$0xff]  ;;  %v11810_v44 = vpack.c.bf16 %v1072_v38, %v1040_v37  ;;  %v1391_v37 = vld [vmem:[#allocation11 + $0xba8] sm:$0xff] }
 0x2de   : > { %11715 = vmatpush1.bf16.msra.mxu0 %v11714_v50  ;;  %11653 = vmatprep.subr.bf16.mxu1 %v11652_v51  ;;  %v1898_v50 = vld [vmem:[#allocation11 + $0x1b80] sm:$0xff]  ;;  %v1868_v51 = vld [vmem:[#allocation11 + $0x1a90] sm:$0xff]  ;;  %v1361_v38 = vld [vmem:[#allocation11 + $0xab8] sm:$0xff] }
 0x2df   : > { %11717 = vmatprep.subr.bf16.mxu0 %v11716_v56  ;;  %v1963_v56 = vld [vmem:[#allocation11 + $0x1d88] sm:$0xff]  ;;  %v11670_v59 = vpack.c.bf16 %v1898_v50, %v1866_v49  ;;  %v11734_v60 = vpack.c.bf16 %v1900_v53, %v1868_v51  ;;  %v1136_v49 = vld [vmem:[#allocation11 + $0x3b0] sm:$0xff]  ;;  %v1169_v53 = vld [vmem:[#allocation11 + $0x4b8] sm:$0xff] }
 0x2e0   : > { %v11672_v61 = vpack.c.bf16 %v1963_v56, %v1931_v55  ;;  %v1167_v50 = vld [vmem:[#allocation11 + $0x4a8] sm:$0xff]  ;;  %v1201_v55 = vld [vmem:[#allocation11 + $0x5b8] sm:$0xff] }
 0x2e1   : > { %11655 = vmatpush1.bf16.msra.mxu1 %v11654_v62  ;;  %v1930_v62 = vld [vmem:[#allocation11 + $0x1c80] sm:$0xff]  ;;  %v1199_v51 = vld [vmem:[#allocation11 + $0x5a8] sm:$0xff] }
 0x2e2   : > { %11719 = vmatpush1.bf16.msra.mxu0 %v11718_v0  ;;  %11657 = vmatprep.subr.bf16.mxu1 %v11656_v1  ;;  %v1962_v0 = vld [vmem:[#allocation11 + $0x1d80] sm:$0xff]  ;;  %v1932_v1 = vld [vmem:[#allocation11 + $0x1c90] sm:$0xff]  ;;  %v11752_v58 = vpack.c.bf16 %v1199_v51, %v1167_v50  ;;  %v1425_v50 = vld [vmem:[#allocation11 + $0xcb8] sm:$0xff] }
 0x2e3   : > { %11721 = vmatprep.subr.bf16.mxu0 %v11720_v8  ;;  %v2027_v8 = vld [vmem:[#allocation11 + $0x1f88] sm:$0xff]  ;;  %v11674_v15 = vpack.c.bf16 %v1962_v0, %v1930_v62  ;;  %v11738_v16 = vpack.c.bf16 %v1964_v4, %v1932_v1  ;;  %v11816_v62 = vpack.c.bf16 %v1201_v55, %v1169_v53  ;;  %v1200_v0 = vld [vmem:[#allocation11 + $0x5b0] sm:$0xff]  ;;  %v1233_v4 = vld [vmem:[#allocation11 + $0x6b8] sm:$0xff] }
 0x2e4   : > { %v11676_v19 = vpack.c.bf16 %v2027_v8, %v1995_v6  ;;  %v1231_v1 = vld [vmem:[#allocation11 + $0x6a8] sm:$0xff]  ;;  %v1265_v6 = vld [vmem:[#allocation11 + $0x7b8] sm:$0xff] }
 0x2e5   : > { %11659 = vmatpush1.bf16.msra.mxu1 %v11658_v7  ;;  %v1994_v7 = vld [vmem:[#allocation11 + $0x1e80] sm:$0xff]  ;;  %v1457_v51 = vld [vmem:[#allocation11 + $0xdb8] sm:$0xff] }
 0x2e6   : > { %11723 = vmatpush1.bf16.msra.mxu0 %v11722_v20  ;;  %11661 = vmatprep.subr.bf16.mxu1 %v11660_v21  ;;  %v2026_v20 = vld [vmem:[#allocation11 + $0x1f80] sm:$0xff]  ;;  %v1996_v21 = vld [vmem:[#allocation11 + $0x1e90] sm:$0xff] }
 0x2e7   : > { %11725 = vmatprep.subr.bf16.mxu0 %v11724_v25  ;;  %v1071_v25 = vld [vmem:[#allocation11 + $0x1a8] sm:$0xff]  ;;  %v11678_v30 = vpack.c.bf16 %v2026_v20, %v1994_v7  ;;  %v11742_v31 = vpack.c.bf16 %v2028_v23, %v1996_v21  ;;  %v11820_v7 = vpack.c.bf16 %v1265_v6, %v1233_v4  ;;  %v1264_v20 = vld [vmem:[#allocation11 + $0x7b0] sm:$0xff]  ;;  %v1297_v23 = vld [vmem:[#allocation11 + $0x8b8] sm:$0xff] }
 0x2e8   : > { %v11744_v32 = vpack.c.bf16 %v1071_v25, %v1039_v24  ;;  %v1295_v21 = vld [vmem:[#allocation11 + $0x8a8] sm:$0xff]  ;;  %v1329_v24 = vld [vmem:[#allocation11 + $0x9b8] sm:$0xff] }
 0x2e9   : > { %11663 = vmatpush1.bf16.msra.mxu1 %v11662_v33  ;;  %v1038_v33 = vld [vmem:[#allocation11 + $0xa0] sm:$0xff]  ;;  %v1489_v6 = vld [vmem:[#allocation11 + $0xeb8] sm:$0xff] }
 0x2ea   : > { %11727 = vmatpush1.bf16.msra.mxu0 %v11726_v34  ;;  %11665 = vmatprep.subr.bf16.mxu1 %v11664_v35  ;;  %v1070_v34 = vld [vmem:[#allocation11 + $0x1a0] sm:$0xff]  ;;  %v11808_v35 = vpack.c.bf16 %v1073_v27, %v1041_v26 }
 0x2eb   : > { %11729 = vmatprep.subr.bf16.mxu0 %v11728_v40  ;;  %v1135_v40 = vld [vmem:[#allocation11 + $0x3a8] sm:$0xff]  ;;  %v11746_v41 = vpack.c.bf16 %v1070_v34, %v1038_v33  ;;  %v11824_v33 = vpack.c.bf16 %v1329_v24, %v1297_v23  ;;  %v1328_v34 = vld [vmem:[#allocation11 + $0x9b0] sm:$0xff] }
 0x2ed   : > { %11667 = vmatpush1.bf16.msra.mxu1 %v11666_v46  ;;  %v1134_v46 = vld [vmem:[#allocation11 + $0x3a0] sm:$0xff] }
 0x2ee   : > { %11731 = vmatpush1.bf16.msra.mxu0 %v11730_v47  ;;  %11669 = vmatprep.subr.bf16.mxu1 %v11668_v48  ;;  %v1104_v47 = vld [vmem:[#allocation11 + $0x2b0] sm:$0xff]  ;;  %v11748_v48 = vpack.c.bf16 %v1135_v40, %v1103_v39  ;;  %v11750_v56 = vpack.c.bf16 %v1134_v46, %v1102_v45  ;;  %v1393_v39 = vld [vmem:[#allocation11 + $0xbb8] sm:$0xff] }
 0x2ef   : > { %11733 = vmatprep.subr.bf16.mxu0 %v11732_v52  ;;  %v11812_v52 = vpack.c.bf16 %v1137_v43, %v1105_v42  ;;  %v11814_v57 = vpack.c.bf16 %v1136_v49, %v1104_v47  ;;  %v1358_v43 = vld [vmem:[#allocation11 + $0xaa0] sm:$0xff]  ;;  %v1360_v45 = vld [vmem:[#allocation11 + $0xab0] sm:$0xff]  ;;  %v11828_v46 = vpack.c.bf16 %v1393_v39, %v1361_v38  ;;  %v1455_v49 = vld [vmem:[#allocation11 + $0xda8] sm:$0xff] }
 0x2f0   : > { %v1392_v47 = vld [vmem:[#allocation11 + $0xbb0] sm:$0xff]  ;;  %v1582_v38 = vld [vmem:[#allocation11 + $0x11a0] sm:$0xff] }
 0x2f1   : > { %11671 = vmatpush1.bf16.msra.mxu1 %v11670_v59  ;;  %v1166_v59 = vld [vmem:[#allocation11 + $0x4a0] sm:$0xff]  ;;  %v11830_v53 = vpack.c.bf16 %v1392_v47, %v1360_v45  ;;  %v1552_v39 = vld [vmem:[#allocation11 + $0x10b0] sm:$0xff]  ;;  %v1647_v45 = vld [vmem:[#allocation11 + $0x13a8] sm:$0xff] }
 0x2f2   : > { %11735 = vmatpush1.bf16.msra.mxu0 %v11734_v60  ;;  %11673 = vmatprep.subr.bf16.mxu1 %v11672_v61  ;;  %v1198_v60 = vld [vmem:[#allocation11 + $0x5a0] sm:$0xff]  ;;  %v1168_v61 = vld [vmem:[#allocation11 + $0x4b0] sm:$0xff]  ;;  %v1649_v47 = vld [vmem:[#allocation11 + $0x13b8] sm:$0xff] }
 0x2f3   : > { %11737 = vmatprep.subr.bf16.mxu0 %v11736_v2  ;;  %v1263_v2 = vld [vmem:[#allocation11 + $0x7a8] sm:$0xff]  ;;  %v11754_v8 = vpack.c.bf16 %v1198_v60, %v1166_v59  ;;  %v11818_v13 = vpack.c.bf16 %v1200_v0, %v1168_v61  ;;  %v11832_v61 = vpack.c.bf16 %v1457_v51, %v1425_v50 }
 0x2f4   : > { %v11756_v14 = vpack.c.bf16 %v1263_v2, %v1231_v1  ;;  %v1487_v0 = vld [vmem:[#allocation11 + $0xea8] sm:$0xff] }
 0x2f5   : > { %11675 = vmatpush1.bf16.msra.mxu1 %v11674_v15  ;;  %v1230_v15 = vld [vmem:[#allocation11 + $0x6a0] sm:$0xff]  ;;  %v1519_v1 = vld [vmem:[#allocation11 + $0xfa8] sm:$0xff] }
 0x2f6   : > { %11739 = vmatpush1.bf16.msra.mxu0 %v11738_v16  ;;  %11677 = vmatprep.subr.bf16.mxu1 %v11676_v19  ;;  %v1262_v16 = vld [vmem:[#allocation11 + $0x7a0] sm:$0xff]  ;;  %v1232_v19 = vld [vmem:[#allocation11 + $0x6b0] sm:$0xff] }
 0x2f7   : > { %11741 = vmatprep.subr.bf16.mxu0 %v11740_v22  ;;  %v1327_v22 = vld [vmem:[#allocation11 + $0x9a8] sm:$0xff]  ;;  %v11758_v25 = vpack.c.bf16 %v1262_v16, %v1230_v15  ;;  %v11822_v26 = vpack.c.bf16 %v1264_v20, %v1232_v19  ;;  %v11772_v19 = vpack.c.bf16 %v1519_v1, %v1487_v0  ;;  %v1518_v20 = vld [vmem:[#allocation11 + $0xfa0] sm:$0xff] }
 0x2f8   : > { %v11760_v27 = vpack.c.bf16 %v1327_v22, %v1295_v21  ;;  %v1488_v21 = vld [vmem:[#allocation11 + $0xeb0] sm:$0xff]  ;;  %v1678_v1 = vld [vmem:[#allocation11 + $0x14a0] sm:$0xff] }
 0x2f9   : > { %11679 = vmatpush1.bf16.msra.mxu1 %v11678_v30  ;;  %v1294_v30 = vld [vmem:[#allocation11 + $0x8a0] sm:$0xff] }
 0x2fa   : > { %11743 = vmatpush1.bf16.msra.mxu0 %v11742_v31  ;;  %11745 = vmatprep.subr.bf16.mxu1 %v11744_v32  ;;  %v1326_v31 = vld [vmem:[#allocation11 + $0x9a0] sm:$0xff]  ;;  %v1296_v32 = vld [vmem:[#allocation11 + $0x8b0] sm:$0xff] }
 0x2fb   : > { %11809 = vmatprep.subr.bf16.mxu0 %v11808_v35  ;;  %v1359_v35 = vld [vmem:[#allocation11 + $0xaa8] sm:$0xff]  ;;  %v11762_v40 = vpack.c.bf16 %v1326_v31, %v1294_v30  ;;  %v1553_v30 = vld [vmem:[#allocation11 + $0x10b8] sm:$0xff] }
 0x2fc   : > { %2675 = vmatmul.mubr.f32.vlgmr.msra.gmra.mrb[8].mxu1 %v13811_v63  ;;  %v11764_v42 = vpack.c.bf16 %v1391_v37, %v1359_v35  ;;  %v1585_v31 = vld [vmem:[#allocation11 + $0x11b8] sm:$0xff]  ;;  %v1550_v37 = vld [vmem:[#allocation11 + $0x10a0] sm:$0xff] }
 0x2fd   : > { %2746 = vmatmul.mubr.f32.vlgmr.msra.gmra.mrb[10].mxu0 %v13811_v63  ;;  %11747 = vmatpush1.bf16.msra.mxu1 %v11746_v41  ;;  %v11826_v41 = vpack.c.bf16 %v1328_v34, %v1296_v32 }
 0x2fe   : > { %2816 = vmatprep.mubr.f32.mxu1 %v13813_v5  ;;  %11811 = vmatpush1.bf16.msra.mxu0 %v11810_v44  ;;  %v1390_v44 = vld [vmem:[#allocation11 + $0xba0] sm:$0xff] }
 0x2ff   : > { %2887 = vmatprep.mubr.f32.mxu0 %v13813_v5  ;;  %11749 = vmatprep.subr.bf16.mxu1 %v11748_v48  ;;  %v1423_v48 = vld [vmem:[#allocation11 + $0xca8] sm:$0xff] }
 0x300   : > { %11813 = vmatprep.subr.bf16.mxu0 %v11812_v52  ;;  %v11766_v52 = vpack.c.bf16 %v1390_v44, %v1358_v43  ;;  %v11768_v55 = vpack.c.bf16 %v1455_v49, %v1423_v48  ;;  %v1584_v43 = vld [vmem:[#allocation11 + $0x11b0] sm:$0xff]  ;;  %v1615_v44 = vld [vmem:[#allocation11 + $0x12a8] sm:$0xff]  ;;  %v11778_v49 = vpack.c.bf16 %v1582_v38, %v1550_v37  ;;  %v1806_v38 = vld [vmem:[#allocation11 + $0x18a0] sm:$0xff] }
 0x301   : > { %11751 = vmatpush1.bf16.msra.mxu1 %v11750_v56  ;;  %v1422_v56 = vld [vmem:[#allocation11 + $0xca0] sm:$0xff]  ;;  %v11842_v50 = vpack.c.bf16 %v1584_v43, %v1552_v39  ;;  %v11780_v51 = vpack.c.bf16 %v1647_v45, %v1615_v44  ;;  %v1871_v43 = vld [vmem:[#allocation11 + $0x1aa8] sm:$0xff]  ;;  %v1873_v45 = vld [vmem:[#allocation11 + $0x1ab8] sm:$0xff] }
 0x302   : > { %11815 = vmatpush1.bf16.msra.mxu0 %v11814_v57  ;;  %11753 = vmatprep.subr.bf16.mxu1 %v11752_v58  ;;  %v1454_v57 = vld [vmem:[#allocation11 + $0xda0] sm:$0xff]  ;;  %v1424_v58 = vld [vmem:[#allocation11 + $0xcb0] sm:$0xff]  ;;  %v1903_v44 = vld [vmem:[#allocation11 + $0x1ba8] sm:$0xff] }
 0x303   : > { %11817 = vmatprep.subr.bf16.mxu0 %v11816_v62  ;;  %v1456_v62 = vld [vmem:[#allocation11 + $0xdb0] sm:$0xff]  ;;  %v11770_v15 = vpack.c.bf16 %v1454_v57, %v1422_v56  ;;  %v1711_v56 = vld [vmem:[#allocation11 + $0x15a8] sm:$0xff]  ;;  %v1681_v57 = vld [vmem:[#allocation11 + $0x14b8] sm:$0xff] }
 0x304   : > { %v11834_v16 = vpack.c.bf16 %v1456_v62, %v1424_v58  ;;  %v1713_v58 = vld [vmem:[#allocation11 + $0x15b8] sm:$0xff]  ;;  %v1838_v39 = vld [vmem:[#allocation11 + $0x19a0] sm:$0xff] }
 0x305   : > { %11755 = vmatpush1.bf16.msra.mxu1 %v11754_v8  ;;  %v1521_v8 = vld [vmem:[#allocation11 + $0xfb8] sm:$0xff] }
 0x306   : > { %11819 = vmatpush1.bf16.msra.mxu0 %v11818_v13  ;;  %11757 = vmatprep.subr.bf16.mxu1 %v11756_v14  ;;  %v11836_v24 = vpack.c.bf16 %v1521_v8, %v1489_v6  ;;  %v1710_v6 = vld [vmem:[#allocation11 + $0x15a0] sm:$0xff]  ;;  %v1680_v8 = vld [vmem:[#allocation11 + $0x14b0] sm:$0xff] }
 0x307   : > { %11821 = vmatprep.subr.bf16.mxu0 %v11820_v7  ;;  %v1486_v7 = vld [vmem:[#allocation11 + $0xea0] sm:$0xff] }
 0x309   : > { %11759 = vmatpush1.bf16.msra.mxu1 %v11758_v25  ;;  %v1520_v25 = vld [vmem:[#allocation11 + $0xfb0] sm:$0xff] }
 0x30a   : > { %11823 = vmatpush1.bf16.msra.mxu0 %v11822_v26  ;;  %11761 = vmatprep.subr.bf16.mxu1 %v11760_v27  ;;  %v1551_v26 = vld [vmem:[#allocation11 + $0x10a8] sm:$0xff]  ;;  %v11838_v34 = vpack.c.bf16 %v1520_v25, %v1488_v21  ;;  %v1744_v25 = vld [vmem:[#allocation11 + $0x16b0] sm:$0xff] }
 0x30b   : > { %11825 = vmatprep.subr.bf16.mxu0 %v11824_v33  ;;  %v1583_v27 = vld [vmem:[#allocation11 + $0x11a8] sm:$0xff]  ;;  %v11774_v33 = vpack.c.bf16 %v1518_v20, %v1486_v7  ;;  %v1777_v7 = vld [vmem:[#allocation11 + $0x17b8] sm:$0xff]  ;;  %v11786_v20 = vpack.c.bf16 %v1710_v6, %v1678_v1  ;;  %v1936_v1 = vld [vmem:[#allocation11 + $0x1cb0] sm:$0xff] }
 0x30c   : > { %v11776_v35 = vpack.c.bf16 %v1583_v27, %v1551_v26  ;;  %v1776_v27 = vld [vmem:[#allocation11 + $0x17b0] sm:$0xff] }
 0x30d   : > { %11763 = vmatpush1.bf16.msra.mxu1 %v11762_v40  ;;  %v3250_v40 = vrot.slane %v3242_v36, %v13843_v9 }
 0x30e   : > { %11827 = vmatpush1.bf16.msra.mxu0 %v11826_v41  ;;  %11765 = vmatprep.subr.bf16.mxu1 %v11764_v42  ;;  %v11840_v42 = vpack.c.bf16 %v1585_v31, %v1553_v30  ;;  %v1807_v30 = vld [vmem:[#allocation11 + $0x18a8] sm:$0xff] }
 0x30f   : > { %v13869_v59 = vpop.f32.mrb[2].mxu1  ;;  %v13871_v60 = vpop.f32.mrb[4].mxu0  ;;  %11829 = vmatprep.subr.bf16.mxu0 %v11828_v46  ;;  %v1617_v46 = vld [vmem:[#allocation11 + $0x12b8] sm:$0xff]  ;;  %v1839_v31 = vld [vmem:[#allocation11 + $0x19a8] sm:$0xff] }
 0x310   : > { %v13873_v2 = vpop.f32.mrb[3].mxu1  ;;  %v13875_v4 = vpop.f32.mrb[5].mxu0  ;;  %v11844_v36 = vpack.c.bf16 %v1649_v47, %v1617_v46  ;;  %v11792_v37 = vpack.c.bf16 %v1839_v31, %v1807_v30  ;;  %v1905_v46 = vld [vmem:[#allocation11 + $0x1bb8] sm:$0xff]  ;;  %v11794_v47 = vpack.c.bf16 %v1838_v39, %v1806_v38  ;;  %v1044_v39 = vld [vmem:[#allocation11 + $0xd0] sm:$0xff] }
 0x311   : > { %v3212_v13 = vcombine.low %v13869_v59, %v13873_v2  ;;  %v3213_v14 = vcombine.low %v13871_v60, %v13875_v4  ;;  %11767 = vmatpush1.bf16.msra.mxu1 %v11766_v52  ;;  %v1614_v52 = vld [vmem:[#allocation11 + $0x12a0] sm:$0xff]  ;;  %v1045_v30 = vld [vmem:[#allocation11 + $0xd8] sm:$0xff] }
 0x312   : > { %11831 = vmatpush1.bf16.msra.mxu0 %v11830_v53  ;;  %11769 = vmatprep.subr.bf16.mxu1 %v11768_v55  ;;  %v1648_v53 = vld [vmem:[#allocation11 + $0x13b0] sm:$0xff]  ;;  %v1679_v55 = vld [vmem:[#allocation11 + $0x14a8] sm:$0xff]  ;;  %v1077_v31 = vld [vmem:[#allocation11 + $0x1d8] sm:$0xff] }
 0x313   : > { %v3234_v22 = vrot.slane %v3212_v13, %v13843_v9  ;;  %v3241_v23 = vrot.slane %v3213_v14, %v13843_v9  ;;  %11833 = vmatprep.subr.bf16.mxu0 %v11832_v61  ;;  %v11782_v61 = vpack.c.bf16 %v1646_v28, %v1614_v52  ;;  %v11846_v62 = vpack.c.bf16 %v1648_v53, %v1616_v29  ;;  %v1712_v14 = vld [vmem:[#allocation11 + $0x15b0] sm:$0xff]  ;;  %v1967_v53 = vld [vmem:[#allocation11 + $0x1da8] sm:$0xff] }
 0x314   : > { %v11784_v0 = vpack.c.bf16 %v1711_v56, %v1679_v55  ;;  %v11848_v13 = vpack.c.bf16 %v1713_v58, %v1681_v57  ;;  %v11850_v21 = vpack.c.bf16 %v1712_v14, %v1680_v8  ;;  %v1872_v52 = vld [vmem:[#allocation11 + $0x1ab0] sm:$0xff]  ;;  %v11860_v28 = vpack.c.bf16 %v1905_v46, %v1873_v45  ;;  %v1937_v55 = vld [vmem:[#allocation11 + $0x1cb8] sm:$0xff]  ;;  %v2031_v14 = vld [vmem:[#allocation11 + $0x1fa8] sm:$0xff] }
 0x315   : > { %v3243_v32 = vcombine.low %v3234_v22, %v3241_v23  ;;  %11771 = vmatpush1.bf16.msra.mxu1 %v11770_v15  ;;  %v1743_v15 = vld [vmem:[#allocation11 + $0x16a8] sm:$0xff]  ;;  %v1742_v23 = vld [vmem:[#allocation11 + $0x16a0] sm:$0xff]  ;;  %v1904_v29 = vld [vmem:[#allocation11 + $0x1bb0] sm:$0xff]  ;;  %v11936_v38 = vpack.c.bf16 %v1077_v31, %v1045_v30 }
 0x316   : > { %11835 = vmatpush1.bf16.msra.mxu0 %v11834_v16  ;;  %11773 = vmatprep.subr.bf16.mxu1 %v11772_v19  ;;  %v1775_v16 = vld [vmem:[#allocation11 + $0x17a8] sm:$0xff]  ;;  %v1745_v19 = vld [vmem:[#allocation11 + $0x16b8] sm:$0xff]  ;;  %v11862_v58 = vpack.c.bf16 %v1904_v29, %v1872_v52  ;;  %v1968_v8 = vld [vmem:[#allocation11 + $0x1db0] sm:$0xff] }
 0x317   : > { %v3257_v41 = vrot.slane %v3243_v32, %v13843_v9  ;;  %11837 = vmatprep.subr.bf16.mxu0 %v11836_v24  ;;  %v11788_v22 = vpack.c.bf16 %v1775_v16, %v1743_v15  ;;  %v1774_v24 = vld [vmem:[#allocation11 + $0x17a0] sm:$0xff]  ;;  %v11852_v26 = vpack.c.bf16 %v1777_v7, %v1745_v19  ;;  %v1809_v32 = vld [vmem:[#allocation11 + $0x18b8] sm:$0xff]  ;;  %v11866_v7 = vpack.c.bf16 %v1968_v8, %v1936_v1  ;;  %v1171_v52 = vld [vmem:[#allocation11 + $0x4c8] sm:$0xff] }
 0x318   : > { %v1969_v56 = vld [vmem:[#allocation11 + $0x1db8] sm:$0xff]  ;;  %v1204_v1 = vld [vmem:[#allocation11 + $0x5d0] sm:$0xff]  ;;  %v1267_v8 = vld [vmem:[#allocation11 + $0x7c8] sm:$0xff] }
 0x319   : > { %v3258_v48 = vcombine.low %v3250_v40, %v3257_v41  ;;  %11775 = vmatpush1.bf16.msra.mxu1 %v11774_v33  ;;  %v1841_v33 = vld [vmem:[#allocation11 + $0x19b8] sm:$0xff]  ;;  %v1808_v40 = vld [vmem:[#allocation11 + $0x18b0] sm:$0xff]  ;;  %v11864_v6 = vpack.c.bf16 %v1969_v56, %v1937_v55 }
 0x31a   : > { %11839 = vmatpush1.bf16.msra.mxu0 %v11838_v34  ;;  %11777 = vmatprep.subr.bf16.mxu1 %v11776_v35  ;;  %v11790_v34 = vpack.c.bf16 %v1774_v24, %v1742_v23  ;;  %v11854_v35 = vpack.c.bf16 %v1776_v27, %v1744_v25  ;;  %v11856_v41 = vpack.c.bf16 %v1841_v33, %v1809_v32  ;;  %v2001_v15 = vld [vmem:[#allocation11 + $0x1eb8] sm:$0xff]  ;;  %v2000_v23 = vld [vmem:[#allocation11 + $0x1eb0] sm:$0xff]  ;;  %v1075_v27 = vld [vmem:[#allocation11 + $0x1c8] sm:$0xff] }
 0x31b   : > { %11841 = vmatprep.subr.bf16.mxu0 %v11840_v42  ;;  %3410 = vst [vmem:[%s13894_s4] sm:$0xff] %v3258_v48  ;;  %v1840_v42 = vld [vmem:[#allocation11 + $0x19b0] sm:$0xff]  ;;  %v2033_v16 = vld [vmem:[#allocation11 + $0x1fb8] sm:$0xff] }
 0x31c   : > { %v11858_v48 = vpack.c.bf16 %v1840_v42, %v1808_v40  ;;  %v11868_v24 = vpack.c.bf16 %v2033_v16, %v2001_v15  ;;  %v2032_v25 = vld [vmem:[#allocation11 + $0x1fb0] sm:$0xff]  ;;  %v1139_v42 = vld [vmem:[#allocation11 + $0x3c8] sm:$0xff]  ;;  %v1141_v45 = vld [vmem:[#allocation11 + $0x3d8] sm:$0xff] }
 0x31d   : > { %11779 = vmatpush1.bf16.msra.mxu1 %v11778_v49  ;;  %v11796_v49 = vpack.c.bf16 %v1903_v44, %v1871_v43  ;;  %v11870_v33 = vpack.c.bf16 %v2032_v25, %v2000_v23  ;;  %v1076_v40 = vld [vmem:[#allocation11 + $0x1d0] sm:$0xff]  ;;  %v1109_v44 = vld [vmem:[#allocation11 + $0x2d8] sm:$0xff]  ;;  %v1331_v25 = vld [vmem:[#allocation11 + $0x9c8] sm:$0xff] }
 0x31e   : > { %11843 = vmatpush1.bf16.msra.mxu0 %v11842_v50  ;;  %11781 = vmatprep.subr.bf16.mxu1 %v11780_v51  ;;  %v1870_v50 = vld [vmem:[#allocation11 + $0x1aa0] sm:$0xff]  ;;  %v11938_v46 = vpack.c.bf16 %v1076_v40, %v1044_v39  ;;  %v11940_v29 = vpack.c.bf16 %v1141_v45, %v1109_v44  ;;  %v1268_v23 = vld [vmem:[#allocation11 + $0x7d0] sm:$0xff]  ;;  %v1363_v39 = vld [vmem:[#allocation11 + $0xac8] sm:$0xff] }
 0x31f   : > { %11845 = vmatprep.subr.bf16.mxu0 %v11844_v36  ;;  %v1902_v51 = vld [vmem:[#allocation11 + $0x1ba0] sm:$0xff]  ;;  %v1935_v36 = vld [vmem:[#allocation11 + $0x1ca8] sm:$0xff] }
 0x320   : > { %v11798_v57 = vpack.c.bf16 %v1902_v51, %v1870_v50  ;;  %v1140_v51 = vld [vmem:[#allocation11 + $0x3d0] sm:$0xff]  ;;  %v1395_v40 = vld [vmem:[#allocation11 + $0xbc8] sm:$0xff] }
 0x321   : > { %11783 = vmatpush1.bf16.msra.mxu1 %v11782_v61  ;;  %v11800_v61 = vpack.c.bf16 %v1967_v53, %v1935_v36  ;;  %v1173_v36 = vld [vmem:[#allocation11 + $0x4d8] sm:$0xff]  ;;  %v11892_v45 = vpack.c.bf16 %v1395_v40, %v1363_v39 }
 0x322   : > { %11847 = vmatpush1.bf16.msra.mxu0 %v11846_v62  ;;  %11785 = vmatprep.subr.bf16.mxu1 %v11784_v0  ;;  %v1934_v62 = vld [vmem:[#allocation11 + $0x1ca0] sm:$0xff]  ;;  %v1205_v53 = vld [vmem:[#allocation11 + $0x5d8] sm:$0xff] }
 0x323   : > { %11849 = vmatprep.subr.bf16.mxu0 %v11848_v13  ;;  %v1966_v0 = vld [vmem:[#allocation11 + $0x1da0] sm:$0xff]  ;;  %v1999_v13 = vld [vmem:[#allocation11 + $0x1ea8] sm:$0xff] }
 0x324   : > { %v11802_v19 = vpack.c.bf16 %v1966_v0, %v1934_v62  ;;  %v1172_v62 = vld [vmem:[#allocation11 + $0x4d0] sm:$0xff]  ;;  %v11944_v0 = vpack.c.bf16 %v1205_v53, %v1173_v36 }
 0x325   : > { %11787 = vmatpush1.bf16.msra.mxu1 %v11786_v20  ;;  %v11804_v20 = vpack.c.bf16 %v2031_v14, %v1999_v13  ;;  %v1237_v13 = vld [vmem:[#allocation11 + $0x6d8] sm:$0xff]  ;;  %v11946_v16 = vpack.c.bf16 %v1204_v1, %v1172_v62  ;;  %v1491_v1 = vld [vmem:[#allocation11 + $0xec8] sm:$0xff] }
 0x326   : > { %11851 = vmatpush1.bf16.msra.mxu0 %v11850_v21  ;;  %11789 = vmatprep.subr.bf16.mxu1 %v11788_v22  ;;  %v1998_v21 = vld [vmem:[#allocation11 + $0x1ea0] sm:$0xff]  ;;  %v1269_v14 = vld [vmem:[#allocation11 + $0x7d8] sm:$0xff] }
 0x327   : > { %11853 = vmatprep.subr.bf16.mxu0 %v11852_v26  ;;  %v2030_v22 = vld [vmem:[#allocation11 + $0x1fa0] sm:$0xff]  ;;  %v1043_v26 = vld [vmem:[#allocation11 + $0xc8] sm:$0xff] }
 0x328   : > { %v11806_v32 = vpack.c.bf16 %v2030_v22, %v1998_v21  ;;  %v1236_v21 = vld [vmem:[#allocation11 + $0x6d0] sm:$0xff]  ;;  %v11948_v22 = vpack.c.bf16 %v1269_v14, %v1237_v13  ;;  %v1493_v14 = vld [vmem:[#allocation11 + $0xed8] sm:$0xff] }
 0x329   : > { %11791 = vmatpush1.bf16.msra.mxu1 %v11790_v34  ;;  %v11872_v34 = vpack.c.bf16 %v1075_v27, %v1043_v26  ;;  %v1301_v26 = vld [vmem:[#allocation11 + $0x8d8] sm:$0xff]  ;;  %v11950_v31 = vpack.c.bf16 %v1268_v23, %v1236_v21  ;;  %v1490_v23 = vld [vmem:[#allocation11 + $0xec0] sm:$0xff] }
 0x32a   : > { %11855 = vmatpush1.bf16.msra.mxu0 %v11854_v35  ;;  %11793 = vmatprep.subr.bf16.mxu1 %v11792_v37  ;;  %v1042_v35 = vld [vmem:[#allocation11 + $0xc0] sm:$0xff]  ;;  %v1333_v27 = vld [vmem:[#allocation11 + $0x9d8] sm:$0xff] }
 0x32b   : > { %11857 = vmatprep.subr.bf16.mxu0 %v11856_v41  ;;  %v1074_v37 = vld [vmem:[#allocation11 + $0x1c0] sm:$0xff]  ;;  %v1107_v41 = vld [vmem:[#allocation11 + $0x2c8] sm:$0xff] }
 0x32c   : > { %v11874_v43 = vpack.c.bf16 %v1074_v37, %v1042_v35  ;;  %v11876_v50 = vpack.c.bf16 %v1139_v42, %v1107_v41  ;;  %v1300_v35 = vld [vmem:[#allocation11 + $0x8d0] sm:$0xff]  ;;  %v11952_v37 = vpack.c.bf16 %v1333_v27, %v1301_v26  ;;  %v1365_v41 = vld [vmem:[#allocation11 + $0xad8] sm:$0xff] }
 0x32d   : > { %11795 = vmatpush1.bf16.msra.mxu1 %v11794_v47  ;;  %v1106_v47 = vld [vmem:[#allocation11 + $0x2c0] sm:$0xff]  ;;  %v1397_v42 = vld [vmem:[#allocation11 + $0xbd8] sm:$0xff] }
 0x32e   : > { %11859 = vmatpush1.bf16.msra.mxu0 %v11858_v48  ;;  %11797 = vmatprep.subr.bf16.mxu1 %v11796_v49  ;;  %v1138_v48 = vld [vmem:[#allocation11 + $0x3c0] sm:$0xff]  ;;  %v1108_v49 = vld [vmem:[#allocation11 + $0x2d0] sm:$0xff] }
 0x32f   : > { %11861 = vmatprep.subr.bf16.mxu0 %v11860_v28  ;;  %v1203_v28 = vld [vmem:[#allocation11 + $0x5c8] sm:$0xff]  ;;  %v11878_v55 = vpack.c.bf16 %v1138_v48, %v1106_v47  ;;  %v11942_v56 = vpack.c.bf16 %v1140_v51, %v1108_v49  ;;  %v1394_v47 = vld [vmem:[#allocation11 + $0xbc0] sm:$0xff]  ;;  %v1364_v48 = vld [vmem:[#allocation11 + $0xad0] sm:$0xff]  ;;  %v11956_v49 = vpack.c.bf16 %v1397_v42, %v1365_v41 }
 0x330   : > { %v1427_v51 = vld [vmem:[#allocation11 + $0xcc8] sm:$0xff]  ;;  %v1554_v41 = vld [vmem:[#allocation11 + $0x10c0] sm:$0xff] }
 0x331   : > { %11799 = vmatpush1.bf16.msra.mxu1 %v11798_v57  ;;  %v11880_v57 = vpack.c.bf16 %v1203_v28, %v1171_v52  ;;  %v1459_v52 = vld [vmem:[#allocation11 + $0xdc8] sm:$0xff]  ;;  %v1429_v28 = vld [vmem:[#allocation11 + $0xcd8] sm:$0xff]  ;;  %v1586_v42 = vld [vmem:[#allocation11 + $0x11c0] sm:$0xff] }
 0x332   : > { %11863 = vmatpush1.bf16.msra.mxu0 %v11862_v58  ;;  %11801 = vmatprep.subr.bf16.mxu1 %v11800_v61  ;;  %v1170_v58 = vld [vmem:[#allocation11 + $0x4c0] sm:$0xff] }
 0x333   : > { %11865 = vmatprep.subr.bf16.mxu0 %v11864_v6  ;;  %v1202_v61 = vld [vmem:[#allocation11 + $0x5c0] sm:$0xff]  ;;  %v1235_v6 = vld [vmem:[#allocation11 + $0x6c8] sm:$0xff] }
 0x334   : > { %v11882_v15 = vpack.c.bf16 %v1202_v61, %v1170_v58  ;;  %v1428_v58 = vld [vmem:[#allocation11 + $0xcd0] sm:$0xff] }
 0x335   : > { %11803 = vmatpush1.bf16.msra.mxu1 %v11802_v19  ;;  %v11884_v19 = vpack.c.bf16 %v1267_v8, %v1235_v6  ;;  %v1523_v6 = vld [vmem:[#allocation11 + $0xfc8] sm:$0xff] }
 0x336   : > { %11867 = vmatpush1.bf16.msra.mxu0 %v11866_v7  ;;  %11805 = vmatprep.subr.bf16.mxu1 %v11804_v20  ;;  %v1234_v7 = vld [vmem:[#allocation11 + $0x6c0] sm:$0xff] }
 0x337   : > { %11869 = vmatprep.subr.bf16.mxu0 %v11868_v24  ;;  %v1266_v20 = vld [vmem:[#allocation11 + $0x7c0] sm:$0xff]  ;;  %v1299_v24 = vld [vmem:[#allocation11 + $0x8c8] sm:$0xff] }
 0x338   : > { %v11886_v30 = vpack.c.bf16 %v1266_v20, %v1234_v7 }
 0x339   : > { %11807 = vmatpush1.bf16.msra.mxu1 %v11806_v32  ;;  %v11888_v32 = vpack.c.bf16 %v1331_v25, %v1299_v24  ;;  %v1522_v24 = vld [vmem:[#allocation11 + $0xfc0] sm:$0xff]  ;;  %v1492_v25 = vld [vmem:[#allocation11 + $0xed0] sm:$0xff] }
 0x33a   : > { %11871 = vmatpush1.bf16.msra.mxu0 %v11870_v33  ;;  %11873 = vmatprep.subr.bf16.mxu1 %v11872_v34  ;;  %v1298_v33 = vld [vmem:[#allocation11 + $0x8c0] sm:$0xff] }
 0x33b   : > { %11937 = vmatprep.subr.bf16.mxu0 %v11936_v38  ;;  %v1330_v34 = vld [vmem:[#allocation11 + $0x9c0] sm:$0xff]  ;;  %v1332_v38 = vld [vmem:[#allocation11 + $0x9d0] sm:$0xff] }
 0x33c   : > { %2817 = vmatmul.mubr.f32.vlgmr.msra.gmra.mrb[10].mxu1 %v13811_v63  ;;  %v11954_v44 = vpack.c.bf16 %v1332_v38, %v1300_v35  ;;  %v1589_v35 = vld [vmem:[#allocation11 + $0x11d8] sm:$0xff] }
 0x33d   : > { %2888 = vmatmul.mubr.f32.vlgmr.msra.gmra.mrb[12].mxu0 %v13811_v63  ;;  %11875 = vmatpush1.bf16.msra.mxu1 %v11874_v43  ;;  %v11890_v43 = vpack.c.bf16 %v1330_v34, %v1298_v33  ;;  %v1557_v34 = vld [vmem:[#allocation11 + $0x10d8] sm:$0xff] }
 0x33e   : > { %2958 = vmatprep.mubr.f32.mxu1 %v13813_v5  ;;  %11939 = vmatpush1.bf16.msra.mxu0 %v11938_v46  ;;  %v1362_v46 = vld [vmem:[#allocation11 + $0xac0] sm:$0xff] }
 0x33f   : > { %3029 = vmatprep.mubr.f32.mxu0 %v13813_v5  ;;  %11877 = vmatprep.subr.bf16.mxu1 %v11876_v50  ;;  %v1396_v50 = vld [vmem:[#allocation11 + $0xbd0] sm:$0xff]  ;;  %v11894_v36 = vpack.c.bf16 %v1394_v47, %v1362_v46  ;;  %v1619_v46 = vld [vmem:[#allocation11 + $0x12c8] sm:$0xff] }
 0x340   : > { %11941 = vmatprep.subr.bf16.mxu0 %v11940_v29  ;;  %v1461_v29 = vld [vmem:[#allocation11 + $0xdd8] sm:$0xff]  ;;  %v11958_v53 = vpack.c.bf16 %v1396_v50, %v1364_v48  ;;  %v1651_v47 = vld [vmem:[#allocation11 + $0x13c8] sm:$0xff]  ;;  %v11906_v50 = vpack.c.bf16 %v1586_v42, %v1554_v41 }
 0x341   : > { %11879 = vmatpush1.bf16.msra.mxu1 %v11878_v55  ;;  %v11896_v55 = vpack.c.bf16 %v1459_v52, %v1427_v51  ;;  %v11960_v62 = vpack.c.bf16 %v1461_v29, %v1429_v28  ;;  %v1621_v48 = vld [vmem:[#allocation11 + $0x12d8] sm:$0xff]  ;;  %v11908_v52 = vpack.c.bf16 %v1651_v47, %v1619_v46  ;;  %v1618_v28 = vld [vmem:[#allocation11 + $0x12c0] sm:$0xff] }
 0x342   : > { %11943 = vmatpush1.bf16.msra.mxu0 %v11942_v56  ;;  %11881 = vmatprep.subr.bf16.mxu1 %v11880_v57  ;;  %v1426_v56 = vld [vmem:[#allocation11 + $0xcc0] sm:$0xff]  ;;  %v1813_v41 = vld [vmem:[#allocation11 + $0x18d8] sm:$0xff] }
 0x343   : > { %11945 = vmatprep.subr.bf16.mxu0 %v11944_v0  ;;  %v1458_v57 = vld [vmem:[#allocation11 + $0xdc0] sm:$0xff]  ;;  %v1460_v0 = vld [vmem:[#allocation11 + $0xdd0] sm:$0xff]  ;;  %v1845_v42 = vld [vmem:[#allocation11 + $0x19d8] sm:$0xff] }
 0x344   : > { %v11898_v7 = vpack.c.bf16 %v1458_v57, %v1426_v56  ;;  %v11962_v21 = vpack.c.bf16 %v1460_v0, %v1428_v58  ;;  %v1650_v29 = vld [vmem:[#allocation11 + $0x13c0] sm:$0xff]  ;;  %v1683_v56 = vld [vmem:[#allocation11 + $0x14c8] sm:$0xff]  ;;  %v1685_v58 = vld [vmem:[#allocation11 + $0x14d8] sm:$0xff] }
 0x345   : > { %11883 = vmatpush1.bf16.msra.mxu1 %v11882_v15  ;;  %v1525_v15 = vld [vmem:[#allocation11 + $0xfd8] sm:$0xff]  ;;  %v1715_v57 = vld [vmem:[#allocation11 + $0x15c8] sm:$0xff]  ;;  %v11910_v0 = vpack.c.bf16 %v1650_v29, %v1618_v28  ;;  %v1810_v46 = vld [vmem:[#allocation11 + $0x18c0] sm:$0xff] }
 0x346   : > { %11947 = vmatpush1.bf16.msra.mxu0 %v11946_v16  ;;  %11885 = vmatprep.subr.bf16.mxu1 %v11884_v19  ;;  %v11964_v27 = vpack.c.bf16 %v1525_v15, %v1493_v14  ;;  %v1682_v14 = vld [vmem:[#allocation11 + $0x14c0] sm:$0xff]  ;;  %v1877_v28 = vld [vmem:[#allocation11 + $0x1ad8] sm:$0xff] }
 0x347   : > { %11949 = vmatprep.subr.bf16.mxu0 %v11948_v22  ;;  %v11900_v22 = vpack.c.bf16 %v1523_v6, %v1491_v1  ;;  %v11912_v6 = vpack.c.bf16 %v1715_v57, %v1683_v56  ;;  %v1714_v15 = vld [vmem:[#allocation11 + $0x15c0] sm:$0xff]  ;;  %v1909_v29 = vld [vmem:[#allocation11 + $0x1bd8] sm:$0xff] }
 0x348   : > { %v1842_v47 = vld [vmem:[#allocation11 + $0x19c0] sm:$0xff] }
 0x349   : > { %11887 = vmatpush1.bf16.msra.mxu1 %v11886_v30  ;;  %v1524_v30 = vld [vmem:[#allocation11 + $0xfd0] sm:$0xff]  ;;  %v1874_v56 = vld [vmem:[#allocation11 + $0x1ac0] sm:$0xff] }
 0x34a   : > { %11951 = vmatpush1.bf16.msra.mxu0 %v11950_v31  ;;  %11889 = vmatprep.subr.bf16.mxu1 %v11888_v32  ;;  %v1555_v31 = vld [vmem:[#allocation11 + $0x10c8] sm:$0xff]  ;;  %v11966_v39 = vpack.c.bf16 %v1524_v30, %v1492_v25  ;;  %v11914_v25 = vpack.c.bf16 %v1714_v15, %v1682_v14  ;;  %v1906_v57 = vld [vmem:[#allocation11 + $0x1bc0] sm:$0xff]  ;;  %v1941_v14 = vld [vmem:[#allocation11 + $0x1cd8] sm:$0xff] }
 0x34b   : > { %11953 = vmatprep.subr.bf16.mxu0 %v11952_v37  ;;  %v1587_v32 = vld [vmem:[#allocation11 + $0x11c8] sm:$0xff]  ;;  %v11902_v37 = vpack.c.bf16 %v1522_v24, %v1490_v23  ;;  %v1749_v23 = vld [vmem:[#allocation11 + $0x16d8] sm:$0xff] }
 0x34c   : > { %v11904_v40 = vpack.c.bf16 %v1587_v32, %v1555_v31  ;;  %v1781_v24 = vld [vmem:[#allocation11 + $0x17d8] sm:$0xff]  ;;  %v1746_v31 = vld [vmem:[#allocation11 + $0x16c0] sm:$0xff] }
 0x34d   : > { %11891 = vmatpush1.bf16.msra.mxu1 %v11890_v43  ;;  %v1556_v43 = vld [vmem:[#allocation11 + $0x10d0] sm:$0xff]  ;;  %v1778_v32 = vld [vmem:[#allocation11 + $0x17c0] sm:$0xff]  ;;  %v1973_v15 = vld [vmem:[#allocation11 + $0x1dd8] sm:$0xff] }
 0x34e   : > { %11955 = vmatpush1.bf16.msra.mxu0 %v11954_v44  ;;  %11893 = vmatprep.subr.bf16.mxu1 %v11892_v45  ;;  %v11968_v44 = vpack.c.bf16 %v1589_v35, %v1557_v34  ;;  %v1588_v45 = vld [vmem:[#allocation11 + $0x11d0] sm:$0xff]  ;;  %v11980_v35 = vpack.c.bf16 %v1781_v24, %v1749_v23  ;;  %v11992_v24 = vpack.c.bf16 %v1973_v15, %v1941_v14 }
 0x34f   : > { %v13901_v61 = vpop.f32.mrb[4].mxu1  ;;  %11957 = vmatprep.subr.bf16.mxu0 %v11956_v49  ;;  %v1653_v49 = vld [vmem:[#allocation11 + $0x13d8] sm:$0xff]  ;;  %v11970_v51 = vpack.c.bf16 %v1588_v45, %v1556_v43  ;;  %v1748_v34 = vld [vmem:[#allocation11 + $0x16d0] sm:$0xff]  ;;  %v11918_v43 = vpack.c.bf16 %v1778_v32, %v1746_v31 }
 0x350   : > { %v13903_v8 = vpop.f32.mrb[6].mxu0  ;;  %v13905_v13 = vpop.f32.mrb[5].mxu1  ;;  %v1940_v23 = vld [vmem:[#allocation11 + $0x1cd0] sm:$0xff]  ;;  %v2005_v31 = vld [vmem:[#allocation11 + $0x1ed8] sm:$0xff] }
 0x351   : > { %v3259_v16 = vcombine.low %v13901_v61, %v13905_v13  ;;  %v13909_v19 = vpop.f32.mrb[7].mxu0  ;;  %11895 = vmatpush1.bf16.msra.mxu1 %v11894_v36  ;;  %v1620_v36 = vld [vmem:[#allocation11 + $0x12d0] sm:$0xff]  ;;  %v2037_v32 = vld [vmem:[#allocation11 + $0x1fd8] sm:$0xff] }
 0x352   : > { %v3260_v20 = vcombine.low %v13903_v8, %v13909_v19  ;;  %11959 = vmatpush1.bf16.msra.mxu0 %v11958_v53  ;;  %11897 = vmatprep.subr.bf16.mxu1 %v11896_v55  ;;  %v11972_v53 = vpack.c.bf16 %v1653_v49, %v1621_v48  ;;  %v1652_v55 = vld [vmem:[#allocation11 + $0x13d0] sm:$0xff]  ;;  %v11984_v49 = vpack.c.bf16 %v1845_v42, %v1813_v41 }
 0x353   : > { %v13914_v26 = vrot.slane %v3259_v16, %v13843_v9  ;;  %11961 = vmatprep.subr.bf16.mxu0 %v11960_v62  ;;  %v1717_v62 = vld [vmem:[#allocation11 + $0x15d8] sm:$0xff]  ;;  %v11974_v1 = vpack.c.bf16 %v1652_v55, %v1620_v36  ;;  %v1684_v16 = vld [vmem:[#allocation11 + $0x14d0] sm:$0xff]  ;;  %v11922_v36 = vpack.c.bf16 %v1842_v47, %v1810_v46  ;;  %v11996_v42 = vpack.c.bf16 %v2037_v32, %v2005_v31 }
 0x354   : > { %v13917_v33 = vrot.slane %v3260_v20, %v13843_v9  ;;  %v1716_v20 = vld [vmem:[#allocation11 + $0x15d0] sm:$0xff]  ;;  %v1049_v46 = vld [vmem:[#allocation11 + $0xf8] sm:$0xff] }
 0x355   : > { %11899 = vmatpush1.bf16.msra.mxu1 %v11898_v7  ;;  %v11976_v7 = vpack.c.bf16 %v1717_v62, %v1685_v58  ;;  %v1812_v48 = vld [vmem:[#allocation11 + $0x18d0] sm:$0xff]  ;;  %v11988_v62 = vpack.c.bf16 %v1909_v29, %v1877_v28  ;;  %v1081_v47 = vld [vmem:[#allocation11 + $0x1f8] sm:$0xff] }
 0x356   : > { %v3291_v38 = vcombine.low %v13914_v26, %v13917_v33  ;;  %11963 = vmatpush1.bf16.msra.mxu0 %v11962_v21  ;;  %11901 = vmatprep.subr.bf16.mxu1 %v11900_v22  ;;  %v1747_v21 = vld [vmem:[#allocation11 + $0x16c8] sm:$0xff]  ;;  %v1876_v58 = vld [vmem:[#allocation11 + $0x1ad0] sm:$0xff]  ;;  %v12064_v28 = vpack.c.bf16 %v1081_v47, %v1049_v46 }
 0x357   : > { %11965 = vmatprep.subr.bf16.mxu0 %v11964_v27  ;;  %v1779_v22 = vld [vmem:[#allocation11 + $0x17c8] sm:$0xff]  ;;  %v11978_v27 = vpack.c.bf16 %v1716_v20, %v1684_v16  ;;  %v11926_v16 = vpack.c.bf16 %v1906_v57, %v1874_v56  ;;  %v2004_v41 = vld [vmem:[#allocation11 + $0x1ed0] sm:$0xff]  ;;  %v1113_v57 = vld [vmem:[#allocation11 + $0x2f8] sm:$0xff] }
 0x358   : > { %v11916_v30 = vpack.c.bf16 %v1779_v22, %v1747_v21  ;;  %v1938_v21 = vld [vmem:[#allocation11 + $0x1cc0] sm:$0xff]  ;;  %v1048_v29 = vld [vmem:[#allocation11 + $0xf0] sm:$0xff]  ;;  %v1687_v26 = vld [vmem:[#allocation11 + $0x14e8] sm:$0xff] }
 0x359   : > { %11903 = vmatpush1.bf16.msra.mxu1 %v11902_v37  ;;  %v1780_v37 = vld [vmem:[#allocation11 + $0x17d0] sm:$0xff]  ;;  %v1970_v22 = vld [vmem:[#allocation11 + $0x1dc0] sm:$0xff]  ;;  %v1719_v33 = vld [vmem:[#allocation11 + $0x15e8] sm:$0xff] }
 0x35a   : > { %11967 = vmatpush1.bf16.msra.mxu0 %v11966_v39  ;;  %11905 = vmatprep.subr.bf16.mxu1 %v11904_v40  ;;  %v1811_v39 = vld [vmem:[#allocation11 + $0x18c8] sm:$0xff]  ;;  %v1144_v15 = vld [vmem:[#allocation11 + $0x3f0] sm:$0xff] }
 0x35b   : > { %11969 = vmatprep.subr.bf16.mxu0 %v11968_v44  ;;  %v1843_v40 = vld [vmem:[#allocation11 + $0x19c8] sm:$0xff]  ;;  %v11982_v44 = vpack.c.bf16 %v1780_v37, %v1748_v34  ;;  %v11930_v34 = vpack.c.bf16 %v1970_v22, %v1938_v21  ;;  %v1177_v21 = vld [vmem:[#allocation11 + $0x4f8] sm:$0xff]  ;;  %v1176_v31 = vld [vmem:[#allocation11 + $0x4f0] sm:$0xff] }
 0x35c   : > { %v11920_v45 = vpack.c.bf16 %v1843_v40, %v1811_v39  ;;  %v2002_v39 = vld [vmem:[#allocation11 + $0x1ec0] sm:$0xff]  ;;  %v1209_v22 = vld [vmem:[#allocation11 + $0x5f8] sm:$0xff]  ;;  %v1240_v46 = vld [vmem:[#allocation11 + $0x6f0] sm:$0xff] }
 0x35d   : > { %11907 = vmatpush1.bf16.msra.mxu1 %v11906_v50  ;;  %v1844_v50 = vld [vmem:[#allocation11 + $0x19d0] sm:$0xff]  ;;  %v2034_v40 = vld [vmem:[#allocation11 + $0x1fc0] sm:$0xff]  ;;  %v12072_v32 = vpack.c.bf16 %v1209_v22, %v1177_v21 }
 0x35e   : > { %11971 = vmatpush1.bf16.msra.mxu0 %v11970_v51  ;;  %11909 = vmatprep.subr.bf16.mxu1 %v11908_v52  ;;  %v1875_v51 = vld [vmem:[#allocation11 + $0x1ac8] sm:$0xff]  ;;  %v1400_v22 = vld [vmem:[#allocation11 + $0xbf0] sm:$0xff] }
 0x35f   : > { %11973 = vmatprep.subr.bf16.mxu0 %v11972_v53  ;;  %v1907_v52 = vld [vmem:[#allocation11 + $0x1bc8] sm:$0xff]  ;;  %v11986_v53 = vpack.c.bf16 %v1844_v50, %v1812_v48  ;;  %v11934_v48 = vpack.c.bf16 %v2034_v40, %v2002_v39  ;;  %v1241_v39 = vld [vmem:[#allocation11 + $0x6f8] sm:$0xff] }
 0x360   : > { %v11924_v55 = vpack.c.bf16 %v1907_v52, %v1875_v51  ;;  %v1046_v51 = vld [vmem:[#allocation11 + $0xe0] sm:$0xff]  ;;  %v1273_v40 = vld [vmem:[#allocation11 + $0x7f8] sm:$0xff] }
 0x361   : > { %11911 = vmatpush1.bf16.msra.mxu1 %v11910_v0  ;;  %v1908_v0 = vld [vmem:[#allocation11 + $0x1bd0] sm:$0xff]  ;;  %v1078_v52 = vld [vmem:[#allocation11 + $0x1e0] sm:$0xff]  ;;  %v12076_v47 = vpack.c.bf16 %v1273_v40, %v1241_v39 }
 0x362   : > { %11975 = vmatpush1.bf16.msra.mxu0 %v11974_v1  ;;  %11913 = vmatprep.subr.bf16.mxu1 %v11912_v6  ;;  %v1939_v1 = vld [vmem:[#allocation11 + $0x1cc8] sm:$0xff]  ;;  %v12002_v56 = vpack.c.bf16 %v1078_v52, %v1046_v51  ;;  %v1337_v51 = vld [vmem:[#allocation11 + $0x9f8] sm:$0xff] }
 0x363   : > { %11977 = vmatprep.subr.bf16.mxu0 %v11976_v7  ;;  %v1971_v6 = vld [vmem:[#allocation11 + $0x1dc8] sm:$0xff]  ;;  %v11990_v7 = vpack.c.bf16 %v1908_v0, %v1876_v58  ;;  %v1145_v58 = vld [vmem:[#allocation11 + $0x3f8] sm:$0xff]  ;;  %v1110_v0 = vld [vmem:[#allocation11 + $0x2e0] sm:$0xff] }
 0x364   : > { %v11928_v20 = vpack.c.bf16 %v1971_v6, %v1939_v1  ;;  %v1142_v1 = vld [vmem:[#allocation11 + $0x3e0] sm:$0xff]  ;;  %v1112_v6 = vld [vmem:[#allocation11 + $0x2f0] sm:$0xff] }
 0x365   : > { %11915 = vmatpush1.bf16.msra.mxu1 %v11914_v25  ;;  %v1972_v25 = vld [vmem:[#allocation11 + $0x1dd0] sm:$0xff] }
 0x366   : > { %11979 = vmatpush1.bf16.msra.mxu0 %v11978_v27  ;;  %11917 = vmatprep.subr.bf16.mxu1 %v11916_v30  ;;  %v2003_v27 = vld [vmem:[#allocation11 + $0x1ec8] sm:$0xff] }
 0x367   : > { %11981 = vmatprep.subr.bf16.mxu0 %v11980_v35  ;;  %v2035_v30 = vld [vmem:[#allocation11 + $0x1fc8] sm:$0xff]  ;;  %v11994_v35 = vpack.c.bf16 %v1972_v25, %v1940_v23  ;;  %v12006_v23 = vpack.c.bf16 %v1142_v1, %v1110_v0  ;;  %v1369_v0 = vld [vmem:[#allocation11 + $0xaf8] sm:$0xff] }
 0x368   : > { %v11932_v37 = vpack.c.bf16 %v2035_v30, %v2003_v27  ;;  %v1174_v27 = vld [vmem:[#allocation11 + $0x4e0] sm:$0xff]  ;;  %v1401_v1 = vld [vmem:[#allocation11 + $0xbf8] sm:$0xff] }
 0x369   : > { %11919 = vmatpush1.bf16.msra.mxu1 %v11918_v43  ;;  %v2036_v43 = vld [vmem:[#allocation11 + $0x1fd0] sm:$0xff]  ;;  %v1206_v30 = vld [vmem:[#allocation11 + $0x5e0] sm:$0xff]  ;;  %v12084_v21 = vpack.c.bf16 %v1401_v1, %v1369_v0  ;;  %v1561_v0 = vld [vmem:[#allocation11 + $0x10f8] sm:$0xff] }
 0x36a   : > { %11983 = vmatpush1.bf16.msra.mxu0 %v11982_v44  ;;  %11921 = vmatprep.subr.bf16.mxu1 %v11920_v45  ;;  %v1047_v44 = vld [vmem:[#allocation11 + $0xe8] sm:$0xff]  ;;  %v1593_v1 = vld [vmem:[#allocation11 + $0x11f8] sm:$0xff] }
 0x36b   : > { %11985 = vmatprep.subr.bf16.mxu0 %v11984_v49  ;;  %v1079_v45 = vld [vmem:[#allocation11 + $0x1e8] sm:$0xff]  ;;  %v11998_v49 = vpack.c.bf16 %v2036_v43, %v2004_v41  ;;  %v12010_v41 = vpack.c.bf16 %v1206_v30, %v1174_v27  ;;  %v1465_v27 = vld [vmem:[#allocation11 + $0xdf8] sm:$0xff] }
 0x36c   : > { %v12000_v50 = vpack.c.bf16 %v1079_v45, %v1047_v44  ;;  %v1238_v44 = vld [vmem:[#allocation11 + $0x6e0] sm:$0xff] }
 0x36d   : > { %11923 = vmatpush1.bf16.msra.mxu1 %v11922_v36  ;;  %v1080_v36 = vld [vmem:[#allocation11 + $0x1f0] sm:$0xff]  ;;  %v1270_v45 = vld [vmem:[#allocation11 + $0x7e0] sm:$0xff] }
 0x36e   : > { %11987 = vmatpush1.bf16.msra.mxu0 %v11986_v53  ;;  %11925 = vmatprep.subr.bf16.mxu1 %v11924_v55  ;;  %v1111_v53 = vld [vmem:[#allocation11 + $0x2e8] sm:$0xff]  ;;  %v12014_v52 = vpack.c.bf16 %v1270_v45, %v1238_v44 }
 0x36f   : > { %11989 = vmatprep.subr.bf16.mxu0 %v11988_v62  ;;  %v1143_v55 = vld [vmem:[#allocation11 + $0x3e8] sm:$0xff]  ;;  %v12066_v62 = vpack.c.bf16 %v1080_v36, %v1048_v29  ;;  %v1302_v36 = vld [vmem:[#allocation11 + $0x8e0] sm:$0xff] }
 0x370   : > { %v12004_v14 = vpack.c.bf16 %v1143_v55, %v1111_v53  ;;  %v1334_v53 = vld [vmem:[#allocation11 + $0x9e0] sm:$0xff]  ;;  %v1304_v55 = vld [vmem:[#allocation11 + $0x8f0] sm:$0xff] }
 0x371   : > { %11927 = vmatpush1.bf16.msra.mxu1 %v11926_v16  ;;  %v1175_v16 = vld [vmem:[#allocation11 + $0x4e8] sm:$0xff] }
 0x372   : > { %11991 = vmatpush1.bf16.msra.mxu0 %v11990_v7  ;;  %11929 = vmatprep.subr.bf16.mxu1 %v11928_v20  ;;  %v1207_v7 = vld [vmem:[#allocation11 + $0x5e8] sm:$0xff]  ;;  %v12068_v20 = vpack.c.bf16 %v1145_v58, %v1113_v57  ;;  %v1336_v57 = vld [vmem:[#allocation11 + $0x9f0] sm:$0xff] }
 0x373   : > { %11993 = vmatprep.subr.bf16.mxu0 %v11992_v24  ;;  %v12070_v24 = vpack.c.bf16 %v1144_v15, %v1112_v6  ;;  %v12008_v25 = vpack.c.bf16 %v1207_v7, %v1175_v16  ;;  %v1367_v58 = vld [vmem:[#allocation11 + $0xae8] sm:$0xff]  ;;  %v12018_v6 = vpack.c.bf16 %v1334_v53, %v1302_v36  ;;  %v1366_v16 = vld [vmem:[#allocation11 + $0xae0] sm:$0xff]  ;;  %v1496_v36 = vld [vmem:[#allocation11 + $0xef0] sm:$0xff] }
 0x374   : > { %v1398_v7 = vld [vmem:[#allocation11 + $0xbe0] sm:$0xff] }
 0x375   : > { %11931 = vmatpush1.bf16.msra.mxu1 %v11930_v34  ;;  %v1208_v34 = vld [vmem:[#allocation11 + $0x5f0] sm:$0xff]  ;;  %v12022_v30 = vpack.c.bf16 %v1398_v7, %v1366_v16  ;;  %v1558_v7 = vld [vmem:[#allocation11 + $0x10e0] sm:$0xff] }
 0x376   : > { %11995 = vmatpush1.bf16.msra.mxu0 %v11994_v35  ;;  %11933 = vmatprep.subr.bf16.mxu1 %v11932_v37  ;;  %v1239_v35 = vld [vmem:[#allocation11 + $0x6e8] sm:$0xff] }
 0x377   : > { %11997 = vmatprep.subr.bf16.mxu0 %v11996_v42  ;;  %v1271_v37 = vld [vmem:[#allocation11 + $0x7e8] sm:$0xff]  ;;  %v12074_v42 = vpack.c.bf16 %v1208_v34, %v1176_v31  ;;  %v1430_v34 = vld [vmem:[#allocation11 + $0xce0] sm:$0xff] }
 0x378   : > { %v12012_v43 = vpack.c.bf16 %v1271_v37, %v1239_v35  ;;  %v1462_v35 = vld [vmem:[#allocation11 + $0xde0] sm:$0xff]  ;;  %v1432_v37 = vld [vmem:[#allocation11 + $0xcf0] sm:$0xff] }
 0x379   : > { %11935 = vmatpush1.bf16.msra.mxu1 %v11934_v48  ;;  %v1303_v48 = vld [vmem:[#allocation11 + $0x8e8] sm:$0xff] }
 0x37a   : > { %11999 = vmatpush1.bf16.msra.mxu0 %v11998_v49  ;;  %12001 = vmatprep.subr.bf16.mxu1 %v12000_v50  ;;  %v1335_v49 = vld [vmem:[#allocation11 + $0x9e8] sm:$0xff]  ;;  %v1305_v50 = vld [vmem:[#allocation11 + $0x8f8] sm:$0xff] }
 0x37b   : > { %12065 = vmatprep.subr.bf16.mxu0 %v12064_v28  ;;  %v12016_v29 = vpack.c.bf16 %v1335_v49, %v1303_v48  ;;  %v12026_v49 = vpack.c.bf16 %v1462_v35, %v1430_v34 }
 0x37c   : > { %2959 = vmatmul.mubr.f32.vlgmr.msra.gmra.mrb[12].mxu1 %v13811_v63 }
 0x37d   : > { %3030 = vmatmul.mubr.f32.vlgmr.msra.gmra.mrb[14].mxu0 %v13811_v63  ;;  %12003 = vmatpush1.bf16.msra.mxu1 %v12002_v56  ;;  %v12080_v56 = vpack.c.bf16 %v1337_v51, %v1305_v50 }
 0x37e   : > { %3100 = vmatprep.mubr.f32.mxu1 %v13813_v5  ;;  %12067 = vmatpush1.bf16.msra.mxu0 %v12066_v62  ;;  %v1399_v62 = vld [vmem:[#allocation11 + $0xbe8] sm:$0xff] }
 0x37f   : > { %3171 = vmatprep.mubr.f32.mxu0 %v13813_v5  ;;  %12005 = vmatprep.subr.bf16.mxu1 %v12004_v14  ;;  %v1272_v5 = vld [vmem:[#allocation11 + $0x7f0] sm:$0xff]  ;;  %v12082_v14 = vpack.c.bf16 %v1336_v57, %v1304_v55  ;;  %v12020_v15 = vpack.c.bf16 %v1399_v62, %v1367_v58  ;;  %v1559_v57 = vld [vmem:[#allocation11 + $0x10e8] sm:$0xff] }
 0x380   : > { %12069 = vmatprep.subr.bf16.mxu0 %v12068_v20  ;;  %v12078_v28 = vpack.c.bf16 %v1272_v5, %v1240_v46  ;;  %v1368_v20 = vld [vmem:[#allocation11 + $0xaf0] sm:$0xff]  ;;  %v1497_v46 = vld [vmem:[#allocation11 + $0xef8] sm:$0xff]  ;;  %v1591_v58 = vld [vmem:[#allocation11 + $0x11e8] sm:$0xff] }
 0x381   : > { %12007 = vmatpush1.bf16.msra.mxu1 %v12006_v23  ;;  %v1431_v23 = vld [vmem:[#allocation11 + $0xce8] sm:$0xff]  ;;  %v12086_v31 = vpack.c.bf16 %v1400_v22, %v1368_v20  ;;  %v12032_v16 = vpack.c.bf16 %v1591_v58, %v1559_v57  ;;  %v1590_v20 = vld [vmem:[#allocation11 + $0x11e0] sm:$0xff]  ;;  %v12096_v22 = vpack.c.bf16 %v1593_v1, %v1561_v0  ;;  %v1753_v57 = vld [vmem:[#allocation11 + $0x16f8] sm:$0xff] }
 0x382   : > { %12071 = vmatpush1.bf16.msra.mxu0 %v12070_v24  ;;  %12009 = vmatprep.subr.bf16.mxu1 %v12008_v25  ;;  %v1463_v24 = vld [vmem:[#allocation11 + $0xde8] sm:$0xff]  ;;  %v1433_v25 = vld [vmem:[#allocation11 + $0xcf8] sm:$0xff]  ;;  %v12034_v34 = vpack.c.bf16 %v1590_v20, %v1558_v7  ;;  %v1784_v7 = vld [vmem:[#allocation11 + $0x17f0] sm:$0xff] }
 0x383   : > { %12073 = vmatprep.subr.bf16.mxu0 %v12072_v32  ;;  %v12024_v32 = vpack.c.bf16 %v1463_v24, %v1431_v23  ;;  %v12088_v40 = vpack.c.bf16 %v1465_v27, %v1433_v25  ;;  %v1592_v23 = vld [vmem:[#allocation11 + $0x11f0] sm:$0xff]  ;;  %v1623_v24 = vld [vmem:[#allocation11 + $0x12e8] sm:$0xff]  ;;  %v3299_v27 = vrot.slane %v3291_v38, %v13843_v9  ;;  %v1689_v38 = vld [vmem:[#allocation11 + $0x14f8] sm:$0xff] }
 0x384   : > { %v1655_v25 = vld [vmem:[#allocation11 + $0x13e8] sm:$0xff]  ;;  %v1785_v58 = vld [vmem:[#allocation11 + $0x17f8] sm:$0xff] }
 0x385   : > { %12011 = vmatpush1.bf16.msra.mxu1 %v12010_v41  ;;  %v1464_v41 = vld [vmem:[#allocation11 + $0xdf0] sm:$0xff]  ;;  %v1815_v20 = vld [vmem:[#allocation11 + $0x18e8] sm:$0xff] }
 0x386   : > { %12075 = vmatpush1.bf16.msra.mxu0 %v12074_v42  ;;  %12013 = vmatprep.subr.bf16.mxu1 %v12012_v43  ;;  %v1495_v42 = vld [vmem:[#allocation11 + $0xee8] sm:$0xff]  ;;  %v12090_v51 = vpack.c.bf16 %v1464_v41, %v1432_v37  ;;  %v1622_v41 = vld [vmem:[#allocation11 + $0x12e0] sm:$0xff] }
 0x387   : > { %12077 = vmatprep.subr.bf16.mxu0 %v12076_v47  ;;  %v1527_v43 = vld [vmem:[#allocation11 + $0xfe8] sm:$0xff]  ;;  %v1529_v47 = vld [vmem:[#allocation11 + $0xff8] sm:$0xff] }
 0x388   : > { %v12092_v55 = vpack.c.bf16 %v1529_v47, %v1497_v46  ;;  %v1656_v47 = vld [vmem:[#allocation11 + $0x13f0] sm:$0xff] }
 0x389   : > { %12015 = vmatpush1.bf16.msra.mxu1 %v12014_v52  ;;  %v12028_v52 = vpack.c.bf16 %v1527_v43, %v1495_v42  ;;  %v1654_v42 = vld [vmem:[#allocation11 + $0x13e0] sm:$0xff]  ;;  %v1624_v43 = vld [vmem:[#allocation11 + $0x12f0] sm:$0xff] }
 0x38a   : > { %12079 = vmatpush1.bf16.msra.mxu0 %v12078_v28  ;;  %12017 = vmatprep.subr.bf16.mxu1 %v12016_v29  ;;  %v1494_v28 = vld [vmem:[#allocation11 + $0xee0] sm:$0xff] }
 0x38b   : > { %12081 = vmatprep.subr.bf16.mxu0 %v12080_v56  ;;  %v1526_v29 = vld [vmem:[#allocation11 + $0xfe0] sm:$0xff]  ;;  %v1528_v56 = vld [vmem:[#allocation11 + $0xff0] sm:$0xff] }
 0x38d   : > { %12019 = vmatpush1.bf16.msra.mxu1 %v12018_v6  ;;  %v12030_v6 = vpack.c.bf16 %v1526_v29, %v1494_v28  ;;  %v1718_v28 = vld [vmem:[#allocation11 + $0x15e0] sm:$0xff]  ;;  %v1688_v29 = vld [vmem:[#allocation11 + $0x14f0] sm:$0xff] }
 0x38e   : > { %12083 = vmatpush1.bf16.msra.mxu0 %v12082_v14  ;;  %12021 = vmatprep.subr.bf16.mxu1 %v12020_v15  ;;  %v12094_v15 = vpack.c.bf16 %v1528_v56, %v1496_v36  ;;  %v1783_v56 = vld [vmem:[#allocation11 + $0x17e8] sm:$0xff] }
 0x38f   : > { %v13925_v39 = vpop.f32.mrb[6].mxu1  ;;  %12085 = vmatprep.subr.bf16.mxu0 %v12084_v21  ;;  %v1560_v21 = vld [vmem:[#allocation11 + $0x10f0] sm:$0xff] }
 0x390   : > { %v13927_v44 = vpop.f32.mrb[8].mxu0  ;;  %v13929_v45 = vpop.f32.mrb[7].mxu1  ;;  %v12098_v37 = vpack.c.bf16 %v1592_v23, %v1560_v21  ;;  %v1847_v21 = vld [vmem:[#allocation11 + $0x19e8] sm:$0xff]  ;;  %v1849_v23 = vld [vmem:[#allocation11 + $0x19f8] sm:$0xff] }
 0x391   : > { %v3261_v5 = vcombine.low %v13925_v39, %v13929_v45  ;;  %v13933_v48 = vpop.f32.mrb[9].mxu0  ;;  %12023 = vmatpush1.bf16.msra.mxu1 %v12022_v30 }
 0x392   : > { %v3262_v50 = vcombine.low %v13927_v44, %v13933_v48  ;;  %12087 = vmatpush1.bf16.msra.mxu0 %v12086_v31  ;;  %12025 = vmatprep.subr.bf16.mxu1 %v12024_v32  ;;  %v1625_v31 = vld [vmem:[#allocation11 + $0x12f8] sm:$0xff] }
 0x393   : > { %v3283_v53 = vrot.slane %v3261_v5, %v13843_v9  ;;  %12089 = vmatprep.subr.bf16.mxu0 %v12088_v40  ;;  %v1657_v32 = vld [vmem:[#allocation11 + $0x13f8] sm:$0xff]  ;;  %v12036_v40 = vpack.c.bf16 %v1655_v25, %v1623_v24 }
 0x394   : > { %v3290_v62 = vrot.slane %v3262_v50, %v13843_v9  ;;  %v12100_v46 = vpack.c.bf16 %v1657_v32, %v1625_v31  ;;  %v1721_v5 = vld [vmem:[#allocation11 + $0x15f8] sm:$0xff]  ;;  %v12102_v50 = vpack.c.bf16 %v1656_v47, %v1624_v43  ;;  %v1846_v31 = vld [vmem:[#allocation11 + $0x19e0] sm:$0xff]  ;;  %v1816_v32 = vld [vmem:[#allocation11 + $0x18f0] sm:$0xff] }
 0x395   : > { %12027 = vmatpush1.bf16.msra.mxu1 %v12026_v49  ;;  %v12038_v49 = vpack.c.bf16 %v1654_v42, %v1622_v41  ;;  %v12104_v36 = vpack.c.bf16 %v1721_v5, %v1689_v38  ;;  %v1881_v41 = vld [vmem:[#allocation11 + $0x1af8] sm:$0xff]  ;;  %v1880_v38 = vld [vmem:[#allocation11 + $0x1af0] sm:$0xff] }
 0x396   : > { %v3292_v14 = vcombine.low %v3283_v53, %v3290_v62  ;;  %12091 = vmatpush1.bf16.msra.mxu0 %v12090_v51  ;;  %12029 = vmatprep.subr.bf16.mxu1 %v12028_v52  ;;  %v12040_v51 = vpack.c.bf16 %v1719_v33, %v1687_v26  ;;  %v1686_v52 = vld [vmem:[#allocation11 + $0x14e0] sm:$0xff]  ;;  %v1720_v53 = vld [vmem:[#allocation11 + $0x15f0] sm:$0xff]  ;;  %v1913_v42 = vld [vmem:[#allocation11 + $0x1bf8] sm:$0xff] }
 0x397   : > { %12093 = vmatprep.subr.bf16.mxu0 %v12092_v55  ;;  %v1751_v55 = vld [vmem:[#allocation11 + $0x16e8] sm:$0xff]  ;;  %v12042_v62 = vpack.c.bf16 %v1718_v28, %v1686_v52  ;;  %v12106_v0 = vpack.c.bf16 %v1720_v53, %v1688_v29  ;;  %v1878_v26 = vld [vmem:[#allocation11 + $0x1ae0] sm:$0xff]  ;;  %v12116_v5 = vpack.c.bf16 %v1913_v42, %v1881_v41  ;;  %v1945_v52 = vld [vmem:[#allocation11 + $0x1cf8] sm:$0xff] }
 0x398   : > { %v3306_v30 = vrot.slane %v3292_v14, %v13843_v9  ;;  %v12044_v1 = vpack.c.bf16 %v1783_v56, %v1751_v55  ;;  %v1782_v14 = vld [vmem:[#allocation11 + $0x17e0] sm:$0xff]  ;;  %v1977_v28 = vld [vmem:[#allocation11 + $0x1df8] sm:$0xff] }
 0x399   : > { %12031 = vmatpush1.bf16.msra.mxu1 %v12030_v6  ;;  %v1750_v6 = vld [vmem:[#allocation11 + $0x16e0] sm:$0xff] }
 0x39a   : > { %v3307_v35 = vcombine.low %v3299_v27, %v3306_v30  ;;  %12095 = vmatpush1.bf16.msra.mxu0 %v12094_v15  ;;  %12033 = vmatprep.subr.bf16.mxu1 %v12032_v16  ;;  %v1752_v15 = vld [vmem:[#allocation11 + $0x16f0] sm:$0xff]  ;;  %v12108_v16 = vpack.c.bf16 %v1785_v58, %v1753_v57  ;;  %v12046_v24 = vpack.c.bf16 %v1782_v14, %v1750_v6  ;;  %v1814_v30 = vld [vmem:[#allocation11 + $0x18e0] sm:$0xff]  ;;  %v2009_v6 = vld [vmem:[#allocation11 + $0x1ef8] sm:$0xff] }
 0x39b   : > { %12097 = vmatprep.subr.bf16.mxu0 %v12096_v22  ;;  %v1817_v22 = vld [vmem:[#allocation11 + $0x18f8] sm:$0xff]  ;;  %v12110_v25 = vpack.c.bf16 %v1784_v7, %v1752_v15  ;;  %v12048_v27 = vpack.c.bf16 %v1847_v21, %v1815_v20  ;;  %v12050_v43 = vpack.c.bf16 %v1846_v31, %v1814_v30  ;;  %v1910_v33 = vld [vmem:[#allocation11 + $0x1be0] sm:$0xff]  ;;  %v1944_v57 = vld [vmem:[#allocation11 + $0x1cf0] sm:$0xff]  ;;  %v12120_v58 = vpack.c.bf16 %v1977_v28, %v1945_v52 }
 0x39c   : > { %3411 = vst [vmem:[%s13894_s4 + $0x8] sm:$0xff] %v3307_v35  ;;  %v1848_v35 = vld [vmem:[#allocation11 + $0x19f0] sm:$0xff]  ;;  %v12054_v29 = vpack.c.bf16 %v1910_v33, %v1878_v26  ;;  %v1942_v55 = vld [vmem:[#allocation11 + $0x1ce0] sm:$0xff]  ;;  %v2041_v14 = vld [vmem:[#allocation11 + $0x1ff8] sm:$0xff] }
 0x39d   : > { %12035 = vmatpush1.bf16.msra.mxu1 %v12034_v34  ;;  %v12112_v34 = vpack.c.bf16 %v1849_v23, %v1817_v22  ;;  %v1974_v56 = vld [vmem:[#allocation11 + $0x1de0] sm:$0xff]  ;;  %v2008_v22 = vld [vmem:[#allocation11 + $0x1ef0] sm:$0xff]  ;;  %v12124_v23 = vpack.c.bf16 %v2041_v14, %v2009_v6 }
 0x39e   : > { %12099 = vmatpush1.bf16.msra.mxu0 %v12098_v37  ;;  %12037 = vmatprep.subr.bf16.mxu1 %v12036_v40  ;;  %v1879_v37 = vld [vmem:[#allocation11 + $0x1ae8] sm:$0xff]  ;;  %v12058_v15 = vpack.c.bf16 %v1974_v56, %v1942_v55  ;;  %v2006_v20 = vld [vmem:[#allocation11 + $0x1ee0] sm:$0xff]  ;;  %v3436_v52 = vld [vmem:[%s13950_s0 + $0xb0] sm:$0xff] }
 0x39f   : > { %12101 = vmatprep.subr.bf16.mxu0 %v12100_v46  ;;  %v1911_v40 = vld [vmem:[#allocation11 + $0x1be8] sm:$0xff]  ;;  %v12114_v46 = vpack.c.bf16 %v1848_v35, %v1816_v32  ;;  %v2038_v21 = vld [vmem:[#allocation11 + $0x1fe0] sm:$0xff] }
 0x3a0   : > { %v12052_v47 = vpack.c.bf16 %v1911_v40, %v1879_v37  ;;  %v12062_v30 = vpack.c.bf16 %v2038_v21, %v2006_v20  ;;  %v3415_v35 = vld [vmem:[%s13950_s0 + $0x8] sm:$0xff]  ;;  %v3432_v37 = vld [vmem:[%s13950_s0 + $0x90] sm:$0xff]  ;;  %v3433_v40 = vld [vmem:[%s13950_s0 + $0x98] sm:$0xff] }
 0x3a1   : > { %12039 = vmatpush1.bf16.msra.mxu1 %v12038_v49  ;;  %v1912_v49 = vld [vmem:[#allocation11 + $0x1bf0] sm:$0xff]  ;;  %v13958_v41 = vld [vmem:[#allocation6] sm:$0xf]  ;;  %v3437_v28 = vld [vmem:[%s13950_s0 + $0xb8] sm:$0xff] }
 0x3a2   : > { %12103 = vmatpush1.bf16.msra.mxu0 %v12102_v50  ;;  %12041 = vmatprep.subr.bf16.mxu1 %v12040_v51  ;;  %v1943_v50 = vld [vmem:[#allocation11 + $0x1ce8] sm:$0xff]  ;;  %v3489_v26 = vrot.slane %v13958_v41, %v13731_v11  ;;  %v3441_v6 = vld [vmem:[%s13950_s0 + $0xd8] sm:$0xff] }
 0x3a3   : > { %12105 = vmatprep.subr.bf16.mxu0 %v12104_v36  ;;  %v1975_v51 = vld [vmem:[#allocation11 + $0x1de8] sm:$0xff]  ;;  %v12118_v36 = vpack.c.bf16 %v1912_v49, %v1880_v38 }
 0x3a4   : > { %v12056_v53 = vpack.c.bf16 %v1975_v51, %v1943_v50  ;;  %v3434_v33 = vld [vmem:[%s13950_s0 + $0xa0] sm:$0xff]  ;;  %v3435_v38 = vld [vmem:[%s13950_s0 + $0xa8] sm:$0xff] }
 0x3a5   : > { %12043 = vmatpush1.bf16.msra.mxu1 %v12042_v62  ;;  %v1976_v62 = vld [vmem:[#allocation11 + $0x1df0] sm:$0xff]  ;;  %v12136_v49 = vpack.c.bf16 %v3435_v38, %v3434_v33  ;;  %v3418_v50 = vld [vmem:[%s13950_s0 + $0x20] sm:$0xff] }
 0x3a6   : > { %12107 = vmatpush1.bf16.msra.mxu0 %v12106_v0  ;;  %12045 = vmatprep.subr.bf16.mxu1 %v12044_v1  ;;  %v2007_v0 = vld [vmem:[#allocation11 + $0x1ee8] sm:$0xff] }
 0x3a7   : > { %12109 = vmatprep.subr.bf16.mxu0 %v12108_v16  ;;  %v2039_v1 = vld [vmem:[#allocation11 + $0x1fe8] sm:$0xff]  ;;  %v12122_v16 = vpack.c.bf16 %v1976_v62, %v1944_v57 }
 0x3a8   : > { %v12060_v7 = vpack.c.bf16 %v2039_v1, %v2007_v0  ;;  %v3419_v51 = vld [vmem:[%s13950_s0 + $0x28] sm:$0xff]  ;;  %v3438_v55 = vld [vmem:[%s13950_s0 + $0xc0] sm:$0xff]  ;;  %v3440_v1 = vld [vmem:[%s13950_s0 + $0xd0] sm:$0xff] }
 0x3a9   : > { %12047 = vmatpush1.bf16.msra.mxu1 %v12046_v24  ;;  %v2040_v24 = vld [vmem:[#allocation11 + $0x1ff0] sm:$0xff]  ;;  %v3422_v62 = vld [vmem:[%s13950_s0 + $0x40] sm:$0xff] }
 0x3aa   : > { %12111 = vmatpush1.bf16.msra.mxu0 %v12110_v25  ;;  %12049 = vmatprep.subr.bf16.mxu1 %v12048_v27  ;;  %v3430_v25 = vld [vmem:[%s13950_s0 + $0x80] sm:$0xff]  ;;  %v3431_v27 = vld [vmem:[%s13950_s0 + $0x88] sm:$0xff]  ;;  %v12126_v31 = vpack.c.bf16 %v2040_v24, %v2008_v22 }
 0x3ab   : > { %12113 = vmatprep.subr.bf16.mxu0 %v12112_v34  ;;  %v12128_v32 = vpack.c.bf16 %v3431_v27, %v3430_v25  ;;  %v3414_v34 = vld [vmem:[%s13950_s0] sm:$0xff]  ;;  %v3439_v56 = vld [vmem:[%s13950_s0 + $0xc8] sm:$0xff] }
 0x3ac   : > { %v12130_v42 = vpack.c.bf16 %v3415_v35, %v3414_v34  ;;  %v3423_v0 = vld [vmem:[%s13950_s0 + $0x48] sm:$0xff]  ;;  %v3442_v20 = vld [vmem:[%s13950_s0 + $0xe0] sm:$0xff] }
 0x3ad   : > { %12051 = vmatpush1.bf16.msra.mxu1 %v12050_v43  ;;  %v12132_v43 = vpack.c.bf16 %v3433_v40, %v3432_v37  ;;  %v12146_v14 = vpack.c.bf16 %v3423_v0, %v3422_v62  ;;  %v3443_v21 = vld [vmem:[%s13950_s0 + $0xe8] sm:$0xff]  ;;  %v3426_v24 = vld [vmem:[%s13950_s0 + $0x60] sm:$0xff]  ;;  %v3449_v62 = vld [vmem:[%s13950_s0 + $0x118] sm:$0xff] }
 0x3ae   : > { %12115 = vmatpush1.bf16.msra.mxu0 %v12114_v46  ;;  %12053 = vmatprep.subr.bf16.mxu1 %v12052_v47  ;;  %v3416_v46 = vld [vmem:[%s13950_s0 + $0x10] sm:$0xff]  ;;  %v3417_v47 = vld [vmem:[%s13950_s0 + $0x18] sm:$0xff]  ;;  %v3427_v25 = vld [vmem:[%s13950_s0 + $0x68] sm:$0xff] }
 0x3af   : > { %12117 = vmatprep.subr.bf16.mxu0 %v12116_v5  ;;  %v12134_v5 = vpack.c.bf16 %v3417_v47, %v3416_v46  ;;  %v12154_v40 = vpack.c.bf16 %v3427_v25, %v3426_v24  ;;  %v3428_v46 = vld [vmem:[%s13950_s0 + $0x70] sm:$0xff]  ;;  %v3429_v47 = vld [vmem:[%s13950_s0 + $0x78] sm:$0xff]  ;;  %v3462_v33 = vld [vmem:[%s13950_s0 + $0x180] sm:$0xff] }
 0x3b0   : > { %v3463_v38 = vld [vmem:[%s13950_s0 + $0x188] sm:$0xff]  ;;  %v3466_v0 = vld [vmem:[%s13950_s0 + $0x1a0] sm:$0xff]  ;;  %v3453_v24 = vld [vmem:[%s13950_s0 + $0x138] sm:$0xff] }
 0x3b1   : > { %12055 = vmatpush1.bf16.msra.mxu1 %v12054_v29  ;;  %v12138_v29 = vpack.c.bf16 %v3419_v51, %v3418_v50  ;;  %v14011_v50 = vsub.s32 3, %v13725_v3  ;;  %v3470_v25 = vld [vmem:[%s13950_s0 + $0x1c0] sm:$0xff] }
 0x3b2   : > { %12119 = vmatpush1.bf16.msra.mxu0 %v12118_v36  ;;  %12057 = vmatprep.subr.bf16.mxu1 %v12056_v53  ;;  %v12140_v36 = vpack.c.bf16 %v3437_v28, %v3436_v52  ;;  %v3421_v53 = vld [vmem:[%s13950_s0 + $0x38] sm:$0xff]  ;;  %v12160_v52 = vpack.c.bf16 %v3463_v38, %v3462_v33  ;;  %v3446_v28 = vld [vmem:[%s13950_s0 + $0x100] sm:$0xff]  ;;  %v3456_v38 = vld [vmem:[%s13950_s0 + $0x150] sm:$0xff] }
 0x3b3   : > { %12121 = vmatprep.subr.bf16.mxu0 %v12120_v58  ;;  %v12144_v58 = vpack.c.bf16 %v3439_v56, %v3438_v55  ;;  %v3497_v56 = vrot.slane %v13958_v41, %v14011_v50 }
 0x3b5   : > { %12059 = vmatpush1.bf16.msra.mxu1 %v12058_v15  ;;  %v12148_v15 = vpack.c.bf16 %v3441_v6, %v3440_v1  ;;  %v3467_v1 = vld [vmem:[%s13950_s0 + $0x1a8] sm:$0xff] }
 0x3b6   : > { %12123 = vmatpush1.bf16.msra.mxu0 %v12122_v16  ;;  %12061 = vmatprep.subr.bf16.mxu1 %v12060_v7  ;;  %v3424_v16 = vld [vmem:[%s13950_s0 + $0x50] sm:$0xff]  ;;  %v3425_v7 = vld [vmem:[%s13950_s0 + $0x58] sm:$0xff] }
 0x3b7   : > { %12125 = vmatprep.subr.bf16.mxu0 %v12124_v23  ;;  %v12150_v22 = vpack.c.bf16 %v3425_v7, %v3424_v16  ;;  %v12152_v23 = vpack.c.bf16 %v3443_v21, %v3442_v20  ;;  %v3451_v16 = vld [vmem:[%s13950_s0 + $0x128] sm:$0xff]  ;;  %v3468_v7 = vld [vmem:[%s13950_s0 + $0x1b0] sm:$0xff]  ;;  %v3469_v20 = vld [vmem:[%s13950_s0 + $0x1b8] sm:$0xff] }
 0x3b9   : > { %12063 = vmatpush1.bf16.msra.mxu1 %v12062_v30  ;;  %v3444_v30 = vld [vmem:[%s13950_s0 + $0xf0] sm:$0xff] }
 0x3ba   : > { %12127 = vmatpush1.bf16.msra.mxu0 %v12126_v31  ;;  %12129 = vmatprep.subr.bf16.mxu1 %v12128_v32  ;;  %v3445_v31 = vld [vmem:[%s13950_s0 + $0xf8] sm:$0xff] }
 0x3bc   : > { %3101 = vmatmul.mubr.f32.vlgmr.msra.gmra.mrb[14].mxu1 %v13811_v63 }
 0x3bd   : > { %3172 = vmatmul.mubr.f32.vlgmr.msra.gmra.mrb[16].mxu0 %v13811_v63  ;;  %12131 = vmatpush3.bf16.msra.mxu1 %v12130_v42  ;;  %v3420_v63 = vld [vmem:[%s13950_s0 + $0x30] sm:$0xff] }
 0x3be   : > { %12133 = vmatprep.subr.bf16.mxu1 %v12132_v43  ;;  %3566 = vmatprep.mubr.f32.mxu1 %v3489_v26  ;;  %v12142_v57 = vpack.c.bf16 %v3421_v53, %v3420_v63  ;;  %v12156_v43 = vpack.c.bf16 %v3445_v31, %v3444_v30  ;;  %v3465_v63 = vld [vmem:[%s13950_s0 + $0x198] sm:$0xff]  ;;  %v3485_v53 = vrot.slane %v13958_v41, %v13807_v54  ;;  %v3471_v30 = vld [vmem:[%s13950_s0 + $0x1c8] sm:$0xff] }
 0x3c1   : > { %12135 = vmatpush3.bf16.msra.mxu1 %v12134_v5 }
 0x3c2   : > { %12137 = vmatprep.subr.bf16.mxu1 %v12136_v49  ;;  %v12158_v49 = vpack.c.bf16 %v3429_v47, %v3428_v46  ;;  %v3473_v46 = vld [vmem:[%s13950_s0 + $0x1d8] sm:$0xff] }
 0x3c5   : > { %12139 = vmatpush3.bf16.msra.mxu1 %v12138_v29  ;;  %v3447_v29 = vld [vmem:[%s13950_s0 + $0x108] sm:$0xff] }
 0x3c6   : > { %12141 = vmatprep.subr.bf16.mxu1 %v12140_v36  ;;  %v3464_v36 = vld [vmem:[%s13950_s0 + $0x190] sm:$0xff]  ;;  %v12162_v55 = vpack.c.bf16 %v3447_v29, %v3446_v28  ;;  %v3475_v28 = vld [vmem:[%s13950_s0 + $0x1e8] sm:$0xff] }
 0x3c9   : > { %12143 = vmatpush3.bf16.msra.mxu1 %v12142_v57  ;;  %v12164_v57 = vpack.c.bf16 %v3465_v63, %v3464_v36  ;;  %v3458_v63 = vld [vmem:[%s13950_s0 + $0x160] sm:$0xff] }
 0x3ca   : > { %12145 = vmatprep.subr.bf16.mxu1 %v12144_v58  ;;  %v3448_v58 = vld [vmem:[%s13950_s0 + $0x110] sm:$0xff] }
 0x3cb   : > { %v12166_v6 = vpack.c.bf16 %v3449_v62, %v3448_v58  ;;  %v3460_v62 = vld [vmem:[%s13950_s0 + $0x170] sm:$0xff] }
 0x3cd   : > { %12147 = vmatpush3.bf16.msra.mxu1 %v12146_v14  ;;  %v12168_v14 = vpack.c.bf16 %v3467_v1, %v3466_v0  ;;  %v3461_v0 = vld [vmem:[%s13950_s0 + $0x178] sm:$0xff]  ;;  %v14050_v1 = vsub.s32 2, %v13725_v3 }
 0x3ce   : > { %12149 = vmatprep.subr.bf16.mxu1 %v12148_v15  ;;  %v3450_v15 = vld [vmem:[%s13950_s0 + $0x120] sm:$0xff] }
 0x3cf   : > { %v13986_v27 = vpop.f32.mrb[8].mxu1  ;;  %v12170_v21 = vpack.c.bf16 %v3451_v16, %v3450_v15  ;;  %16392 = vst [vmem:[#allocation33_spill] sm:$0xff] %v14050_v1 }
 0x3d0   : > { %v13990_v32 = vpop.f32.mrb[10].mxu0  ;;  %v13992_v34 = vpop.f32.mrb[9].mxu1 }
 0x3d1   : > { %v3308_v35 = vcombine.low %v13986_v27, %v13992_v34  ;;  %v13996_v37 = vpop.f32.mrb[11].mxu0  ;;  %12151 = vmatpush3.bf16.msra.mxu1 %v12150_v22  ;;  %v12172_v22 = vpack.c.bf16 %v3469_v20, %v3468_v7 }
 0x3d2   : > { %v3309_v42 = vcombine.low %v13990_v32, %v13996_v37  ;;  %12153 = vmatprep.subr.bf16.mxu1 %v12152_v23  ;;  %v3452_v23 = vld [vmem:[%s13950_s0 + $0x130] sm:$0xff] }
 0x3d3   : > { %v14003_v26 = vrot.slane %v3308_v35, %v13843_v9  ;;  %v12174_v31 = vpack.c.bf16 %v3453_v24, %v3452_v23  ;;  %v12176_v35 = vpack.c.bf16 %v3471_v30, %v3470_v25 }
 0x3d4   : > { %v14008_v5 = vrot.slane %v3309_v42, %v13843_v9  ;;  %v3455_v42 = vld [vmem:[%s13950_s0 + $0x148] sm:$0xff] }
 0x3d5   : > { %12155 = vmatpush3.bf16.msra.mxu1 %v12154_v40  ;;  %v3454_v40 = vld [vmem:[%s13950_s0 + $0x140] sm:$0xff] }
 0x3d6   : > { %v3340_v51 = vcombine.low %v14003_v26, %v14008_v5  ;;  %12157 = vmatprep.subr.bf16.mxu1 %v12156_v43  ;;  %v3472_v43 = vld [vmem:[%s13950_s0 + $0x1d0] sm:$0xff]  ;;  %v12178_v47 = vpack.c.bf16 %v3455_v42, %v3454_v40  ;;  %v3682_v40 = vld [vmem:[%s16393_s9 + $0x108] sm:$0xff]  ;;  %v3652_v42 = vld [vmem:[%s16393_s9 + $0x18] sm:$0xff] }
 0x3d7   : > { %v12180_v33 = vpack.c.bf16 %v3473_v46, %v3472_v43  ;;  %v3684_v26 = vld [vmem:[%s16393_s9 + $0x118] sm:$0xff]  ;;  %v3649_v5 = vld [vmem:[%s16393_s9] sm:$0xff] }
 0x3d8   : > { %v3348_v25 = vrot.slane %v3340_v51, %v13843_v9  ;;  %v3681_v51 = vld [vmem:[%s16393_s9 + $0x100] sm:$0xff]  ;;  %v12208_v46 = vpack.c.bf16 %v3684_v26, %v3652_v42  ;;  %v3874_v26 = vld [vmem:[%s16393_s9 + $0x708] sm:$0xff] }
 0x3d9   : > { %12159 = vmatpush3.bf16.msra.mxu1 %v12158_v49  ;;  %v3457_v49 = vld [vmem:[%s13950_s0 + $0x158] sm:$0xff] }
 0x3da   : > { %12161 = vmatprep.subr.bf16.mxu1 %v12160_v52  ;;  %v3474_v52 = vld [vmem:[%s13950_s0 + $0x1e0] sm:$0xff]  ;;  %v12182_v29 = vpack.c.bf16 %v3457_v49, %v3456_v38  ;;  %v3683_v38 = vld [vmem:[%s16393_s9 + $0x110] sm:$0xff]  ;;  %v3714_v49 = vld [vmem:[%s16393_s9 + $0x208] sm:$0xff] }
 0x3db   : > { %v12184_v36 = vpack.c.bf16 %v3475_v28, %v3474_v52  ;;  %v3746_v28 = vld [vmem:[%s16393_s9 + $0x308] sm:$0xff] }
 0x3dc   : > { %3567 = vmatmul.mubr.f32.vlgmr.msra.gmra.mrb[16].mxu1 %v3485_v53  ;;  %v3459_v53 = vld [vmem:[%s13950_s0 + $0x168] sm:$0xff] }
 0x3dd   : > { %12163 = vmatpush3.bf16.msra.mxu1 %v12162_v55  ;;  %3636 = vmatprep.mubr.f32.mxu1 %v3497_v56  ;;  %v3476_v55 = vld [vmem:[%s13950_s0 + $0x1f0] sm:$0xff]  ;;  %v3477_v56 = vld [vmem:[%s13950_s0 + $0x1f8] sm:$0xff]  ;;  %s16394_s0 = sld [smem:[#allocation41_spill]] }
 0x3de   : > { %12165 = vmatprep.subr.bf16.mxu1 %v12164_v57  ;;  %v12186_v57 = vpack.c.bf16 %v3459_v53, %v3458_v63  ;;  %v12188_v58 = vpack.c.bf16 %v3477_v56, %v3476_v55  ;;  %v12196_v63 = vpack.c.bf16 %v3746_v28, %v3714_v49  ;;  %v3713_v55 = vld [vmem:[%s16393_s9 + $0x200] sm:$0xff] }
 0x3df   : > { %v3745_v56 = vld [vmem:[%s16393_s9 + $0x300] sm:$0xff] }
 0x3e0   : > { %v3873_v49 = vld [vmem:[%s16393_s9 + $0x700] sm:$0xff] }
 0x3e1   : > { %12167 = vmatpush3.bf16.msra.mxu1 %v12166_v6  ;;  %v12190_v6 = vpack.c.bf16 %v3461_v0, %v3460_v62  ;;  %v3747_v62 = vld [vmem:[%s16393_s9 + $0x310] sm:$0xff]  ;;  %v3778_v0 = vld [vmem:[%s16393_s9 + $0x408] sm:$0xff] }
 0x3e2   : > { %12169 = vmatprep.subr.bf16.mxu1 %v12168_v14  ;;  %v3493_v14 = vrot.slane %v13958_v41, %v14050_v1 }
 0x3e5   : > { %12171 = vmatpush3.bf16.msra.mxu1 %v12170_v21 }
 0x3e6   : > { %12173 = vmatprep.subr.bf16.mxu1 %v12172_v22 }
 0x3e9   : > { %12175 = vmatpush3.bf16.msra.mxu1 %v12174_v31 }
 0x3ea   : > { %12177 = vmatprep.subr.bf16.mxu1 %v12176_v35  ;;  %v3650_v35 = vld [vmem:[%s16393_s9 + $0x8] sm:$0xff] }
 0x3eb   : > { %v12192_v43 = vpack.c.bf16 %v3682_v40, %v3650_v35 }
 0x3ed   : > { %12179 = vmatpush3.bf16.msra.mxu1 %v12178_v47  ;;  %v12194_v47 = vpack.c.bf16 %v3681_v51, %v3649_v5  ;;  %12193 = vmatprep.subr.bf16.mxu0 %v12192_v43  ;;  %v3842_v43 = vld [vmem:[%s16393_s9 + $0x608] sm:$0xff]  ;;  %v3844_v5 = vld [vmem:[%s16393_s9 + $0x618] sm:$0xff] }
 0x3ee   : > { %12181 = vmatprep.subr.bf16.mxu1 %v12180_v33  ;;  %v3651_v33 = vld [vmem:[%s16393_s9 + $0x10] sm:$0xff] }
 0x3ef   : > { %v12210_v52 = vpack.c.bf16 %v3683_v38, %v3651_v33  ;;  %12195 = vmatpush1.bf16.msra.mxu0 %v12194_v47  ;;  %v12204_v47 = vpack.c.bf16 %v3874_v26, %v3842_v43  ;;  %v3876_v33 = vld [vmem:[%s16393_s9 + $0x718] sm:$0xff]  ;;  %v3841_v38 = vld [vmem:[%s16393_s9 + $0x600] sm:$0xff] }
 0x3f0   : > { %12197 = vmatprep.subr.bf16.mxu0 %v12196_v63  ;;  %v3843_v63 = vld [vmem:[%s16393_s9 + $0x610] sm:$0xff] }
 0x3f1   : > { %12183 = vmatpush3.bf16.msra.mxu1 %v12182_v29  ;;  %v3716_v29 = vld [vmem:[%s16393_s9 + $0x218] sm:$0xff] }
 0x3f2   : > { %12185 = vmatprep.subr.bf16.mxu1 %v12184_v36  ;;  %v3748_v36 = vld [vmem:[%s16393_s9 + $0x318] sm:$0xff] }
 0x3f3   : > { %v12212_v53 = vpack.c.bf16 %v3748_v36, %v3716_v29  ;;  %v12220_v29 = vpack.c.bf16 %v3876_v33, %v3844_v5  ;;  %v12206_v36 = vpack.c.bf16 %v3873_v49, %v3841_v38 }
 0x3f5   : > { %12187 = vmatpush3.bf16.msra.mxu1 %v12186_v57  ;;  %v3715_v57 = vld [vmem:[%s16393_s9 + $0x210] sm:$0xff] }
 0x3f6   : > { %12189 = vmatprep.subr.bf16.mxu1 %v12188_v58  ;;  %v12198_v58 = vpack.c.bf16 %v3745_v56, %v3713_v55 }
 0x3f8   : > { %12199 = vmatpush1.bf16.msra.mxu0 %v12198_v58  ;;  %v3654_v58 = vld [vmem:[%s16393_s9 + $0x28] sm:$0xff] }
 0x3f9   : > { %12191 = vmatpush3.bf16.msra.mxu1 %v12190_v6  ;;  %v3810_v6 = vld [vmem:[%s16393_s9 + $0x508] sm:$0xff] }
 0x3fa   : > { %12209 = vmatprep.subr.bf16.mxu1 %v12208_v46 }
 0x3fc   : > { %3637 = vmatmul.mubr.f32.vlgmr.msra.gmra.mrb[18].mxu1 %v3493_v14  ;;  %v12214_v14 = vpack.c.bf16 %v3747_v62, %v3715_v57  ;;  %v3686_v62 = vld [vmem:[%s16393_s9 + $0x128] sm:$0xff] }
 0x3fd   : > { %12211 = vmatpush1.bf16.msra.mxu1 %v12210_v52 }
 0x3fe   : > { %12213 = vmatprep.subr.bf16.mxu1 %v12212_v53  ;;  %v3875_v53 = vld [vmem:[%s16393_s9 + $0x710] sm:$0xff] }
 0x3ff   : > { %v12222_v56 = vpack.c.bf16 %v3875_v53, %v3843_v63  ;;  %v3653_v63 = vld [vmem:[%s16393_s9 + $0x20] sm:$0xff] }
 0x401   : > { %12215 = vmatpush1.bf16.msra.mxu1 %v12214_v14  ;;  %v16342_v14 = vmov 0.0  }
 0x402   : > { %3973 = vmatprep.mubr.f32.mxu0 %v16342_v14  ;;  %4044 = vmatprep.mubr.f32.mxu1 %v16342_v14 }
 0x40f   : > { %v14054_v15 = vpop.f32.mrb[10].mxu1 }
 0x410   : > { %v14056_v16 = vpop.f32.mrb[12].mxu0  ;;  %v14058_v7 = vpop.f32.mrb[11].mxu1 }
 0x411   : > { %v3310_v20 = vcombine.low %v14054_v15, %v14058_v7  ;;  %v14062_v21 = vpop.f32.mrb[13].mxu0 }
 0x412   : > { %v3311_v22 = vcombine.low %v14056_v16, %v14062_v21 }
 0x413   : > { %v3332_v23 = vrot.slane %v3310_v20, %v13843_v9  ;;  %v12200_v20 = vpack.c.bf16 %v3810_v6, %v3778_v0  ;;  %v3656_v0 = vld [vmem:[%s16393_s9 + $0x38] sm:$0xff] }
 0x414   : > { %v3339_v41 = vrot.slane %v3311_v22, %v13843_v9  ;;  %v3780_v22 = vld [vmem:[%s16393_s9 + $0x418] sm:$0xff] }
 0x415   : > { %12201 = vmatprep.subr.bf16.mxu0 %v12200_v20  ;;  %v12224_v20 = vpack.c.bf16 %v3686_v62, %v3654_v58  ;;  %v3718_v62 = vld [vmem:[%s16393_s9 + $0x228] sm:$0xff] }
 0x416   : > { %v3341_v24 = vcombine.low %v3332_v23, %v3339_v41  ;;  %v3812_v23 = vld [vmem:[%s16393_s9 + $0x518] sm:$0xff]  ;;  %v3777_v41 = vld [vmem:[%s16393_s9 + $0x400] sm:$0xff] }
 0x418   : > { %v3355_v30 = vrot.slane %v3341_v24, %v13843_v9  ;;  %v12216_v24 = vpack.c.bf16 %v3812_v23, %v3780_v22  ;;  %v3688_v22 = vld [vmem:[%s16393_s9 + $0x138] sm:$0xff] }
 0x419   : > { %v12240_v23 = vpack.c.bf16 %v3688_v22, %v3656_v0  ;;  %v3750_v0 = vld [vmem:[%s16393_s9 + $0x328] sm:$0xff]  ;;  %v3720_v22 = vld [vmem:[%s16393_s9 + $0x238] sm:$0xff] }
 0x41a   : > { %v3356_v31 = vcombine.low %v3348_v25, %v3355_v30  ;;  %v3809_v25 = vld [vmem:[%s16393_s9 + $0x500] sm:$0xff]  ;;  %v3779_v30 = vld [vmem:[%s16393_s9 + $0x410] sm:$0xff]  ;;  %12217 = vmatprep.subr.bf16.mxu1 %v12216_v24 }
 0x41b   : > { %v12202_v35 = vpack.c.bf16 %v3809_v25, %v3777_v41 }
 0x41c   : > { %3412 = vst [vmem:[%s13894_s4 + $0x10] sm:$0xff] %v3356_v31  ;;  %v3811_v31 = vld [vmem:[%s16393_s9 + $0x510] sm:$0xff] }
 0x41d   : > { %v12218_v40 = vpack.c.bf16 %v3811_v31, %v3779_v30  ;;  %12203 = vmatpush1.bf16.msra.mxu0 %v12202_v35 }
 0x41e   : > { %12205 = vmatprep.subr.bf16.mxu0 %v12204_v47 }
 0x41f   : > { %12219 = vmatpush1.bf16.msra.mxu1 %v12218_v40 }
 0x420   : > { %12221 = vmatprep.subr.bf16.mxu1 %v12220_v29 }
 0x421   : > { %12207 = vmatpush1.bf16.msra.mxu0 %v12206_v36  ;;  %v3480_v36 = vstv %s10441_s23  ;;  %s14901_s23 = scalar_lea.vmem %s16394_s0, %s10543_s22  ;;  %s13195_s22 = scalar_lea.vmem %s13194_s29, 1024 }
 0x422   : > { %12225 = vmatprep.subr.bf16.mxu0 %v12224_v20 }
 0x423   : > { %12223 = vmatpush1.bf16.msra.mxu1 %v12222_v56  ;;  %v3655_v56 = vld [vmem:[%s16393_s9 + $0x30] sm:$0xff] }
 0x424   : > { %12241 = vmatprep.subr.bf16.mxu1 %v12240_v23  ;;  %v3752_v23 = vld [vmem:[%s16393_s9 + $0x338] sm:$0xff] }
 0x44f   : > { %v14146_v42 = vpop.f32.mrb[12].mxu1 }
 0x450   : > { %v14157_v51 = vpop.f32.mrb[14].mxu0  ;;  %v14159_v46 = vpop.f32.mrb[13].mxu1 }
 0x451   : > { %v3357_v52 = vcombine.low %v14146_v42, %v14159_v46  ;;  %v14172_v28 = vpop.f32.mrb[15].mxu0 }
 0x452   : > { %v3358_v55 = vcombine.low %v14157_v51, %v14172_v28 }
 0x453   : > { %v3367_v57 = vrot.slane %v3357_v52, %v13843_v9 }
 0x454   : > { %v3374_v6 = vrot.slane %v3358_v55, %v13843_v9  ;;  %v3685_v55 = vld [vmem:[%s16393_s9 + $0x120] sm:$0xff] }
 0x456   : > { %v3389_v41 = vcombine.low %v3367_v57, %v3374_v6  ;;  %v3687_v57 = vld [vmem:[%s16393_s9 + $0x130] sm:$0xff] }
 0x458   : > { %v3397_v47 = vrot.slane %v3389_v41, %v13843_v9  ;;  %v12226_v41 = vpack.c.bf16 %v3685_v55, %v3653_v63 }
 0x48f   : > { %v14198_v24 = vpop.f32.mrb[14].mxu1 }
 0x490   : > { %v14200_v25 = vpop.f32.mrb[16].mxu0  ;;  %v14202_v30 = vpop.f32.mrb[15].mxu1 }
 0x491   : > { %v3359_v31 = vcombine.low %v14198_v24, %v14202_v30  ;;  %v14206_v35 = vpop.f32.mrb[17].mxu0 }
 0x492   : > { %v3360_v40 = vcombine.low %v14200_v25, %v14206_v35 }
 0x493   : > { %v3381_v43 = vrot.slane %v3359_v31, %v13843_v9  ;;  %v12242_v31 = vpack.c.bf16 %v3687_v57, %v3655_v56  ;;  %v3781_v56 = vld [vmem:[%s16393_s9 + $0x420] sm:$0xff] }
 0x494   : > { %v3388_v26 = vrot.slane %v3360_v40, %v13843_v9  ;;  %v3717_v40 = vld [vmem:[%s16393_s9 + $0x220] sm:$0xff] }
 0x495   : > { %v3813_v57 = vld [vmem:[%s16393_s9 + $0x520] sm:$0xff] }
 0x496   : > { %v3390_v5 = vcombine.low %v3381_v43, %v3388_v26  ;;  %v3749_v43 = vld [vmem:[%s16393_s9 + $0x320] sm:$0xff] }
 0x498   : > { %v3404_v33 = vrot.slane %v3390_v5, %v13843_v9  ;;  %v12228_v5 = vpack.c.bf16 %v3750_v0, %v3718_v62  ;;  %v3783_v0 = vld [vmem:[%s16393_s9 + $0x430] sm:$0xff] }
 0x49a   : > { %v3405_v38 = vcombine.low %v3397_v47, %v3404_v33  ;;  %v3719_v47 = vld [vmem:[%s16393_s9 + $0x230] sm:$0xff] }
 0x49b   : > { %v3751_v33 = vld [vmem:[%s16393_s9 + $0x330] sm:$0xff] }
 0x49c   : > { %3413 = vst [vmem:[%s13894_s4 + $0x18] sm:$0xff] %v3405_v38  ;;  %v3782_v38 = vld [vmem:[%s16393_s9 + $0x428] sm:$0xff]  ;;  %v12246_v55 = vpack.c.bf16 %v3751_v33, %v3719_v47 }
 0x4af   : > { %v10582_v49 = vpop.f32.mrb[16].mxu1 }
 0x4b0   : > { %v10583_v52 = vpop.f32.mrb[17].mxu1 }
 0x4b1   : > { %v10584_v29 = vadd.f32 %v10583_v52, %v10582_v49  ;;  %v12244_v49 = vpack.c.bf16 %v3752_v23, %v3720_v22  ;;  %v3814_v52 = vld [vmem:[%s16393_s9 + $0x528] sm:$0xff]  ;;  %v3848_v23 = vld [vmem:[%s16393_s9 + $0x638] sm:$0xff] }
 0x4b2   : > { %v3878_v22 = vld [vmem:[%s16393_s9 + $0x728] sm:$0xff] }
 0x4b3   : > { %v3569_v6 = vadd.f32 %v10584_v29, %v3480_v36  ;;  %v3784_v29 = vld [vmem:[%s16393_s9 + $0x438] sm:$0xff] }
 0x4b4   : > { %v3816_v36 = vld [vmem:[%s16393_s9 + $0x538] sm:$0xff] }
 0x4b5   : > { %v12248_v62 = vpack.c.bf16 %v3816_v36, %v3784_v29  ;;  %v3690_v29 = vld [vmem:[%s16393_s9 + $0x148] sm:$0xff]  ;;  %v3660_v36 = vld [vmem:[%s16393_s9 + $0x58] sm:$0xff] }
 0x4cf   : > { %v10617_v53 = vpop.f32.mrb[18].mxu1 }
 0x4d0   : > { %v10618_v58 = vpop.f32.mrb[19].mxu1 }
 0x4d1   : > { %v10619_v20 = vadd.f32 %v10618_v58, %v10617_v53  ;;  %v12230_v53 = vpack.c.bf16 %v3749_v43, %v3717_v40  ;;  %v12232_v58 = vpack.c.bf16 %v3814_v52, %v3782_v38  ;;  %v3845_v43 = vld [vmem:[%s16393_s9 + $0x620] sm:$0xff]  ;;  %v3847_v38 = vld [vmem:[%s16393_s9 + $0x630] sm:$0xff]  ;;  %v3658_v52 = vld [vmem:[%s16393_s9 + $0x48] sm:$0xff] }
 0x4d3   : > { %v14245_v26 = vadd.f32 %v10619_v20, %v3569_v6  ;;  %v3815_v6 = vld [vmem:[%s16393_s9 + $0x530] sm:$0xff]  ;;  %v3846_v20 = vld [vmem:[%s16393_s9 + $0x628] sm:$0xff] }
 0x4d4   : > { %v12250_v40 = vpack.c.bf16 %v3815_v6, %v3783_v0  ;;  %v12236_v47 = vpack.c.bf16 %v3878_v22, %v3846_v20  ;;  %v3659_v0 = vld [vmem:[%s16393_s9 + $0x50] sm:$0xff]  ;;  %v3722_v20 = vld [vmem:[%s16393_s9 + $0x248] sm:$0xff] }
 0x4d5   : > { %10442 = vmatmul.mubr.msk.f32.vlgmr.msra.gmra.mrb[18].mxu0 %vm3905_vm2, %v14245_v26  ;;  %10443 = vmatmul.mubr.msk.f32.vlgmr.msra.gmra.mrb[20].mxu1 %vm3905_vm2, %v14245_v26  ;;  %v3643_v63 = vsel %vm3642_vm3, %v14245_v26, 0.0  ;;  %v3691_v6 = vld [vmem:[%s16393_s9 + $0x150] sm:$0xff]  ;;  %v3754_v22 = vld [vmem:[%s16393_s9 + $0x348] sm:$0xff] }
 0x4d6   : > { %12227 = vmatpush1.bf16.msra.mxu0 %v12226_v41  ;;  %12243 = vmatpush1.bf16.msra.mxu1 %v12242_v31  ;;  %v3880_v41 = vld [vmem:[%s16393_s9 + $0x738] sm:$0xff]  ;;  %v12234_v31 = vpack.c.bf16 %v3813_v57, %v3781_v56  ;;  %v3657_v56 = vld [vmem:[%s16393_s9 + $0x40] sm:$0xff] }
 0x4d7   : > { %3644 = vadd.xlane.f32.xlu0 %v3643_v63  ;;  %12229 = vmatprep.subr.bf16.mxu0 %v12228_v5  ;;  %v3877_v5 = vld [vmem:[%s16393_s9 + $0x720] sm:$0xff]  ;;  %v12252_v33 = vpack.c.bf16 %v3880_v41, %v3848_v23  ;;  %v3692_v63 = vld [vmem:[%s16393_s9 + $0x158] sm:$0xff] }
 0x4d8   : > { %12245 = vmatprep.subr.bf16.mxu1 %v12244_v49  ;;  %4115 = vmatprep.mubr.f32.mxu0 %v16342_v14  ;;  %v3879_v49 = vld [vmem:[%s16393_s9 + $0x730] sm:$0xff]  ;;  %v3689_v57 = vld [vmem:[%s16393_s9 + $0x140] sm:$0xff]  ;;  %v3724_v23 = vld [vmem:[%s16393_s9 + $0x258] sm:$0xff] }
 0x4d9   : > { %4186 = vmatprep.mubr.f32.mxu1 %v16342_v14  ;;  %v3756_v41 = vld [vmem:[%s16393_s9 + $0x358] sm:$0xff] }
 0x4da   : > { %12231 = vmatpush1.bf16.msra.mxu0 %v12230_v53  ;;  %12247 = vmatpush1.bf16.msra.mxu1 %v12246_v55  ;;  %v12238_v53 = vpack.c.bf16 %v3877_v5, %v3845_v43  ;;  %v12254_v55 = vpack.c.bf16 %v3879_v49, %v3847_v38  ;;  %v3721_v43 = vld [vmem:[%s16393_s9 + $0x240] sm:$0xff]  ;;  %v3723_v38 = vld [vmem:[%s16393_s9 + $0x250] sm:$0xff] }
 0x4db   : > { %12233 = vmatprep.subr.bf16.mxu0 %v12232_v58  ;;  %12249 = vmatprep.subr.bf16.mxu1 %v12248_v62  ;;  %v12256_v58 = vpack.c.bf16 %v3690_v29, %v3658_v52  ;;  %v12272_v62 = vpack.c.bf16 %v3692_v63, %v3660_v36  ;;  %v3753_v5 = vld [vmem:[%s16393_s9 + $0x340] sm:$0xff]  ;;  %v3755_v49 = vld [vmem:[%s16393_s9 + $0x350] sm:$0xff]  ;;  %v3786_v52 = vld [vmem:[%s16393_s9 + $0x448] sm:$0xff] }
 0x4dc   : > { %v3818_v29 = vld [vmem:[%s16393_s9 + $0x548] sm:$0xff]  ;;  %v3788_v36 = vld [vmem:[%s16393_s9 + $0x458] sm:$0xff] }
 0x4dd   : > { %v3820_v63 = vld [vmem:[%s16393_s9 + $0x558] sm:$0xff] }
 0x4de   : > { %12235 = vmatpush1.bf16.msra.mxu0 %v12234_v31  ;;  %12251 = vmatpush1.bf16.msra.mxu1 %v12250_v40  ;;  %v12258_v31 = vpack.c.bf16 %v3689_v57, %v3657_v56  ;;  %v12274_v40 = vpack.c.bf16 %v3691_v6, %v3659_v0  ;;  %v3785_v56 = vld [vmem:[%s16393_s9 + $0x440] sm:$0xff]  ;;  %v3787_v0 = vld [vmem:[%s16393_s9 + $0x450] sm:$0xff] }
 0x4df   : > { %12237 = vmatprep.subr.bf16.mxu0 %v12236_v47  ;;  %12253 = vmatprep.subr.bf16.mxu1 %v12252_v33  ;;  %v12260_v47 = vpack.c.bf16 %v3754_v22, %v3722_v20  ;;  %v12276_v33 = vpack.c.bf16 %v3756_v41, %v3724_v23  ;;  %v3817_v57 = vld [vmem:[%s16393_s9 + $0x540] sm:$0xff]  ;;  %v3819_v6 = vld [vmem:[%s16393_s9 + $0x550] sm:$0xff]  ;;  %v3850_v20 = vld [vmem:[%s16393_s9 + $0x648] sm:$0xff] }
 0x4e0   : > { %v3882_v22 = vld [vmem:[%s16393_s9 + $0x748] sm:$0xff]  ;;  %v3852_v23 = vld [vmem:[%s16393_s9 + $0x658] sm:$0xff] }
 0x4e1   : > { %v3884_v41 = vld [vmem:[%s16393_s9 + $0x758] sm:$0xff] }
 0x4e2   : > { %12239 = vmatpush1.bf16.msra.mxu0 %v12238_v53  ;;  %12255 = vmatpush1.bf16.msra.mxu1 %v12254_v55  ;;  %v12262_v53 = vpack.c.bf16 %v3753_v5, %v3721_v43  ;;  %v12278_v55 = vpack.c.bf16 %v3755_v49, %v3723_v38  ;;  %v3849_v43 = vld [vmem:[%s16393_s9 + $0x640] sm:$0xff]  ;;  %v3851_v38 = vld [vmem:[%s16393_s9 + $0x650] sm:$0xff] }
 0x4e3   : > { %12257 = vmatprep.subr.bf16.mxu0 %v12256_v58  ;;  %12273 = vmatprep.subr.bf16.mxu1 %v12272_v62  ;;  %v12264_v58 = vpack.c.bf16 %v3818_v29, %v3786_v52  ;;  %v12280_v62 = vpack.c.bf16 %v3820_v63, %v3788_v36  ;;  %v3881_v5 = vld [vmem:[%s16393_s9 + $0x740] sm:$0xff]  ;;  %v3883_v49 = vld [vmem:[%s16393_s9 + $0x750] sm:$0xff]  ;;  %v3662_v52 = vld [vmem:[%s16393_s9 + $0x68] sm:$0xff] }
 0x4e4   : > { %v3694_v29 = vld [vmem:[%s16393_s9 + $0x168] sm:$0xff]  ;;  %v3664_v36 = vld [vmem:[%s16393_s9 + $0x78] sm:$0xff] }
 0x4e5   : > { %10444 = vmatmul.mubr.msk.f32.vlgmr.msra.gmra.mrb[20].mxu0 %vm3905_vm2, %v14245_v26  ;;  %10445 = vmatmul.mubr.msk.f32.vlgmr.msra.gmra.mrb[22].mxu1 %vm3905_vm2, %v14245_v26  ;;  %v3696_v63 = vld [vmem:[%s16393_s9 + $0x178] sm:$0xff] }
 0x4e6   : > { %12259 = vmatpush1.bf16.msra.mxu0 %v12258_v31  ;;  %12275 = vmatpush1.bf16.msra.mxu1 %v12274_v40  ;;  %v12266_v31 = vpack.c.bf16 %v3817_v57, %v3785_v56  ;;  %v12282_v40 = vpack.c.bf16 %v3819_v6, %v3787_v0  ;;  %v3661_v56 = vld [vmem:[%s16393_s9 + $0x60] sm:$0xff]  ;;  %v3663_v0 = vld [vmem:[%s16393_s9 + $0x70] sm:$0xff] }
 0x4e7   : > { %12261 = vmatprep.subr.bf16.mxu0 %v12260_v47  ;;  %12277 = vmatprep.subr.bf16.mxu1 %v12276_v33  ;;  %v12268_v47 = vpack.c.bf16 %v3882_v22, %v3850_v20  ;;  %v12284_v33 = vpack.c.bf16 %v3884_v41, %v3852_v23  ;;  %v3693_v57 = vld [vmem:[%s16393_s9 + $0x160] sm:$0xff]  ;;  %v3695_v6 = vld [vmem:[%s16393_s9 + $0x170] sm:$0xff]  ;;  %v3726_v20 = vld [vmem:[%s16393_s9 + $0x268] sm:$0xff] }
 0x4e8   : > { %4257 = vmatprep.mubr.f32.mxu0 %v16342_v14  ;;  %4328 = vmatprep.mubr.f32.mxu1 %v16342_v14  ;;  %v3758_v22 = vld [vmem:[%s16393_s9 + $0x368] sm:$0xff]  ;;  %v3728_v23 = vld [vmem:[%s16393_s9 + $0x278] sm:$0xff] }
 0x4e9   : > { %v3760_v41 = vld [vmem:[%s16393_s9 + $0x378] sm:$0xff] }
 0x4ea   : > { %12263 = vmatpush1.bf16.msra.mxu0 %v12262_v53  ;;  %12279 = vmatpush1.bf16.msra.mxu1 %v12278_v55  ;;  %v12270_v53 = vpack.c.bf16 %v3881_v5, %v3849_v43  ;;  %v12286_v55 = vpack.c.bf16 %v3883_v49, %v3851_v38  ;;  %v3725_v43 = vld [vmem:[%s16393_s9 + $0x260] sm:$0xff]  ;;  %v3727_v38 = vld [vmem:[%s16393_s9 + $0x270] sm:$0xff] }
 0x4eb   : > { %12265 = vmatprep.subr.bf16.mxu0 %v12264_v58  ;;  %12281 = vmatprep.subr.bf16.mxu1 %v12280_v62  ;;  %v12288_v58 = vpack.c.bf16 %v3694_v29, %v3662_v52  ;;  %v12304_v62 = vpack.c.bf16 %v3696_v63, %v3664_v36  ;;  %v3757_v5 = vld [vmem:[%s16393_s9 + $0x360] sm:$0xff]  ;;  %v3759_v49 = vld [vmem:[%s16393_s9 + $0x370] sm:$0xff]  ;;  %v3790_v52 = vld [vmem:[%s16393_s9 + $0x468] sm:$0xff] }
 0x4ec   : > { %v3822_v29 = vld [vmem:[%s16393_s9 + $0x568] sm:$0xff]  ;;  %v3792_v36 = vld [vmem:[%s16393_s9 + $0x478] sm:$0xff] }
 0x4ed   : > { %v3824_v63 = vld [vmem:[%s16393_s9 + $0x578] sm:$0xff] }
 0x4ee   : > { %12267 = vmatpush1.bf16.msra.mxu0 %v12266_v31  ;;  %12283 = vmatpush1.bf16.msra.mxu1 %v12282_v40  ;;  %v12290_v31 = vpack.c.bf16 %v3693_v57, %v3661_v56  ;;  %v12306_v40 = vpack.c.bf16 %v3695_v6, %v3663_v0  ;;  %v3789_v56 = vld [vmem:[%s16393_s9 + $0x460] sm:$0xff]  ;;  %v3791_v0 = vld [vmem:[%s16393_s9 + $0x470] sm:$0xff] }
 0x4ef   : > { %12269 = vmatprep.subr.bf16.mxu0 %v12268_v47  ;;  %12285 = vmatprep.subr.bf16.mxu1 %v12284_v33  ;;  %v12292_v47 = vpack.c.bf16 %v3758_v22, %v3726_v20  ;;  %v12308_v33 = vpack.c.bf16 %v3760_v41, %v3728_v23  ;;  %v3821_v57 = vld [vmem:[%s16393_s9 + $0x560] sm:$0xff]  ;;  %v3823_v6 = vld [vmem:[%s16393_s9 + $0x570] sm:$0xff]  ;;  %v3854_v20 = vld [vmem:[%s16393_s9 + $0x668] sm:$0xff] }
 0x4f0   : > { %v3886_v22 = vld [vmem:[%s16393_s9 + $0x768] sm:$0xff]  ;;  %v3856_v23 = vld [vmem:[%s16393_s9 + $0x678] sm:$0xff] }
 0x4f1   : > { %v3888_v41 = vld [vmem:[%s16393_s9 + $0x778] sm:$0xff] }
 0x4f2   : > { %12271 = vmatpush1.bf16.msra.mxu0 %v12270_v53  ;;  %12287 = vmatpush1.bf16.msra.mxu1 %v12286_v55  ;;  %v12294_v53 = vpack.c.bf16 %v3757_v5, %v3725_v43  ;;  %v12310_v55 = vpack.c.bf16 %v3759_v49, %v3727_v38  ;;  %v3853_v43 = vld [vmem:[%s16393_s9 + $0x660] sm:$0xff]  ;;  %v3855_v38 = vld [vmem:[%s16393_s9 + $0x670] sm:$0xff] }
 0x4f3   : > { %12289 = vmatprep.subr.bf16.mxu0 %v12288_v58  ;;  %12305 = vmatprep.subr.bf16.mxu1 %v12304_v62  ;;  %v12296_v58 = vpack.c.bf16 %v3822_v29, %v3790_v52  ;;  %v12312_v62 = vpack.c.bf16 %v3824_v63, %v3792_v36  ;;  %v3885_v5 = vld [vmem:[%s16393_s9 + $0x760] sm:$0xff]  ;;  %v3887_v49 = vld [vmem:[%s16393_s9 + $0x770] sm:$0xff]  ;;  %v3666_v52 = vld [vmem:[%s16393_s9 + $0x88] sm:$0xff] }
 0x4f4   : > { %v3698_v29 = vld [vmem:[%s16393_s9 + $0x188] sm:$0xff]  ;;  %v3668_v36 = vld [vmem:[%s16393_s9 + $0x98] sm:$0xff] }
 0x4f5   : > { %10446 = vmatmul.mubr.msk.f32.vlgmr.msra.gmra.mrb[22].mxu0 %vm3905_vm2, %v14245_v26  ;;  %10447 = vmatmul.mubr.msk.f32.vlgmr.msra.gmra.mrb[24].mxu1 %vm3905_vm2, %v14245_v26  ;;  %v3700_v63 = vld [vmem:[%s16393_s9 + $0x198] sm:$0xff] }
 0x4f6   : > { %12291 = vmatpush1.bf16.msra.mxu0 %v12290_v31  ;;  %12307 = vmatpush1.bf16.msra.mxu1 %v12306_v40  ;;  %v12298_v31 = vpack.c.bf16 %v3821_v57, %v3789_v56  ;;  %v12314_v40 = vpack.c.bf16 %v3823_v6, %v3791_v0  ;;  %v3665_v56 = vld [vmem:[%s16393_s9 + $0x80] sm:$0xff]  ;;  %v3667_v0 = vld [vmem:[%s16393_s9 + $0x90] sm:$0xff] }
 0x4f7   : > { %12293 = vmatprep.subr.bf16.mxu0 %v12292_v47  ;;  %12309 = vmatprep.subr.bf16.mxu1 %v12308_v33  ;;  %v12300_v47 = vpack.c.bf16 %v3886_v22, %v3854_v20  ;;  %v12316_v33 = vpack.c.bf16 %v3888_v41, %v3856_v23  ;;  %v3697_v57 = vld [vmem:[%s16393_s9 + $0x180] sm:$0xff]  ;;  %v3699_v6 = vld [vmem:[%s16393_s9 + $0x190] sm:$0xff]  ;;  %v3730_v20 = vld [vmem:[%s16393_s9 + $0x288] sm:$0xff] }
 0x4f8   : > { %4399 = vmatprep.mubr.f32.mxu0 %v16342_v14  ;;  %4470 = vmatprep.mubr.f32.mxu1 %v16342_v14  ;;  %v3762_v22 = vld [vmem:[%s16393_s9 + $0x388] sm:$0xff]  ;;  %v3732_v23 = vld [vmem:[%s16393_s9 + $0x298] sm:$0xff] }
 0x4f9   : > { %v3764_v41 = vld [vmem:[%s16393_s9 + $0x398] sm:$0xff] }
 0x4fa   : > { %12295 = vmatpush1.bf16.msra.mxu0 %v12294_v53  ;;  %12311 = vmatpush1.bf16.msra.mxu1 %v12310_v55  ;;  %v12302_v53 = vpack.c.bf16 %v3885_v5, %v3853_v43  ;;  %v12318_v55 = vpack.c.bf16 %v3887_v49, %v3855_v38  ;;  %v3729_v43 = vld [vmem:[%s16393_s9 + $0x280] sm:$0xff]  ;;  %v3731_v38 = vld [vmem:[%s16393_s9 + $0x290] sm:$0xff] }
 0x4fb   : > { %12297 = vmatprep.subr.bf16.mxu0 %v12296_v58  ;;  %12313 = vmatprep.subr.bf16.mxu1 %v12312_v62  ;;  %v12320_v58 = vpack.c.bf16 %v3698_v29, %v3666_v52  ;;  %v12336_v62 = vpack.c.bf16 %v3700_v63, %v3668_v36  ;;  %v3761_v5 = vld [vmem:[%s16393_s9 + $0x380] sm:$0xff]  ;;  %v3763_v49 = vld [vmem:[%s16393_s9 + $0x390] sm:$0xff]  ;;  %v3794_v52 = vld [vmem:[%s16393_s9 + $0x488] sm:$0xff] }
 0x4fc   : > { %v3826_v29 = vld [vmem:[%s16393_s9 + $0x588] sm:$0xff]  ;;  %v3796_v36 = vld [vmem:[%s16393_s9 + $0x498] sm:$0xff] }
 0x4fd   : > { %v3828_v63 = vld [vmem:[%s16393_s9 + $0x598] sm:$0xff] }
 0x4fe   : > { %12299 = vmatpush1.bf16.msra.mxu0 %v12298_v31  ;;  %12315 = vmatpush1.bf16.msra.mxu1 %v12314_v40  ;;  %v12322_v31 = vpack.c.bf16 %v3697_v57, %v3665_v56  ;;  %v12338_v40 = vpack.c.bf16 %v3699_v6, %v3667_v0  ;;  %v3793_v56 = vld [vmem:[%s16393_s9 + $0x480] sm:$0xff]  ;;  %v3795_v0 = vld [vmem:[%s16393_s9 + $0x490] sm:$0xff] }
 0x4ff   : > { %12301 = vmatprep.subr.bf16.mxu0 %v12300_v47  ;;  %12317 = vmatprep.subr.bf16.mxu1 %v12316_v33  ;;  %v12324_v47 = vpack.c.bf16 %v3762_v22, %v3730_v20  ;;  %v12340_v33 = vpack.c.bf16 %v3764_v41, %v3732_v23  ;;  %v3825_v57 = vld [vmem:[%s16393_s9 + $0x580] sm:$0xff]  ;;  %v3827_v6 = vld [vmem:[%s16393_s9 + $0x590] sm:$0xff]  ;;  %v3858_v20 = vld [vmem:[%s16393_s9 + $0x688] sm:$0xff] }
 0x500   : > { %v3890_v22 = vld [vmem:[%s16393_s9 + $0x788] sm:$0xff]  ;;  %v3860_v23 = vld [vmem:[%s16393_s9 + $0x698] sm:$0xff] }
 0x501   : > { %v3892_v41 = vld [vmem:[%s16393_s9 + $0x798] sm:$0xff] }
 0x502   : > { %12303 = vmatpush1.bf16.msra.mxu0 %v12302_v53  ;;  %12319 = vmatpush1.bf16.msra.mxu1 %v12318_v55  ;;  %v12326_v53 = vpack.c.bf16 %v3761_v5, %v3729_v43  ;;  %v12342_v55 = vpack.c.bf16 %v3763_v49, %v3731_v38  ;;  %v3857_v43 = vld [vmem:[%s16393_s9 + $0x680] sm:$0xff]  ;;  %v3859_v38 = vld [vmem:[%s16393_s9 + $0x690] sm:$0xff] }
 0x503   : > { %12321 = vmatprep.subr.bf16.mxu0 %v12320_v58  ;;  %12337 = vmatprep.subr.bf16.mxu1 %v12336_v62  ;;  %v12328_v58 = vpack.c.bf16 %v3826_v29, %v3794_v52  ;;  %v12344_v62 = vpack.c.bf16 %v3828_v63, %v3796_v36  ;;  %v3889_v5 = vld [vmem:[%s16393_s9 + $0x780] sm:$0xff]  ;;  %v3891_v49 = vld [vmem:[%s16393_s9 + $0x790] sm:$0xff]  ;;  %v3670_v52 = vld [vmem:[%s16393_s9 + $0xa8] sm:$0xff] }
 0x504   : > { %v3702_v29 = vld [vmem:[%s16393_s9 + $0x1a8] sm:$0xff]  ;;  %v3672_v36 = vld [vmem:[%s16393_s9 + $0xb8] sm:$0xff] }
 0x505   : > { %10448 = vmatmul.mubr.msk.f32.vlgmr.msra.gmra.mrb[24].mxu0 %vm3905_vm2, %v14245_v26  ;;  %10449 = vmatmul.mubr.msk.f32.vlgmr.msra.gmra.mrb[26].mxu1 %vm3905_vm2, %v14245_v26  ;;  %v3704_v63 = vld [vmem:[%s16393_s9 + $0x1b8] sm:$0xff] }
 0x506   : > { %12323 = vmatpush1.bf16.msra.mxu0 %v12322_v31  ;;  %12339 = vmatpush1.bf16.msra.mxu1 %v12338_v40  ;;  %v12330_v31 = vpack.c.bf16 %v3825_v57, %v3793_v56  ;;  %v12346_v40 = vpack.c.bf16 %v3827_v6, %v3795_v0  ;;  %v3669_v56 = vld [vmem:[%s16393_s9 + $0xa0] sm:$0xff]  ;;  %v3671_v0 = vld [vmem:[%s16393_s9 + $0xb0] sm:$0xff] }
 0x507   : > { %12325 = vmatprep.subr.bf16.mxu0 %v12324_v47  ;;  %12341 = vmatprep.subr.bf16.mxu1 %v12340_v33  ;;  %v12332_v47 = vpack.c.bf16 %v3890_v22, %v3858_v20  ;;  %v12348_v33 = vpack.c.bf16 %v3892_v41, %v3860_v23  ;;  %v3701_v57 = vld [vmem:[%s16393_s9 + $0x1a0] sm:$0xff]  ;;  %v3703_v6 = vld [vmem:[%s16393_s9 + $0x1b0] sm:$0xff]  ;;  %v3734_v20 = vld [vmem:[%s16393_s9 + $0x2a8] sm:$0xff] }
 0x508   : > { %4541 = vmatprep.mubr.f32.mxu0 %v16342_v14  ;;  %4612 = vmatprep.mubr.f32.mxu1 %v16342_v14  ;;  %v3766_v22 = vld [vmem:[%s16393_s9 + $0x3a8] sm:$0xff]  ;;  %v3736_v23 = vld [vmem:[%s16393_s9 + $0x2b8] sm:$0xff] }
 0x509   : > { %v3768_v41 = vld [vmem:[%s16393_s9 + $0x3b8] sm:$0xff] }
 0x50a   : > { %12327 = vmatpush1.bf16.msra.mxu0 %v12326_v53  ;;  %12343 = vmatpush1.bf16.msra.mxu1 %v12342_v55  ;;  %v12334_v53 = vpack.c.bf16 %v3889_v5, %v3857_v43  ;;  %v12350_v55 = vpack.c.bf16 %v3891_v49, %v3859_v38  ;;  %v3733_v43 = vld [vmem:[%s16393_s9 + $0x2a0] sm:$0xff]  ;;  %v3735_v38 = vld [vmem:[%s16393_s9 + $0x2b0] sm:$0xff] }
 0x50b   : > { %12329 = vmatprep.subr.bf16.mxu0 %v12328_v58  ;;  %12345 = vmatprep.subr.bf16.mxu1 %v12344_v62  ;;  %v12352_v58 = vpack.c.bf16 %v3702_v29, %v3670_v52  ;;  %v12368_v62 = vpack.c.bf16 %v3704_v63, %v3672_v36  ;;  %v3765_v5 = vld [vmem:[%s16393_s9 + $0x3a0] sm:$0xff]  ;;  %v3767_v49 = vld [vmem:[%s16393_s9 + $0x3b0] sm:$0xff]  ;;  %v3798_v52 = vld [vmem:[%s16393_s9 + $0x4a8] sm:$0xff] }
 0x50c   : > { %v3830_v29 = vld [vmem:[%s16393_s9 + $0x5a8] sm:$0xff]  ;;  %v3800_v36 = vld [vmem:[%s16393_s9 + $0x4b8] sm:$0xff] }
 0x50d   : > { %v3832_v63 = vld [vmem:[%s16393_s9 + $0x5b8] sm:$0xff] }
 0x50e   : > { %12331 = vmatpush1.bf16.msra.mxu0 %v12330_v31  ;;  %12347 = vmatpush1.bf16.msra.mxu1 %v12346_v40  ;;  %v12354_v31 = vpack.c.bf16 %v3701_v57, %v3669_v56  ;;  %v12370_v40 = vpack.c.bf16 %v3703_v6, %v3671_v0  ;;  %v3797_v56 = vld [vmem:[%s16393_s9 + $0x4a0] sm:$0xff]  ;;  %v3799_v0 = vld [vmem:[%s16393_s9 + $0x4b0] sm:$0xff] }
 0x50f   : > { %12333 = vmatprep.subr.bf16.mxu0 %v12332_v47  ;;  %12349 = vmatprep.subr.bf16.mxu1 %v12348_v33  ;;  %v12356_v47 = vpack.c.bf16 %v3766_v22, %v3734_v20  ;;  %v12372_v33 = vpack.c.bf16 %v3768_v41, %v3736_v23  ;;  %v3829_v57 = vld [vmem:[%s16393_s9 + $0x5a0] sm:$0xff]  ;;  %v3831_v6 = vld [vmem:[%s16393_s9 + $0x5b0] sm:$0xff]  ;;  %v3862_v20 = vld [vmem:[%s16393_s9 + $0x6a8] sm:$0xff] }
 0x510   : > { %v3894_v22 = vld [vmem:[%s16393_s9 + $0x7a8] sm:$0xff]  ;;  %v3864_v23 = vld [vmem:[%s16393_s9 + $0x6b8] sm:$0xff] }
 0x511   : > { %v3896_v41 = vld [vmem:[%s16393_s9 + $0x7b8] sm:$0xff] }
 0x512   : > { %12335 = vmatpush1.bf16.msra.mxu0 %v12334_v53  ;;  %12351 = vmatpush1.bf16.msra.mxu1 %v12350_v55  ;;  %v12358_v53 = vpack.c.bf16 %v3765_v5, %v3733_v43  ;;  %v12374_v55 = vpack.c.bf16 %v3767_v49, %v3735_v38  ;;  %v3861_v43 = vld [vmem:[%s16393_s9 + $0x6a0] sm:$0xff]  ;;  %v3863_v38 = vld [vmem:[%s16393_s9 + $0x6b0] sm:$0xff] }
 0x513   : > { %12353 = vmatprep.subr.bf16.mxu0 %v12352_v58  ;;  %12369 = vmatprep.subr.bf16.mxu1 %v12368_v62  ;;  %v12360_v58 = vpack.c.bf16 %v3830_v29, %v3798_v52  ;;  %v12376_v62 = vpack.c.bf16 %v3832_v63, %v3800_v36  ;;  %v3893_v5 = vld [vmem:[%s16393_s9 + $0x7a0] sm:$0xff]  ;;  %v3895_v49 = vld [vmem:[%s16393_s9 + $0x7b0] sm:$0xff]  ;;  %v3674_v52 = vld [vmem:[%s16393_s9 + $0xc8] sm:$0xff] }
 0x514   : > { %v3706_v29 = vld [vmem:[%s16393_s9 + $0x1c8] sm:$0xff]  ;;  %v3676_v36 = vld [vmem:[%s16393_s9 + $0xd8] sm:$0xff] }
 0x515   : > { %10450 = vmatmul.mubr.msk.f32.vlgmr.msra.gmra.mrb[26].mxu0 %vm3905_vm2, %v14245_v26  ;;  %10451 = vmatmul.mubr.msk.f32.vlgmr.msra.gmra.mrb[28].mxu1 %vm3905_vm2, %v14245_v26  ;;  %v3708_v63 = vld [vmem:[%s16393_s9 + $0x1d8] sm:$0xff] }
 0x516   : > { %12355 = vmatpush1.bf16.msra.mxu0 %v12354_v31  ;;  %12371 = vmatpush1.bf16.msra.mxu1 %v12370_v40  ;;  %v12362_v31 = vpack.c.bf16 %v3829_v57, %v3797_v56  ;;  %v12378_v40 = vpack.c.bf16 %v3831_v6, %v3799_v0  ;;  %v3673_v56 = vld [vmem:[%s16393_s9 + $0xc0] sm:$0xff]  ;;  %v3675_v0 = vld [vmem:[%s16393_s9 + $0xd0] sm:$0xff] }
 0x517   : > { %12357 = vmatprep.subr.bf16.mxu0 %v12356_v47  ;;  %12373 = vmatprep.subr.bf16.mxu1 %v12372_v33  ;;  %v12364_v47 = vpack.c.bf16 %v3894_v22, %v3862_v20  ;;  %v12380_v33 = vpack.c.bf16 %v3896_v41, %v3864_v23  ;;  %v3705_v57 = vld [vmem:[%s16393_s9 + $0x1c0] sm:$0xff]  ;;  %v3707_v6 = vld [vmem:[%s16393_s9 + $0x1d0] sm:$0xff]  ;;  %v3738_v20 = vld [vmem:[%s16393_s9 + $0x2c8] sm:$0xff] }
 0x518   : > { %4683 = vmatprep.mubr.f32.mxu0 %v16342_v14  ;;  %4754 = vmatprep.mubr.f32.mxu1 %v16342_v14  ;;  %v3770_v22 = vld [vmem:[%s16393_s9 + $0x3c8] sm:$0xff]  ;;  %v3740_v23 = vld [vmem:[%s16393_s9 + $0x2d8] sm:$0xff] }
 0x519   : > { %v3772_v41 = vld [vmem:[%s16393_s9 + $0x3d8] sm:$0xff] }
 0x51a   : > { %12359 = vmatpush1.bf16.msra.mxu0 %v12358_v53  ;;  %12375 = vmatpush1.bf16.msra.mxu1 %v12374_v55  ;;  %v12366_v53 = vpack.c.bf16 %v3893_v5, %v3861_v43  ;;  %v12382_v55 = vpack.c.bf16 %v3895_v49, %v3863_v38  ;;  %v3737_v43 = vld [vmem:[%s16393_s9 + $0x2c0] sm:$0xff]  ;;  %v3739_v38 = vld [vmem:[%s16393_s9 + $0x2d0] sm:$0xff] }
 0x51b   : > { %12361 = vmatprep.subr.bf16.mxu0 %v12360_v58  ;;  %12377 = vmatprep.subr.bf16.mxu1 %v12376_v62  ;;  %v12384_v58 = vpack.c.bf16 %v3706_v29, %v3674_v52  ;;  %v12400_v62 = vpack.c.bf16 %v3708_v63, %v3676_v36  ;;  %v3769_v5 = vld [vmem:[%s16393_s9 + $0x3c0] sm:$0xff]  ;;  %v3771_v49 = vld [vmem:[%s16393_s9 + $0x3d0] sm:$0xff]  ;;  %v3802_v52 = vld [vmem:[%s16393_s9 + $0x4c8] sm:$0xff] }
 0x51c   : > { %v3834_v29 = vld [vmem:[%s16393_s9 + $0x5c8] sm:$0xff]  ;;  %v3804_v36 = vld [vmem:[%s16393_s9 + $0x4d8] sm:$0xff] }
 0x51d   : > { %v3836_v63 = vld [vmem:[%s16393_s9 + $0x5d8] sm:$0xff] }
 0x51e   : > { %12363 = vmatpush1.bf16.msra.mxu0 %v12362_v31  ;;  %12379 = vmatpush1.bf16.msra.mxu1 %v12378_v40  ;;  %v12386_v31 = vpack.c.bf16 %v3705_v57, %v3673_v56  ;;  %v12402_v40 = vpack.c.bf16 %v3707_v6, %v3675_v0  ;;  %v3801_v56 = vld [vmem:[%s16393_s9 + $0x4c0] sm:$0xff]  ;;  %v3803_v0 = vld [vmem:[%s16393_s9 + $0x4d0] sm:$0xff] }
 0x51f   : > { %12365 = vmatprep.subr.bf16.mxu0 %v12364_v47  ;;  %12381 = vmatprep.subr.bf16.mxu1 %v12380_v33  ;;  %v12388_v47 = vpack.c.bf16 %v3770_v22, %v3738_v20  ;;  %v12404_v33 = vpack.c.bf16 %v3772_v41, %v3740_v23  ;;  %v3833_v57 = vld [vmem:[%s16393_s9 + $0x5c0] sm:$0xff]  ;;  %v3835_v6 = vld [vmem:[%s16393_s9 + $0x5d0] sm:$0xff]  ;;  %v3866_v20 = vld [vmem:[%s16393_s9 + $0x6c8] sm:$0xff] }
 0x520   : > { %v3898_v22 = vld [vmem:[%s16393_s9 + $0x7c8] sm:$0xff]  ;;  %v3868_v23 = vld [vmem:[%s16393_s9 + $0x6d8] sm:$0xff] }
 0x521   : > { %v3900_v41 = vld [vmem:[%s16393_s9 + $0x7d8] sm:$0xff] }
 0x522   : > { %12367 = vmatpush1.bf16.msra.mxu0 %v12366_v53  ;;  %12383 = vmatpush1.bf16.msra.mxu1 %v12382_v55  ;;  %v12390_v53 = vpack.c.bf16 %v3769_v5, %v3737_v43  ;;  %v12406_v55 = vpack.c.bf16 %v3771_v49, %v3739_v38  ;;  %v3865_v43 = vld [vmem:[%s16393_s9 + $0x6c0] sm:$0xff]  ;;  %v3867_v38 = vld [vmem:[%s16393_s9 + $0x6d0] sm:$0xff] }
 0x523   : > { %12385 = vmatprep.subr.bf16.mxu0 %v12384_v58  ;;  %12401 = vmatprep.subr.bf16.mxu1 %v12400_v62  ;;  %v12392_v58 = vpack.c.bf16 %v3834_v29, %v3802_v52  ;;  %v12408_v62 = vpack.c.bf16 %v3836_v63, %v3804_v36  ;;  %v3897_v5 = vld [vmem:[%s16393_s9 + $0x7c0] sm:$0xff]  ;;  %v3899_v49 = vld [vmem:[%s16393_s9 + $0x7d0] sm:$0xff]  ;;  %v3678_v52 = vld [vmem:[%s16393_s9 + $0xe8] sm:$0xff] }
 0x524   : > { %v3710_v29 = vld [vmem:[%s16393_s9 + $0x1e8] sm:$0xff]  ;;  %v3680_v36 = vld [vmem:[%s16393_s9 + $0xf8] sm:$0xff] }
 0x525   : > { %10452 = vmatmul.mubr.msk.f32.vlgmr.msra.gmra.mrb[28].mxu0 %vm3905_vm2, %v14245_v26  ;;  %10453 = vmatmul.mubr.msk.f32.vlgmr.msra.gmra.mrb[30].mxu1 %vm3905_vm2, %v14245_v26  ;;  %v3712_v63 = vld [vmem:[%s16393_s9 + $0x1f8] sm:$0xff] }
 0x526   : > { %12387 = vmatpush1.bf16.msra.mxu0 %v12386_v31  ;;  %12403 = vmatpush1.bf16.msra.mxu1 %v12402_v40  ;;  %v12394_v31 = vpack.c.bf16 %v3833_v57, %v3801_v56  ;;  %v12410_v40 = vpack.c.bf16 %v3835_v6, %v3803_v0  ;;  %v3677_v56 = vld [vmem:[%s16393_s9 + $0xe0] sm:$0xff]  ;;  %v3679_v0 = vld [vmem:[%s16393_s9 + $0xf0] sm:$0xff] }
 0x527   : > { %12389 = vmatprep.subr.bf16.mxu0 %v12388_v47  ;;  %12405 = vmatprep.subr.bf16.mxu1 %v12404_v33  ;;  %v12396_v47 = vpack.c.bf16 %v3898_v22, %v3866_v20  ;;  %v12412_v33 = vpack.c.bf16 %v3900_v41, %v3868_v23  ;;  %v3709_v57 = vld [vmem:[%s16393_s9 + $0x1e0] sm:$0xff]  ;;  %v3711_v6 = vld [vmem:[%s16393_s9 + $0x1f0] sm:$0xff]  ;;  %v3742_v20 = vld [vmem:[%s16393_s9 + $0x2e8] sm:$0xff] }
 0x528   : > { %4825 = vmatprep.mubr.f32.mxu0 %v16342_v14  ;;  %4896 = vmatprep.mubr.f32.mxu1 %v16342_v14  ;;  %v3774_v22 = vld [vmem:[%s16393_s9 + $0x3e8] sm:$0xff]  ;;  %v3744_v23 = vld [vmem:[%s16393_s9 + $0x2f8] sm:$0xff] }
 0x529   : > { %v3776_v41 = vld [vmem:[%s16393_s9 + $0x3f8] sm:$0xff] }
 0x52a   : > { %12391 = vmatpush1.bf16.msra.mxu0 %v12390_v53  ;;  %12407 = vmatpush1.bf16.msra.mxu1 %v12406_v55  ;;  %v12398_v53 = vpack.c.bf16 %v3897_v5, %v3865_v43  ;;  %v12414_v55 = vpack.c.bf16 %v3899_v49, %v3867_v38  ;;  %v3741_v43 = vld [vmem:[%s16393_s9 + $0x2e0] sm:$0xff]  ;;  %v3743_v38 = vld [vmem:[%s16393_s9 + $0x2f0] sm:$0xff] }
 0x52b   : > { %12393 = vmatprep.subr.bf16.mxu0 %v12392_v58  ;;  %12409 = vmatprep.subr.bf16.mxu1 %v12408_v62  ;;  %v12416_v58 = vpack.c.bf16 %v3710_v29, %v3678_v52  ;;  %v12432_v62 = vpack.c.bf16 %v3712_v63, %v3680_v36  ;;  %v3773_v5 = vld [vmem:[%s16393_s9 + $0x3e0] sm:$0xff]  ;;  %v3775_v49 = vld [vmem:[%s16393_s9 + $0x3f0] sm:$0xff]  ;;  %v3806_v52 = vld [vmem:[%s16393_s9 + $0x4e8] sm:$0xff] }
 0x52c   : > { %v3838_v29 = vld [vmem:[%s16393_s9 + $0x5e8] sm:$0xff]  ;;  %v3808_v36 = vld [vmem:[%s16393_s9 + $0x4f8] sm:$0xff] }
 0x52d   : > { %v3840_v63 = vld [vmem:[%s16393_s9 + $0x5f8] sm:$0xff] }
 0x52e   : > { %12395 = vmatpush1.bf16.msra.mxu0 %v12394_v31  ;;  %12411 = vmatpush1.bf16.msra.mxu1 %v12410_v40  ;;  %v12418_v31 = vpack.c.bf16 %v3709_v57, %v3677_v56  ;;  %v12434_v40 = vpack.c.bf16 %v3711_v6, %v3679_v0  ;;  %v3805_v56 = vld [vmem:[%s16393_s9 + $0x4e0] sm:$0xff]  ;;  %v3807_v0 = vld [vmem:[%s16393_s9 + $0x4f0] sm:$0xff] }
 0x52f   : > { %12397 = vmatprep.subr.bf16.mxu0 %v12396_v47  ;;  %12413 = vmatprep.subr.bf16.mxu1 %v12412_v33  ;;  %v12420_v47 = vpack.c.bf16 %v3774_v22, %v3742_v20  ;;  %v12436_v33 = vpack.c.bf16 %v3776_v41, %v3744_v23  ;;  %v3837_v57 = vld [vmem:[%s16393_s9 + $0x5e0] sm:$0xff]  ;;  %v3839_v6 = vld [vmem:[%s16393_s9 + $0x5f0] sm:$0xff]  ;;  %v3870_v20 = vld [vmem:[%s16393_s9 + $0x6e8] sm:$0xff] }
 0x530   : > { %v3902_v22 = vld [vmem:[%s16393_s9 + $0x7e8] sm:$0xff]  ;;  %v3872_v23 = vld [vmem:[%s16393_s9 + $0x6f8] sm:$0xff] }
 0x531   : > { %v3904_v41 = vld [vmem:[%s16393_s9 + $0x7f8] sm:$0xff] }
 0x532   : > { %12399 = vmatpush1.bf16.msra.mxu0 %v12398_v53  ;;  %12415 = vmatpush1.bf16.msra.mxu1 %v12414_v55  ;;  %v12422_v53 = vpack.c.bf16 %v3773_v5, %v3741_v43  ;;  %v12438_v55 = vpack.c.bf16 %v3775_v49, %v3743_v38  ;;  %v3869_v43 = vld [vmem:[%s16393_s9 + $0x6e0] sm:$0xff]  ;;  %v3871_v38 = vld [vmem:[%s16393_s9 + $0x6f0] sm:$0xff] }
 0x533   : > { %12417 = vmatprep.subr.bf16.mxu0 %v12416_v58  ;;  %12433 = vmatprep.subr.bf16.mxu1 %v12432_v62  ;;  %v12424_v58 = vpack.c.bf16 %v3838_v29, %v3806_v52  ;;  %v12440_v62 = vpack.c.bf16 %v3840_v63, %v3808_v36  ;;  %v3901_v5 = vld [vmem:[%s16393_s9 + $0x7e0] sm:$0xff]  ;;  %v3903_v49 = vld [vmem:[%s16393_s9 + $0x7f0] sm:$0xff]  ;;  %v5330_v29 = vld [vmem:[%s14901_s23 + $0x88] sm:$0xff] }
 0x534   : > { %v5329_v52 = vld [vmem:[%s14901_s23 + $0x80] sm:$0xff]  ;;  %v5362_v63 = vld [vmem:[%s14901_s23 + $0x188] sm:$0xff] }
 0x535   : > { %10454 = vmatmul.mubr.msk.f32.vlgmr.msra.gmra.mrb[30].mxu0 %vm3905_vm2, %v14245_v26  ;;  %10455 = vmatmul.mubr.msk.f32.vlgmr.msra.gmra.mrb[32].mxu1 %vm3905_vm2, %v14245_v26  ;;  %v5361_v36 = vld [vmem:[%s14901_s23 + $0x180] sm:$0xff] }
 0x536   : > { %12419 = vmatpush1.bf16.msra.mxu0 %v12418_v31  ;;  %12435 = vmatpush1.bf16.msra.mxu1 %v12434_v40  ;;  %v12426_v31 = vpack.c.bf16 %v3837_v57, %v3805_v56  ;;  %v12442_v40 = vpack.c.bf16 %v3839_v6, %v3807_v0  ;;  %v5313_v56 = vld [vmem:[%s14901_s23] sm:$0xff]  ;;  %v5314_v57 = vld [vmem:[%s14901_s23 + $0x8] sm:$0xff] }
 0x537   : > { %12421 = vmatprep.subr.bf16.mxu0 %v12420_v47  ;;  %12437 = vmatprep.subr.bf16.mxu1 %v12436_v33  ;;  %v12428_v47 = vpack.c.bf16 %v3902_v22, %v3870_v20  ;;  %v12444_v33 = vpack.c.bf16 %v3904_v41, %v3872_v23  ;;  %v5345_v0 = vld [vmem:[%s14901_s23 + $0x100] sm:$0xff]  ;;  %v5346_v6 = vld [vmem:[%s14901_s23 + $0x108] sm:$0xff]  ;;  %v5331_v20 = vld [vmem:[%s14901_s23 + $0x90] sm:$0xff] }
 0x538   : > { %4967 = vmatprep.mubr.f32.mxu0 %v16342_v14  ;;  %5038 = vmatprep.mubr.f32.mxu1 %v16342_v14  ;;  %v5332_v22 = vld [vmem:[%s14901_s23 + $0x98] sm:$0xff]  ;;  %v5363_v23 = vld [vmem:[%s14901_s23 + $0x190] sm:$0xff]  ;;  %v5366_v14 = vld [vmem:[%s14901_s23 + $0x1a8] sm:$0xff] }
 0x539   : > { %v5364_v41 = vld [vmem:[%s14901_s23 + $0x198] sm:$0xff] }
 0x53a   : > { %12423 = vmatpush1.bf16.msra.mxu0 %v12422_v53  ;;  %12439 = vmatpush1.bf16.msra.mxu1 %v12438_v55  ;;  %v12430_v53 = vpack.c.bf16 %v3901_v5, %v3869_v43  ;;  %v12446_v55 = vpack.c.bf16 %v3903_v49, %v3871_v38  ;;  %v12482_v43 = vpack.c.bf16 %v5346_v6, %v5345_v0  ;;  %v5315_v5 = vld [vmem:[%s14901_s23 + $0x10] sm:$0xff] }
 0x53b   : > { %12425 = vmatprep.subr.bf16.mxu0 %v12424_v58  ;;  %12441 = vmatprep.subr.bf16.mxu1 %v12440_v62  ;;  %v12448_v58 = vpack.c.bf16 %v5330_v29, %v5329_v52  ;;  %v12480_v62 = vpack.c.bf16 %v5362_v63, %v5361_v36  ;;  %v12484_v38 = vpack.c.bf16 %v5364_v41, %v5363_v23  ;;  %v5347_v49 = vld [vmem:[%s14901_s23 + $0x110] sm:$0xff]  ;;  %v5348_v52 = vld [vmem:[%s14901_s23 + $0x118] sm:$0xff]  ;;  %v5333_v29 = vld [vmem:[%s14901_s23 + $0xa0] sm:$0xff] }
 0x53c   : > { %v5334_v36 = vld [vmem:[%s14901_s23 + $0xa8] sm:$0xff]  ;;  %v5365_v63 = vld [vmem:[%s14901_s23 + $0x1a0] sm:$0xff]  ;;  %v5335_v23 = vld [vmem:[%s14901_s23 + $0xb0] sm:$0xff] }
 0x53d   : > { %v12456_v0 = vpack.c.bf16 %v5334_v36, %v5333_v29  ;;  %v12488_v6 = vpack.c.bf16 %v5366_v14, %v5365_v63  ;;  %v5336_v41 = vld [vmem:[%s14901_s23 + $0xb8] sm:$0xff]  ;;  %v5337_v29 = vld [vmem:[%s14901_s23 + $0xc0] sm:$0xff]  ;;  %v5338_v36 = vld [vmem:[%s14901_s23 + $0xc8] sm:$0xff] }
 0x53e   : > { %12427 = vmatpush1.bf16.msra.mxu0 %v12426_v31  ;;  %12443 = vmatpush1.bf16.msra.mxu1 %v12442_v40  ;;  %v14938_v31 = vld [vmem:[#allocation8] sm:$0xff]  ;;  %v12450_v40 = vpack.c.bf16 %v5314_v57, %v5313_v56  ;;  %v12486_v57 = vpack.c.bf16 %v5348_v52, %v5347_v49  ;;  %v5320_v14 = vld [vmem:[%s14901_s23 + $0x38] sm:$0xff]  ;;  %v5351_v49 = vld [vmem:[%s14901_s23 + $0x130] sm:$0xff] }
 0x53f   : > { %12429 = vmatprep.subr.bf16.mxu0 %v12428_v47  ;;  %12445 = vmatprep.subr.bf16.mxu1 %v12444_v33  ;;  %v5316_v47 = vld [vmem:[%s14901_s23 + $0x18] sm:$0xff]  ;;  %v12452_v33 = vpack.c.bf16 %v5332_v22, %v5331_v20  ;;  %v5349_v20 = vld [vmem:[%s14901_s23 + $0x120] sm:$0xff]  ;;  %v5350_v22 = vld [vmem:[%s14901_s23 + $0x128] sm:$0xff] }
 0x540   : > { %v12454_v56 = vpack.c.bf16 %v5316_v47, %v5315_v5  ;;  %v12490_v5 = vpack.c.bf16 %v5350_v22, %v5349_v20  ;;  %v5319_v47 = vld [vmem:[%s14901_s23 + $0x30] sm:$0xff]  ;;  %v5352_v52 = vld [vmem:[%s14901_s23 + $0x138] sm:$0xff]  ;;  %v5369_v63 = vld [vmem:[%s14901_s23 + $0x1c0] sm:$0xff] }
 0x541   : > { %v5354_v20 = vld [vmem:[%s14901_s23 + $0x148] sm:$0xff]  ;;  %v5339_v22 = vld [vmem:[%s14901_s23 + $0xd0] sm:$0xff] }
 0x542   : > { %12431 = vmatpush1.bf16.msra.mxu0 %v12430_v53  ;;  %12447 = vmatpush1.bf16.msra.mxu1 %v12446_v55  ;;  %v5452_v53 = vrot.slane %v14938_v31, %v13731_v11  ;;  %v5460_v55 = vrot.slane %v14938_v31, %v14011_v50 }
 0x543   : > { %12449 = vmatprep.subr.bf16.mxu0 %v12448_v58  ;;  %12481 = vmatprep.subr.bf16.mxu1 %v12480_v62  ;;  %v5317_v58 = vld [vmem:[%s14901_s23 + $0x20] sm:$0xff]  ;;  %v5318_v62 = vld [vmem:[%s14901_s23 + $0x28] sm:$0xff] }
 0x545   : > { %10456 = vmatmul.mubr.msk.f32.vlgmr.msra.gmra.mrb[32].mxu0 %vm3905_vm2, %v14245_v26  ;;  %10457 = vmatmul.mubr.msk.f32.vlgmr.msra.gmra.mrb[34].mxu1 %vm3905_vm2, %v14245_v26  ;;  %v5367_v26 = vld [vmem:[%s14901_s23 + $0x1b0] sm:$0xff] }
 0x546   : > { %12451 = vmatpush3.bf16.msra.mxu0 %v12450_v40  ;;  %12483 = vmatpush3.bf16.msra.mxu1 %v12482_v43  ;;  %v5368_v40 = vld [vmem:[%s14901_s23 + $0x1b8] sm:$0xff]  ;;  %v12458_v43 = vpack.c.bf16 %v5318_v62, %v5317_v58  ;;  %v5322_v58 = vld [vmem:[%s14901_s23 + $0x48] sm:$0xff]  ;;  %v12464_v62 = vpack.c.bf16 %v5338_v36, %v5337_v29  ;;  %v5373_v36 = vld [vmem:[%s14901_s23 + $0x1e0] sm:$0xff] }
 0x547   : > { %12453 = vmatprep.subr.bf16.mxu0 %v12452_v33  ;;  %12485 = vmatprep.subr.bf16.mxu1 %v12484_v38  ;;  %v12460_v33 = vpack.c.bf16 %v5336_v41, %v5335_v23  ;;  %v12492_v38 = vpack.c.bf16 %v5368_v40, %v5367_v26  ;;  %v5340_v23 = vld [vmem:[%s14901_s23 + $0xd8] sm:$0xff]  ;;  %v5371_v41 = vld [vmem:[%s14901_s23 + $0x1d0] sm:$0xff]  ;;  %v5342_v29 = vld [vmem:[%s14901_s23 + $0xe8] sm:$0xff] }
 0x548   : > { %5549 = vmatprep.mubr.f32.mxu0 %v5452_v53  ;;  %5619 = vmatprep.mubr.f32.mxu1 %v5460_v55  ;;  %v5370_v53 = vld [vmem:[%s14901_s23 + $0x1c8] sm:$0xff]  ;;  %v12462_v55 = vpack.c.bf16 %v5320_v14, %v5319_v47  ;;  %v5372_v26 = vld [vmem:[%s14901_s23 + $0x1d8] sm:$0xff]  ;;  %v12468_v14 = vpack.c.bf16 %v5340_v23, %v5339_v22  ;;  %v5375_v23 = vld [vmem:[%s14901_s23 + $0x1f0] sm:$0xff] }
 0x549   : > { %v5324_v47 = vld [vmem:[%s14901_s23 + $0x58] sm:$0xff] }
 0x54a   : > { %12455 = vmatpush3.bf16.msra.mxu0 %v12454_v56  ;;  %12487 = vmatpush3.bf16.msra.mxu1 %v12486_v57  ;;  %v12494_v56 = vpack.c.bf16 %v5352_v52, %v5351_v49  ;;  %v5321_v57 = vld [vmem:[%s14901_s23 + $0x40] sm:$0xff]  ;;  %v5356_v49 = vld [vmem:[%s14901_s23 + $0x158] sm:$0xff] }
 0x54b   : > { %12457 = vmatprep.subr.bf16.mxu0 %v12456_v0  ;;  %12489 = vmatprep.subr.bf16.mxu1 %v12488_v6  ;;  %v12496_v0 = vpack.c.bf16 %v5370_v53, %v5369_v63  ;;  %v5353_v6 = vld [vmem:[%s14901_s23 + $0x140] sm:$0xff]  ;;  %v12466_v40 = vpack.c.bf16 %v5322_v58, %v5321_v57  ;;  %v5374_v63 = vld [vmem:[%s14901_s23 + $0x1e8] sm:$0xff]  ;;  %v5344_v22 = vld [vmem:[%s14901_s23 + $0xf8] sm:$0xff] }
 0x54c   : > { %v5341_v52 = vld [vmem:[%s14901_s23 + $0xe0] sm:$0xff]  ;;  %v5326_v57 = vld [vmem:[%s14901_s23 + $0x68] sm:$0xff] }
 0x54d   : > { %v12472_v58 = vpack.c.bf16 %v5342_v29, %v5341_v52  ;;  %v5394_v52 = vld [vmem:[%s14901_s23 + $0x288] sm:$0xff]  ;;  %v5425_v29 = vld [vmem:[%s14901_s23 + $0x380] sm:$0xff] }
 0x54e   : > { %12459 = vmatpush3.bf16.msra.mxu0 %v12458_v43  ;;  %12491 = vmatpush3.bf16.msra.mxu1 %v12490_v5  ;;  %v12498_v43 = vpack.c.bf16 %v5354_v20, %v5353_v6  ;;  %v5323_v5 = vld [vmem:[%s14901_s23 + $0x50] sm:$0xff]  ;;  %v5358_v6 = vld [vmem:[%s14901_s23 + $0x168] sm:$0xff] }
 0x54f   : > { %12461 = vmatprep.subr.bf16.mxu0 %v12460_v33  ;;  %12493 = vmatprep.subr.bf16.mxu1 %v12492_v38  ;;  %v12500_v33 = vpack.c.bf16 %v5372_v26, %v5371_v41  ;;  %v5355_v38 = vld [vmem:[%s14901_s23 + $0x150] sm:$0xff]  ;;  %v12470_v53 = vpack.c.bf16 %v5324_v47, %v5323_v5  ;;  %v5376_v41 = vld [vmem:[%s14901_s23 + $0x1f8] sm:$0xff] }
 0x550   : > { %v5343_v20 = vld [vmem:[%s14901_s23 + $0xf0] sm:$0xff]  ;;  %v5328_v5 = vld [vmem:[%s14901_s23 + $0x78] sm:$0xff] }
 0x551   : > { %v12476_v47 = vpack.c.bf16 %v5344_v22, %v5343_v20  ;;  %v5396_v20 = vld [vmem:[%s14901_s23 + $0x298] sm:$0xff]  ;;  %v5427_v22 = vld [vmem:[%s14901_s23 + $0x390] sm:$0xff] }
 0x552   : > { %12463 = vmatpush3.bf16.msra.mxu0 %v12462_v55  ;;  %12495 = vmatpush3.bf16.msra.mxu1 %v12494_v56  ;;  %v12502_v55 = vpack.c.bf16 %v5356_v49, %v5355_v38  ;;  %v5325_v56 = vld [vmem:[%s14901_s23 + $0x60] sm:$0xff]  ;;  %v5360_v38 = vld [vmem:[%s14901_s23 + $0x178] sm:$0xff] }
 0x553   : > { %12465 = vmatprep.subr.bf16.mxu0 %v12464_v62  ;;  %12497 = vmatprep.subr.bf16.mxu1 %v12496_v0  ;;  %v12504_v62 = vpack.c.bf16 %v5374_v63, %v5373_v36  ;;  %v5357_v0 = vld [vmem:[%s14901_s23 + $0x160] sm:$0xff]  ;;  %v12474_v26 = vpack.c.bf16 %v5326_v57, %v5325_v56  ;;  %v5426_v36 = vld [vmem:[%s14901_s23 + $0x388] sm:$0xff] }
 0x554   : > { %v5393_v49 = vld [vmem:[%s14901_s23 + $0x280] sm:$0xff]  ;;  %v5378_v56 = vld [vmem:[%s14901_s23 + $0x208] sm:$0xff] }
 0x555   : > { %v12512_v57 = vpack.c.bf16 %v5394_v52, %v5393_v49  ;;  %v5411_v52 = vld [vmem:[%s14901_s23 + $0x310] sm:$0xff] }
 0x556   : > { %12467 = vmatpush3.bf16.msra.mxu0 %v12466_v40  ;;  %12499 = vmatpush3.bf16.msra.mxu1 %v12498_v43  ;;  %v12506_v40 = vpack.c.bf16 %v5358_v6, %v5357_v0  ;;  %v5327_v43 = vld [vmem:[%s14901_s23 + $0x70] sm:$0xff]  ;;  %v5410_v0 = vld [vmem:[%s14901_s23 + $0x308] sm:$0xff] }
 0x557   : > { %12469 = vmatprep.subr.bf16.mxu0 %v12468_v14  ;;  %12501 = vmatprep.subr.bf16.mxu1 %v12500_v33  ;;  %v12508_v14 = vpack.c.bf16 %v5376_v41, %v5375_v23  ;;  %v5359_v33 = vld [vmem:[%s14901_s23 + $0x170] sm:$0xff]  ;;  %v12478_v63 = vpack.c.bf16 %v5328_v5, %v5327_v43  ;;  %v5428_v23 = vld [vmem:[%s14901_s23 + $0x398] sm:$0xff]  ;;  %v15013_v41 = vsub.s32 5, %v13725_v3  ;;  %v5456_v43 = vrot.slane %v14938_v31, %v14050_v1  ;;  %v5429_v1 = vld [vmem:[%s14901_s23 + $0x3a0] sm:$0xff] }
 0x558   : > { %v5395_v6 = vld [vmem:[%s14901_s23 + $0x290] sm:$0xff]  ;;  %v12548_v49 = vpack.c.bf16 %v5428_v23, %v5427_v22 }
 0x55a   : > { %12471 = vmatpush3.bf16.msra.mxu0 %v12470_v53  ;;  %12503 = vmatpush3.bf16.msra.mxu1 %v12502_v55  ;;  %v12510_v53 = vpack.c.bf16 %v5360_v38, %v5359_v33  ;;  %v5377_v55 = vld [vmem:[%s14901_s23 + $0x200] sm:$0xff]  ;;  %v5380_v33 = vld [vmem:[%s14901_s23 + $0x218] sm:$0xff]  ;;  %v12516_v38 = vpack.c.bf16 %v5396_v20, %v5395_v6  ;;  %v5382_v20 = vld [vmem:[%s14901_s23 + $0x228] sm:$0xff] }
 0x55b   : > { %12473 = vmatprep.subr.bf16.mxu0 %v12472_v58  ;;  %12505 = vmatprep.subr.bf16.mxu1 %v12504_v62  ;;  %v12544_v58 = vpack.c.bf16 %v5426_v36, %v5425_v29  ;;  %v5409_v62 = vld [vmem:[%s14901_s23 + $0x300] sm:$0xff]  ;;  %v12514_v5 = vpack.c.bf16 %v5378_v56, %v5377_v55  ;;  %v5412_v29 = vld [vmem:[%s14901_s23 + $0x318] sm:$0xff]  ;;  %v5430_v55 = vld [vmem:[%s14901_s23 + $0x3a8] sm:$0xff]  ;;  %v5468_v56 = vrot.slane %v14938_v31, %v15013_v41 }
 0x55c   : > { %v5397_v36 = vld [vmem:[%s14901_s23 + $0x2a0] sm:$0xff]  ;;  %v12552_v23 = vpack.c.bf16 %v5430_v55, %v5429_v1  ;;  %v5384_v1 = vld [vmem:[%s14901_s23 + $0x238] sm:$0xff]  ;;  %v5402_v55 = vld [vmem:[%s14901_s23 + $0x2c8] sm:$0xff] }
 0x55d   : > { %v5381_v6 = vld [vmem:[%s14901_s23 + $0x220] sm:$0xff] }
 0x55e   : > { %12475 = vmatpush3.bf16.msra.mxu0 %v12474_v26  ;;  %12507 = vmatpush3.bf16.msra.mxu1 %v12506_v40  ;;  %v15016_v26 = vsub.s32 7, %v13725_v3  ;;  %v5448_v40 = vrot.slane %v14938_v31, %v13807_v54 }
 0x55f   : > { %12477 = vmatprep.subr.bf16.mxu0 %v12476_v47  ;;  %12509 = vmatprep.subr.bf16.mxu1 %v12508_v14  ;;  %v12546_v47 = vpack.c.bf16 %v5410_v0, %v5409_v62  ;;  %v5379_v14 = vld [vmem:[%s14901_s23 + $0x210] sm:$0xff]  ;;  %v12550_v0 = vpack.c.bf16 %v5412_v29, %v5411_v52 }
 0x560   : > { %16395 = vst [vmem:[#allocation34_spill] sm:$0xff] %v15016_v26  ;;  %v12518_v62 = vpack.c.bf16 %v5380_v33, %v5379_v14  ;;  %v12522_v14 = vpack.c.bf16 %v5382_v20, %v5381_v6  ;;  %v5415_v29 = vld [vmem:[%s14901_s23 + $0x330] sm:$0xff] }
 0x562   : > { %12479 = vmatpush3.bf16.msra.mxu0 %v12478_v63  ;;  %12511 = vmatpush3.bf16.msra.mxu1 %v12510_v53  ;;  %v5398_v53 = vld [vmem:[%s14901_s23 + $0x2a8] sm:$0xff] }
 0x563   : > { %12513 = vmatprep.subr.bf16.mxu0 %v12512_v57  ;;  %12545 = vmatprep.subr.bf16.mxu1 %v12544_v58  ;;  %v5476_v57 = vrot.slane %v14938_v31, %v15016_v26  ;;  %v12520_v22 = vpack.c.bf16 %v5398_v53, %v5397_v36  ;;  %v5399_v26 = vld [vmem:[%s14901_s23 + $0x2b0] sm:$0xff]  ;;  %v5416_v36 = vld [vmem:[%s14901_s23 + $0x338] sm:$0xff]  ;;  %v5401_v53 = vld [vmem:[%s14901_s23 + $0x2c0] sm:$0xff] }
 0x564   : > { %v3645_v63 = vpop.xlane.xlu0 %3644  ;;  %v12528_v6 = vpack.c.bf16 %v5402_v55, %v5401_v53  ;;  %v5406_v53 = vld [vmem:[%s14901_s23 + $0x2e8] sm:$0xff]  ;;  %v5437_v55 = vld [vmem:[%s14901_s23 + $0x3e0] sm:$0xff] }
 0x565   : > { %v3647_v58 = vmul.f32 0.015625, %v3645_v63  ;;  %5550 = vmatmul.mubr.f32.vlgmr.msra.gmra.mrb[34].mxu0 %v5448_v40  ;;  %5620 = vmatmul.mubr.f32.vlgmr.msra.gmra.mrb[36].mxu1 %v5456_v43  ;;  %v5413_v63 = vld [vmem:[%s14901_s23 + $0x320] sm:$0xff]  ;;  %v5414_v40 = vld [vmem:[%s14901_s23 + $0x328] sm:$0xff]  ;;  %v5400_v43 = vld [vmem:[%s14901_s23 + $0x2b8] sm:$0xff] }
 0x566   : > { %12515 = vmatpush3.bf16.msra.mxu0 %v12514_v5  ;;  %12547 = vmatpush3.bf16.msra.mxu1 %v12546_v47  ;;  %v5431_v5 = vld [vmem:[%s14901_s23 + $0x3b0] sm:$0xff]  ;;  %v5432_v47 = vld [vmem:[%s14901_s23 + $0x3b8] sm:$0xff]  ;;  %v12554_v33 = vpack.c.bf16 %v5414_v40, %v5413_v63 }
 0x567   : > { %3648 = vst.msk [vmem:[%s852_s1] sm:$0x1] %vm1016_vm1, %v3647_v58  ;;  %12517 = vmatprep.subr.bf16.mxu0 %v12516_v38  ;;  %12549 = vmatprep.subr.bf16.mxu1 %v12548_v49  ;;  %v5383_v38 = vld [vmem:[%s14901_s23 + $0x230] sm:$0xff]  ;;  %v12524_v49 = vpack.c.bf16 %v5400_v43, %v5399_v26  ;;  %v12556_v52 = vpack.c.bf16 %v5432_v47, %v5431_v5  ;;  %v5386_v26 = vld [vmem:[%s14901_s23 + $0x248] sm:$0xff]  ;;  %v5404_v40 = vld [vmem:[%s14901_s23 + $0x2d8] sm:$0xff] }
 0x568   : > { %5689 = vmatprep.mubr.f32.mxu0 %v5468_v56  ;;  %5759 = vmatprep.mubr.f32.mxu1 %v5476_v57  ;;  %v5433_v56 = vld [vmem:[%s14901_s23 + $0x3c0] sm:$0xff]  ;;  %v5434_v57 = vld [vmem:[%s14901_s23 + $0x3c8] sm:$0xff]  ;;  %v12526_v58 = vpack.c.bf16 %v5384_v1, %v5383_v38  ;;  %v5403_v63 = vld [vmem:[%s14901_s23 + $0x2d0] sm:$0xff] }
 0x569   : > { %v12560_v20 = vpack.c.bf16 %v5434_v57, %v5433_v56  ;;  %v5435_v43 = vld [vmem:[%s14901_s23 + $0x3d0] sm:$0xff]  ;;  %v5436_v5 = vld [vmem:[%s14901_s23 + $0x3d8] sm:$0xff]  ;;  %v12532_v1 = vpack.c.bf16 %v5404_v40, %v5403_v63  ;;  %v5438_v56 = vld [vmem:[%s14901_s23 + $0x3e8] sm:$0xff] }
 0x56a   : > { %12519 = vmatpush3.bf16.msra.mxu0 %v12518_v62  ;;  %12551 = vmatpush3.bf16.msra.mxu1 %v12550_v0  ;;  %v12558_v62 = vpack.c.bf16 %v5416_v36, %v5415_v29  ;;  %v5385_v0 = vld [vmem:[%s14901_s23 + $0x240] sm:$0xff]  ;;  %v5388_v38 = vld [vmem:[%s14901_s23 + $0x258] sm:$0xff]  ;;  %v5439_v40 = vld [vmem:[%s14901_s23 + $0x3f0] sm:$0xff] }
 0x56b   : > { %12521 = vmatprep.subr.bf16.mxu0 %v12520_v22  ;;  %12553 = vmatprep.subr.bf16.mxu1 %v12552_v23  ;;  %v5417_v22 = vld [vmem:[%s14901_s23 + $0x340] sm:$0xff]  ;;  %v5418_v23 = vld [vmem:[%s14901_s23 + $0x348] sm:$0xff]  ;;  %v12530_v47 = vpack.c.bf16 %v5386_v26, %v5385_v0  ;;  %v5420_v29 = vld [vmem:[%s14901_s23 + $0x358] sm:$0xff] }
 0x56c   : > { %v5405_v36 = vld [vmem:[%s14901_s23 + $0x2e0] sm:$0xff]  ;;  %v5390_v0 = vld [vmem:[%s14901_s23 + $0x268] sm:$0xff]  ;;  %v5408_v63 = vld [vmem:[%s14901_s23 + $0x2f8] sm:$0xff] }
 0x56d   : > { %v12536_v26 = vpack.c.bf16 %v5406_v53, %v5405_v36  ;;  %v15087_v36 = vsub.s32 6, %v13725_v3 }
 0x56e   : > { %12523 = vmatpush3.bf16.msra.mxu0 %v12522_v14  ;;  %12555 = vmatpush3.bf16.msra.mxu1 %v12554_v33  ;;  %v12562_v14 = vpack.c.bf16 %v5418_v23, %v5417_v22  ;;  %v5387_v33 = vld [vmem:[%s14901_s23 + $0x250] sm:$0xff]  ;;  %v5422_v22 = vld [vmem:[%s14901_s23 + $0x368] sm:$0xff] }
 0x56f   : > { %12525 = vmatprep.subr.bf16.mxu0 %v12524_v49  ;;  %12557 = vmatprep.subr.bf16.mxu1 %v12556_v52  ;;  %v12564_v49 = vpack.c.bf16 %v5436_v5, %v5435_v43  ;;  %v5419_v52 = vld [vmem:[%s14901_s23 + $0x350] sm:$0xff]  ;;  %v12534_v57 = vpack.c.bf16 %v5388_v38, %v5387_v33  ;;  %v5440_v43 = vld [vmem:[%s14901_s23 + $0x3f8] sm:$0xff] }
 0x570   : > { %v5407_v23 = vld [vmem:[%s14901_s23 + $0x2f0] sm:$0xff]  ;;  %v5392_v38 = vld [vmem:[%s14901_s23 + $0x278] sm:$0xff] }
 0x571   : > { %v12540_v33 = vpack.c.bf16 %v5408_v63, %v5407_v23 }
 0x572   : > { %12527 = vmatpush3.bf16.msra.mxu0 %v12526_v58  ;;  %12559 = vmatpush3.bf16.msra.mxu1 %v12558_v62  ;;  %v12566_v58 = vpack.c.bf16 %v5420_v29, %v5419_v52  ;;  %v5389_v62 = vld [vmem:[%s14901_s23 + $0x260] sm:$0xff]  ;;  %v5424_v52 = vld [vmem:[%s14901_s23 + $0x378] sm:$0xff]  ;;  %v15084_v29 = vsub.s32 4, %v13725_v3 }
 0x573   : > { %12529 = vmatprep.subr.bf16.mxu0 %v12528_v6  ;;  %12561 = vmatprep.subr.bf16.mxu1 %v12560_v20  ;;  %v12568_v6 = vpack.c.bf16 %v5438_v56, %v5437_v55  ;;  %v5421_v20 = vld [vmem:[%s14901_s23 + $0x360] sm:$0xff]  ;;  %v12538_v5 = vpack.c.bf16 %v5390_v0, %v5389_v62 }
 0x574   : > { %v5464_v56 = vrot.slane %v14938_v31, %v15084_v29 }
 0x576   : > { %12531 = vmatpush3.bf16.msra.mxu0 %v12530_v47  ;;  %12563 = vmatpush3.bf16.msra.mxu1 %v12562_v14  ;;  %v12570_v47 = vpack.c.bf16 %v5422_v22, %v5421_v20  ;;  %v5391_v14 = vld [vmem:[%s14901_s23 + $0x270] sm:$0xff] }
 0x577   : > { %12533 = vmatprep.subr.bf16.mxu0 %v12532_v1  ;;  %12565 = vmatprep.subr.bf16.mxu1 %v12564_v49  ;;  %v12572_v1 = vpack.c.bf16 %v5440_v43, %v5439_v40  ;;  %v5423_v49 = vld [vmem:[%s14901_s23 + $0x370] sm:$0xff]  ;;  %v12542_v53 = vpack.c.bf16 %v5392_v38, %v5391_v14  ;;  %s15126_s23 = scalar_lea.vmem [#allocation14], %s13886_s24 }
 0x578   : > { %v12574_v55 = vpack.c.bf16 %v5424_v52, %v5423_v49  ;;  %s10015_s0 = sshll.u32 %s15126_s23, 4  ;;  %s10016_s0 = int_to_ptr.vmem [resolvable:$true] %s10015_s0 }
 0x579   : > { %s13189_s1 = scalar_lea.vmem %s10016_s0, 512  ;;  %p13196_p10 = scmp.lt.s32.totalorder %s10016_s0, %s13194_s29 }
 0x57a   : > { %12535 = vmatpush3.bf16.msra.mxu0 %v12534_v57  ;;  %12567 = vmatpush3.bf16.msra.mxu1 %v12566_v58  ;;  %v5472_v57 = vrot.slane %v14938_v31, %v15087_v36  ;;  %v16396_v58 = vmov 0.0   ;;  %p13190_p1 = scmp.ne.s32.totalorder %s10016_s0, %s13189_s1  ;;  %p13197_p2 = scmp.lt.s32.totalorder %s13195_s22, %s13189_s1 }
 0x57b   : > { %12537 = vmatprep.subr.bf16.mxu0 %v12536_v26  ;;  %12569 = vmatprep.subr.bf16.mxu1 %v12568_v6 }
 0x57c   : > { %p13191_p5 = pnand %p13190_p1, %p16410_p6  ;;  %p13198_p0 = por %p13197_p2, %p13196_p10 }
 0x57e   : > { %12539 = vmatpush3.bf16.msra.mxu0 %v12538_v5  ;;  %12571 = vmatpush3.bf16.msra.mxu1 %v12570_v47  ;;  %p13192_p9 = pneg %p13191_p5 }
 0x57f   : > { %12541 = vmatprep.subr.bf16.mxu0 %v12540_v33  ;;  %12573 = vmatprep.subr.bf16.mxu1 %v12572_v1 }
 0x580   : > { %p13199_p3 = pnand %p13198_p0, %p13192_p9 }
 0x582   : > { %12543 = vmatpush3.bf16.msra.mxu0 %v12542_v53  ;;  %12575 = vmatpush3.bf16.msra.mxu1 %v12574_v55 }
 0x585   : > { %5690 = vmatmul.mubr.f32.vlgmr.msra.gmra.mrb[36].mxu0 %v5464_v56  ;;  %5760 = vmatmul.mubr.f32.vlgmr.msra.gmra.mrb[38].mxu1 %v5472_v57 }
 0x586   : > { %5904 = vmatprep.mubr.f32.mxu0 %v16396_v58  ;;  %5975 = vmatprep.mubr.f32.mxu1 %v16396_v58 }
 0x5a8   : > { %v3975_v3 = vpop.f32.mrb[18].mxu0  ;;  %v4046_v62 = vpop.f32.mrb[20].mxu1 }
 0x5a9   : > { %v15096_v0 = vadd.f32 %v3975_v3, %v13845_v10  ;;  %v15099_v26 = vadd.f32 %v4046_v62, %v13847_v12  ;;  %v3977_v6 = vpop.f32.mrb[19].mxu0  ;;  %v4048_v20 = vpop.f32.mrb[21].mxu1 }
 0x5aa   : > { %v5077_v22 = vcombine.low %v3975_v3, %v3977_v6  ;;  %v15102_v31 = vadd.f32 %v3977_v6, %v13849_v17  ;;  %v5078_v23 = vcombine.low %v4046_v62, %v4048_v20  ;;  %v15105_v63 = vadd.f32 %v4048_v20, %v13851_v18 }
 0x5ac   : > { %v5087_v40 = vrot.slane %v5077_v22, %v13843_v9  ;;  %v5094_v43 = vrot.slane %v5078_v23, %v13843_v9 }
 0x5ae   : > { %v5109_v5 = vcombine.low %v5087_v40, %v5094_v43 }
 0x5b8   : > { %v4117_v10 = vpop.f32.mrb[20].mxu0  ;;  %v4188_v47 = vpop.f32.mrb[22].mxu1 }
 0x5b9   : > { %v15110_v12 = vadd.f32 %v4117_v10, %v13869_v59  ;;  %v15113_v14 = vadd.f32 %v4188_v47, %v13871_v60  ;;  %v4119_v17 = vpop.f32.mrb[21].mxu0  ;;  %v4190_v33 = vpop.f32.mrb[23].mxu1  ;;  %v5117_v59 = vrot.slane %v5109_v5, %v13843_v9 }
 0x5ba   : > { %v5079_v38 = vcombine.low %v4117_v10, %v4119_v17  ;;  %v15116_v18 = vadd.f32 %v4119_v17, %v13873_v2  ;;  %v5080_v1 = vcombine.low %v4188_v47, %v4190_v33  ;;  %v15119_v49 = vadd.f32 %v4190_v33, %v13875_v4 }
 0x5bc   : > { %v5101_v52 = vrot.slane %v5079_v38, %v13843_v9  ;;  %v5108_v53 = vrot.slane %v5080_v1, %v13843_v9  ;;  %v5805_v38 = vld [vmem:[%s16397_s10 + $0x108] sm:$0xff] }
 0x5be   : > { %v5110_v55 = vcombine.low %v5101_v52, %v5108_v53 }
 0x5c0   : > { %v5124_v60 = vrot.slane %v5110_v55, %v13843_v9  ;;  %v5804_v55 = vld [vmem:[%s16397_s10 + $0x100] sm:$0xff] }
 0x5c2   : > { %v5125_v56 = vcombine.low %v5117_v59, %v5124_v60  ;;  %v5775_v59 = vld [vmem:[%s16397_s10 + $0x18] sm:$0xff] }
 0x5c4   : > { %5277 = vst [vmem:[%s15126_s23] sm:$0xff] %v5125_v56 }
 0x5c8   : > { %v4259_v2 = vpop.f32.mrb[22].mxu0  ;;  %v4330_v57 = vpop.f32.mrb[24].mxu1 }
 0x5c9   : > { %v15130_v3 = vadd.f32 %v4259_v2, %v13901_v61  ;;  %v15133_v4 = vadd.f32 %v4330_v57, %v13903_v8  ;;  %v4261_v62 = vpop.f32.mrb[23].mxu0  ;;  %v4332_v6 = vpop.f32.mrb[25].mxu1 }
 0x5ca   : > { %v5126_v20 = vcombine.low %v4259_v2, %v4261_v62  ;;  %v15136_v22 = vadd.f32 %v4261_v62, %v13905_v13  ;;  %v5127_v23 = vcombine.low %v4330_v57, %v4332_v6  ;;  %v15139_v40 = vadd.f32 %v4332_v6, %v13909_v19  ;;  %v5773_v19 = vld [vmem:[%s16397_s10 + $0x8] sm:$0xff]  ;;  %v5806_v2 = vld [vmem:[%s16397_s10 + $0x110] sm:$0xff] }
 0x5cb   : > { %v12576_v60 = vpack.c.bf16 %v5805_v38, %v5773_v19 }
 0x5cc   : > { %v5136_v43 = vrot.slane %v5126_v20, %v13843_v9  ;;  %v5143_v5 = vrot.slane %v5127_v23, %v13843_v9  ;;  %v5777_v23 = vld [vmem:[%s16397_s10 + $0x28] sm:$0xff] }
 0x5cd   : > { %12577 = vmatprep.subr.bf16.mxu0 %v12576_v60 }
 0x5ce   : > { %v5158_v10 = vcombine.low %v5136_v43, %v5143_v5  ;;  %v5809_v43 = vld [vmem:[%s16397_s10 + $0x128] sm:$0xff] }
 0x5d8   : > { %v4401_v61 = vpop.f32.mrb[24].mxu0  ;;  %v4472_v47 = vpop.f32.mrb[26].mxu1 }
 0x5d9   : > { %v15144_v8 = vadd.f32 %v4401_v61, %v13925_v39  ;;  %v15147_v17 = vadd.f32 %v4472_v47, %v13927_v44  ;;  %v4403_v33 = vpop.f32.mrb[25].mxu0  ;;  %v4474_v13 = vpop.f32.mrb[27].mxu1  ;;  %v5772_v44 = vld [vmem:[%s16397_s10] sm:$0xff] }
 0x5da   : > { %v5128_v1 = vcombine.low %v4401_v61, %v4403_v33  ;;  %v15156_v52 = vadd.f32 %v4403_v33, %v13929_v45  ;;  %v5129_v53 = vcombine.low %v4472_v47, %v4474_v13  ;;  %v15159_v39 = vadd.f32 %v4474_v13, %v13933_v48  ;;  %v5807_v45 = vld [vmem:[%s16397_s10 + $0x118] sm:$0xff]  ;;  %v5774_v48 = vld [vmem:[%s16397_s10 + $0x10] sm:$0xff] }
 0x5db   : > { %v12578_v56 = vpack.c.bf16 %v5804_v55, %v5772_v44  ;;  %v12580_v6 = vpack.c.bf16 %v5807_v45, %v5775_v59  ;;  %v12582_v20 = vpack.c.bf16 %v5806_v2, %v5774_v48  ;;  %v12584_v61 = vpack.c.bf16 %v5809_v43, %v5777_v23  ;;  %v5779_v47 = vld [vmem:[%s16397_s10 + $0x38] sm:$0xff] }
 0x5dc   : > { %v5150_v57 = vrot.slane %v5128_v1, %v13843_v9  ;;  %v5157_v62 = vrot.slane %v5129_v53, %v13843_v9  ;;  %v5811_v33 = vld [vmem:[%s16397_s10 + $0x138] sm:$0xff]  ;;  %v5166_v13 = vrot.slane %v5158_v10, %v13843_v9 }
 0x5dd   : > { %12579 = vmatpush1.bf16.msra.mxu0 %v12578_v56  ;;  %12581 = vmatprep.subr.bf16.mxu1 %v12580_v6  ;;  %v12588_v38 = vpack.c.bf16 %v5811_v33, %v5779_v47 }
 0x5de   : > { %v5159_v5 = vcombine.low %v5150_v57, %v5157_v62  ;;  %12583 = vmatpush1.bf16.msra.mxu1 %v12582_v20  ;;  %12585 = vmatprep.subr.bf16.mxu0 %v12584_v61 }
 0x5df   : > { %12589 = vmatprep.subr.bf16.mxu1 %v12588_v38 }
 0x5e0   : > { %v5173_v19 = vrot.slane %v5159_v5, %v13843_v9 }
 0x5e2   : > { %v5174_v1 = vcombine.low %v5166_v13, %v5173_v19 }
 0x5e4   : > { %5278 = vst [vmem:[%s15126_s23 + $0x8] sm:$0xff] %v5174_v1 }
 0x5e8   : > { %v4543_v53 = vpop.f32.mrb[26].mxu0  ;;  %v4614_v44 = vpop.f32.mrb[28].mxu1 }
 0x5e9   : > { %v15197_v55 = vadd.f32 %v4543_v53, %v13986_v27  ;;  %v15200_v59 = vadd.f32 %v4614_v44, %v13990_v32  ;;  %v4545_v60 = vpop.f32.mrb[27].mxu0  ;;  %v4616_v56 = vpop.f32.mrb[29].mxu1 }
 0x5ea   : > { %v5175_v45 = vcombine.low %v4543_v53, %v4545_v60  ;;  %v15203_v10 = vadd.f32 %v4545_v60, %v13992_v34  ;;  %v5176_v48 = vcombine.low %v4614_v44, %v4616_v56  ;;  %v15206_v2 = vadd.f32 %v4616_v56, %v13996_v37 }
 0x5ec   : > { %v5185_v57 = vrot.slane %v5175_v45, %v13843_v9  ;;  %v5192_v62 = vrot.slane %v5176_v48, %v13843_v9 }
 0x5ee   : > { %v5207_v6 = vcombine.low %v5185_v57, %v5192_v62 }
 0x5f8   : > { %v4685_v27 = vpop.f32.mrb[28].mxu0  ;;  %v4756_v20 = vpop.f32.mrb[30].mxu1 }
 0x5f9   : > { %v15211_v32 = vadd.f32 %v4685_v27, %v14054_v15  ;;  %v15214_v23 = vadd.f32 %v4756_v20, %v14056_v16  ;;  %v4687_v34 = vpop.f32.mrb[29].mxu0  ;;  %v4758_v43 = vpop.f32.mrb[31].mxu1  ;;  %v5215_v15 = vrot.slane %v5207_v6, %v13843_v9 }
 0x5fa   : > { %v5177_v5 = vcombine.low %v4685_v27, %v4687_v34  ;;  %v15217_v37 = vadd.f32 %v4687_v34, %v14058_v7  ;;  %v5178_v61 = vcombine.low %v4756_v20, %v4758_v43  ;;  %v15220_v47 = vadd.f32 %v4758_v43, %v14062_v21 }
 0x5fc   : > { %v5199_v33 = vrot.slane %v5177_v5, %v13843_v9  ;;  %v5206_v13 = vrot.slane %v5178_v61, %v13843_v9 }
 0x5fe   : > { %v5208_v19 = vcombine.low %v5199_v33, %v5206_v13 }
 0x600   : > { %v5222_v16 = vrot.slane %v5208_v19, %v13843_v9 }
 0x602   : > { %v5223_v38 = vcombine.low %v5215_v15, %v5222_v16 }
 0x604   : > { %5279 = vst [vmem:[%s15126_s23 + $0x10] sm:$0xff] %v5223_v38 }
 0x608   : > { %v4827_v1 = vpop.f32.mrb[30].mxu0  ;;  %v4898_v53 = vpop.f32.mrb[32].mxu1 }
 0x609   : > { %v15228_v7 = vadd.f32 %v4827_v1, %v14146_v42  ;;  %v15231_v44 = vadd.f32 %v4898_v53, %v14157_v51  ;;  %v4829_v21 = vpop.f32.mrb[31].mxu0  ;;  %v4900_v60 = vpop.f32.mrb[33].mxu1 }
 0x60a   : > { %v5224_v56 = vcombine.low %v4827_v1, %v4829_v21  ;;  %v15234_v45 = vadd.f32 %v4829_v21, %v14159_v46  ;;  %v5225_v48 = vcombine.low %v4898_v53, %v4900_v60  ;;  %v15237_v57 = vadd.f32 %v4900_v60, %v14172_v28 }
 0x60c   : > { %v5234_v62 = vrot.slane %v5224_v56, %v13843_v9  ;;  %v5241_v6 = vrot.slane %v5225_v48, %v13843_v9 }
 0x60e   : > { %v5256_v27 = vcombine.low %v5234_v62, %v5241_v6 }
 0x618   : > { %v4969_v42 = vpop.f32.mrb[32].mxu0  ;;  %v5040_v20 = vpop.f32.mrb[34].mxu1 }
 0x619   : > { %v15242_v51 = vadd.f32 %v4969_v42, %v14198_v24  ;;  %v15245_v34 = vadd.f32 %v5040_v20, %v14200_v25  ;;  %v4971_v46 = vpop.f32.mrb[33].mxu0  ;;  %v5042_v43 = vpop.f32.mrb[35].mxu1  ;;  %v5264_v24 = vrot.slane %v5256_v27, %v13843_v9  ;;  %v5776_v27 = vld [vmem:[%s16397_s10 + $0x20] sm:$0xff] }
 0x61a   : > { %v5226_v5 = vcombine.low %v4969_v42, %v4971_v46  ;;  %v15248_v28 = vadd.f32 %v4971_v46, %v14202_v30  ;;  %v5227_v61 = vcombine.low %v5040_v20, %v5042_v43  ;;  %v15251_v33 = vadd.f32 %v5042_v43, %v14206_v35 }
 0x61b   : > { %16398 = vst [vmem:[#allocation35_spill] sm:$0xff] %v15242_v51  ;;  %16399 = vst [vmem:[#allocation36_spill] sm:$0xff] %v15245_v34  ;;  %v5443_v30 = vstv %s10458_s26  ;;  %v7330_v34 = vld [vmem:[%s15429_s21 + $0x2b0] sm:$0xff]  ;;  %v7331_v51 = vld [vmem:[%s15429_s21 + $0x2b8] sm:$0xff]  ;;  %s16037_s26 = scalar_lea.sflag [#allocation15], %s16348_s2 }
 0x61c   : > { %16400 = vst [vmem:[#allocation37_spill] sm:$0xff] %v15248_v28  ;;  %16401 = vst [vmem:[#allocation38_spill] sm:$0xff] %v15251_v33  ;;  %v5248_v13 = vrot.slane %v5226_v5, %v13843_v9  ;;  %v5255_v19 = vrot.slane %v5227_v61, %v13843_v9  ;;  %v5808_v5 = vld [vmem:[%s16397_s10 + $0x120] sm:$0xff]  ;;  %v5778_v61 = vld [vmem:[%s16397_s10 + $0x30] sm:$0xff] }
 0x61d   : > { %v7266_v33 = vld [vmem:[%s15429_s21 + $0xb0] sm:$0xff]  ;;  %v7267_v28 = vld [vmem:[%s15429_s21 + $0xb8] sm:$0xff] }
 0x61e   : > { %v5257_v15 = vcombine.low %v5248_v13, %v5255_v19  ;;  %v5810_v13 = vld [vmem:[%s16397_s10 + $0x130] sm:$0xff] }
 0x620   : > { %v5271_v25 = vrot.slane %v5257_v15, %v13843_v9  ;;  %v5781_v15 = vld [vmem:[%s16397_s10 + $0x48] sm:$0xff] }
 0x622   : > { %v5272_v16 = vcombine.low %v5264_v24, %v5271_v25  ;;  %v5813_v24 = vld [vmem:[%s16397_s10 + $0x148] sm:$0xff]  ;;  %v12586_v25 = vpack.c.bf16 %v5808_v5, %v5776_v27  ;;  %v5787_v27 = vld [vmem:[%s16397_s10 + $0x78] sm:$0xff]  ;;  %v5784_v5 = vld [vmem:[%s16397_s10 + $0x60] sm:$0xff] }
 0x624   : > { %5280 = vst [vmem:[%s15126_s23 + $0x18] sm:$0xff] %v5272_v16  ;;  %v12590_v16 = vpack.c.bf16 %v5810_v13, %v5778_v61  ;;  %v5816_v61 = vld [vmem:[%s16397_s10 + $0x160] sm:$0xff] }
 0x638   : > { %v10652_v38 = vpop.f32.mrb[34].mxu0  ;;  %v10687_v1 = vpop.f32.mrb[36].mxu1 }
 0x639   : > { %v10653_v53 = vpop.f32.mrb[35].mxu0  ;;  %v10688_v21 = vpop.f32.mrb[37].mxu1 }
 0x63a   : > { %v10654_v60 = vadd.f32 %v10653_v53, %v10652_v38  ;;  %v10689_v35 = vadd.f32 %v10688_v21, %v10687_v1  ;;  %v5780_v38 = vld [vmem:[%s16397_s10 + $0x40] sm:$0xff]  ;;  %v5783_v53 = vld [vmem:[%s16397_s10 + $0x58] sm:$0xff] }
 0x63b   : > { %v5815_v21 = vld [vmem:[%s16397_s10 + $0x158] sm:$0xff] }
 0x63c   : > { %v5552_v56 = vadd.f32 %v10654_v60, %v5443_v30  ;;  %v5812_v30 = vld [vmem:[%s16397_s10 + $0x140] sm:$0xff]  ;;  %v12592_v60 = vpack.c.bf16 %v5813_v24, %v5781_v15  ;;  %v5818_v15 = vld [vmem:[%s16397_s10 + $0x170] sm:$0xff] }
 0x63e   : > { %v5622_v48 = vadd.f32 %v10689_v35, %v5552_v56  ;;  %v5782_v35 = vld [vmem:[%s16397_s10 + $0x50] sm:$0xff] }
 0x63f   : > { %v5814_v56 = vld [vmem:[%s16397_s10 + $0x150] sm:$0xff] }
 0x658   : > { %v10722_v62 = vpop.f32.mrb[36].mxu0  ;;  %v10757_v6 = vpop.f32.mrb[38].mxu1 }
 0x659   : > { %v10723_v42 = vpop.f32.mrb[37].mxu0  ;;  %v10758_v20 = vpop.f32.mrb[39].mxu1 }
 0x65a   : > { %v10724_v46 = vadd.f32 %v10723_v42, %v10722_v62  ;;  %v10759_v43 = vadd.f32 %v10758_v20, %v10757_v6  ;;  %v5785_v62 = vld [vmem:[%s16397_s10 + $0x68] sm:$0xff]  ;;  %v12594_v42 = vpack.c.bf16 %v5812_v30, %v5780_v38  ;;  %v12596_v20 = vpack.c.bf16 %v5815_v21, %v5783_v53  ;;  %v5791_v30 = vld [vmem:[%s16397_s10 + $0x98] sm:$0xff] }
 0x65b   : > { %v5817_v6 = vld [vmem:[%s16397_s10 + $0x168] sm:$0xff]  ;;  %v12602_v38 = vpack.c.bf16 %v5816_v61, %v5784_v5  ;;  %v5823_v53 = vld [vmem:[%s16397_s10 + $0x198] sm:$0xff]  ;;  %v5792_v61 = vld [vmem:[%s16397_s10 + $0xa0] sm:$0xff] }
 0x65c   : > { %v5692_v19 = vadd.f32 %v10724_v46, %v5622_v48  ;;  %v5819_v46 = vld [vmem:[%s16397_s10 + $0x178] sm:$0xff]  ;;  %v12600_v13 = vpack.c.bf16 %v5817_v6, %v5785_v62  ;;  %v5822_v62 = vld [vmem:[%s16397_s10 + $0x190] sm:$0xff]  ;;  %v12612_v6 = vpack.c.bf16 %v5823_v53, %v5791_v30 }
 0x65d   : > { %v12604_v24 = vpack.c.bf16 %v5819_v46, %v5787_v27  ;;  %v5795_v46 = vld [vmem:[%s16397_s10 + $0xb8] sm:$0xff] }
 0x65e   : > { %v15279_v1 = vadd.f32 %v10759_v43, %v5692_v19  ;;  %v12598_v43 = vpack.c.bf16 %v5814_v56, %v5782_v35  ;;  %v5786_v19 = vld [vmem:[%s16397_s10 + $0x70] sm:$0xff]  ;;  %v5820_v35 = vld [vmem:[%s16397_s10 + $0x180] sm:$0xff]  ;;  %v5799_v53 = vld [vmem:[%s16397_s10 + $0xd8] sm:$0xff] }
 0x65f   : > { %v12606_v21 = vpack.c.bf16 %v5818_v15, %v5786_v19  ;;  %v5794_v15 = vld [vmem:[%s16397_s10 + $0xb0] sm:$0xff] }
 0x660   : > { %10459 = vmatmul.mubr.msk.f32.vlgmr.msra.gmra.mrb[38].mxu0 %vm5836_vm4, %v15279_v1  ;;  %10460 = vmatmul.mubr.msk.f32.vlgmr.msra.gmra.mrb[40].mxu1 %vm5836_vm4, %v15279_v1  ;;  %v5766_v48 = vsel %vm5765_vm5, %v15279_v1, 0.0 }
 0x661   : > { %12587 = vmatpush1.bf16.msra.mxu0 %v12586_v25  ;;  %12591 = vmatpush1.bf16.msra.mxu1 %v12590_v16  ;;  %v5789_v25 = vld [vmem:[%s16397_s10 + $0x88] sm:$0xff] }
 0x662   : > { %5767 = vadd.xlane.f32.xlu1 %v5766_v48  ;;  %6046 = vmatprep.mubr.f32.mxu0 %v16396_v58  ;;  %v5821_v16 = vld [vmem:[%s16397_s10 + $0x188] sm:$0xff]  ;;  %v5790_v48 = vld [vmem:[%s16397_s10 + $0x90] sm:$0xff] }
 0x663   : > { %6117 = vmatprep.mubr.f32.mxu1 %v16396_v58  ;;  %12593 = vmatprep.subr.bf16.mxu0 %v12592_v60  ;;  %v5788_v60 = vld [vmem:[%s16397_s10 + $0x80] sm:$0xff]  ;;  %v12608_v56 = vpack.c.bf16 %v5821_v16, %v5789_v25  ;;  %v12614_v5 = vpack.c.bf16 %v5822_v62, %v5790_v48  ;;  %v5797_v16 = vld [vmem:[%s16397_s10 + $0xc8] sm:$0xff]  ;;  %v5798_v62 = vld [vmem:[%s16397_s10 + $0xd0] sm:$0xff] }
 0x664   : > { %10461 = vmatmul.mubr.msk.f32.vlgmr.msra.gmra.mrb[40].mxu0 %vm5836_vm4, %v15279_v1  ;;  %10462 = vmatmul.mubr.msk.f32.vlgmr.msra.gmra.mrb[42].mxu1 %vm5836_vm4, %v15279_v1  ;;  %v12610_v27 = vpack.c.bf16 %v5820_v35, %v5788_v60  ;;  %v5796_v35 = vld [vmem:[%s16397_s10 + $0xc0] sm:$0xff] }
 0x665   : > { %12595 = vmatpush1.bf16.msra.mxu0 %v12594_v42  ;;  %12597 = vmatprep.subr.bf16.mxu1 %v12596_v20  ;;  %v5793_v42 = vld [vmem:[%s16397_s10 + $0xa8] sm:$0xff] }
 0x666   : > { %12599 = vmatpush1.bf16.msra.mxu1 %v12598_v43  ;;  %6188 = vmatprep.mubr.f32.mxu0 %v16396_v58  ;;  %v5825_v20 = vld [vmem:[%s16397_s10 + $0x1a8] sm:$0xff]  ;;  %v5827_v43 = vld [vmem:[%s16397_s10 + $0x1b8] sm:$0xff] }
 0x667   : > { %6259 = vmatprep.mubr.f32.mxu1 %v16396_v58  ;;  %12601 = vmatprep.subr.bf16.mxu0 %v12600_v13  ;;  %v5824_v13 = vld [vmem:[%s16397_s10 + $0x1a0] sm:$0xff]  ;;  %v12616_v19 = vpack.c.bf16 %v5825_v20, %v5793_v42  ;;  %v12620_v25 = vpack.c.bf16 %v5827_v43, %v5795_v46  ;;  %v5801_v20 = vld [vmem:[%s16397_s10 + $0xe8] sm:$0xff]  ;;  %v5803_v43 = vld [vmem:[%s16397_s10 + $0xf8] sm:$0xff] }
 0x668   : > { %10463 = vmatmul.mubr.msk.f32.vlgmr.msra.gmra.mrb[42].mxu0 %vm5836_vm4, %v15279_v1  ;;  %12605 = vmatprep.subr.bf16.mxu1 %v12604_v24  ;;  %v5826_v24 = vld [vmem:[%s16397_s10 + $0x1b0] sm:$0xff]  ;;  %v12618_v30 = vpack.c.bf16 %v5824_v13, %v5792_v61  ;;  %v5800_v13 = vld [vmem:[%s16397_s10 + $0xe0] sm:$0xff] }
 0x669   : > { %10464 = vmatmul.mubr.msk.f32.vlgmr.msra.gmra.mrb[44].mxu1 %vm5836_vm4, %v15279_v1  ;;  %12603 = vmatpush1.bf16.msra.mxu0 %v12602_v38  ;;  %v5829_v38 = vld [vmem:[%s16397_s10 + $0x1c8] sm:$0xff]  ;;  %v12622_v60 = vpack.c.bf16 %v5826_v24, %v5794_v15  ;;  %v5802_v24 = vld [vmem:[%s16397_s10 + $0xf0] sm:$0xff] }
 0x66a   : > { %12607 = vmatpush1.bf16.msra.mxu1 %v12606_v21  ;;  %6330 = vmatprep.mubr.f32.mxu0 %v16396_v58  ;;  %v5831_v21 = vld [vmem:[%s16397_s10 + $0x1d8] sm:$0xff]  ;;  %v12624_v48 = vpack.c.bf16 %v5829_v38, %v5797_v16  ;;  %v7260_v38 = vld [vmem:[%s15429_s21 + $0x80] sm:$0xff] }
 0x66b   : > { %6401 = vmatprep.mubr.f32.mxu1 %v16396_v58  ;;  %12609 = vmatprep.subr.bf16.mxu0 %v12608_v56  ;;  %v5828_v56 = vld [vmem:[%s16397_s10 + $0x1c0] sm:$0xff]  ;;  %v12628_v42 = vpack.c.bf16 %v5831_v21, %v5799_v53 }
 0x66c   : > { %10465 = vmatmul.mubr.msk.f32.vlgmr.msra.gmra.mrb[44].mxu0 %vm5836_vm4, %v15279_v1  ;;  %12613 = vmatprep.subr.bf16.mxu1 %v12612_v6  ;;  %v5830_v6 = vld [vmem:[%s16397_s10 + $0x1d0] sm:$0xff]  ;;  %v12626_v46 = vpack.c.bf16 %v5828_v56, %v5796_v35  ;;  %v7292_v21 = vld [vmem:[%s15429_s21 + $0x180] sm:$0xff] }
 0x66d   : > { %10466 = vmatmul.mubr.msk.f32.vlgmr.msra.gmra.mrb[46].mxu1 %vm5836_vm4, %v15279_v1  ;;  %12611 = vmatpush1.bf16.msra.mxu0 %v12610_v27  ;;  %v5833_v27 = vld [vmem:[%s16397_s10 + $0x1e8] sm:$0xff]  ;;  %v12630_v61 = vpack.c.bf16 %v5830_v6, %v5798_v62  ;;  %v7244_v56 = vld [vmem:[%s15429_s21] sm:$0xff] }
 0x66e   : > { %12615 = vmatpush1.bf16.msra.mxu1 %v12614_v5  ;;  %6472 = vmatprep.mubr.f32.mxu0 %v16396_v58  ;;  %v5835_v5 = vld [vmem:[%s16397_s10 + $0x1f8] sm:$0xff]  ;;  %v12632_v15 = vpack.c.bf16 %v5833_v27, %v5801_v20  ;;  %v7276_v62 = vld [vmem:[%s15429_s21 + $0x100] sm:$0xff]  ;;  %v7262_v20 = vld [vmem:[%s15429_s21 + $0x90] sm:$0xff] }
 0x66f   : > { %6543 = vmatprep.mubr.f32.mxu1 %v16396_v58  ;;  %12617 = vmatprep.subr.bf16.mxu0 %v12616_v19  ;;  %v5832_v19 = vld [vmem:[%s16397_s10 + $0x1e0] sm:$0xff]  ;;  %v12636_v16 = vpack.c.bf16 %v5835_v5, %v5803_v43  ;;  %v7263_v27 = vld [vmem:[%s15429_s21 + $0x98] sm:$0xff]  ;;  %v7294_v43 = vld [vmem:[%s15429_s21 + $0x190] sm:$0xff] }
 0x670   : > { %10467 = vmatmul.mubr.msk.f32.vlgmr.msra.gmra.mrb[46].mxu0 %vm5836_vm4, %v15279_v1  ;;  %12621 = vmatprep.subr.bf16.mxu1 %v12620_v25  ;;  %v5834_v25 = vld [vmem:[%s16397_s10 + $0x1f0] sm:$0xff]  ;;  %v12634_v53 = vpack.c.bf16 %v5832_v19, %v5800_v13  ;;  %v7295_v5 = vld [vmem:[%s15429_s21 + $0x198] sm:$0xff] }
 0x671   : > { %10468 = vmatmul.mubr.msk.f32.vlgmr.msra.gmra.mrb[48].mxu1 %vm5836_vm4, %v15279_v1  ;;  %12619 = vmatpush1.bf16.msra.mxu0 %v12618_v30  ;;  %v7261_v30 = vld [vmem:[%s15429_s21 + $0x88] sm:$0xff]  ;;  %v12638_v35 = vpack.c.bf16 %v5834_v25, %v5802_v24  ;;  %v7246_v24 = vld [vmem:[%s15429_s21 + $0x10] sm:$0xff]  ;;  %v7247_v25 = vld [vmem:[%s15429_s21 + $0x18] sm:$0xff] }
 0x672   : > { %12623 = vmatpush1.bf16.msra.mxu1 %v12622_v60  ;;  %6614 = vmatprep.mubr.f32.mxu0 %v16396_v58  ;;  %v7293_v60 = vld [vmem:[%s15429_s21 + $0x188] sm:$0xff]  ;;  %v12640_v6 = vpack.c.bf16 %v7261_v30, %v7260_v38  ;;  %v12676_v38 = vpack.c.bf16 %v7295_v5, %v7294_v43  ;;  %v7279_v30 = vld [vmem:[%s15429_s21 + $0x118] sm:$0xff] }
 0x673   : > { %6685 = vmatprep.mubr.f32.mxu1 %v16396_v58  ;;  %12625 = vmatprep.subr.bf16.mxu0 %v12624_v48  ;;  %v7245_v48 = vld [vmem:[%s15429_s21 + $0x8] sm:$0xff] }
 0x674   : > { %10469 = vmatmul.mubr.msk.f32.vlgmr.msra.gmra.mrb[48].mxu0 %vm5836_vm4, %v15279_v1  ;;  %12629 = vmatprep.subr.bf16.mxu1 %v12628_v42  ;;  %v7277_v42 = vld [vmem:[%s15429_s21 + $0x108] sm:$0xff]  ;;  %v12642_v13 = vpack.c.bf16 %v7245_v48, %v7244_v56 }
 0x675   : > { %10470 = vmatmul.mubr.msk.f32.vlgmr.msra.gmra.mrb[50].mxu1 %vm5836_vm4, %v15279_v1  ;;  %12627 = vmatpush1.bf16.msra.mxu0 %v12626_v46  ;;  %v12672_v46 = vpack.c.bf16 %v7293_v60, %v7292_v21  ;;  %v12674_v19 = vpack.c.bf16 %v7277_v42, %v7276_v62  ;;  %v7264_v21 = vld [vmem:[%s15429_s21 + $0xa0] sm:$0xff]  ;;  %v7297_v56 = vld [vmem:[%s15429_s21 + $0x1a8] sm:$0xff]  ;;  %v12646_v62 = vpack.c.bf16 %v7247_v25, %v7246_v24  ;;  %v7250_v25 = vld [vmem:[%s15429_s21 + $0x30] sm:$0xff] }
 0x676   : > { %12631 = vmatpush1.bf16.msra.mxu1 %v12630_v61  ;;  %6756 = vmatprep.mubr.f32.mxu0 %v16396_v58  ;;  %v15473_v61 = vld [vmem:[#allocation9] sm:$0xff]  ;;  %v12652_v24 = vpack.c.bf16 %v7267_v28, %v7266_v33 }
 0x677   : > { %6827 = vmatprep.mubr.f32.mxu1 %v16396_v58  ;;  %12633 = vmatprep.subr.bf16.mxu0 %v12632_v15  ;;  %v12644_v15 = vpack.c.bf16 %v7263_v27, %v7262_v20  ;;  %v7513_v60 = vrot.slane %v15473_v61, %v13731_v11  ;;  %v7521_v48 = vrot.slane %v15473_v61, %v14011_v50  ;;  %v7248_v20 = vld [vmem:[%s15429_s21 + $0x20] sm:$0xff]  ;;  %v7249_v27 = vld [vmem:[%s15429_s21 + $0x28] sm:$0xff] }
 0x678   : > { %10471 = vmatmul.mubr.msk.f32.vlgmr.msra.gmra.mrb[50].mxu0 %vm5836_vm4, %v15279_v1  ;;  %12637 = vmatprep.subr.bf16.mxu1 %v12636_v16  ;;  %v7278_v16 = vld [vmem:[%s15429_s21 + $0x110] sm:$0xff]  ;;  %v7281_v5 = vld [vmem:[%s15429_s21 + $0x128] sm:$0xff] }
 0x679   : > { %10472 = vmatmul.mubr.msk.f32.vlgmr.msra.gmra.mrb[52].mxu1 %vm5836_vm4, %v15279_v1  ;;  %12635 = vmatpush1.bf16.msra.mxu0 %v12634_v53  ;;  %v7265_v53 = vld [vmem:[%s15429_s21 + $0xa8] sm:$0xff] }
 0x67a   : > { %12639 = vmatpush1.bf16.msra.mxu1 %v12638_v35  ;;  %6898 = vmatprep.mubr.f32.mxu0 %v16396_v58  ;;  %v7296_v35 = vld [vmem:[%s15429_s21 + $0x1a0] sm:$0xff]  ;;  %v12648_v42 = vpack.c.bf16 %v7265_v53, %v7264_v21  ;;  %v7283_v21 = vld [vmem:[%s15429_s21 + $0x138] sm:$0xff] }
 0x67b   : > { %6969 = vmatprep.mubr.f32.mxu1 %v16396_v58  ;;  %12641 = vmatprep.subr.bf16.mxu0 %v12640_v6  ;;  %v12678_v6 = vpack.c.bf16 %v7279_v30, %v7278_v16  ;;  %v12680_v43 = vpack.c.bf16 %v7297_v56, %v7296_v35  ;;  %v7251_v16 = vld [vmem:[%s15429_s21 + $0x38] sm:$0xff]  ;;  %v7268_v53 = vld [vmem:[%s15429_s21 + $0xc0] sm:$0xff]  ;;  %v7301_v56 = vld [vmem:[%s15429_s21 + $0x1c8] sm:$0xff] }
 0x67c   : > { %10473 = vmatmul.mubr.msk.f32.vlgmr.msra.gmra.mrb[52].mxu0 %vm5836_vm4, %v15279_v1  ;;  %12673 = vmatprep.subr.bf16.mxu1 %v12672_v46  ;;  %v7280_v46 = vld [vmem:[%s15429_s21 + $0x120] sm:$0xff]  ;;  %v12654_v28 = vpack.c.bf16 %v7251_v16, %v7250_v25  ;;  %v7255_v25 = vld [vmem:[%s15429_s21 + $0x58] sm:$0xff]  ;;  %v7286_v16 = vld [vmem:[%s15429_s21 + $0x150] sm:$0xff] }
 0x67d   : > { %10474 = vmatmul.mubr.msk.f32.vlgmr.msra.gmra.mrb[54].mxu1 %vm5836_vm4, %v15279_v1  ;;  %12643 = vmatpush3.bf16.msra.mxu0 %v12642_v13  ;;  %v7298_v1 = vld [vmem:[%s15429_s21 + $0x1b0] sm:$0xff]  ;;  %v7299_v13 = vld [vmem:[%s15429_s21 + $0x1b8] sm:$0xff]  ;;  %v7300_v35 = vld [vmem:[%s15429_s21 + $0x1c0] sm:$0xff] }
 0x67e   : > { %12675 = vmatpush3.bf16.msra.mxu1 %v12674_v19  ;;  %12645 = vmatprep.subr.bf16.mxu0 %v12644_v15  ;;  %v12650_v19 = vpack.c.bf16 %v7249_v27, %v7248_v20  ;;  %v12682_v15 = vpack.c.bf16 %v7281_v5, %v7280_v46  ;;  %v12684_v30 = vpack.c.bf16 %v7299_v13, %v7298_v1  ;;  %v7285_v27 = vld [vmem:[%s15429_s21 + $0x148] sm:$0xff]  ;;  %v7270_v46 = vld [vmem:[%s15429_s21 + $0xd0] sm:$0xff]  ;;  %v7303_v1 = vld [vmem:[%s15429_s21 + $0x1d8] sm:$0xff] }
 0x67f   : > { %12677 = vmatprep.subr.bf16.mxu1 %v12676_v38  ;;  %7650 = vmatprep.mubr.f32.mxu0 %v7513_v60  ;;  %v7282_v38 = vld [vmem:[%s15429_s21 + $0x130] sm:$0xff]  ;;  %v7269_v60 = vld [vmem:[%s15429_s21 + $0xc8] sm:$0xff]  ;;  %v12688_v20 = vpack.c.bf16 %v7301_v56, %v7300_v35 }
 0x680   : > { %7720 = vmatprep.mubr.f32.mxu1 %v7521_v48  ;;  %v12686_v33 = vpack.c.bf16 %v7283_v21, %v7282_v38  ;;  %v12656_v48 = vpack.c.bf16 %v7269_v60, %v7268_v53  ;;  %v7302_v5 = vld [vmem:[%s15429_s21 + $0x1d0] sm:$0xff]  ;;  %v7272_v21 = vld [vmem:[%s15429_s21 + $0xe0] sm:$0xff]  ;;  %v7273_v53 = vld [vmem:[%s15429_s21 + $0xe8] sm:$0xff] }
 0x681   : > { %12647 = vmatpush3.bf16.msra.mxu0 %v12646_v62  ;;  %v7252_v62 = vld [vmem:[%s15429_s21 + $0x40] sm:$0xff]  ;;  %v12692_v38 = vpack.c.bf16 %v7303_v1, %v7302_v5  ;;  %v7305_v35 = vld [vmem:[%s15429_s21 + $0x1e8] sm:$0xff]  ;;  %v7307_v5 = vld [vmem:[%s15429_s21 + $0x1f8] sm:$0xff] }
 0x682   : > { %12679 = vmatpush3.bf16.msra.mxu1 %v12678_v6  ;;  %12649 = vmatprep.subr.bf16.mxu0 %v12648_v42  ;;  %v7253_v6 = vld [vmem:[%s15429_s21 + $0x48] sm:$0xff]  ;;  %v7284_v42 = vld [vmem:[%s15429_s21 + $0x140] sm:$0xff] }
 0x683   : > { %12681 = vmatprep.subr.bf16.mxu1 %v12680_v43  ;;  %v7271_v43 = vld [vmem:[%s15429_s21 + $0xd8] sm:$0xff]  ;;  %v12658_v13 = vpack.c.bf16 %v7253_v6, %v7252_v62  ;;  %v7304_v60 = vld [vmem:[%s15429_s21 + $0x1e0] sm:$0xff]  ;;  %v7257_v62 = vld [vmem:[%s15429_s21 + $0x68] sm:$0xff] }
 0x684   : > { %v7288_v6 = vld [vmem:[%s15429_s21 + $0x160] sm:$0xff] }
 0x685   : > { %12651 = vmatpush3.bf16.msra.mxu0 %v12650_v19  ;;  %v12690_v19 = vpack.c.bf16 %v7285_v27, %v7284_v42  ;;  %v12696_v42 = vpack.c.bf16 %v7305_v35, %v7304_v60  ;;  %v7274_v27 = vld [vmem:[%s15429_s21 + $0xf0] sm:$0xff]  ;;  %v7357_v60 = vld [vmem:[%s15429_s21 + $0x388] sm:$0xff] }
 0x686   : > { %12683 = vmatpush3.bf16.msra.mxu1 %v12682_v15  ;;  %12653 = vmatprep.subr.bf16.mxu0 %v12652_v24  ;;  %v12660_v15 = vpack.c.bf16 %v7271_v43, %v7270_v46  ;;  %v7254_v24 = vld [vmem:[%s15429_s21 + $0x50] sm:$0xff]  ;;  %v7275_v46 = vld [vmem:[%s15429_s21 + $0xf8] sm:$0xff] }
 0x687   : > { %12685 = vmatprep.subr.bf16.mxu1 %v12684_v30  ;;  %v7287_v30 = vld [vmem:[%s15429_s21 + $0x158] sm:$0xff]  ;;  %v12662_v56 = vpack.c.bf16 %v7255_v25, %v7254_v24  ;;  %v7306_v43 = vld [vmem:[%s15429_s21 + $0x1f0] sm:$0xff] }
 0x688   : > { %v7259_v24 = vld [vmem:[%s15429_s21 + $0x78] sm:$0xff]  ;;  %v7290_v25 = vld [vmem:[%s15429_s21 + $0x170] sm:$0xff] }
 0x689   : > { %12655 = vmatpush3.bf16.msra.mxu0 %v12654_v28  ;;  %v12694_v28 = vpack.c.bf16 %v7287_v30, %v7286_v16  ;;  %v12700_v16 = vpack.c.bf16 %v7307_v5, %v7306_v43  ;;  %v7324_v30 = vld [vmem:[%s15429_s21 + $0x280] sm:$0xff]  ;;  %v7358_v43 = vld [vmem:[%s15429_s21 + $0x390] sm:$0xff]  ;;  %v7359_v5 = vld [vmem:[%s15429_s21 + $0x398] sm:$0xff] }
 0x68a   : > { %12687 = vmatpush3.bf16.msra.mxu1 %v12686_v33  ;;  %12657 = vmatprep.subr.bf16.mxu0 %v12656_v48  ;;  %v12664_v33 = vpack.c.bf16 %v7273_v53, %v7272_v21  ;;  %v7256_v48 = vld [vmem:[%s15429_s21 + $0x60] sm:$0xff]  ;;  %v7325_v21 = vld [vmem:[%s15429_s21 + $0x288] sm:$0xff] }
 0x68b   : > { %12689 = vmatprep.subr.bf16.mxu1 %v12688_v20  ;;  %v7289_v20 = vld [vmem:[%s15429_s21 + $0x168] sm:$0xff]  ;;  %v12666_v1 = vpack.c.bf16 %v7257_v62, %v7256_v48  ;;  %v7356_v53 = vld [vmem:[%s15429_s21 + $0x380] sm:$0xff] }
 0x68c   : > { %v7309_v48 = vld [vmem:[%s15429_s21 + $0x208] sm:$0xff]  ;;  %v7340_v62 = vld [vmem:[%s15429_s21 + $0x300] sm:$0xff] }
 0x68d   : > { %12659 = vmatpush3.bf16.msra.mxu0 %v12658_v13  ;;  %v12698_v13 = vpack.c.bf16 %v7289_v20, %v7288_v6  ;;  %v12736_v6 = vpack.c.bf16 %v7357_v60, %v7356_v53  ;;  %v7326_v20 = vld [vmem:[%s15429_s21 + $0x290] sm:$0xff]  ;;  %v7328_v53 = vld [vmem:[%s15429_s21 + $0x2a0] sm:$0xff]  ;;  %v7329_v60 = vld [vmem:[%s15429_s21 + $0x2a8] sm:$0xff] }
 0x68e   : > { %12691 = vmatpush3.bf16.msra.mxu1 %v12690_v19  ;;  %12661 = vmatprep.subr.bf16.mxu0 %v12660_v15  ;;  %v12668_v19 = vpack.c.bf16 %v7275_v46, %v7274_v27  ;;  %v7258_v15 = vld [vmem:[%s15429_s21 + $0x70] sm:$0xff]  ;;  %v7327_v27 = vld [vmem:[%s15429_s21 + $0x298] sm:$0xff]  ;;  %v7509_v46 = vrot.slane %v15473_v61, %v13807_v54 }
 0x68f   : > { %12693 = vmatprep.subr.bf16.mxu1 %v12692_v38  ;;  %v7291_v38 = vld [vmem:[%s15429_s21 + $0x178] sm:$0xff]  ;;  %v12670_v35 = vpack.c.bf16 %v7259_v24, %v7258_v15  ;;  %v12708_v24 = vpack.c.bf16 %v7327_v27, %v7326_v20  ;;  %v7312_v20 = vld [vmem:[%s15429_s21 + $0x220] sm:$0xff]  ;;  %v7313_v27 = vld [vmem:[%s15429_s21 + $0x228] sm:$0xff] }
 0x691   : > { %12663 = vmatpush3.bf16.msra.mxu0 %v12662_v56  ;;  %v12702_v56 = vpack.c.bf16 %v7291_v38, %v7290_v25  ;;  %v7310_v25 = vld [vmem:[%s15429_s21 + $0x210] sm:$0xff] }
 0x692   : > { %12695 = vmatpush3.bf16.msra.mxu1 %v12694_v28  ;;  %12665 = vmatprep.subr.bf16.mxu0 %v12664_v33  ;;  %v12704_v28 = vpack.c.bf16 %v7325_v21, %v7324_v30  ;;  %v7308_v33 = vld [vmem:[%s15429_s21 + $0x200] sm:$0xff]  ;;  %v7342_v38 = vld [vmem:[%s15429_s21 + $0x310] sm:$0xff]  ;;  %v12740_v30 = vpack.c.bf16 %v7359_v5, %v7358_v43  ;;  %v7343_v21 = vld [vmem:[%s15429_s21 + $0x318] sm:$0xff] }
 0x693   : > { %12697 = vmatprep.subr.bf16.mxu1 %v12696_v42  ;;  %v7341_v42 = vld [vmem:[%s15429_s21 + $0x308] sm:$0xff] }
 0x694   : > { %v12738_v15 = vpack.c.bf16 %v7341_v42, %v7340_v62  ;;  %v12712_v42 = vpack.c.bf16 %v7329_v60, %v7328_v53  ;;  %v7345_v5 = vld [vmem:[%s15429_s21 + $0x328] sm:$0xff]  ;;  %v7347_v53 = vld [vmem:[%s15429_s21 + $0x338] sm:$0xff]  ;;  %v7332_v60 = vld [vmem:[%s15429_s21 + $0x2c0] sm:$0xff] }
 0x695   : > { %12667 = vmatpush3.bf16.msra.mxu0 %v12666_v1  ;;  %v12706_v1 = vpack.c.bf16 %v7309_v48, %v7308_v33  ;;  %v16404_v33 = vld [vmem:[#allocation34_spill] sm:$0xff] }
 0x696   : > { %12699 = vmatpush3.bf16.msra.mxu1 %v12698_v13  ;;  %12669 = vmatprep.subr.bf16.mxu0 %v12668_v19  ;;  %v16403_v13 = vld [vmem:[#allocation33_spill] sm:$0xff]  ;;  %v7537_v48 = vrot.slane %v15473_v61, %v16404_v33 }
 0x697   : > { %12701 = vmatprep.subr.bf16.mxu1 %v12700_v16  ;;  %v7517_v19 = vrot.slane %v15473_v61, %v16403_v13  ;;  %v7311_v16 = vld [vmem:[%s15429_s21 + $0x218] sm:$0xff] }
 0x698   : > { %v12710_v62 = vpack.c.bf16 %v7311_v16, %v7310_v25  ;;  %v12716_v25 = vpack.c.bf16 %v7331_v51, %v7330_v34  ;;  %v7314_v16 = vld [vmem:[%s15429_s21 + $0x230] sm:$0xff] }
 0x699   : > { %12671 = vmatpush3.bf16.msra.mxu0 %v12670_v35  ;;  %v7529_v35 = vrot.slane %v15473_v61, %v15013_v41 }
 0x69a   : > { %12703 = vmatpush3.bf16.msra.mxu1 %v12702_v56  ;;  %12705 = vmatprep.subr.bf16.mxu0 %v12704_v28  ;;  %v7360_v56 = vld [vmem:[%s15429_s21 + $0x3a0] sm:$0xff]  ;;  %v7361_v28 = vld [vmem:[%s15429_s21 + $0x3a8] sm:$0xff] }
 0x69b   : > { %12737 = vmatprep.subr.bf16.mxu1 %v12736_v6  ;;  %v12742_v6 = vpack.c.bf16 %v7343_v21, %v7342_v38  ;;  %v12744_v43 = vpack.c.bf16 %v7361_v28, %v7360_v56  ;;  %v7315_v38 = vld [vmem:[%s15429_s21 + $0x238] sm:$0xff]  ;;  %v7364_v56 = vld [vmem:[%s15429_s21 + $0x3c0] sm:$0xff]  ;;  %v7365_v28 = vld [vmem:[%s15429_s21 + $0x3c8] sm:$0xff] }
 0x69c   : > { %7651 = vmatmul.mubr.f32.vlgmr.msra.gmra.mrb[54].mxu0 %v7509_v46  ;;  %v7344_v46 = vld [vmem:[%s15429_s21 + $0x320] sm:$0xff]  ;;  %v12718_v51 = vpack.c.bf16 %v7315_v38, %v7314_v16  ;;  %v7319_v16 = vld [vmem:[%s15429_s21 + $0x258] sm:$0xff]  ;;  %v7350_v38 = vld [vmem:[%s15429_s21 + $0x350] sm:$0xff] }
 0x69d   : > { %12707 = vmatpush3.bf16.msra.mxu0 %v12706_v1  ;;  %7721 = vmatmul.mubr.f32.vlgmr.msra.gmra.mrb[56].mxu1 %v7517_v19  ;;  %v7362_v1 = vld [vmem:[%s15429_s21 + $0x3b0] sm:$0xff]  ;;  %v7363_v19 = vld [vmem:[%s15429_s21 + $0x3b8] sm:$0xff] }
 0x69e   : > { %12739 = vmatpush3.bf16.msra.mxu1 %v12738_v15  ;;  %12709 = vmatprep.subr.bf16.mxu0 %v12708_v24  ;;  %v12714_v15 = vpack.c.bf16 %v7313_v27, %v7312_v20  ;;  %v12746_v24 = vpack.c.bf16 %v7345_v5, %v7344_v46  ;;  %v12748_v21 = vpack.c.bf16 %v7363_v19, %v7362_v1  ;;  %v7349_v27 = vld [vmem:[%s15429_s21 + $0x348] sm:$0xff]  ;;  %v7334_v46 = vld [vmem:[%s15429_s21 + $0x2d0] sm:$0xff]  ;;  %v7367_v1 = vld [vmem:[%s15429_s21 + $0x3d8] sm:$0xff] }
 0x69f   : > { %12741 = vmatprep.subr.bf16.mxu1 %v12740_v30  ;;  %7790 = vmatprep.mubr.f32.mxu0 %v7529_v35  ;;  %v7346_v30 = vld [vmem:[%s15429_s21 + $0x330] sm:$0xff]  ;;  %v7333_v35 = vld [vmem:[%s15429_s21 + $0x2c8] sm:$0xff]  ;;  %v12752_v20 = vpack.c.bf16 %v7365_v28, %v7364_v56 }
 0x6a0   : > { %7860 = vmatprep.mubr.f32.mxu1 %v7537_v48  ;;  %v12750_v34 = vpack.c.bf16 %v7347_v53, %v7346_v30  ;;  %v12720_v48 = vpack.c.bf16 %v7333_v35, %v7332_v60  ;;  %v7366_v5 = vld [vmem:[%s15429_s21 + $0x3d0] sm:$0xff]  ;;  %v7336_v53 = vld [vmem:[%s15429_s21 + $0x2e0] sm:$0xff]  ;;  %v7337_v60 = vld [vmem:[%s15429_s21 + $0x2e8] sm:$0xff] }
 0x6a1   : > { %12711 = vmatpush3.bf16.msra.mxu0 %v12710_v62  ;;  %v7316_v62 = vld [vmem:[%s15429_s21 + $0x240] sm:$0xff]  ;;  %v12756_v30 = vpack.c.bf16 %v7367_v1, %v7366_v5  ;;  %v7369_v56 = vld [vmem:[%s15429_s21 + $0x3e8] sm:$0xff]  ;;  %v7371_v5 = vld [vmem:[%s15429_s21 + $0x3f8] sm:$0xff] }
 0x6a2   : > { %12743 = vmatpush3.bf16.msra.mxu1 %v12742_v6  ;;  %12713 = vmatprep.subr.bf16.mxu0 %v12712_v42  ;;  %v7317_v6 = vld [vmem:[%s15429_s21 + $0x248] sm:$0xff]  ;;  %v7348_v42 = vld [vmem:[%s15429_s21 + $0x340] sm:$0xff] }
 0x6a3   : > { %12745 = vmatprep.subr.bf16.mxu1 %v12744_v43  ;;  %v7335_v43 = vld [vmem:[%s15429_s21 + $0x2d8] sm:$0xff]  ;;  %v12722_v19 = vpack.c.bf16 %v7317_v6, %v7316_v62  ;;  %v7368_v35 = vld [vmem:[%s15429_s21 + $0x3e0] sm:$0xff]  ;;  %v7321_v62 = vld [vmem:[%s15429_s21 + $0x268] sm:$0xff] }
 0x6a4   : > { %v7352_v6 = vld [vmem:[%s15429_s21 + $0x360] sm:$0xff] }
 0x6a5   : > { %12715 = vmatpush3.bf16.msra.mxu0 %v12714_v15  ;;  %v12754_v15 = vpack.c.bf16 %v7349_v27, %v7348_v42  ;;  %v12760_v42 = vpack.c.bf16 %v7369_v56, %v7368_v35  ;;  %v7338_v27 = vld [vmem:[%s15429_s21 + $0x2f0] sm:$0xff]  ;;  %v7421_v35 = vld [vmem:[%s15429_s21 + $0x588] sm:$0xff] }
 0x6a6   : > { %12747 = vmatpush3.bf16.msra.mxu1 %v12746_v24  ;;  %12717 = vmatprep.subr.bf16.mxu0 %v12716_v25  ;;  %v12724_v24 = vpack.c.bf16 %v7335_v43, %v7334_v46  ;;  %v7318_v25 = vld [vmem:[%s15429_s21 + $0x250] sm:$0xff]  ;;  %v7339_v46 = vld [vmem:[%s15429_s21 + $0x2f8] sm:$0xff] }
 0x6a7   : > { %12749 = vmatprep.subr.bf16.mxu1 %v12748_v21  ;;  %v7351_v21 = vld [vmem:[%s15429_s21 + $0x358] sm:$0xff]  ;;  %v12726_v28 = vpack.c.bf16 %v7319_v16, %v7318_v25  ;;  %v7370_v43 = vld [vmem:[%s15429_s21 + $0x3f0] sm:$0xff] }
 0x6a8   : > { %v7323_v25 = vld [vmem:[%s15429_s21 + $0x278] sm:$0xff]  ;;  %v7354_v16 = vld [vmem:[%s15429_s21 + $0x370] sm:$0xff] }
 0x6a9   : > { %12719 = vmatpush3.bf16.msra.mxu0 %v12718_v51  ;;  %v12758_v51 = vpack.c.bf16 %v7351_v21, %v7350_v38  ;;  %v12764_v38 = vpack.c.bf16 %v7371_v5, %v7370_v43  ;;  %v7388_v21 = vld [vmem:[%s15429_s21 + $0x480] sm:$0xff]  ;;  %v7422_v43 = vld [vmem:[%s15429_s21 + $0x590] sm:$0xff]  ;;  %v7423_v5 = vld [vmem:[%s15429_s21 + $0x598] sm:$0xff] }
 0x6aa   : > { %12751 = vmatpush3.bf16.msra.mxu1 %v12750_v34  ;;  %12721 = vmatprep.subr.bf16.mxu0 %v12720_v48  ;;  %v12728_v34 = vpack.c.bf16 %v7337_v60, %v7336_v53  ;;  %v7320_v48 = vld [vmem:[%s15429_s21 + $0x260] sm:$0xff]  ;;  %v7389_v53 = vld [vmem:[%s15429_s21 + $0x488] sm:$0xff] }
 0x6ab   : > { %12753 = vmatprep.subr.bf16.mxu1 %v12752_v20  ;;  %v7353_v20 = vld [vmem:[%s15429_s21 + $0x368] sm:$0xff]  ;;  %v12730_v1 = vpack.c.bf16 %v7321_v62, %v7320_v48  ;;  %v7420_v60 = vld [vmem:[%s15429_s21 + $0x580] sm:$0xff] }
 0x6ac   : > { %v7373_v48 = vld [vmem:[%s15429_s21 + $0x408] sm:$0xff]  ;;  %v7404_v62 = vld [vmem:[%s15429_s21 + $0x500] sm:$0xff] }
 0x6ad   : > { %12723 = vmatpush3.bf16.msra.mxu0 %v12722_v19  ;;  %v12762_v19 = vpack.c.bf16 %v7353_v20, %v7352_v6  ;;  %v12800_v6 = vpack.c.bf16 %v7421_v35, %v7420_v60  ;;  %v7390_v20 = vld [vmem:[%s15429_s21 + $0x490] sm:$0xff]  ;;  %v7392_v60 = vld [vmem:[%s15429_s21 + $0x4a0] sm:$0xff]  ;;  %v7393_v35 = vld [vmem:[%s15429_s21 + $0x4a8] sm:$0xff] }
 0x6ae   : > { %12755 = vmatpush3.bf16.msra.mxu1 %v12754_v15  ;;  %12725 = vmatprep.subr.bf16.mxu0 %v12724_v24  ;;  %v12732_v15 = vpack.c.bf16 %v7339_v46, %v7338_v27  ;;  %v7322_v24 = vld [vmem:[%s15429_s21 + $0x270] sm:$0xff]  ;;  %v7391_v27 = vld [vmem:[%s15429_s21 + $0x498] sm:$0xff]  ;;  %v7525_v46 = vrot.slane %v15473_v61, %v15084_v29 }
 0x6af   : > { %12757 = vmatprep.subr.bf16.mxu1 %v12756_v30  ;;  %v7355_v30 = vld [vmem:[%s15429_s21 + $0x378] sm:$0xff]  ;;  %v12734_v56 = vpack.c.bf16 %v7323_v25, %v7322_v24  ;;  %v12772_v25 = vpack.c.bf16 %v7391_v27, %v7390_v20  ;;  %v7409_v27 = vld [vmem:[%s15429_s21 + $0x528] sm:$0xff] }
 0x6b1   : > { %12727 = vmatpush3.bf16.msra.mxu0 %v12726_v28  ;;  %v12766_v28 = vpack.c.bf16 %v7355_v30, %v7354_v16  ;;  %v7374_v16 = vld [vmem:[%s15429_s21 + $0x410] sm:$0xff] }
 0x6b2   : > { %12759 = vmatpush3.bf16.msra.mxu1 %v12758_v51  ;;  %12729 = vmatprep.subr.bf16.mxu0 %v12728_v34  ;;  %v12768_v51 = vpack.c.bf16 %v7389_v53, %v7388_v21  ;;  %v7372_v34 = vld [vmem:[%s15429_s21 + $0x400] sm:$0xff]  ;;  %v7406_v30 = vld [vmem:[%s15429_s21 + $0x510] sm:$0xff]  ;;  %v12804_v21 = vpack.c.bf16 %v7423_v5, %v7422_v43  ;;  %v7407_v53 = vld [vmem:[%s15429_s21 + $0x518] sm:$0xff] }
 0x6b3   : > { %12761 = vmatprep.subr.bf16.mxu1 %v12760_v42  ;;  %v7405_v42 = vld [vmem:[%s15429_s21 + $0x508] sm:$0xff]  ;;  %v7426_v43 = vld [vmem:[%s15429_s21 + $0x5b0] sm:$0xff]  ;;  %v7427_v5 = vld [vmem:[%s15429_s21 + $0x5b8] sm:$0xff] }
 0x6b4   : > { %v12802_v24 = vpack.c.bf16 %v7405_v42, %v7404_v62  ;;  %v12776_v62 = vpack.c.bf16 %v7393_v35, %v7392_v60  ;;  %v7408_v42 = vld [vmem:[%s15429_s21 + $0x520] sm:$0xff]  ;;  %v7397_v60 = vld [vmem:[%s15429_s21 + $0x4c8] sm:$0xff] }
 0x6b5   : > { %12731 = vmatpush3.bf16.msra.mxu0 %v12730_v1  ;;  %v15625_v1 = vld [vmem:[#allocation9 + $0x8] sm:$0xff]  ;;  %v7428_v35 = vld [vmem:[%s15429_s21 + $0x5c0] sm:$0xff] }
 0x6b6   : > { %12763 = vmatpush3.bf16.msra.mxu1 %v12762_v19  ;;  %12733 = vmatprep.subr.bf16.mxu0 %v12732_v15  ;;  %v12770_v19 = vpack.c.bf16 %v7373_v48, %v7372_v34  ;;  %v7533_v15 = vrot.slane %v15473_v61, %v15087_v36  ;;  %v7424_v61 = vld [vmem:[%s15429_s21 + $0x5a0] sm:$0xff]  ;;  %v12806_v48 = vpack.c.bf16 %v7407_v53, %v7406_v30 }
 0x6b7   : > { %12765 = vmatprep.subr.bf16.mxu1 %v12764_v38  ;;  %v7375_v38 = vld [vmem:[%s15429_s21 + $0x418] sm:$0xff]  ;;  %v12812_v30 = vpack.c.bf16 %v7427_v5, %v7426_v43  ;;  %v7396_v53 = vld [vmem:[%s15429_s21 + $0x4c0] sm:$0xff] }
 0x6b8   : > { %v12774_v34 = vpack.c.bf16 %v7375_v38, %v7374_v16  ;;  %v7379_v16 = vld [vmem:[%s15429_s21 + $0x438] sm:$0xff]  ;;  %v7410_v38 = vld [vmem:[%s15429_s21 + $0x530] sm:$0xff] }
 0x6b9   : > { %12735 = vmatpush3.bf16.msra.mxu0 %v12734_v56  ;;  %v7545_v56 = vrot.slane %v15625_v1, %v13731_v11  ;;  %v7377_v11 = vld [vmem:[%s15429_s21 + $0x428] sm:$0xff] }
 0x6ba   : > { %12767 = vmatpush3.bf16.msra.mxu1 %v12766_v28  ;;  %12769 = vmatprep.subr.bf16.mxu0 %v12768_v51  ;;  %v7425_v28 = vld [vmem:[%s15429_s21 + $0x5a8] sm:$0xff]  ;;  %v7553_v51 = vrot.slane %v15625_v1, %v14011_v50  ;;  %v7395_v50 = vld [vmem:[%s15429_s21 + $0x4b8] sm:$0xff] }
 0x6bb   : > { %12801 = vmatprep.subr.bf16.mxu1 %v12800_v6  ;;  %v7376_v6 = vld [vmem:[%s15429_s21 + $0x420] sm:$0xff]  ;;  %v12808_v20 = vpack.c.bf16 %v7425_v28, %v7424_v61 }
 0x6bc   : > { %7791 = vmatmul.mubr.f32.vlgmr.msra.gmra.mrb[56].mxu0 %v7525_v46  ;;  %v7394_v46 = vld [vmem:[%s15429_s21 + $0x4b0] sm:$0xff] }
 0x6bd   : > { %12771 = vmatpush3.bf16.msra.mxu0 %v12770_v19  ;;  %7861 = vmatmul.mubr.f32.vlgmr.msra.gmra.mrb[58].mxu1 %v7533_v15  ;;  %v12778_v19 = vpack.c.bf16 %v7377_v11, %v7376_v6  ;;  %v12810_v15 = vpack.c.bf16 %v7409_v27, %v7408_v42  ;;  %v7413_v11 = vld [vmem:[%s15429_s21 + $0x548] sm:$0xff]  ;;  %v7398_v42 = vld [vmem:[%s15429_s21 + $0x4d0] sm:$0xff] }
 0x6be   : > { %12803 = vmatpush3.bf16.msra.mxu1 %v12802_v24  ;;  %12773 = vmatprep.subr.bf16.mxu0 %v12772_v25  ;;  %v12780_v24 = vpack.c.bf16 %v7395_v50, %v7394_v46  ;;  %v7378_v25 = vld [vmem:[%s15429_s21 + $0x430] sm:$0xff]  ;;  %v7431_v46 = vld [vmem:[%s15429_s21 + $0x5d8] sm:$0xff] }
 0x6bf   : > { %12805 = vmatprep.subr.bf16.mxu1 %v12804_v21  ;;  %7930 = vmatprep.mubr.f32.mxu0 %v7545_v56  ;;  %v7411_v21 = vld [vmem:[%s15429_s21 + $0x538] sm:$0xff]  ;;  %v7429_v56 = vld [vmem:[%s15429_s21 + $0x5c8] sm:$0xff]  ;;  %v12782_v61 = vpack.c.bf16 %v7379_v16, %v7378_v25  ;;  %v7430_v27 = vld [vmem:[%s15429_s21 + $0x5d0] sm:$0xff] }
 0x6c0   : > { %8000 = vmatprep.mubr.f32.mxu1 %v7553_v51  ;;  %v12814_v28 = vpack.c.bf16 %v7411_v21, %v7410_v38  ;;  %v12784_v51 = vpack.c.bf16 %v7397_v60, %v7396_v53  ;;  %v12816_v6 = vpack.c.bf16 %v7429_v56, %v7428_v35  ;;  %v12820_v25 = vpack.c.bf16 %v7431_v46, %v7430_v27  ;;  %v7415_v16 = vld [vmem:[%s15429_s21 + $0x558] sm:$0xff]  ;;  %v7400_v38 = vld [vmem:[%s15429_s21 + $0x4e0] sm:$0xff]  ;;  %v7433_v53 = vld [vmem:[%s15429_s21 + $0x5e8] sm:$0xff] }
 0x6c1   : > { %12775 = vmatpush3.bf16.msra.mxu0 %v12774_v34  ;;  %v7380_v34 = vld [vmem:[%s15429_s21 + $0x440] sm:$0xff] }
 0x6c2   : > { %12807 = vmatpush3.bf16.msra.mxu1 %v12806_v48  ;;  %12777 = vmatprep.subr.bf16.mxu0 %v12776_v62  ;;  %v7381_v48 = vld [vmem:[%s15429_s21 + $0x448] sm:$0xff]  ;;  %v7412_v62 = vld [vmem:[%s15429_s21 + $0x540] sm:$0xff] }
 0x6c3   : > { %12809 = vmatprep.subr.bf16.mxu1 %v12808_v20  ;;  %v7399_v20 = vld [vmem:[%s15429_s21 + $0x4d8] sm:$0xff]  ;;  %v12786_v50 = vpack.c.bf16 %v7381_v48, %v7380_v34  ;;  %v12818_v43 = vpack.c.bf16 %v7413_v11, %v7412_v62  ;;  %v7432_v21 = vld [vmem:[%s15429_s21 + $0x5e0] sm:$0xff]  ;;  %v7417_v48 = vld [vmem:[%s15429_s21 + $0x568] sm:$0xff] }
 0x6c4   : > { %v12788_v5 = vpack.c.bf16 %v7399_v20, %v7398_v42  ;;  %v12824_v34 = vpack.c.bf16 %v7433_v53, %v7432_v21  ;;  %v7402_v62 = vld [vmem:[%s15429_s21 + $0x4f0] sm:$0xff]  ;;  %v7435_v42 = vld [vmem:[%s15429_s21 + $0x5f8] sm:$0xff] }
 0x6c5   : > { %12779 = vmatpush3.bf16.msra.mxu0 %v12778_v19  ;;  %v7382_v19 = vld [vmem:[%s15429_s21 + $0x450] sm:$0xff] }
 0x6c6   : > { %12811 = vmatpush3.bf16.msra.mxu1 %v12810_v15  ;;  %12781 = vmatprep.subr.bf16.mxu0 %v12780_v24  ;;  %v7383_v15 = vld [vmem:[%s15429_s21 + $0x458] sm:$0xff]  ;;  %v7414_v24 = vld [vmem:[%s15429_s21 + $0x550] sm:$0xff] }
 0x6c7   : > { %12813 = vmatprep.subr.bf16.mxu1 %v12812_v30  ;;  %v7401_v30 = vld [vmem:[%s15429_s21 + $0x4e8] sm:$0xff]  ;;  %v12790_v60 = vpack.c.bf16 %v7383_v15, %v7382_v19  ;;  %v12822_v35 = vpack.c.bf16 %v7415_v16, %v7414_v24  ;;  %v7434_v11 = vld [vmem:[%s15429_s21 + $0x5f0] sm:$0xff]  ;;  %v7419_v15 = vld [vmem:[%s15429_s21 + $0x578] sm:$0xff] }
 0x6c8   : > { %v12792_v56 = vpack.c.bf16 %v7401_v30, %v7400_v38  ;;  %v12828_v19 = vpack.c.bf16 %v7435_v42, %v7434_v11  ;;  %v7452_v24 = vld [vmem:[%s15429_s21 + $0x680] sm:$0xff]  ;;  %v7485_v38 = vld [vmem:[%s15429_s21 + $0x788] sm:$0xff]  ;;  %v7549_v42 = vrot.slane %v15625_v1, %v16403_v13 }
 0x6c9   : > { %12783 = vmatpush3.bf16.msra.mxu0 %v12782_v61  ;;  %v7384_v61 = vld [vmem:[%s15429_s21 + $0x460] sm:$0xff] }
 0x6ca   : > { %12815 = vmatpush3.bf16.msra.mxu1 %v12814_v28  ;;  %12785 = vmatprep.subr.bf16.mxu0 %v12784_v51  ;;  %v7385_v28 = vld [vmem:[%s15429_s21 + $0x468] sm:$0xff]  ;;  %v7416_v51 = vld [vmem:[%s15429_s21 + $0x560] sm:$0xff] }
 0x6cb   : > { %12817 = vmatprep.subr.bf16.mxu1 %v12816_v6  ;;  %v7403_v6 = vld [vmem:[%s15429_s21 + $0x4f8] sm:$0xff]  ;;  %v12794_v20 = vpack.c.bf16 %v7385_v28, %v7384_v61  ;;  %v12826_v27 = vpack.c.bf16 %v7417_v48, %v7416_v51  ;;  %v7484_v16 = vld [vmem:[%s15429_s21 + $0x780] sm:$0xff]  ;;  %v7469_v28 = vld [vmem:[%s15429_s21 + $0x708] sm:$0xff]  ;;  %v7541_v48 = vrot.slane %v15625_v1, %v13807_v54 }
 0x6cc   : > { %v12796_v46 = vpack.c.bf16 %v7403_v6, %v7402_v62  ;;  %v12864_v61 = vpack.c.bf16 %v7485_v38, %v7484_v16  ;;  %v7454_v51 = vld [vmem:[%s15429_s21 + $0x690] sm:$0xff]  ;;  %v7487_v6 = vld [vmem:[%s15429_s21 + $0x798] sm:$0xff]  ;;  %v7488_v13 = vld [vmem:[%s15429_s21 + $0x7a0] sm:$0xff]  ;;  %v7569_v16 = vrot.slane %v15625_v1, %v16404_v33 }
 0x6cd   : > { %12787 = vmatpush3.bf16.msra.mxu0 %v12786_v50  ;;  %v7386_v50 = vld [vmem:[%s15429_s21 + $0x470] sm:$0xff]  ;;  %v7459_v33 = vld [vmem:[%s15429_s21 + $0x6b8] sm:$0xff] }
 0x6ce   : > { %12819 = vmatpush3.bf16.msra.mxu1 %v12818_v43  ;;  %12789 = vmatprep.subr.bf16.mxu0 %v12788_v5  ;;  %v7387_v43 = vld [vmem:[%s15429_s21 + $0x478] sm:$0xff]  ;;  %v7418_v5 = vld [vmem:[%s15429_s21 + $0x570] sm:$0xff] }
 0x6cf   : > { %12821 = vmatprep.subr.bf16.mxu1 %v12820_v25  ;;  %v7453_v25 = vld [vmem:[%s15429_s21 + $0x688] sm:$0xff]  ;;  %v12798_v30 = vpack.c.bf16 %v7387_v43, %v7386_v50  ;;  %v12830_v21 = vpack.c.bf16 %v7419_v15, %v7418_v5  ;;  %v7486_v62 = vld [vmem:[%s15429_s21 + $0x790] sm:$0xff]  ;;  %v7439_v50 = vld [vmem:[%s15429_s21 + $0x618] sm:$0xff] }
 0x6d0   : > { %v12832_v53 = vpack.c.bf16 %v7453_v25, %v7452_v24  ;;  %v7470_v43 = vld [vmem:[%s15429_s21 + $0x710] sm:$0xff]  ;;  %v12868_v54 = vpack.c.bf16 %v7487_v6, %v7486_v62  ;;  %v7471_v5 = vld [vmem:[%s15429_s21 + $0x718] sm:$0xff]  ;;  %v7457_v15 = vld [vmem:[%s15429_s21 + $0x6a8] sm:$0xff]  ;;  %v7561_v24 = vrot.slane %v15625_v1, %v15013_v41 }
 0x6d1   : > { %12791 = vmatpush3.bf16.msra.mxu0 %v12790_v60  ;;  %v7436_v60 = vld [vmem:[%s15429_s21 + $0x600] sm:$0xff]  ;;  %v7489_v25 = vld [vmem:[%s15429_s21 + $0x7a8] sm:$0xff]  ;;  %v7442_v6 = vld [vmem:[%s15429_s21 + $0x630] sm:$0xff] }
 0x6d2   : > { %12823 = vmatpush3.bf16.msra.mxu1 %v12822_v35  ;;  %12793 = vmatprep.subr.bf16.mxu0 %v12792_v56  ;;  %v7437_v35 = vld [vmem:[%s15429_s21 + $0x608] sm:$0xff]  ;;  %v7468_v56 = vld [vmem:[%s15429_s21 + $0x700] sm:$0xff] }
 0x6d3   : > { %12825 = vmatprep.subr.bf16.mxu1 %v12824_v34  ;;  %v7455_v34 = vld [vmem:[%s15429_s21 + $0x698] sm:$0xff]  ;;  %v12834_v11 = vpack.c.bf16 %v7437_v35, %v7436_v60  ;;  %v7441_v41 = vld [vmem:[%s15429_s21 + $0x628] sm:$0xff]  ;;  %v7472_v60 = vld [vmem:[%s15429_s21 + $0x720] sm:$0xff]  ;;  %v12872_v35 = vpack.c.bf16 %v7489_v25, %v7488_v13 }
 0x6d4   : > { %v7445_v13 = vld [vmem:[%s15429_s21 + $0x648] sm:$0xff]  ;;  %v7476_v25 = vld [vmem:[%s15429_s21 + $0x740] sm:$0xff] }
 0x6d5   : > { %12795 = vmatpush3.bf16.msra.mxu0 %v12794_v20  ;;  %v12866_v20 = vpack.c.bf16 %v7469_v28, %v7468_v56  ;;  %v7473_v56 = vld [vmem:[%s15429_s21 + $0x728] sm:$0xff]  ;;  %v7490_v28 = vld [vmem:[%s15429_s21 + $0x7b0] sm:$0xff] }
 0x6d6   : > { %12827 = vmatpush3.bf16.msra.mxu1 %v12826_v27  ;;  %12797 = vmatprep.subr.bf16.mxu0 %v12796_v46  ;;  %v12836_v27 = vpack.c.bf16 %v7455_v34, %v7454_v51  ;;  %v7438_v46 = vld [vmem:[%s15429_s21 + $0x610] sm:$0xff]  ;;  %v7491_v51 = vld [vmem:[%s15429_s21 + $0x7b8] sm:$0xff] }
 0x6d7   : > { %12829 = vmatprep.subr.bf16.mxu1 %v12828_v19  ;;  %v7456_v19 = vld [vmem:[%s15429_s21 + $0x6a0] sm:$0xff]  ;;  %v12838_v38 = vpack.c.bf16 %v7439_v50, %v7438_v46  ;;  %v7461_v50 = vld [vmem:[%s15429_s21 + $0x6c8] sm:$0xff] }
 0x6d8   : > { %v7460_v46 = vld [vmem:[%s15429_s21 + $0x6c0] sm:$0xff] }
 0x6d9   : > { %12799 = vmatpush3.bf16.msra.mxu0 %v12798_v30  ;;  %v12870_v30 = vpack.c.bf16 %v7471_v5, %v7470_v43  ;;  %v7492_v43 = vld [vmem:[%s15429_s21 + $0x7c0] sm:$0xff] }
 0x6da   : > { %12831 = vmatpush3.bf16.msra.mxu1 %v12830_v21  ;;  %12833 = vmatprep.subr.bf16.mxu0 %v12832_v53  ;;  %v12840_v21 = vpack.c.bf16 %v7457_v15, %v7456_v19  ;;  %v7440_v53 = vld [vmem:[%s15429_s21 + $0x620] sm:$0xff]  ;;  %v12848_v15 = vpack.c.bf16 %v7461_v50, %v7460_v46  ;;  %v7449_v50 = vld [vmem:[%s15429_s21 + $0x668] sm:$0xff] }
 0x6db   : > { %12865 = vmatprep.subr.bf16.mxu1 %v12864_v61  ;;  %v7458_v61 = vld [vmem:[%s15429_s21 + $0x6b0] sm:$0xff]  ;;  %v12842_v34 = vpack.c.bf16 %v7441_v41, %v7440_v53  ;;  %v7495_v41 = vld [vmem:[%s15429_s21 + $0x7d8] sm:$0xff]  ;;  %v7448_v46 = vld [vmem:[%s15429_s21 + $0x660] sm:$0xff] }
 0x6dc   : > { %7931 = vmatmul.mubr.f32.vlgmr.msra.gmra.mrb[58].mxu0 %v7541_v48  ;;  %v12874_v48 = vpack.c.bf16 %v7473_v56, %v7472_v60  ;;  %v12844_v62 = vpack.c.bf16 %v7459_v33, %v7458_v61  ;;  %v7494_v53 = vld [vmem:[%s15429_s21 + $0x7d0] sm:$0xff]  ;;  %v7447_v33 = vld [vmem:[%s15429_s21 + $0x658] sm:$0xff] }
 0x6dd   : > { %12835 = vmatpush3.bf16.msra.mxu0 %v12834_v11  ;;  %8001 = vmatmul.mubr.f32.vlgmr.msra.gmra.mrb[60].mxu1 %v7549_v42  ;;  %v7443_v11 = vld [vmem:[%s15429_s21 + $0x638] sm:$0xff]  ;;  %v7474_v42 = vld [vmem:[%s15429_s21 + $0x730] sm:$0xff] }
 0x6de   : > { %12867 = vmatpush3.bf16.msra.mxu1 %v12866_v20  ;;  %12837 = vmatprep.subr.bf16.mxu0 %v12836_v27  ;;  %v12876_v20 = vpack.c.bf16 %v7491_v51, %v7490_v28  ;;  %v7475_v27 = vld [vmem:[%s15429_s21 + $0x738] sm:$0xff]  ;;  %v12846_v5 = vpack.c.bf16 %v7443_v11, %v7442_v6  ;;  %v7446_v61 = vld [vmem:[%s15429_s21 + $0x650] sm:$0xff]  ;;  %v12884_v51 = vpack.c.bf16 %v7495_v41, %v7494_v53  ;;  %v7496_v6 = vld [vmem:[%s15429_s21 + $0x7e0] sm:$0xff] }
 0x6df   : > { %12869 = vmatprep.subr.bf16.mxu1 %v12868_v54  ;;  %8070 = vmatprep.mubr.f32.mxu0 %v7561_v24  ;;  %v7493_v54 = vld [vmem:[%s15429_s21 + $0x7c8] sm:$0xff]  ;;  %v12878_v19 = vpack.c.bf16 %v7475_v27, %v7474_v42  ;;  %v7444_v24 = vld [vmem:[%s15429_s21 + $0x640] sm:$0xff]  ;;  %v7478_v28 = vld [vmem:[%s15429_s21 + $0x750] sm:$0xff]  ;;  %v12854_v42 = vpack.c.bf16 %v7447_v33, %v7446_v61 }
 0x6e0   : > { %8140 = vmatprep.mubr.f32.mxu1 %v7569_v16  ;;  %v12880_v16 = vpack.c.bf16 %v7493_v54, %v7492_v43  ;;  %v12850_v60 = vpack.c.bf16 %v7445_v13, %v7444_v24  ;;  %v7497_v11 = vld [vmem:[%s15429_s21 + $0x7e8] sm:$0xff]  ;;  %v7480_v43 = vld [vmem:[%s15429_s21 + $0x760] sm:$0xff]  ;;  %v7467_v24 = vld [vmem:[%s15429_s21 + $0x6f8] sm:$0xff] }
 0x6e1   : > { %12839 = vmatpush3.bf16.msra.mxu0 %v12838_v38  ;;  %v7477_v38 = vld [vmem:[%s15429_s21 + $0x748] sm:$0xff]  ;;  %v7450_v53 = vld [vmem:[%s15429_s21 + $0x670] sm:$0xff]  ;;  %v7451_v41 = vld [vmem:[%s15429_s21 + $0x678] sm:$0xff] }
 0x6e2   : > { %12871 = vmatpush3.bf16.msra.mxu1 %v12870_v30  ;;  %12841 = vmatprep.subr.bf16.mxu0 %v12840_v21  ;;  %v7462_v30 = vld [vmem:[%s15429_s21 + $0x6d0] sm:$0xff]  ;;  %v7463_v21 = vld [vmem:[%s15429_s21 + $0x6d8] sm:$0xff]  ;;  %v12862_v61 = vpack.c.bf16 %v7451_v41, %v7450_v53 }
 0x6e3   : > { %12873 = vmatprep.subr.bf16.mxu1 %v12872_v35  ;;  %v12882_v35 = vpack.c.bf16 %v7477_v38, %v7476_v25  ;;  %v12852_v56 = vpack.c.bf16 %v7463_v21, %v7462_v30  ;;  %v7498_v25 = vld [vmem:[%s15429_s21 + $0x7f0] sm:$0xff]  ;;  %v12858_v38 = vpack.c.bf16 %v7449_v50, %v7448_v46 }
 0x6e5   : > { %12843 = vmatpush3.bf16.msra.mxu0 %v12842_v34  ;;  %v7479_v34 = vld [vmem:[%s15429_s21 + $0x758] sm:$0xff] }
 0x6e6   : > { %12875 = vmatpush3.bf16.msra.mxu1 %v12874_v48  ;;  %12845 = vmatprep.subr.bf16.mxu0 %v12844_v62  ;;  %v7464_v48 = vld [vmem:[%s15429_s21 + $0x6e0] sm:$0xff]  ;;  %v7465_v62 = vld [vmem:[%s15429_s21 + $0x6e8] sm:$0xff] }
 0x6e7   : > { %12877 = vmatprep.subr.bf16.mxu1 %v12876_v20  ;;  %v12886_v20 = vpack.c.bf16 %v7479_v34, %v7478_v28  ;;  %v12856_v27 = vpack.c.bf16 %v7465_v62, %v7464_v48  ;;  %v7557_v28 = vrot.slane %v15625_v1, %v15084_v29 }
 0x6e9   : > { %12847 = vmatpush3.bf16.msra.mxu0 %v12846_v5  ;;  %v12888_v5 = vpack.c.bf16 %v7497_v11, %v7496_v6 }
 0x6ea   : > { %12879 = vmatpush3.bf16.msra.mxu1 %v12878_v19  ;;  %12849 = vmatprep.subr.bf16.mxu0 %v12848_v15  ;;  %v7481_v19 = vld [vmem:[%s15429_s21 + $0x768] sm:$0xff]  ;;  %v7466_v15 = vld [vmem:[%s15429_s21 + $0x6f0] sm:$0xff] }
 0x6eb   : > { %12881 = vmatprep.subr.bf16.mxu1 %v12880_v16  ;;  %v7499_v16 = vld [vmem:[%s15429_s21 + $0x7f8] sm:$0xff]  ;;  %v12890_v30 = vpack.c.bf16 %v7481_v19, %v7480_v43  ;;  %v12860_v21 = vpack.c.bf16 %v7467_v24, %v7466_v15 }
 0x6ed   : > { %12851 = vmatpush3.bf16.msra.mxu0 %v12850_v60  ;;  %v12892_v60 = vpack.c.bf16 %v7499_v16, %v7498_v25 }
 0x6ee   : > { %12883 = vmatpush3.bf16.msra.mxu1 %v12882_v35  ;;  %12853 = vmatprep.subr.bf16.mxu0 %v12852_v56  ;;  %v7482_v35 = vld [vmem:[%s15429_s21 + $0x770] sm:$0xff]  ;;  %v7483_v56 = vld [vmem:[%s15429_s21 + $0x778] sm:$0xff]  ;;  %s15825_s21 = scalar_lea.vmem [#allocation16], %s13886_s24 }
 0x6ef   : > { %v5768_v54 = vpop.xlane.xlu1 %5767  ;;  %12885 = vmatprep.subr.bf16.mxu1 %v12884_v51  ;;  %v12894_v33 = vpack.c.bf16 %v7483_v56, %v7482_v35  ;;  %v7565_v51 = vrot.slane %v15625_v1, %v15087_v36 }
 0x6f0   : > { %v5770_v13 = vmul.f32 0.0625, %v5768_v54 }
 0x6f1   : > { %12855 = vmatpush3.bf16.msra.mxu0 %v12854_v42 }
 0x6f2   : > { %5771 = vst.msk [vmem:[%s855_s17] sm:$0x1] %vm1016_vm1, %v5770_v13  ;;  %12887 = vmatpush3.bf16.msra.mxu1 %v12886_v20  ;;  %12857 = vmatprep.subr.bf16.mxu0 %v12856_v27 }
 0x6f3   : > { %12889 = vmatprep.subr.bf16.mxu1 %v12888_v5 }
 0x6f5   : > { %12859 = vmatpush3.bf16.msra.mxu0 %v12858_v38 }
 0x6f6   : > { %12891 = vmatpush3.bf16.msra.mxu1 %v12890_v30  ;;  %12861 = vmatprep.subr.bf16.mxu0 %v12860_v21 }
 0x6f7   : > { %12893 = vmatprep.subr.bf16.mxu1 %v12892_v60 }
 0x6f9   : > { %12863 = vmatpush3.bf16.msra.mxu0 %v12862_v61 }
 0x6fa   : > { %12895 = vmatpush3.bf16.msra.mxu1 %v12894_v33 }
 0x6fc   : > { %8071 = vmatmul.mubr.f32.vlgmr.msra.gmra.mrb[60].mxu0 %v7557_v28 }
 0x6fd   : > { %8141 = vmatmul.mubr.f32.vlgmr.msra.gmra.mrb[62].mxu1 %v7565_v51  ;;  %8334 = vmatprep.mubr.f32.mxu0 %v16396_v58 }
 0x6fe   : > { %8405 = vmatprep.mubr.f32.mxu1 %v16396_v58 }
 0x733   : > { %v5906_v34 = vpop.f32.mrb[38].mxu0  ;;  %v5977_v48 = vpop.f32.mrb[40].mxu1 }
 0x734   : > { %v15769_v62 = vadd.f32 %v5906_v34, %v15096_v0  ;;  %v15772_v6 = vadd.f32 %v5977_v48, %v15099_v26  ;;  %v5908_v29 = vpop.f32.mrb[39].mxu0  ;;  %v5979_v11 = vpop.f32.mrb[41].mxu1 }
 0x735   : > { %v7008_v42 = vcombine.low %v5906_v34, %v5908_v29  ;;  %v15775_v36 = vadd.f32 %v5908_v29, %v15102_v31  ;;  %v7009_v1 = vcombine.low %v5977_v48, %v5979_v11  ;;  %v15778_v20 = vadd.f32 %v5979_v11, %v15105_v63 }
 0x737   : > { %v7018_v27 = vrot.slane %v7008_v42, %v13843_v9  ;;  %v7025_v46 = vrot.slane %v7009_v1, %v13843_v9  ;;  %v6048_v50 = vpop.f32.mrb[40].mxu0  ;;  %v6119_v0 = vpop.f32.mrb[42].mxu1 }
 0x738   : > { %v15783_v43 = vadd.f32 %v6048_v50, %v15110_v12  ;;  %v15786_v26 = vadd.f32 %v6119_v0, %v15113_v14  ;;  %v6050_v54 = vpop.f32.mrb[41].mxu0  ;;  %v6121_v5 = vpop.f32.mrb[43].mxu1 }
 0x739   : > { %v7040_v31 = vcombine.low %v7018_v27, %v7025_v46  ;;  %v7010_v19 = vcombine.low %v6048_v50, %v6050_v54  ;;  %v15789_v15 = vadd.f32 %v6050_v54, %v15116_v18  ;;  %v7011_v63 = vcombine.low %v6119_v0, %v6121_v5 }
 0x73a   : > { %v15792_v24 = vadd.f32 %v6121_v5, %v15119_v49 }
 0x73b   : > { %v7032_v13 = vrot.slane %v7010_v19, %v13843_v9  ;;  %v7039_v25 = vrot.slane %v7011_v63, %v13843_v9  ;;  %v6190_v12 = vpop.f32.mrb[42].mxu0  ;;  %v7048_v35 = vrot.slane %v7040_v31, %v13843_v9 }
 0x73c   : > { %v15797_v16 = vadd.f32 %v6190_v12, %v15130_v3  ;;  %v6261_v14 = vpop.f32.mrb[44].mxu1  ;;  %v6192_v38 = vpop.f32.mrb[43].mxu0 }
 0x73d   : > { %v7041_v30 = vcombine.low %v7032_v13, %v7039_v25  ;;  %v15800_v21 = vadd.f32 %v6261_v14, %v15133_v4  ;;  %v7057_v18 = vcombine.low %v6190_v12, %v6192_v38  ;;  %v15803_v53 = vadd.f32 %v6192_v38, %v15136_v22  ;;  %v6263_v49 = vpop.f32.mrb[45].mxu1 }
 0x73e   : > { %v7058_v41 = vcombine.low %v6261_v14, %v6263_v49  ;;  %v15806_v60 = vadd.f32 %v6263_v49, %v15139_v40 }
 0x73f   : > { %v7055_v3 = vrot.slane %v7041_v30, %v13843_v9  ;;  %v7067_v56 = vrot.slane %v7057_v18, %v13843_v9  ;;  %v6332_v61 = vpop.f32.mrb[44].mxu0 }
 0x740   : > { %v7074_v4 = vrot.slane %v7058_v41, %v13843_v9  ;;  %v15813_v33 = vadd.f32 %v6332_v61, %v15144_v8  ;;  %v6403_v22 = vpop.f32.mrb[46].mxu1  ;;  %v6334_v28 = vpop.f32.mrb[45].mxu0 }
 0x741   : > { %v7056_v51 = vcombine.low %v7048_v35, %v7055_v3  ;;  %v15816_v34 = vadd.f32 %v6403_v22, %v15147_v17  ;;  %v7059_v40 = vcombine.low %v6332_v61, %v6334_v28  ;;  %v15819_v48 = vadd.f32 %v6334_v28, %v15156_v52  ;;  %v6405_v29 = vpop.f32.mrb[47].mxu1 }
 0x742   : > { %v7089_v11 = vcombine.low %v7067_v56, %v7074_v4  ;;  %v7060_v42 = vcombine.low %v6403_v22, %v6405_v29  ;;  %v15822_v1 = vadd.f32 %v6405_v29, %v15159_v39 }
 0x743   : > { %7208 = vst [vmem:[%s15825_s21] sm:$0xff] %v7056_v51  ;;  %v7081_v8 = vrot.slane %v7059_v40, %v13843_v9  ;;  %v6474_v27 = vpop.f32.mrb[46].mxu0 }
 0x744   : > { %v7088_v17 = vrot.slane %v7060_v42, %v13843_v9  ;;  %v15831_v46 = vadd.f32 %v6474_v27, %v15197_v55  ;;  %v6545_v52 = vpop.f32.mrb[48].mxu1  ;;  %v6476_v50 = vpop.f32.mrb[47].mxu0  ;;  %v7097_v55 = vrot.slane %v7089_v11, %v13843_v9 }
 0x745   : > { %v15834_v0 = vadd.f32 %v6545_v52, %v15200_v59  ;;  %v7106_v54 = vcombine.low %v6474_v27, %v6476_v50  ;;  %v15837_v39 = vadd.f32 %v6476_v50, %v15203_v10  ;;  %v6547_v5 = vpop.f32.mrb[49].mxu1 }
 0x746   : > { %v7090_v31 = vcombine.low %v7081_v8, %v7088_v17  ;;  %v7107_v19 = vcombine.low %v6545_v52, %v6547_v5  ;;  %v15840_v63 = vadd.f32 %v6547_v5, %v15206_v2  ;;  %v16405_v52 = vld [vmem:[#allocation35_spill] sm:$0xff]  ;;  %v16406_v5 = vld [vmem:[#allocation36_spill] sm:$0xff] }
 0x747   : > { %v7116_v13 = vrot.slane %v7106_v54, %v13843_v9  ;;  %v6616_v25 = vpop.f32.mrb[48].mxu0 }
 0x748   : > { %v7104_v12 = vrot.slane %v7090_v31, %v13843_v9  ;;  %v7123_v59 = vrot.slane %v7107_v19, %v13843_v9  ;;  %v15847_v14 = vadd.f32 %v6616_v25, %v15211_v32  ;;  %v6687_v10 = vpop.f32.mrb[50].mxu1  ;;  %v6618_v38 = vpop.f32.mrb[49].mxu0  ;;  %v16407_v19 = vld [vmem:[#allocation37_spill] sm:$0xff] }
 0x749   : > { %v15850_v30 = vadd.f32 %v6687_v10, %v15214_v23  ;;  %v7108_v2 = vcombine.low %v6616_v25, %v6618_v38  ;;  %v15853_v18 = vadd.f32 %v6618_v38, %v15217_v37  ;;  %v6689_v49 = vpop.f32.mrb[51].mxu1 }
 0x74a   : > { %v7105_v41 = vcombine.low %v7097_v55, %v7104_v12  ;;  %v7138_v35 = vcombine.low %v7116_v13, %v7123_v59  ;;  %v7109_v3 = vcombine.low %v6687_v10, %v6689_v49  ;;  %v15856_v56 = vadd.f32 %v6689_v49, %v15220_v47  ;;  %v16408_v10 = vld [vmem:[#allocation38_spill] sm:$0xff] }
 0x74b   : > { %v7130_v61 = vrot.slane %v7108_v2, %v13843_v9  ;;  %v6758_v32 = vpop.f32.mrb[50].mxu0  ;;  %v8153_v2 = vld [vmem:[%s16409_s11] sm:$0xff]  ;;  %v8154_v49 = vld [vmem:[%s16409_s11 + $0x8] sm:$0xff] }
 0x74c   : > { %7209 = vst [vmem:[%s15825_s21 + $0x8] sm:$0xff] %v7105_v41  ;;  %v7137_v4 = vrot.slane %v7109_v3, %v13843_v9  ;;  %v15862_v23 = vadd.f32 %v6758_v32, %v15228_v7  ;;  %v6829_v22 = vpop.f32.mrb[52].mxu1  ;;  %v6760_v28 = vpop.f32.mrb[51].mxu0  ;;  %v7146_v7 = vrot.slane %v7138_v35, %v13843_v9  ;;  %v8185_v35 = vcombine.high %v8153_v2, %v8153_v2 }
 0x74d   : > { %v15865_v37 = vadd.f32 %v6829_v22, %v15231_v44  ;;  %v7155_v51 = vcombine.low %v6758_v32, %v6760_v28  ;;  %v15868_v40 = vadd.f32 %v6760_v28, %v15234_v45  ;;  %v6831_v47 = vpop.f32.mrb[53].mxu1  ;;  %v8186_v3 = vcombine.high %v8154_v49, %v8154_v49  ;;  %v8155_v32 = vld [vmem:[%s16409_s11 + $0x10] sm:$0xff] }
 0x74e   : > { %v7139_v29 = vcombine.low %v7130_v61, %v7137_v4  ;;  %v7156_v11 = vcombine.low %v6829_v22, %v6831_v47  ;;  %v15871_v42 = vadd.f32 %v6831_v47, %v15237_v57  ;;  %10476 = vmatprep.subr.msk.mxu0 %vm8205_vm6, %v8185_v35  ;;  %v8156_v4 = vld [vmem:[%s16409_s11 + $0x18] sm:$0xff]  ;;  %v8187_v28 = vcombine.high %v8155_v32, %v8155_v32 }
 0x74f   : > { %v7165_v8 = vrot.slane %v7155_v51, %v13843_v9  ;;  %v6900_v27 = vpop.f32.mrb[52].mxu0  ;;  %10479 = vmatprep.subr.msk.mxu1 %vm8205_vm6, %v8186_v3  ;;  %10477 = vmatpush1.msk.msra.mxu0 %vm8205_vm6, %v8153_v2  ;;  %v8188_v51 = vcombine.high %v8156_v4, %v8156_v4 }
 0x750   : > { %v7153_v17 = vrot.slane %v7139_v29, %v13843_v9  ;;  %v7172_v44 = vrot.slane %v7156_v11, %v13843_v9  ;;  %v15878_v50 = vadd.f32 %v6900_v27, %v16405_v52  ;;  %v6971_v45 = vpop.f32.mrb[54].mxu1  ;;  %v6902_v54 = vpop.f32.mrb[53].mxu0  ;;  %10480 = vmatpush1.msk.msra.mxu1 %vm8205_vm6, %v8154_v49  ;;  %10482 = vmatprep.subr.msk.mxu0 %vm8205_vm6, %v8187_v28 }
 0x751   : > { %v15881_v31 = vadd.f32 %v6971_v45, %v16406_v5  ;;  %v7157_v57 = vcombine.low %v6900_v27, %v6902_v54  ;;  %v15884_v13 = vadd.f32 %v6902_v54, %v16407_v19  ;;  %v6973_v25 = vpop.f32.mrb[55].mxu1  ;;  %10485 = vmatprep.subr.msk.mxu1 %vm8205_vm6, %v8188_v51  ;;  %v7503_v27 = vstv %s10475_s6 }
 0x752   : > { %v7154_v55 = vcombine.low %v7146_v7, %v7153_v17  ;;  %v7187_v12 = vcombine.low %v7165_v8, %v7172_v44  ;;  %v7158_v59 = vcombine.low %v6971_v45, %v6973_v25  ;;  %v15887_v38 = vadd.f32 %v6973_v25, %v16408_v10 }
 0x753   : > { %v7179_v41 = vrot.slane %v7157_v57, %v13843_v9 }
 0x754   : > { %7210 = vst [vmem:[%s15825_s21 + $0x10] sm:$0xff] %v7154_v55  ;;  %v7186_v61 = vrot.slane %v7158_v59, %v13843_v9  ;;  %v7195_v47 = vrot.slane %v7187_v12, %v13843_v9 }
 0x756   : > { %v7188_v22 = vcombine.low %v7179_v41, %v7186_v61 }
 0x758   : > { %v7202_v29 = vrot.slane %v7188_v22, %v13843_v9 }
 0x75a   : > { %v7203_v11 = vcombine.low %v7195_v47, %v7202_v29 }
 0x75c   : > { %7211 = vst [vmem:[%s15825_s21 + $0x18] sm:$0xff] %v7203_v11 }
 0x76f   : > { %v10792_v8 = vpop.f32.mrb[54].mxu0 }
 0x770   : > { %v10793_v7 = vpop.f32.mrb[55].mxu0  ;;  %v10827_v17 = vpop.f32.mrb[56].mxu1 }
 0x771   : > { %v10794_v44 = vadd.f32 %v10793_v7, %v10792_v8  ;;  %v10828_v52 = vpop.f32.mrb[57].mxu1 }
 0x772   : > { %v10829_v45 = vadd.f32 %v10828_v52, %v10827_v17  ;;  %v8158_v52 = vld [vmem:[%s16409_s11 + $0x28] sm:$0xff] }
 0x773   : > { %v7653_v54 = vadd.f32 %v10794_v44, %v7503_v27  ;;  %v8157_v44 = vld [vmem:[%s16409_s11 + $0x20] sm:$0xff] }
 0x775   : > { %v7723_v5 = vadd.f32 %v10829_v45, %v7653_v54  ;;  %v8189_v54 = vcombine.high %v8157_v44, %v8157_v44 }
 0x78f   : > { %v10862_v57 = vpop.f32.mrb[56].mxu0 }
 0x790   : > { %v10863_v19 = vpop.f32.mrb[57].mxu0  ;;  %v10897_v25 = vpop.f32.mrb[58].mxu1 }
 0x791   : > { %v10864_v55 = vadd.f32 %v10863_v19, %v10862_v57  ;;  %v10898_v12 = vpop.f32.mrb[59].mxu1  ;;  %v8190_v57 = vcombine.high %v8158_v52, %v8158_v52  ;;  %v8159_v19 = vld [vmem:[%s16409_s11 + $0x30] sm:$0xff] }
 0x792   : > { %v10899_v59 = vadd.f32 %v10898_v12, %v10897_v25  ;;  %v8160_v25 = vld [vmem:[%s16409_s11 + $0x38] sm:$0xff]  ;;  %v8162_v12 = vld [vmem:[%s16409_s11 + $0x48] sm:$0xff] }
 0x793   : > { %v7793_v10 = vadd.f32 %v10864_v55, %v7723_v5  ;;  %v8191_v55 = vcombine.high %v8159_v19, %v8159_v19 }
 0x795   : > { %v7863_v2 = vadd.f32 %v10899_v59, %v7793_v10  ;;  %v8194_v10 = vcombine.high %v8162_v12, %v8162_v12 }
 0x7af   : > { %v10932_v49 = vpop.f32.mrb[58].mxu0 }
 0x7b0   : > { %v10933_v41 = vpop.f32.mrb[59].mxu0  ;;  %v10967_v35 = vpop.f32.mrb[60].mxu1 }
 0x7b1   : > { %v10934_v3 = vadd.f32 %v10933_v41, %v10932_v49  ;;  %v10968_v61 = vpop.f32.mrb[61].mxu1  ;;  %v8164_v49 = vld [vmem:[%s16409_s11 + $0x58] sm:$0xff] }
 0x7b2   : > { %v10969_v22 = vadd.f32 %v10968_v61, %v10967_v35  ;;  %v8196_v35 = vcombine.high %v8164_v49, %v8164_v49  ;;  %v8166_v61 = vld [vmem:[%s16409_s11 + $0x68] sm:$0xff] }
 0x7b3   : > { %v7933_v28 = vadd.f32 %v10934_v3, %v7863_v2  ;;  %v8163_v2 = vld [vmem:[%s16409_s11 + $0x50] sm:$0xff]  ;;  %v8165_v3 = vld [vmem:[%s16409_s11 + $0x60] sm:$0xff] }
 0x7b4   : > { %v8195_v41 = vcombine.high %v8163_v2, %v8163_v2 }
 0x7b5   : > { %v8003_v51 = vadd.f32 %v10969_v22, %v7933_v28  ;;  %v8197_v22 = vcombine.high %v8165_v3, %v8165_v3  ;;  %v8198_v28 = vcombine.high %v8166_v61, %v8166_v61 }
 0x7cf   : > { %v11002_v47 = vpop.f32.mrb[60].mxu0 }
 0x7d0   : > { %v11003_v29 = vpop.f32.mrb[61].mxu0  ;;  %v11037_v11 = vpop.f32.mrb[62].mxu1 }
 0x7d1   : > { %v11004_v8 = vadd.f32 %v11003_v29, %v11002_v47  ;;  %v11038_v27 = vpop.f32.mrb[63].mxu1  ;;  %v8168_v47 = vld [vmem:[%s16409_s11 + $0x78] sm:$0xff] }
 0x7d2   : > { %v11039_v7 = vadd.f32 %v11038_v27, %v11037_v11  ;;  %v8200_v11 = vcombine.high %v8168_v47, %v8168_v47 }
 0x7d3   : > { %v8073_v17 = vadd.f32 %v11004_v8, %v8003_v51  ;;  %v8167_v51 = vld [vmem:[%s16409_s11 + $0x70] sm:$0xff] }
 0x7d4   : > { %v8199_v29 = vcombine.high %v8167_v51, %v8167_v51 }
 0x7d5   : > { %v15919_v45 = vadd.f32 %v11039_v7, %v8073_v17 }
 0x7d7   : > { %10478 = vmatmul.mubr.msk.f32.vlgmr.msra.gmra.mrb[62].mxu0 %vm8201_vm7, %v15919_v45  ;;  %10481 = vmatmul.mubr.msk.f32.vlgmr.msra.gmra.mrb[64].mxu1 %vm8201_vm7, %v15919_v45  ;;  %v8147_v5 = vsel %vm8146_vm8, %v15919_v45, 0.0 }
 0x7d8   : > { %10483 = vmatpush1.msk.msra.mxu0 %vm8205_vm6, %v8155_v32  ;;  %10486 = vmatpush1.msk.msra.mxu1 %vm8205_vm6, %v8156_v4  ;;  %v8192_v32 = vcombine.high %v8160_v25, %v8160_v25  ;;  %v8161_v4 = vld [vmem:[%s16409_s11 + $0x40] sm:$0xff] }
 0x7d9   : > { %8148 = vadd.xlane.f32.xlu1 %v8147_v5  ;;  %8476 = vmatprep.mubr.f32.mxu0 %v16396_v58  ;;  %v8193_v59 = vcombine.high %v8161_v4, %v8161_v4 }
 0x7da   : > { %8547 = vmatprep.mubr.f32.mxu1 %v16396_v58  ;;  %10488 = vmatprep.subr.msk.mxu0 %vm8205_vm6, %v8189_v54 }
 0x7db   : > { %10491 = vmatprep.subr.msk.mxu1 %vm8205_vm6, %v8190_v57  ;;  %10484 = vmatmul.mubr.msk.f32.vlgmr.msra.gmra.mrb[64].mxu0 %vm8201_vm7, %v15919_v45 }
 0x7dc   : > { %10487 = vmatmul.mubr.msk.f32.vlgmr.msra.gmra.mrb[66].mxu1 %vm8201_vm7, %v15919_v45  ;;  %10489 = vmatpush1.msk.msra.mxu0 %vm8205_vm6, %v8157_v44 }
 0x7dd   : > { %10492 = vmatpush1.msk.msra.mxu1 %vm8205_vm6, %v8158_v52  ;;  %8618 = vmatprep.mubr.f32.mxu0 %v16396_v58 }
 0x7de   : > { %8689 = vmatprep.mubr.f32.mxu1 %v16396_v58  ;;  %10494 = vmatprep.subr.msk.mxu0 %vm8205_vm6, %v8191_v55 }
 0x7df   : > { %10497 = vmatprep.subr.msk.mxu1 %vm8205_vm6, %v8192_v32  ;;  %10490 = vmatmul.mubr.msk.f32.vlgmr.msra.gmra.mrb[66].mxu0 %vm8201_vm7, %v15919_v45 }
 0x7e0   : > { %10493 = vmatmul.mubr.msk.f32.vlgmr.msra.gmra.mrb[68].mxu1 %vm8201_vm7, %v15919_v45  ;;  %10495 = vmatpush1.msk.msra.mxu0 %vm8205_vm6, %v8159_v19 }
 0x7e1   : > { %10498 = vmatpush1.msk.msra.mxu1 %vm8205_vm6, %v8160_v25  ;;  %8760 = vmatprep.mubr.f32.mxu0 %v16396_v58 }
 0x7e2   : > { %8831 = vmatprep.mubr.f32.mxu1 %v16396_v58  ;;  %10500 = vmatprep.subr.msk.mxu0 %vm8205_vm6, %v8193_v59 }
 0x7e3   : > { %10503 = vmatprep.subr.msk.mxu1 %vm8205_vm6, %v8194_v10  ;;  %10496 = vmatmul.mubr.msk.f32.vlgmr.msra.gmra.mrb[68].mxu0 %vm8201_vm7, %v15919_v45 }
 0x7e4   : > { %10499 = vmatmul.mubr.msk.f32.vlgmr.msra.gmra.mrb[70].mxu1 %vm8201_vm7, %v15919_v45  ;;  %10501 = vmatpush1.msk.msra.mxu0 %vm8205_vm6, %v8161_v4 }
 0x7e5   : > { %10504 = vmatpush1.msk.msra.mxu1 %vm8205_vm6, %v8162_v12  ;;  %8902 = vmatprep.mubr.f32.mxu0 %v16396_v58 }
 0x7e6   : > { %8973 = vmatprep.mubr.f32.mxu1 %v16396_v58  ;;  %10506 = vmatprep.subr.msk.mxu0 %vm8205_vm6, %v8195_v41 }
 0x7e7   : > { %10509 = vmatprep.subr.msk.mxu1 %vm8205_vm6, %v8196_v35  ;;  %10502 = vmatmul.mubr.msk.f32.vlgmr.msra.gmra.mrb[70].mxu0 %vm8201_vm7, %v15919_v45 }
 0x7e8   : > { %10505 = vmatmul.mubr.msk.f32.vlgmr.msra.gmra.mrb[72].mxu1 %vm8201_vm7, %v15919_v45  ;;  %10507 = vmatpush1.msk.msra.mxu0 %vm8205_vm6, %v8163_v2 }
 0x7e9   : > { %10510 = vmatpush1.msk.msra.mxu1 %vm8205_vm6, %v8164_v49  ;;  %9044 = vmatprep.mubr.f32.mxu0 %v16396_v58 }
 0x7ea   : > { %9115 = vmatprep.mubr.f32.mxu1 %v16396_v58  ;;  %10512 = vmatprep.subr.msk.mxu0 %vm8205_vm6, %v8197_v22 }
 0x7eb   : > { %10515 = vmatprep.subr.msk.mxu1 %vm8205_vm6, %v8198_v28  ;;  %10508 = vmatmul.mubr.msk.f32.vlgmr.msra.gmra.mrb[72].mxu0 %vm8201_vm7, %v15919_v45 }
 0x7ec   : > { %10511 = vmatmul.mubr.msk.f32.vlgmr.msra.gmra.mrb[74].mxu1 %vm8201_vm7, %v15919_v45  ;;  %10513 = vmatpush1.msk.msra.mxu0 %vm8205_vm6, %v8165_v3 }
 0x7ed   : > { %10516 = vmatpush1.msk.msra.mxu1 %vm8205_vm6, %v8166_v61  ;;  %9186 = vmatprep.mubr.f32.mxu0 %v16396_v58 }
 0x7ee   : > { %9257 = vmatprep.mubr.f32.mxu1 %v16396_v58  ;;  %10518 = vmatprep.subr.msk.mxu0 %vm8205_vm6, %v8199_v29 }
 0x7ef   : > { %10521 = vmatprep.subr.msk.mxu1 %vm8205_vm6, %v8200_v11  ;;  %10514 = vmatmul.mubr.msk.f32.vlgmr.msra.gmra.mrb[74].mxu0 %vm8201_vm7, %v15919_v45 }
 0x7f0   : > { %10517 = vmatmul.mubr.msk.f32.vlgmr.msra.gmra.mrb[76].mxu1 %vm8201_vm7, %v15919_v45  ;;  %10519 = vmatpush1.msk.msra.mxu0 %vm8205_vm6, %v8167_v51 }
 0x7f1   : > { %10522 = vmatpush1.msk.msra.mxu1 %vm8205_vm6, %v8168_v47  ;;  %9328 = vmatprep.mubr.f32.mxu0 %v16396_v58 }
 0x7f2   : > { %9399 = vmatprep.mubr.f32.mxu1 %v16396_v58 }
 0x7f3   : > { %10520 = vmatmul.mubr.msk.f32.vlgmr.msra.gmra.mrb[76].mxu0 %vm8201_vm7, %v15919_v45 }
 0x7f4   : > { %10523 = vmatmul.mubr.msk.f32.vlgmr.msra.gmra.mrb[78].mxu1 %vm8201_vm7, %v15919_v45 }
 0x7f5   : > { %13202 = shalt.err (!%p13199_p3)
}
 0x7f6   : > { %s13203_s23 = scalar_lea.hbm %s16032_s7, 512  ;;  %s13207_s27 = scalar_lea.hbm %s16319_s18, 1024 }
 0x7f7   : > { %p13204_p4 = scmp.ne.s32.totalorder %s16032_s7, %s13203_s23  ;;  %p13208_p8 = scmp.lt.u32.totalorder %s16032_s7, %s16319_s18 }
 0x7f8   : > { %p13209_p11 = scmp.lt.u32.totalorder %s13207_s27, %s13203_s23  ;;  %p13211_p1 = scmp.lt.u32.totalorder %s13203_s23, %s16032_s7 }
 0x7f9   : > { %p13205_p7 = pnand %p13204_p4, %p16410_p6 }
 0x7fa   : > { %p13210_p13 = por %p13209_p11, %p13208_p8 }
 0x7fb   : > { %p13206_p12 = pneg %p13205_p7 }
 0x7fc   : > { %p13212_p5 = por %p13211_p1, %p13210_p13 }
 0x7fe   : > { %p13213_p9 = pnand %p13212_p5, %p13206_p12 }
 0x800   : > { %13216 = shalt.err (!%p13213_p9)
}
 0x801   : > { %12921 = dma.vmem_to_hbm [thread:$0]  (%p16410_p6), %s10016_s0, 512, %s16032_s7, %s16037_s26  }
 0x802   : > { %s858_s6 = scalar_lea.vmem %s16317_s16, %s13723_s28  ;;  %s16411_s27 = sld [smem:[#allocation51_spill]] }
 0x803   : > { %s10001_s2 = sshll.u32 %s13894_s4, 4  ;;  %s16413_s10 = sld [smem:[#allocation52_spill]]  ;;  %s16074_s2 = int_to_ptr.vmem [resolvable:$true] %s10001_s2 }
 0x804   : > { %s10029_s7 = sshll.u32 %s15825_s21, 4  ;;  %s16414_s0 = sand.u32 1, %s13379_s25   ;;  %s10030_s7 = int_to_ptr.vmem [resolvable:$true] %s10029_s7 }
 0x805   : > { %s9955_s1 = scalar_lea.sflag [#allocation4], %s16414_s0  ;;  %s13217_s22 = scalar_lea.vmem %s16074_s2, 512 }
 0x806   : > { %p13218_p10 = scmp.ne.s32.totalorder %s16074_s2, %s13217_s22  ;;  %s13400_s4 = smov [#allocation13]  }
 0x807   : > { %s13221_s23 = sshll.u32 %s13400_s4, 4  ;;  %s13222_s23 = int_to_ptr.vmem [resolvable:$false] %s13221_s23 }
 0x808   : > { %s16412_s19 = smov %s16411_s27  ;;  %s16065_s29 = scalar_lea.hbm %s16411_s27, %s16026_s30 }
 0x809   : > { %s16072_s11 = scalar_lea.hbm %s16413_s10, %s16026_s30  ;;  %p13219_p2 = pnand %p13218_p10, %p16410_p6 }
 0x80a   : > { %s13223_s8 = scalar_lea.vmem %s13222_s23, 1024  ;;  %p13224_p3 = scmp.lt.s32.totalorder %s16074_s2, %s13222_s23 }
 0x80b   : > { %p13220_p0 = pneg %p13219_p2  ;;  %p13225_p4 = scmp.lt.s32.totalorder %s13223_s8, %s13217_s22 }
 0x80d   : > { %p13226_p7 = por %p13225_p4, %p13224_p3 }
 0x80f   : > { %p13227_p12 = pnand %p13226_p7, %p13220_p0 }
 0x866   : > { %v8149_v58 = vpop.xlane.xlu1 %8148 }
 0x867   : > { %13230 = shalt.err (!%p13227_p12)
}
 0x868   : > { %s13231_s9 = scalar_lea.hbm %s16065_s29, 512  ;;  %s13235_s0 = scalar_lea.hbm %s16412_s19, 1024 }
 0x869   : > { %p13232_p8 = scmp.ne.s32.totalorder %s16065_s29, %s13231_s9  ;;  %p13236_p1 = scmp.lt.u32.totalorder %s16065_s29, %s16412_s19 }
 0x86a   : > { %p13237_p5 = scmp.lt.u32.totalorder %s13235_s0, %s13231_s9  ;;  %p13239_p10 = scmp.lt.u32.totalorder %s13231_s9, %s16065_s29 }
 0x86b   : > { %p13233_p11 = pnand %p13232_p8, %p16410_p6 }
 0x86c   : > { %p13238_p9 = por %p13237_p5, %p13236_p1 }
 0x86d   : > { %p13234_p13 = pneg %p13233_p11 }
 0x86e   : > { %p13240_p2 = por %p13239_p10, %p13238_p9 }
 0x870   : > { %p13241_p0 = pnand %p13240_p2, %p13234_p13 }
 0x872   : > { %13244 = shalt.err (!%p13241_p0)
}
 0x873   : > { %12920 = dma.vmem_to_hbm [thread:$0]  (%p16410_p6), %s16074_s2, 512, %s16065_s29, %s9955_s1   ;;  %v8151_v8 = vmul.f32 0.25, %v8149_v58 }
 0x874   : > { %s13245_s22 = scalar_lea.vmem %s10030_s7, 512  ;;  %s13401_s8 = smov [#allocation16]  }
 0x875   : > { %p13246_p3 = scmp.ne.s32.totalorder %s10030_s7, %s13245_s22  ;;  %s13249_s9 = sshll.u32 %s13401_s8, 4  ;;  %s13250_s9 = int_to_ptr.vmem [resolvable:$false] %s13249_s9 }
 0x876   : > { %s13251_s17 = scalar_lea.vmem %s13250_s9, 1024  ;;  %p13252_p12 = scmp.lt.s32.totalorder %s10030_s7, %s13250_s9 }
 0x877   : > { %p13247_p4 = pnand %p13246_p3, %p16410_p6  ;;  %p13253_p8 = scmp.lt.s32.totalorder %s13251_s17, %s13245_s22 }
 0x879   : > { %p13248_p7 = pneg %p13247_p4  ;;  %p13254_p11 = por %p13253_p8, %p13252_p12 }
 0x87b   : > { %p13255_p13 = pnand %p13254_p11, %p13248_p7 }
 0x87d   : > { %13258 = shalt.err (!%p13255_p13)
}
 0x87e   : > { %s13259_s21 = scalar_lea.hbm %s16072_s11, 512  ;;  %s13263_s1 = scalar_lea.hbm %s16413_s10, 1024 }
 0x87f   : > { %p13260_p1 = scmp.ne.s32.totalorder %s16072_s11, %s13259_s21  ;;  %p13264_p10 = scmp.lt.u32.totalorder %s16072_s11, %s16413_s10 }
 0x880   : > { %p13265_p2 = scmp.lt.u32.totalorder %s13263_s1, %s13259_s21  ;;  %p13267_p3 = scmp.lt.u32.totalorder %s13259_s21, %s16072_s11 }
 0x881   : > { %p13261_p5 = pnand %p13260_p1, %p16410_p6 }
 0x882   : > { %p13266_p0 = por %p13265_p2, %p13264_p10 }
 0x883   : > { %p13262_p9 = pneg %p13261_p5 }
 0x884   : > { %p13268_p4 = por %p13267_p3, %p13266_p0 }
 0x886   : > { %p13269_p7 = pnand %p13268_p4, %p13262_p9 }
 0x888   : > { %13272 = shalt.err (!%p13269_p7)
}
 0x889   : > { %12922 = dma.vmem_to_hbm [thread:$0]  (%p16410_p6), %s10030_s7, 512, %s16072_s11, %s16037_s26   ;;  %8152 = vst.msk [vmem:[%s858_s6] sm:$0x1] %vm1016_vm1, %v8151_v8 }
 0x88a   : > { %s16157_s11 = scalar_lea.vmem [#allocation17], %s13886_s24  ;;  %s16167_s28 = scalar_lea.vmem [#allocation19], %s13886_s24 }
 0x88b   : > { %s10043_s24 = sshll.u32 %s16157_s11, 4  ;;  %s16415_s7 = sld [smem:[#allocation53_spill]]  ;;  %s16223_s24 = int_to_ptr.vmem [resolvable:$true] %s10043_s24 }
 0x88c   : > { %s10057_s8 = sshll.u32 %s16167_s28, 4  ;;  %s16416_s9 = sand.u32 1, %s13535_s3   ;;  %s10058_s8 = int_to_ptr.vmem [resolvable:$true] %s10057_s8 }
 0x88d   : > { %s16231_s17 = scalar_lea.sflag [#allocation18], %s16416_s9  ;;  %s13273_s21 = scalar_lea.vmem %s16223_s24, 512 }
 0x88e   : > { %p13274_p12 = scmp.ne.s32.totalorder %s16223_s24, %s13273_s21  ;;  %s13402_s2 = smov [#allocation17]  }
 0x88f   : > { %s13277_s29 = sshll.u32 %s13402_s2, 4  ;;  %s13278_s29 = int_to_ptr.vmem [resolvable:$false] %s13277_s29 }
 0x890   : > { %p13275_p8 = pnand %p13274_p12, %p16410_p6  ;;  %s13279_s1 = scalar_lea.vmem %s13278_s29, 1024 }
 0x891   : > { %s16221_s22 = scalar_lea.hbm %s16415_s7, %s16026_s30  ;;  %p13280_p13 = scmp.lt.s32.totalorder %s16223_s24, %s13278_s29 }
 0x892   : > { %p13276_p11 = pneg %p13275_p8  ;;  %p13281_p1 = scmp.lt.s32.totalorder %s13279_s1, %s13273_s21 }
 0x894   : > { %p13282_p5 = por %p13281_p1, %p13280_p13 }
 0x896   : > { %p13283_p9 = pnand %p13282_p5, %p13276_p11 }
 0x8aa   : > { %v8336_v27 = vpop.f32.mrb[62].mxu0  ;;  %v8407_v7 = vpop.f32.mrb[64].mxu1 }
 0x8ab   : > { %v9642_v17 = vadd.f32 %v8336_v27, %v15769_v62  ;;  %v9644_v44 = vadd.f32 %v8407_v7, %v15772_v6  ;;  %v8338_v52 = vpop.f32.mrb[63].mxu0  ;;  %v8409_v45 = vpop.f32.mrb[65].mxu1 }
 0x8ac   : > { %v9438_v54 = vcombine.low %v8336_v27, %v8338_v52  ;;  %v9643_v5 = vadd.f32 %v8338_v52, %v15775_v36  ;;  %v9439_v57 = vcombine.low %v8407_v7, %v8409_v45  ;;  %v9645_v19 = vadd.f32 %v8409_v45, %v15778_v20 }
 0x8ad   : > { %v9674_v25 = vmul.f32 0.25, %v9642_v17  ;;  %v9676_v55 = vmul.f32 0.25, %v9644_v44 }
 0x8ae   : > { %v9448_v32 = vrot.slane %v9438_v54, %v13843_v9  ;;  %v9675_v4 = vmul.f32 0.25, %v9643_v5  ;;  %v9455_v12 = vrot.slane %v9439_v57, %v13843_v9  ;;  %v9677_v59 = vmul.f32 0.25, %v9645_v19  ;;  %v8478_v10 = vpop.f32.mrb[64].mxu0 }
 0x8af   : > { %v9646_v62 = vadd.f32 %v8478_v10, %v15783_v43  ;;  %v8549_v6 = vpop.f32.mrb[66].mxu1  ;;  %v8480_v2 = vpop.f32.mrb[65].mxu0 }
 0x8b0   : > { %v9738_v49 = vcombine.low %v9674_v25, %v9675_v4  ;;  %v9470_v41 = vcombine.low %v9448_v32, %v9455_v12  ;;  %v9739_v35 = vcombine.low %v9676_v55, %v9677_v59  ;;  %v9648_v36 = vadd.f32 %v8549_v6, %v15786_v26  ;;  %v8551_v3 = vpop.f32.mrb[67].mxu1 }
 0x8b1   : > { %v9678_v20 = vmul.f32 0.25, %v9646_v62  ;;  %v9440_v61 = vcombine.low %v8478_v10, %v8480_v2  ;;  %v9647_v22 = vadd.f32 %v8480_v2, %v15789_v15  ;;  %v9441_v28 = vcombine.low %v8549_v6, %v8551_v3 }
 0x8b2   : > { %v9748_v51 = vrot.slane %v9738_v49, %v13843_v9  ;;  %v9478_v47 = vrot.slane %v9470_v41, %v13843_v9  ;;  %v9755_v29 = vrot.slane %v9739_v35, %v13843_v9  ;;  %v9680_v43 = vmul.f32 0.25, %v9648_v36  ;;  %v8620_v11 = vpop.f32.mrb[66].mxu0 }
 0x8b3   : > { %v9462_v58 = vrot.slane %v9440_v61, %v13843_v9  ;;  %v9679_v8 = vmul.f32 0.25, %v9647_v22  ;;  %v9469_v27 = vrot.slane %v9441_v28, %v13843_v9  ;;  %v9649_v26 = vadd.f32 %v8551_v3, %v15792_v24  ;;  %v8691_v7 = vpop.f32.mrb[68].mxu1  ;;  %v8622_v17 = vpop.f32.mrb[67].mxu0 }
 0x8b4   : > { %v9770_v44 = vcombine.low %v9748_v51, %v9755_v29  ;;  %v9650_v15 = vadd.f32 %v8620_v11, %v15797_v16  ;;  %v9652_v52 = vadd.f32 %v8691_v7, %v15800_v21  ;;  %v9487_v45 = vcombine.low %v8620_v11, %v8622_v17  ;;  %v8693_v54 = vpop.f32.mrb[69].mxu1 }
 0x8b5   : > { %v9740_v5 = vcombine.low %v9678_v20, %v9679_v8  ;;  %v9471_v57 = vcombine.low %v9462_v58, %v9469_v27  ;;  %v9681_v19 = vmul.f32 0.25, %v9649_v26  ;;  %v9651_v25 = vadd.f32 %v8622_v17, %v15803_v53 }
 0x8b6   : > { %v9778_v55 = vrot.slane %v9770_v44, %v13843_v9  ;;  %v9682_v32 = vmul.f32 0.25, %v9650_v15  ;;  %v9684_v4 = vmul.f32 0.25, %v9652_v52  ;;  %v9497_v24 = vrot.slane %v9487_v45, %v13843_v9  ;;  %v8762_v12 = vpop.f32.mrb[68].mxu0 }
 0x8b7   : > { %v9762_v59 = vrot.slane %v9740_v5, %v13843_v9  ;;  %v9485_v16 = vrot.slane %v9471_v57, %v13843_v9  ;;  %v9741_v10 = vcombine.low %v9680_v43, %v9681_v19  ;;  %v9683_v21 = vmul.f32 0.25, %v9651_v25  ;;  %v8833_v62 = vpop.f32.mrb[70].mxu1  ;;  %v8764_v6 = vpop.f32.mrb[69].mxu0 }
 0x8b8   : > { %v9488_v2 = vcombine.low %v8691_v7, %v8693_v54  ;;  %v9653_v49 = vadd.f32 %v8693_v54, %v15806_v60  ;;  %v9654_v53 = vadd.f32 %v8762_v12, %v15813_v33  ;;  %v9656_v41 = vadd.f32 %v8833_v62, %v15816_v34  ;;  %v8835_v35 = vpop.f32.mrb[71].mxu1 }
 0x8b9   : > { %v9486_v36 = vcombine.low %v9478_v47, %v9485_v16  ;;  %v9769_v3 = vrot.slane %v9741_v10, %v13843_v9  ;;  %v9787_v20 = vcombine.low %v9682_v32, %v9683_v21  ;;  %v9489_v61 = vcombine.low %v8762_v12, %v8764_v6 }
 0x8ba   : > { %v9504_v22 = vrot.slane %v9488_v2, %v13843_v9  ;;  %v9685_v28 = vmul.f32 0.25, %v9653_v49  ;;  %v9686_v51 = vmul.f32 0.25, %v9654_v53  ;;  %v9688_v29 = vmul.f32 0.25, %v9656_v41  ;;  %v8904_v43 = vpop.f32.mrb[70].mxu0 }
 0x8bb   : > { %v9771_v11 = vcombine.low %v9762_v59, %v9769_v3  ;;  %v9797_v60 = vrot.slane %v9787_v20, %v13843_v9  ;;  %v9511_v33 = vrot.slane %v9489_v61, %v13843_v9  ;;  %v9655_v34 = vadd.f32 %v8764_v6, %v15819_v48  ;;  %v8975_v58 = vpop.f32.mrb[72].mxu1  ;;  %v8906_v8 = vpop.f32.mrb[71].mxu0  ;;  %9638 = vst [vmem:[%s16157_s11] sm:$0xff] %v9486_v36 }
 0x8bc   : > { %v9519_v47 = vcombine.low %v9497_v24, %v9504_v22  ;;  %v9788_v27 = vcombine.low %v9684_v4, %v9685_v28  ;;  %v9490_v26 = vcombine.low %v8833_v62, %v8835_v35  ;;  %v9657_v7 = vadd.f32 %v8835_v35, %v15822_v1  ;;  %v8977_v17 = vpop.f32.mrb[73].mxu1 }
 0x8bd   : > { %v9785_v44 = vrot.slane %v9771_v11, %v13843_v9  ;;  %v9687_v15 = vmul.f32 0.25, %v9655_v34  ;;  %v9658_v52 = vadd.f32 %v8904_v43, %v15831_v46  ;;  %v9660_v45 = vadd.f32 %v8975_v58, %v15834_v0 }
 0x8be   : > { %v9804_v48 = vrot.slane %v9788_v27, %v13843_v9  ;;  %v9518_v54 = vrot.slane %v9490_v26, %v13843_v9  ;;  %v9689_v5 = vmul.f32 0.25, %v9657_v7  ;;  %v9046_v57 = vpop.f32.mrb[72].mxu0  ;;  %v9536_v10 = vcombine.low %v8904_v43, %v8906_v8 }
 0x8bf   : > { %v9786_v19 = vcombine.low %v9778_v55, %v9785_v44  ;;  %v9789_v25 = vcombine.low %v9686_v51, %v9687_v15  ;;  %v9690_v32 = vmul.f32 0.25, %v9658_v52  ;;  %v9692_v4 = vmul.f32 0.25, %v9660_v45  ;;  %v9117_v1 = vpop.f32.mrb[74].mxu1  ;;  %v9048_v24 = vpop.f32.mrb[73].mxu0 }
 0x8c0   : > { %v9819_v12 = vcombine.low %v9797_v60, %v9804_v48  ;;  %v9520_v59 = vcombine.low %v9511_v33, %v9518_v54  ;;  %v9790_v16 = vcombine.low %v9688_v29, %v9689_v5  ;;  %v9119_v46 = vpop.f32.mrb[75].mxu1  ;;  %v9659_v21 = vadd.f32 %v8906_v8, %v15837_v39 }
 0x8c1   : > { %9938 = vst [vmem:[%s16167_s28] sm:$0xff] %v9786_v19  ;;  %v9811_v0 = vrot.slane %v9789_v25, %v13843_v9  ;;  %v9537_v62 = vcombine.low %v8975_v58, %v8977_v17  ;;  %v9661_v55 = vadd.f32 %v8977_v17, %v15840_v63  ;;  %v9527_v6 = vrot.slane %v9519_v47, %v13843_v9 }
 0x8c2   : > { %v9534_v2 = vrot.slane %v9520_v59, %v13843_v9  ;;  %v9818_v49 = vrot.slane %v9790_v16, %v13843_v9  ;;  %v9546_v53 = vrot.slane %v9536_v10, %v13843_v9  ;;  %v9188_v41 = vpop.f32.mrb[74].mxu0  ;;  %v9691_v35 = vmul.f32 0.25, %v9659_v21 }
 0x8c3   : > { %v9553_v36 = vrot.slane %v9537_v62, %v13843_v9  ;;  %v9693_v3 = vmul.f32 0.25, %v9661_v55  ;;  %v9662_v20 = vadd.f32 %v9046_v57, %v15847_v14  ;;  %v9259_v61 = vpop.f32.mrb[76].mxu1  ;;  %v9190_v39 = vpop.f32.mrb[75].mxu0  ;;  %v9664_v28 = vadd.f32 %v9117_v1, %v15850_v30 }
 0x8c4   : > { %v9535_v22 = vcombine.low %v9527_v6, %v9534_v2  ;;  %v9820_v63 = vcombine.low %v9811_v0, %v9818_v49  ;;  %v9538_v51 = vcombine.low %v9046_v57, %v9048_v24  ;;  %v9261_v29 = vpop.f32.mrb[77].mxu1  ;;  %v9827_v43 = vrot.slane %v9819_v12, %v13843_v9 }
 0x8c5   : > { %v9836_v11 = vcombine.low %v9690_v32, %v9691_v35  ;;  %v9568_v60 = vcombine.low %v9546_v53, %v9553_v36  ;;  %v9837_v33 = vcombine.low %v9692_v4, %v9693_v3  ;;  %v9694_v58 = vmul.f32 0.25, %v9662_v20 }
 0x8c6   : > { %v9834_v34 = vrot.slane %v9820_v63, %v13843_v9  ;;  %v9696_v8 = vmul.f32 0.25, %v9664_v28  ;;  %v9663_v14 = vadd.f32 %v9048_v24, %v15853_v18  ;;  %v9330_v47 = vpop.f32.mrb[76].mxu0  ;;  %9639 = vst [vmem:[%s16157_s11 + $0x8] sm:$0xff] %v9535_v22  ;;  %v9560_v26 = vrot.slane %v9538_v51, %v13843_v9 }
 0x8c7   : > { %v9846_v27 = vrot.slane %v9836_v11, %v13843_v9  ;;  %v9853_v30 = vrot.slane %v9837_v33, %v13843_v9  ;;  %v9539_v7 = vcombine.low %v9117_v1, %v9119_v46  ;;  %v9401_v17 = vpop.f32.mrb[78].mxu1  ;;  %v9332_v44 = vpop.f32.mrb[77].mxu0  ;;  %v9665_v45 = vadd.f32 %v9119_v46, %v15856_v56 }
 0x8c8   : > { %v9835_v15 = vcombine.low %v9827_v43, %v9834_v34  ;;  %v9695_v52 = vmul.f32 0.25, %v9663_v14  ;;  %v9666_v48 = vadd.f32 %v9188_v41, %v15862_v23  ;;  %v9403_v54 = vpop.f32.mrb[79].mxu1  ;;  %v9668_v57 = vadd.f32 %v9259_v61, %v15865_v37 }
 0x8c9   : > { %v9868_v18 = vcombine.low %v9846_v27, %v9853_v30  ;;  %v9567_v5 = vrot.slane %v9539_v7, %v13843_v9  ;;  %v9585_v19 = vcombine.low %v9188_v41, %v9190_v39  ;;  %v9697_v32 = vmul.f32 0.25, %v9665_v45 }
 0x8ca   : > { %9939 = vst [vmem:[%s16167_s28 + $0x8] sm:$0xff] %v9835_v15  ;;  %v9838_v25 = vcombine.low %v9694_v58, %v9695_v52  ;;  %v9698_v4 = vmul.f32 0.25, %v9666_v48  ;;  %v9667_v1 = vadd.f32 %v9190_v39, %v15868_v40  ;;  %v9576_v24 = vrot.slane %v9568_v60, %v13843_v9 }
 0x8cb   : > { %v9569_v12 = vcombine.low %v9560_v26, %v9567_v5  ;;  %v9700_v59 = vmul.f32 0.25, %v9668_v57  ;;  %v9595_v56 = vrot.slane %v9585_v19, %v13843_v9  ;;  %v9839_v16 = vcombine.low %v9696_v8, %v9697_v32 }
 0x8cc   : > { %v9860_v23 = vrot.slane %v9838_v25, %v13843_v9  ;;  %v9699_v10 = vmul.f32 0.25, %v9667_v1  ;;  %v9586_v46 = vcombine.low %v9259_v61, %v9261_v29  ;;  %v9669_v0 = vadd.f32 %v9261_v29, %v15871_v42 }
 0x8cd   : > { %v9583_v37 = vrot.slane %v9569_v12, %v13843_v9  ;;  %v9670_v21 = vadd.f32 %v9330_v47, %v15878_v50  ;;  %v9672_v62 = vadd.f32 %v9401_v17, %v15881_v31  ;;  %v9867_v40 = vrot.slane %v9839_v16, %v13843_v9 }
 0x8ce   : > { %v9885_v55 = vcombine.low %v9698_v4, %v9699_v10  ;;  %v9602_v6 = vrot.slane %v9586_v46, %v13843_v9  ;;  %v9587_v2 = vcombine.low %v9330_v47, %v9332_v44  ;;  %v9701_v53 = vmul.f32 0.25, %v9669_v0 }
 0x8cf   : > { %v9584_v49 = vcombine.low %v9576_v24, %v9583_v37  ;;  %v9702_v41 = vmul.f32 0.25, %v9670_v21  ;;  %v9704_v35 = vmul.f32 0.25, %v9672_v62  ;;  %v9869_v36 = vcombine.low %v9860_v23, %v9867_v40 }
 0x8d0   : > { %v9895_v3 = vrot.slane %v9885_v55, %v13843_v9  ;;  %v9617_v20 = vcombine.low %v9595_v56, %v9602_v6  ;;  %v9609_v42 = vrot.slane %v9587_v2, %v13843_v9  ;;  %v9886_v50 = vcombine.low %v9700_v59, %v9701_v53 }
 0x8d1   : > { %v9671_v31 = vadd.f32 %v9332_v44, %v15884_v13  ;;  %v9588_v61 = vcombine.low %v9401_v17, %v9403_v54  ;;  %v9673_v39 = vadd.f32 %v9403_v54, %v15887_v38  ;;  %9640 = vst [vmem:[%s16157_s11 + $0x10] sm:$0xff] %v9584_v49  ;;  %v9876_v22 = vrot.slane %v9868_v18, %v13843_v9 }
 0x8d2   : > { %v9883_v63 = vrot.slane %v9869_v36, %v13843_v9  ;;  %v9902_v28 = vrot.slane %v9886_v50, %v13843_v9  ;;  %v9625_v34 = vrot.slane %v9617_v20, %v13843_v9 }
 0x8d3   : > { %v9703_v51 = vmul.f32 0.25, %v9671_v31  ;;  %v9616_v29 = vrot.slane %v9588_v61, %v13843_v9  ;;  %v9705_v43 = vmul.f32 0.25, %v9673_v39 }
 0x8d4   : > { %v9884_v11 = vcombine.low %v9876_v22, %v9883_v63  ;;  %v9917_v60 = vcombine.low %v9895_v3, %v9902_v28 }
 0x8d5   : > { %v9887_v13 = vcombine.low %v9702_v41, %v9703_v51  ;;  %v9618_v33 = vcombine.low %v9609_v42, %v9616_v29  ;;  %v9888_v38 = vcombine.low %v9704_v35, %v9705_v43 }
 0x8d6   : > { %9940 = vst [vmem:[%s16167_s28 + $0x10] sm:$0xff] %v9884_v11  ;;  %v9925_v30 = vrot.slane %v9917_v60, %v13843_v9 }
 0x8d7   : > { %v9909_v58 = vrot.slane %v9887_v13, %v13843_v9  ;;  %v9632_v8 = vrot.slane %v9618_v33, %v13843_v9  ;;  %v9916_v14 = vrot.slane %v9888_v38, %v13843_v9 }
 0x8d9   : > { %v9633_v47 = vcombine.low %v9625_v34, %v9632_v8  ;;  %v9918_v27 = vcombine.low %v9909_v58, %v9916_v14 }
 0x8db   : > { %9641 = vst [vmem:[%s16157_s11 + $0x18] sm:$0xff] %v9633_v47  ;;  %v9932_v26 = vrot.slane %v9918_v27, %v13843_v9 }
 0x8dc   : > { %13286 = shalt.err (!%p13283_p9)
}
 0x8dd   : > { %s13287_s3 = scalar_lea.hbm %s16221_s22, 512  ;;  %s13291_s4 = scalar_lea.hbm %s16415_s7, 1024 }
 0x8de   : > { %p13288_p10 = scmp.ne.s32.totalorder %s16221_s22, %s13287_s3  ;;  %p13292_p3 = scmp.lt.u32.totalorder %s16221_s22, %s16415_s7 }
 0x8df   : > { %p13293_p4 = scmp.lt.u32.totalorder %s13291_s4, %s13287_s3  ;;  %p13295_p12 = scmp.lt.u32.totalorder %s13287_s3, %s16221_s22 }
 0x8e0   : > { %p13289_p2 = pnand %p13288_p10, %p16410_p6 }
 0x8e1   : > { %p13294_p7 = por %p13293_p4, %p13292_p3 }
 0x8e2   : > { %p13290_p0 = pneg %p13289_p2 }
 0x8e3   : > { %p13296_p8 = por %p13295_p12, %p13294_p7 }
 0x8e5   : > { %p13297_p11 = pnand %p13296_p8, %p13290_p0 }
 0x8e7   : > { %13300 = shalt.err (!%p13297_p11)
}
 0x8e8   : > { %12923 = dma.vmem_to_hbm [thread:$0]  (%p16410_p6), %s16223_s24, 512, %s16221_s22, %s16231_s17   ;;  %v9933_v9 = vcombine.low %v9925_v30, %v9932_v26 }
 0x8e9   : > { %s16417_s9 = sld [smem:[#allocation54_spill]]  ;;  %s13301_s2 = scalar_lea.vmem %s10058_s8, 512 }
 0x8ea   : > { %9941 = vst [vmem:[%s16167_s28 + $0x18] sm:$0xff] %v9933_v9  ;;  %p13302_p13 = scmp.ne.s32.totalorder %s10058_s8, %s13301_s2  ;;  %s13403_s29 = smov [#allocation19]  }
 0x8eb   : > { %s13305_s1 = sshll.u32 %s13403_s29, 4  ;;  %s13306_s1 = int_to_ptr.vmem [resolvable:$false] %s13305_s1 }
 0x8ec   : > { %p13303_p1 = pnand %p13302_p13, %p16410_p6  ;;  %s13307_s3 = scalar_lea.vmem %s13306_s1, 1024 }
 0x8ed   : > { %p13308_p9 = scmp.lt.s32.totalorder %s10058_s8, %s13306_s1  ;;  %p13309_p10 = scmp.lt.s32.totalorder %s13307_s3, %s13301_s2 }
 0x8ee   : > { %p13304_p5 = pneg %p13303_p1 }
 0x8ef   : > { %s16259_s21 = scalar_lea.hbm %s16417_s9, %s16026_s30  ;;  %p13310_p2 = por %p13309_p10, %p13308_p9 }
 0x8f1   : > { %p13311_p0 = pnand %p13310_p2, %p13304_p5 }
 0x8f3   : > { %13314 = shalt.err (!%p13311_p0)
}
 0x8f4   : > { %s13315_s30 = scalar_lea.hbm %s16259_s21, 512  ;;  %s13319_s22 = scalar_lea.hbm %s16417_s9, 1024 }
 0x8f5   : > { %p13316_p3 = scmp.ne.s32.totalorder %s16259_s21, %s13315_s30  ;;  %p13320_p12 = scmp.lt.u32.totalorder %s16259_s21, %s16417_s9 }
 0x8f6   : > { %p13321_p8 = scmp.lt.u32.totalorder %s13319_s22, %s13315_s30  ;;  %p13323_p13 = scmp.lt.u32.totalorder %s13315_s30, %s16259_s21 }
 0x8f7   : > { %p13317_p4 = pnand %p13316_p3, %p16410_p6 }
 0x8f8   : > { %p13322_p11 = por %p13321_p8, %p13320_p12 }
 0x8f9   : > { %p13318_p7 = pneg %p13317_p4 }
 0x8fa   : > { %p13324_p1 = por %p13323_p13, %p13322_p11 }
 0x8fc   : > { %p13325_p5 = pnand %p13324_p1, %p13318_p7 }
 0x8fe   : > { %13328 = shalt.err (!%p13325_p5)
}
 0x8ff   : > { %12924 = dma.vmem_to_hbm [thread:$0]  (%p16410_p6), %s10058_s8, 512, %s16259_s21, %s16231_s17  }
 0x900 PF: > { %s16418_s4 = sld [smem:[#allocation29_spill]]  ;;  %s16419_s23 = sld [smem:[#allocation27_spill]] }
 0x901   : > { %s16420_s11 = sld [smem:[#allocation32_spill]] }
 0x906   : > { %p12977_p9 = scmp.ge.s32.totalorder %s16418_s4, 2  ;;  %s10093_s26 = sand.u32 1, %s16419_s23  }
 0x907   : > { %p16421_p10 = scmp.ne.s32.totalorder %s16420_s11, 0  ;;  %s10094_s6 = scalar_lea.sflag [#allocation4], %s10093_s26 }
 0x909   : > { %p12950_p2 = pnand %p12977_p9, %p16421_p10 }
 0x90b   : > { %13362 = dma.done.wait (!%p12950_p2), %s10094_s6, 512  }
 0x90c   : > { %13364 = vsyncadd (!%p12950_p2), %s10094_s6, 4294966784  ;;  %s16422_s2 = sadd.s32 4294967294, %s16418_s4  }
 0x90d   : > { %s10102_s29 = sand.u32 1, %s16422_s2  }
 0x90e   : > { %s10103_s1 = scalar_lea.sflag [#allocation15], %s10102_s29 }
 0x90f   : > { %13366 = dma.done.wait (!%p12950_p2), %s10103_s1, 1024  }
 0x910   : > { %13368 = vsyncadd (!%p12950_p2), %s10103_s1, 4294966272  ;;  %s10121_s5 = scalar_lea.sflag [#allocation18], %s10102_s29 }
 0x911   : > { %13370 = dma.done.wait (!%p12950_p2), %s10121_s5, 1024  }
 0x912   : > { %13372 = vsyncadd (!%p12950_p2), %s10121_s5, 4294966272  ;;  %s16423_s27 = sld [smem:[#allocation30_spill]]  ;;  %s16424_s8 = sld [smem:[#allocation28_spill]] }
 0x913   : > { %s16425_s26 = sld [smem:[#allocation31_spill]]  ;;  %s16426_s2 = smov %s13379_s25 }
 0x918   : > { %p42_p6 = scmp.ge.s32.totalorder %s16423_s27, 4   ;;  %s16427_s25 = smov %s16424_s8 }
 0x91a   :  { %44 = sbr.rel (!%p42_p6) target bundleno = 28 (0x1c), region = 254 }
 0x921   :  { %10135 = vsyncpa [#allocation3], 1 }
 0x922   :  { %10137 = vsyncpa [#allocation3 + $0x1], 1 }
 0x923   :  { %10138 = vsyncpa [#allocation7], 1 }
 0x924   :  { %10139 = vsyncpa [#allocation10], 1 }
 0x925   :  { %10140 = vsyncpa [#allocation4], 1 }
 0x926   :  { %10142 = vsyncpa [#allocation4 + $0x1], 1 }
 0x927   :  { %10143 = vsyncpa [#allocation15], 1 }
 0x928   :  { %10145 = vsyncpa [#allocation15 + $0x1], 1 }
 0x929   :  { %10146 = vsyncpa [#allocation18], 1 }
 0x92a   :  { %10148 = vsyncpa [#allocation18 + $0x1], 1 }
 0x92b   :  { %10149 = vsyncpa [#allocation5], 1 }
 0x92c   :  { %10151 = vsyncpa [#allocation5 + $0x1], 1 }

</bundles_post_ra>
